<compile_context>
chip_gen: v5e
topology: v5e:2x2
jax: 0.10.0
libtpu: 0.0.40
codegen_flags: <defaults>
</compile_context>

<pallas_src>
import functools
import numpy as np
import jax
import jax.numpy as jnp
from jax.experimental import pallas as pl
from jax.experimental.pallas import tpu as pltpu


def _spatial_transformer_kernel(row_ref, grid_ref, src_ref, flow_ref, o_ref,
                                *, sizes, onehot_dtype):
    """One (batch b, output-column tile j) grid step.

    row_ref:  (V, TN) int32  input-voxel row index (VMEM-resident, const map)
    grid_ref: (3, TN) f32    identity voxel coords of this output tile
    src_ref:  (1, C, V)      whole source volume (resident across j)
    flow_ref: (1, 3, TN)     flow tile
    o_ref:    (1, C, TN)     warped output tile
    """
    D, H, W = sizes

    # align_corners=True: the module's normalize and grid_sample's unnormalize
    # cancel exactly -> sample coordinate is grid + flow in voxel units.
    loc = grid_ref[...] + flow_ref[0]                          # (3, TN)

    idx = []   # per spatial dim: (i0, i1)  int32 (1, TN)
    wgt = []   # per spatial dim: (w0, w1)  f32   (1, TN), OOB-masked (zeros pad)
    for i, s in enumerate(sizes):
        p = loc[i:i + 1, :]                                    # (1, TN)
        p0f = jnp.floor(p)
        p0 = p0f.astype(jnp.int32)
        p1 = p0 + 1
        w1 = p - p0f
        w0 = 1.0 - w1
        v0 = jnp.logical_and(p0 >= 0, p0 <= s - 1).astype(jnp.float32)
        v1 = jnp.logical_and(p1 >= 0, p1 <= s - 1).astype(jnp.float32)
        idx.append((p0, p1))
        wgt.append((w0 * v0, w1 * v1))

    # W_t[v_in, p_out] = trilinear weight of input voxel v_in for output voxel
    # p_out.  One-hot built by comparing the resident row index against the
    # (1, TN) flat corner index; accumulator seeded by the first corner.
    row = row_ref[...]                                         # (V, TN) int32
    w_t = None
    for a in (0, 1):
        iz, wz = idx[0][a], wgt[0][a]
        for b in (0, 1):
            iy, wy = idx[1][b], wgt[1][b]
            for c in (0, 1):
                ix, wx = idx[2][c], wgt[2][c]
                flat = iz * (H * W) + iy * W + ix              # (1, TN) int32
                w = (wz * wy * wx).astype(onehot_dtype)        # 0 if OOB corner
                term = jnp.where(row == flat, w, jnp.zeros_like(w))
                w_t = term if w_t is None else w_t + term      # (V, TN)

    # Single MXU matmul: (C, V) @ (V, TN) -> (C, TN); bf16 operands, f32 acc.
    src = src_ref[0].astype(jnp.bfloat16)
    out = jnp.dot(src, w_t.astype(jnp.bfloat16),
                  preferred_element_type=jnp.float32)
    o_ref[0] = out.astype(o_ref.dtype)


def _pick_tile_n(V, onehot_bytes, budget_bytes=8 * 1024 * 1024, cap=1024):
    """Largest multiple of 128 that divides V, bounded by `cap` and by a VMEM
    budget for one (V, TILE_N) one-hot block."""
    max_tn = max(128, min(cap, budget_bytes // max(1, V * onehot_bytes)))
    best = None
    t = 128
    while t <= min(V, max_tn):
        if V % t == 0:
            best = t
        t += 128
    return best if best is not None else V


def spatial_transformer(src, flow, mode='bilinear'):
    """src: (B, C, D, H, W); flow: (B, 3, D, H, W). Returns warped src."""
    # TODO(synk): mode='nearest' (grid_sample nearest) not implemented.
    assert mode == 'bilinear'
    B, C, D, H, W = src.shape
    V = D * H * W
    assert V % 128 == 0, "flattened spatial size must be a multiple of 128"

    # bf16 one-hot construction on bf16-VALU chips (v6e/v7x); f32 elsewhere
    # (v5e has no bf16 VALU -> bf16 elementwise would only add converts).
    try:
        kind = jax.devices()[0].device_kind.lower()
    except Exception:  # pragma: no cover - conservative fallback
        kind = ""
    onehot_dtype = jnp.bfloat16 if ("v6" in kind or "v7" in kind) else jnp.float32
    onehot_bytes = jnp.dtype(onehot_dtype).itemsize

    tile_n = _pick_tile_n(V, onehot_bytes)
    n_j = V // tile_n

    zz, yy, xx = jnp.meshgrid(jnp.arange(D), jnp.arange(H), jnp.arange(W),
                              indexing='ij')
    ident = jnp.stack([zz, yy, xx]).astype(jnp.float32).reshape(3, V)
    row = jnp.broadcast_to(jnp.arange(V, dtype=jnp.int32)[:, None], (V, tile_n))

    src_f = src.reshape(B, C, V)
    flow_f = flow.reshape(B, 3, V)

    # Rough per-step working set -> deliberate scoped-VMEM request (clamped to
    # values valid on v5e/v6e/v7x).
    work = (V * tile_n * 4                      # resident row index
            + 2 * V * tile_n * onehot_bytes     # w_t + one live corner term
            + 2 * C * V * 4                     # src (double-buffered)
            + 4 * (3 + 3 + C) * tile_n * 4)     # grid/flow/out tiles (buffered)
    vmem_limit = int(min(max(2 * work, 16 * 1024 * 1024), 32 * 1024 * 1024))

    kernel = functools.partial(_spatial_transformer_kernel,
                               sizes=(D, H, W), onehot_dtype=onehot_dtype)
    out = pl.pallas_call(
        kernel,
        out_shape=jax.ShapeDtypeStruct((B, C, V), src.dtype),
        grid_spec=pltpu.PrefetchScalarGridSpec(
            num_scalar_prefetch=0,
            grid=(B, n_j),
            in_specs=[
                pl.BlockSpec((V, tile_n), lambda b, j: (0, 0)),       # row idx (resident)
                pl.BlockSpec((3, tile_n), lambda b, j: (0, j)),       # identity grid tile
                pl.BlockSpec((1, C, V), lambda b, j: (b, 0, 0)),      # src volume (resident over j)
                pl.BlockSpec((1, 3, tile_n), lambda b, j: (b, 0, j)), # flow tile
            ],
            out_specs=pl.BlockSpec((1, C, tile_n), lambda b, j: (b, 0, j)),
        ),
        compiler_params=pltpu.CompilerParams(
            dimension_semantics=("parallel", "parallel"),
            vmem_limit_bytes=vmem_limit),
        cost_estimate=pl.CostEstimate(
            flops=2 * B * C * V * V,
            transcendentals=0,
            bytes_accessed=4 * (2 * B * C * V + B * 3 * V) + V * tile_n * 4),
    )(row, ident, src_f, flow_f)
    return out.reshape(B, C, D, H, W)


def reference_forward(src, flow):
    """Pure-JAX port of the PyTorch forward (grid_sample, bilinear,
    align_corners=True, zeros padding)."""
    B, C, D, H, W = src.shape
    sizes = (D, H, W)
    zz, yy, xx = jnp.meshgrid(jnp.arange(D), jnp.arange(H), jnp.arange(W),
                              indexing='ij')
    ident = jnp.stack([zz, yy, xx]).astype(jnp.float32)        # (3, D, H, W)
    new_locs = ident[None] + flow                              # (B, 3, D, H, W)

    idx, wgt = [], []
    for i, s in enumerate(sizes):
        p = new_locs[:, i]
        # faithful round-trip (module normalize -> grid_sample unnormalize)
        p = 2.0 * (p / (s - 1) - 0.5)
        p = (p + 1.0) * 0.5 * (s - 1)
        f0 = jnp.floor(p)
        p0 = f0.astype(jnp.int32)
        p1 = p0 + 1
        w1 = p - f0
        w0 = 1.0 - w1
        v0 = ((p0 >= 0) & (p0 <= s - 1)).astype(jnp.float32)
        v1 = ((p1 >= 0) & (p1 <= s - 1)).astype(jnp.float32)
        idx.append((jnp.clip(p0, 0, s - 1), jnp.clip(p1, 0, s - 1)))
        wgt.append((w0 * v0, w1 * v1))

    src_flat = src.reshape(B, C, -1)
    out = jnp.zeros((B, C, D, H, W), jnp.float32)
    for a in (0, 1):
        iz, wz = idx[0][a], wgt[0][a]
        for b in (0, 1):
            iy, wy = idx[1][b], wgt[1][b]
            for c in (0, 1):
                ix, wx = idx[2][c], wgt[2][c]
                flat = (iz * (H * W) + iy * W + ix).reshape(B, 1, -1)
                vals = jnp.take_along_axis(
                    src_flat,
                    jnp.broadcast_to(flat, (B, C, flat.shape[-1])), axis=2)
                vals = vals.reshape(B, C, D, H, W)
                out = out + vals * (wz * wy * wx)[:, None]
    return out


if __name__ == "__main__":
    # Small 3-D shapes consistent with the module (voxelmorph-style use).
    B, C = 2, 4
    size = (8, 8, 8)        # V = 512 (lane-dense, multiple of 128)

    key = jax.random.PRNGKey(0)
    k1, k2 = jax.random.split(key)
    src = jax.random.normal(k1, (B, C) + size, dtype=jnp.float32)
    flow = 1.5 * jax.random.normal(k2, (B, 3) + size, dtype=jnp.float32)

    out = spatial_transformer(src, flow)
    out = jax.block_until_ready(out)

    ref = reference_forward(src, flow)
    # Tolerance absorbs the bf16 MXU operands / bf16 one-hot construction.
    np.testing.assert_allclose(np.asarray(out), np.asarray(ref),
                               rtol=5e-2, atol=5e-2)
    print("KERNEL_OK")
</pallas_src>

<mosaic_0001>
module attributes {stable_mosaic.version = 11 : i64} {
  func.func @_spatial_transformer_kernel(%arg0: i32, %arg1: i32, %arg2: memref<512x512xi32, #tpu.memory_space<vmem>>, %arg3: memref<3x512xf32, #tpu.memory_space<vmem>>, %arg4: memref<1x4x512xf32, #tpu.memory_space<vmem>>, %arg5: memref<1x3x512xf32, #tpu.memory_space<vmem>>, %arg6: memref<1x4x512xf32, #tpu.memory_space<vmem>>) attributes {dimension_semantics = [#tpu.dimension_semantics<parallel>, #tpu.dimension_semantics<parallel>], iteration_bounds = array<i64: 2, 1>, scalar_prefetch = 0 : i64, scratch_operands = 0 : i64, tpu.core_type = #tpu.core_type<tc>, window_params = [{pipeline_mode = #tpu.pipeline_mode<synchronous>, transform_indices = @transform_0, window_bounds = array<i64: 512, 512>}, {transform_indices = @transform_1, window_bounds = array<i64: 3, 512>}, {transform_indices = @transform_2, window_bounds = array<i64: 1, 4, 512>}, {transform_indices = @transform_3, window_bounds = array<i64: 1, 3, 512>}, {transform_indices = @transform_4, window_bounds = array<i64: 1, 4, 512>}]} {
    %c0 = arith.constant 0 : index
    %c0_0 = arith.constant 0 : index
    %0 = vector.load %arg3[%c0, %c0_0] : memref<3x512xf32, #tpu.memory_space<vmem>>, vector<3x512xf32>
    %c0_1 = arith.constant 0 : index
    %c0_2 = arith.constant 0 : index
    %c0_3 = arith.constant 0 : index
    %1 = vector.load %arg5[%c0_1, %c0_2, %c0_3] : memref<1x3x512xf32, #tpu.memory_space<vmem>>, vector<1x3x512xf32>
    %2 = vector.shape_cast %1 : vector<1x3x512xf32> to vector<3x512xf32>
    %3 = arith.addf %0, %2 : vector<3x512xf32>
    %4 = vector.extract_strided_slice %3 {offsets = [0, 0], sizes = [1, 512], strides = [1, 1]} : vector<3x512xf32> to vector<1x512xf32>
    %5 = math.floor %4 : vector<1x512xf32>
    %6 = arith.fptosi %5 : vector<1x512xf32> to vector<1x512xi32>
    %c1_i32 = arith.constant 1 : i32
    %7 = vector.broadcast %c1_i32 : i32 to vector<1x512xi32>
    %8 = arith.addi %6, %7 : vector<1x512xi32>
    %9 = arith.subf %4, %5 : vector<1x512xf32>
    %cst = arith.constant 1.000000e+00 : f32
    %10 = vector.broadcast %cst : f32 to vector<1x512xf32>
    %11 = arith.subf %10, %9 : vector<1x512xf32>
    %c0_i32 = arith.constant 0 : i32
    %12 = vector.broadcast %c0_i32 : i32 to vector<1x512xi32>
    %13 = arith.cmpi sge, %6, %12 : vector<1x512xi32>
    %c7_i32 = arith.constant 7 : i32
    %14 = vector.broadcast %c7_i32 : i32 to vector<1x512xi32>
    %15 = arith.cmpi sle, %6, %14 : vector<1x512xi32>
    %16 = arith.andi %13, %15 : vector<1x512xi1>
    %17 = arith.extui %16 : vector<1x512xi1> to vector<1x512xi32>
    %18 = arith.sitofp %17 : vector<1x512xi32> to vector<1x512xf32>
    %c0_i32_4 = arith.constant 0 : i32
    %19 = vector.broadcast %c0_i32_4 : i32 to vector<1x512xi32>
    %20 = arith.cmpi sge, %8, %19 : vector<1x512xi32>
    %c7_i32_5 = arith.constant 7 : i32
    %21 = vector.broadcast %c7_i32_5 : i32 to vector<1x512xi32>
    %22 = arith.cmpi sle, %8, %21 : vector<1x512xi32>
    %23 = arith.andi %20, %22 : vector<1x512xi1>
    %24 = arith.extui %23 : vector<1x512xi1> to vector<1x512xi32>
    %25 = arith.sitofp %24 : vector<1x512xi32> to vector<1x512xf32>
    %26 = arith.mulf %11, %18 : vector<1x512xf32>
    %27 = arith.mulf %9, %25 : vector<1x512xf32>
    %28 = vector.extract_strided_slice %3 {offsets = [1, 0], sizes = [1, 512], strides = [1, 1]} : vector<3x512xf32> to vector<1x512xf32>
    %29 = math.floor %28 : vector<1x512xf32>
    %30 = arith.fptosi %29 : vector<1x512xf32> to vector<1x512xi32>
    %c1_i32_6 = arith.constant 1 : i32
    %31 = vector.broadcast %c1_i32_6 : i32 to vector<1x512xi32>
    %32 = arith.addi %30, %31 : vector<1x512xi32>
    %33 = arith.subf %28, %29 : vector<1x512xf32>
    %cst_7 = arith.constant 1.000000e+00 : f32
    %34 = vector.broadcast %cst_7 : f32 to vector<1x512xf32>
    %35 = arith.subf %34, %33 : vector<1x512xf32>
    %c0_i32_8 = arith.constant 0 : i32
    %36 = vector.broadcast %c0_i32_8 : i32 to vector<1x512xi32>
    %37 = arith.cmpi sge, %30, %36 : vector<1x512xi32>
    %c7_i32_9 = arith.constant 7 : i32
    %38 = vector.broadcast %c7_i32_9 : i32 to vector<1x512xi32>
    %39 = arith.cmpi sle, %30, %38 : vector<1x512xi32>
    %40 = arith.andi %37, %39 : vector<1x512xi1>
    %41 = arith.extui %40 : vector<1x512xi1> to vector<1x512xi32>
    %42 = arith.sitofp %41 : vector<1x512xi32> to vector<1x512xf32>
    %c0_i32_10 = arith.constant 0 : i32
    %43 = vector.broadcast %c0_i32_10 : i32 to vector<1x512xi32>
    %44 = arith.cmpi sge, %32, %43 : vector<1x512xi32>
    %c7_i32_11 = arith.constant 7 : i32
    %45 = vector.broadcast %c7_i32_11 : i32 to vector<1x512xi32>
    %46 = arith.cmpi sle, %32, %45 : vector<1x512xi32>
    %47 = arith.andi %44, %46 : vector<1x512xi1>
    %48 = arith.extui %47 : vector<1x512xi1> to vector<1x512xi32>
    %49 = arith.sitofp %48 : vector<1x512xi32> to vector<1x512xf32>
    %50 = arith.mulf %35, %42 : vector<1x512xf32>
    %51 = arith.mulf %33, %49 : vector<1x512xf32>
    %52 = vector.extract_strided_slice %3 {offsets = [2, 0], sizes = [1, 512], strides = [1, 1]} : vector<3x512xf32> to vector<1x512xf32>
    %53 = math.floor %52 : vector<1x512xf32>
    %54 = arith.fptosi %53 : vector<1x512xf32> to vector<1x512xi32>
    %c1_i32_12 = arith.constant 1 : i32
    %55 = vector.broadcast %c1_i32_12 : i32 to vector<1x512xi32>
    %56 = arith.addi %54, %55 : vector<1x512xi32>
    %57 = arith.subf %52, %53 : vector<1x512xf32>
    %cst_13 = arith.constant 1.000000e+00 : f32
    %58 = vector.broadcast %cst_13 : f32 to vector<1x512xf32>
    %59 = arith.subf %58, %57 : vector<1x512xf32>
    %c0_i32_14 = arith.constant 0 : i32
    %60 = vector.broadcast %c0_i32_14 : i32 to vector<1x512xi32>
    %61 = arith.cmpi sge, %54, %60 : vector<1x512xi32>
    %c7_i32_15 = arith.constant 7 : i32
    %62 = vector.broadcast %c7_i32_15 : i32 to vector<1x512xi32>
    %63 = arith.cmpi sle, %54, %62 : vector<1x512xi32>
    %64 = arith.andi %61, %63 : vector<1x512xi1>
    %65 = arith.extui %64 : vector<1x512xi1> to vector<1x512xi32>
    %66 = arith.sitofp %65 : vector<1x512xi32> to vector<1x512xf32>
    %c0_i32_16 = arith.constant 0 : i32
    %67 = vector.broadcast %c0_i32_16 : i32 to vector<1x512xi32>
    %68 = arith.cmpi sge, %56, %67 : vector<1x512xi32>
    %c7_i32_17 = arith.constant 7 : i32
    %69 = vector.broadcast %c7_i32_17 : i32 to vector<1x512xi32>
    %70 = arith.cmpi sle, %56, %69 : vector<1x512xi32>
    %71 = arith.andi %68, %70 : vector<1x512xi1>
    %72 = arith.extui %71 : vector<1x512xi1> to vector<1x512xi32>
    %73 = arith.sitofp %72 : vector<1x512xi32> to vector<1x512xf32>
    %74 = arith.mulf %59, %66 : vector<1x512xf32>
    %75 = arith.mulf %57, %73 : vector<1x512xf32>
    %c0_18 = arith.constant 0 : index
    %c0_19 = arith.constant 0 : index
    %76 = vector.load %arg2[%c0_18, %c0_19] : memref<512x512xi32, #tpu.memory_space<vmem>>, vector<512x512xi32>
    %c64_i32 = arith.constant 64 : i32
    %77 = vector.broadcast %c64_i32 : i32 to vector<1x512xi32>
    %78 = arith.muli %6, %77 : vector<1x512xi32>
    %c8_i32 = arith.constant 8 : i32
    %79 = vector.broadcast %c8_i32 : i32 to vector<1x512xi32>
    %80 = arith.muli %30, %79 : vector<1x512xi32>
    %81 = arith.addi %78, %80 : vector<1x512xi32>
    %82 = arith.addi %81, %54 : vector<1x512xi32>
    %83 = arith.mulf %26, %50 : vector<1x512xf32>
    %84 = arith.mulf %83, %74 : vector<1x512xf32>
    %85 = vector.broadcast %82 : vector<1x512xi32> to vector<512x512xi32>
    %86 = arith.cmpi eq, %76, %85 : vector<512x512xi32>
    %cst_20 = arith.constant 0.000000e+00 : f32
    %87 = vector.broadcast %cst_20 : f32 to vector<1x512xf32>
    %88 = vector.shape_cast %84 : vector<1x512xf32> to vector<1x512xf32>
    %89 = vector.broadcast %88 : vector<1x512xf32> to vector<512x512xf32>
    %90 = vector.shape_cast %87 : vector<1x512xf32> to vector<1x512xf32>
    %91 = vector.broadcast %90 : vector<1x512xf32> to vector<512x512xf32>
    %92 = arith.select %86, %89, %91 : vector<512x512xi1>, vector<512x512xf32>
    %c64_i32_21 = arith.constant 64 : i32
    %93 = vector.broadcast %c64_i32_21 : i32 to vector<1x512xi32>
    %94 = arith.muli %6, %93 : vector<1x512xi32>
    %c8_i32_22 = arith.constant 8 : i32
    %95 = vector.broadcast %c8_i32_22 : i32 to vector<1x512xi32>
    %96 = arith.muli %30, %95 : vector<1x512xi32>
    %97 = arith.addi %94, %96 : vector<1x512xi32>
    %98 = arith.addi %97, %56 : vector<1x512xi32>
    %99 = arith.mulf %26, %50 : vector<1x512xf32>
    %100 = arith.mulf %99, %75 : vector<1x512xf32>
    %101 = vector.broadcast %98 : vector<1x512xi32> to vector<512x512xi32>
    %102 = arith.cmpi eq, %76, %101 : vector<512x512xi32>
    %cst_23 = arith.constant 0.000000e+00 : f32
    %103 = vector.broadcast %cst_23 : f32 to vector<1x512xf32>
    %104 = vector.shape_cast %100 : vector<1x512xf32> to vector<1x512xf32>
    %105 = vector.broadcast %104 : vector<1x512xf32> to vector<512x512xf32>
    %106 = vector.shape_cast %103 : vector<1x512xf32> to vector<1x512xf32>
    %107 = vector.broadcast %106 : vector<1x512xf32> to vector<512x512xf32>
    %108 = arith.select %102, %105, %107 : vector<512x512xi1>, vector<512x512xf32>
    %109 = arith.addf %92, %108 : vector<512x512xf32>
    %c64_i32_24 = arith.constant 64 : i32
    %110 = vector.broadcast %c64_i32_24 : i32 to vector<1x512xi32>
    %111 = arith.muli %6, %110 : vector<1x512xi32>
    %c8_i32_25 = arith.constant 8 : i32
    %112 = vector.broadcast %c8_i32_25 : i32 to vector<1x512xi32>
    %113 = arith.muli %32, %112 : vector<1x512xi32>
    %114 = arith.addi %111, %113 : vector<1x512xi32>
    %115 = arith.addi %114, %54 : vector<1x512xi32>
    %116 = arith.mulf %26, %51 : vector<1x512xf32>
    %117 = arith.mulf %116, %74 : vector<1x512xf32>
    %118 = vector.broadcast %115 : vector<1x512xi32> to vector<512x512xi32>
    %119 = arith.cmpi eq, %76, %118 : vector<512x512xi32>
    %cst_26 = arith.constant 0.000000e+00 : f32
    %120 = vector.broadcast %cst_26 : f32 to vector<1x512xf32>
    %121 = vector.shape_cast %117 : vector<1x512xf32> to vector<1x512xf32>
    %122 = vector.broadcast %121 : vector<1x512xf32> to vector<512x512xf32>
    %123 = vector.shape_cast %120 : vector<1x512xf32> to vector<1x512xf32>
    %124 = vector.broadcast %123 : vector<1x512xf32> to vector<512x512xf32>
    %125 = arith.select %119, %122, %124 : vector<512x512xi1>, vector<512x512xf32>
    %126 = arith.addf %109, %125 : vector<512x512xf32>
    %c64_i32_27 = arith.constant 64 : i32
    %127 = vector.broadcast %c64_i32_27 : i32 to vector<1x512xi32>
    %128 = arith.muli %6, %127 : vector<1x512xi32>
    %c8_i32_28 = arith.constant 8 : i32
    %129 = vector.broadcast %c8_i32_28 : i32 to vector<1x512xi32>
    %130 = arith.muli %32, %129 : vector<1x512xi32>
    %131 = arith.addi %128, %130 : vector<1x512xi32>
    %132 = arith.addi %131, %56 : vector<1x512xi32>
    %133 = arith.mulf %26, %51 : vector<1x512xf32>
    %134 = arith.mulf %133, %75 : vector<1x512xf32>
    %135 = vector.broadcast %132 : vector<1x512xi32> to vector<512x512xi32>
    %136 = arith.cmpi eq, %76, %135 : vector<512x512xi32>
    %cst_29 = arith.constant 0.000000e+00 : f32
    %137 = vector.broadcast %cst_29 : f32 to vector<1x512xf32>
    %138 = vector.shape_cast %134 : vector<1x512xf32> to vector<1x512xf32>
    %139 = vector.broadcast %138 : vector<1x512xf32> to vector<512x512xf32>
    %140 = vector.shape_cast %137 : vector<1x512xf32> to vector<1x512xf32>
    %141 = vector.broadcast %140 : vector<1x512xf32> to vector<512x512xf32>
    %142 = arith.select %136, %139, %141 : vector<512x512xi1>, vector<512x512xf32>
    %143 = arith.addf %126, %142 : vector<512x512xf32>
    %c64_i32_30 = arith.constant 64 : i32
    %144 = vector.broadcast %c64_i32_30 : i32 to vector<1x512xi32>
    %145 = arith.muli %8, %144 : vector<1x512xi32>
    %c8_i32_31 = arith.constant 8 : i32
    %146 = vector.broadcast %c8_i32_31 : i32 to vector<1x512xi32>
    %147 = arith.muli %30, %146 : vector<1x512xi32>
    %148 = arith.addi %145, %147 : vector<1x512xi32>
    %149 = arith.addi %148, %54 : vector<1x512xi32>
    %150 = arith.mulf %27, %50 : vector<1x512xf32>
    %151 = arith.mulf %150, %74 : vector<1x512xf32>
    %152 = vector.broadcast %149 : vector<1x512xi32> to vector<512x512xi32>
    %153 = arith.cmpi eq, %76, %152 : vector<512x512xi32>
    %cst_32 = arith.constant 0.000000e+00 : f32
    %154 = vector.broadcast %cst_32 : f32 to vector<1x512xf32>
    %155 = vector.shape_cast %151 : vector<1x512xf32> to vector<1x512xf32>
    %156 = vector.broadcast %155 : vector<1x512xf32> to vector<512x512xf32>
    %157 = vector.shape_cast %154 : vector<1x512xf32> to vector<1x512xf32>
    %158 = vector.broadcast %157 : vector<1x512xf32> to vector<512x512xf32>
    %159 = arith.select %153, %156, %158 : vector<512x512xi1>, vector<512x512xf32>
    %160 = arith.addf %143, %159 : vector<512x512xf32>
    %c64_i32_33 = arith.constant 64 : i32
    %161 = vector.broadcast %c64_i32_33 : i32 to vector<1x512xi32>
    %162 = arith.muli %8, %161 : vector<1x512xi32>
    %c8_i32_34 = arith.constant 8 : i32
    %163 = vector.broadcast %c8_i32_34 : i32 to vector<1x512xi32>
    %164 = arith.muli %30, %163 : vector<1x512xi32>
    %165 = arith.addi %162, %164 : vector<1x512xi32>
    %166 = arith.addi %165, %56 : vector<1x512xi32>
    %167 = arith.mulf %27, %50 : vector<1x512xf32>
    %168 = arith.mulf %167, %75 : vector<1x512xf32>
    %169 = vector.broadcast %166 : vector<1x512xi32> to vector<512x512xi32>
    %170 = arith.cmpi eq, %76, %169 : vector<512x512xi32>
    %cst_35 = arith.constant 0.000000e+00 : f32
    %171 = vector.broadcast %cst_35 : f32 to vector<1x512xf32>
    %172 = vector.shape_cast %168 : vector<1x512xf32> to vector<1x512xf32>
    %173 = vector.broadcast %172 : vector<1x512xf32> to vector<512x512xf32>
    %174 = vector.shape_cast %171 : vector<1x512xf32> to vector<1x512xf32>
    %175 = vector.broadcast %174 : vector<1x512xf32> to vector<512x512xf32>
    %176 = arith.select %170, %173, %175 : vector<512x512xi1>, vector<512x512xf32>
    %177 = arith.addf %160, %176 : vector<512x512xf32>
    %c64_i32_36 = arith.constant 64 : i32
    %178 = vector.broadcast %c64_i32_36 : i32 to vector<1x512xi32>
    %179 = arith.muli %8, %178 : vector<1x512xi32>
    %c8_i32_37 = arith.constant 8 : i32
    %180 = vector.broadcast %c8_i32_37 : i32 to vector<1x512xi32>
    %181 = arith.muli %32, %180 : vector<1x512xi32>
    %182 = arith.addi %179, %181 : vector<1x512xi32>
    %183 = arith.addi %182, %54 : vector<1x512xi32>
    %184 = arith.mulf %27, %51 : vector<1x512xf32>
    %185 = arith.mulf %184, %74 : vector<1x512xf32>
    %186 = vector.broadcast %183 : vector<1x512xi32> to vector<512x512xi32>
    %187 = arith.cmpi eq, %76, %186 : vector<512x512xi32>
    %cst_38 = arith.constant 0.000000e+00 : f32
    %188 = vector.broadcast %cst_38 : f32 to vector<1x512xf32>
    %189 = vector.shape_cast %185 : vector<1x512xf32> to vector<1x512xf32>
    %190 = vector.broadcast %189 : vector<1x512xf32> to vector<512x512xf32>
    %191 = vector.shape_cast %188 : vector<1x512xf32> to vector<1x512xf32>
    %192 = vector.broadcast %191 : vector<1x512xf32> to vector<512x512xf32>
    %193 = arith.select %187, %190, %192 : vector<512x512xi1>, vector<512x512xf32>
    %194 = arith.addf %177, %193 : vector<512x512xf32>
    %c64_i32_39 = arith.constant 64 : i32
    %195 = vector.broadcast %c64_i32_39 : i32 to vector<1x512xi32>
    %196 = arith.muli %8, %195 : vector<1x512xi32>
    %c8_i32_40 = arith.constant 8 : i32
    %197 = vector.broadcast %c8_i32_40 : i32 to vector<1x512xi32>
    %198 = arith.muli %32, %197 : vector<1x512xi32>
    %199 = arith.addi %196, %198 : vector<1x512xi32>
    %200 = arith.addi %199, %56 : vector<1x512xi32>
    %201 = arith.mulf %27, %51 : vector<1x512xf32>
    %202 = arith.mulf %201, %75 : vector<1x512xf32>
    %203 = vector.broadcast %200 : vector<1x512xi32> to vector<512x512xi32>
    %204 = arith.cmpi eq, %76, %203 : vector<512x512xi32>
    %cst_41 = arith.constant 0.000000e+00 : f32
    %205 = vector.broadcast %cst_41 : f32 to vector<1x512xf32>
    %206 = vector.shape_cast %202 : vector<1x512xf32> to vector<1x512xf32>
    %207 = vector.broadcast %206 : vector<1x512xf32> to vector<512x512xf32>
    %208 = vector.shape_cast %205 : vector<1x512xf32> to vector<1x512xf32>
    %209 = vector.broadcast %208 : vector<1x512xf32> to vector<512x512xf32>
    %210 = arith.select %204, %207, %209 : vector<512x512xi1>, vector<512x512xf32>
    %211 = arith.addf %194, %210 : vector<512x512xf32>
    %c0_42 = arith.constant 0 : index
    %c0_43 = arith.constant 0 : index
    %c0_44 = arith.constant 0 : index
    %212 = vector.load %arg4[%c0_42, %c0_43, %c0_44] : memref<1x4x512xf32, #tpu.memory_space<vmem>>, vector<1x4x512xf32>
    %213 = vector.shape_cast %212 : vector<1x4x512xf32> to vector<4x512xf32>
    %214 = arith.truncf %213 : vector<4x512xf32> to vector<4x512xbf16>
    %215 = arith.truncf %211 : vector<512x512xf32> to vector<512x512xbf16>
    %cst_45 = arith.constant dense<0.000000e+00> : vector<4x512xf32>
    %216 = tpu.matmul %214, %215, %cst_45 {dimension_numbers = #tpu.dot_dimension_numbers<[1], [0], [0], [1], [0, 0, 1, 1], [], []>} : vector<4x512xbf16>, vector<512x512xbf16>, vector<4x512xf32> -> vector<4x512xf32>
    %c0_46 = arith.constant 0 : index
    %c0_47 = arith.constant 0 : index
    %c0_48 = arith.constant 0 : index
    %217 = vector.load %arg6[%c0_46, %c0_47, %c0_48] : memref<1x4x512xf32, #tpu.memory_space<vmem>>, vector<1x4x512xf32>
    %218 = vector.shape_cast %217 : vector<1x4x512xf32> to vector<4x512xf32>
    %219 = vector.shape_cast %216 : vector<4x512xf32> to vector<1x4x512xf32>
    tpu.vector_store %arg6[%c0_46, %c0_47, %c0_48], %219 {strides = array<i32>} : memref<1x4x512xf32, #tpu.memory_space<vmem>>, vector<1x4x512xf32>,
    return
  }
  func.func @transform_0(%arg0: i32, %arg1: i32) -> (i32, i32) {
    %c0_i32 = arith.constant 0 : i32
    %c0_i32_0 = arith.constant 0 : i32
    %c0_i32_1 = arith.constant 0 : i32
    return %c0_i32, %c0_i32_0 : i32, i32
  }
  func.func @transform_1(%arg0: i32, %arg1: i32) -> (i32, i32) {
    %c0_i32 = arith.constant 0 : i32
    %c0_i32_0 = arith.constant 0 : i32
    return %c0_i32, %arg1 : i32, i32
  }
  func.func @transform_2(%arg0: i32, %arg1: i32) -> (i32, i32, i32) {
    %c0_i32 = arith.constant 0 : i32
    %c0_i32_0 = arith.constant 0 : i32
    %c0_i32_1 = arith.constant 0 : i32
    return %arg0, %c0_i32, %c0_i32_0 : i32, i32, i32
  }
  func.func @transform_3(%arg0: i32, %arg1: i32) -> (i32, i32, i32) {
    %c0_i32 = arith.constant 0 : i32
    %c0_i32_0 = arith.constant 0 : i32
    return %arg0, %c0_i32, %arg1 : i32, i32, i32
  }
  func.func @transform_4(%arg0: i32, %arg1: i32) -> (i32, i32, i32) {
    %c0_i32 = arith.constant 0 : i32
    %c0_i32_0 = arith.constant 0 : i32
    return %arg0, %c0_i32, %arg1 : i32, i32, i32
  }
}

</mosaic_0001>

<bundles_post_ra>
// kernel: tpu_custom_call.1
= control target key start
LH: loop header
LB: loop body
LE: loop exit
PB: predicated region body
PF: predicated region fallthrough
CT: control target
= control target key end

     0   :  { %9 = vsyncpa [#allocation3], 0  ;;  %s13006_s0 = inlined_call_operand.hbm [shape: s32[512,512], index: 0, kind: input, shape index: {}]   ;;  %s13007_s1 = inlined_call_operand.vmem [shape: f32[3,512], index: 1, kind: input, shape index: {}]   ;;  %s13008_s2 = inlined_call_operand.vmem [shape: f32[2,4,512], index: 2, kind: input, shape index: {}]   ;;  %s13009_s3 = inlined_call_operand.vmem [shape: f32[2,3,512], index: 3, kind: input, shape index: {}]   ;;  %s13010_s4 = inlined_call_operand.hbm [shape: f32[2,4,512], index: 4, kind: output, shape index: {}]  }
   0x1   :  { %10 = vsyncpa [#allocation4], 0 }
   0x2   :  { %12 = vsyncpa [#allocation4 + $0x1], 0  ;;  %s7489_s15 = smov 0   ;;  %s7491_s16 = smov 0  }
   0x3   :  { %s7493_s17 = smov 0   ;;  %s7495_s18 = smov 0  }
   0x4   :  { %s7497_s19 = smov 0   ;;  %s7499_s20 = smov 0  }
   0x5 LB: > { %s7248_s21 = sadd.s32 4294967295, %s7458_s20   ;;  %s7249_s22 = sadd.s32 4294967294, %s7458_s20   ;;  %s7458_s20 = sphi %s7499_s20, %s18_s20   ;;  %s7454_s19 = sphi %s7497_s19, %s13017_s19   ;;  %s7450_s18 = sphi %s7495_s18, %s13016_s18   ;;  %s7446_s17 = sphi %s7493_s17, %s13015_s17   ;;  %s7442_s16 = sphi %s7491_s16, %s13014_s16   ;;  %s7438_s15 = sphi %s7489_s15, %s13013_s15  }
   0x6   : > { %s30_s23 = sadd.s32 1, %s7454_s19  ;;  %s140_s24 = sadd.s32 1, %s7446_s17 }
   0x7   : > { %p32_p0 = scmp.ge.s32.totalorder %s30_s23, 2  ;;  %p150_p1 = scmp.ne.s32.totalorder %s7446_s17, %s7442_s16 }
   0x8   : > { %p151_p2 = scmp.eq.s32.totalorder %s7248_s21, 1  ;;  %p156_p3 = scmp.ne.s32.totalorder %s7442_s16, %s7438_s15 }
   0x9   : > { %s13019_s23 = smov (%p32_p0, %s30_s23), 0  ;;  %p157_p5 = scmp.eq.s32.totalorder %s7249_s22, 1 }
   0xa   : > { %p7529_p4 = por %p151_p2, %p150_p1  ;;  %s135_s26 = ssub.s32 %s7454_s19, %s13019_s23 }
   0xb   : > { %p7250_p6 = scmp.ge.s32.totalorder %s7458_s20, 1  ;;  %p138_p7 = scmp.eq.s32.totalorder %s135_s26, 0 }
   0xc   : > { %p7536_p8 = por %p157_p5, %p156_p3  ;;  %p164_p9 = scmp.lt.s32.totalorder %s7458_s20, 3 }
   0xd   : > { %s7542_s28 = scalar_select %p138_p7, %s7446_s17, %s140_s24  }
   0xe   : > { %p165_p10 = pnand %p7250_p6, %p164_p9  ;;  %p7291_p11 = scmp.eq.s32.totalorder %s7248_s21, 0 }
   0xf   : > { %s175_s5 = sshll.u32 %s13006_s0, 4  ;;  %s7460_s6 = smov [#allocation2]   ;;  %s176_s5 = int_to_ptr.hbm [resolvable:$true] %s175_s5 }
  0x10   : > { %p7283_p12 = pneg %p165_p10  ;;  %s177_s7 = sshll.u32 %s7460_s6, 4  ;;  %s178_s7 = int_to_ptr.vmem [resolvable:$true] %s177_s7 }
  0x11   : > { %s7461_s8 = smov 512   ;;  %s7462_s9 = smov 32  }
  0x12   : > { %p7284_p13 = pnand %p7291_p11, %p7283_p12  ;;  %223 = sbr.rel (%p165_p10) target bundleno = 1751 (0x6d7), region = 36 }
  0x14   : > { %7286 = dma.hbm_to_vmem [thread:$0]  (!%p7284_p13), %s176_s5, 32768, %s178_s7, [#allocation3], %s7461_s8, %s7461_s8, %s7462_s9  }
  0x17   : > { %7429 = dma.done.wait (%p7291_p11), [#allocation3], 32768  }
  0x18   : > { %7431 = vsyncadd (%p7291_p11), [#allocation3], 4294934528  ;;  %p270_p0 = scmp.lt.s32.totalorder %s7450_s18, 1  ;;  %v286_v0 = vld [vmem:[%s13007_s1] sm:$0x77]  ;;  %v7463_v14 = vmov 0.0  }
  0x19   : > { %v287_v1 = vld [vmem:[%s13007_s1 + $0x8] sm:$0x77]  ;;  %s261_s6 = sand.u32 1, %s7442_s16   ;;  %s7272_s9 = sshll.u32 %s7450_s18, 4 }
  0x1a   : > { %s7549_s10 = scalar_select %p270_p0, %s7450_s18, 1  ;;  %v7625_v51 = vld [vmem:[#allocation2 + $0x1c0] sm:$0xff] }
  0x1b   : > { %v7627_v52 = vld [vmem:[#allocation2 + $0x1e0] sm:$0xff]  ;;  %s7256_s7 = sshll.u32 %s261_s6, 4  ;;  %s7128_s12 = scalar_lea.hbm %s13010_s4, %s7272_s9 }
  0x1c   : > { %s7270_s11 = sshll.u32 %s7549_s10, 4  ;;  %s12961_s8 = scalar_lea.vmem [#allocation5], %s7256_s7 }
  0x1d   : > { %s283_s14 = scalar_lea.vmem %s13009_s3, %s7270_s11  ;;  %s9500_s5 = scalar_lea.vmem %s13008_s2, %s7270_s11 }
  0x1e   : > { %v288_v2 = vld [vmem:[%s283_s14] sm:$0x77]  ;;  %v289_v3 = vld [vmem:[%s283_s14 + $0x8] sm:$0x77]  ;;  %s7130_s13 = sshll.u32 %s12961_s8, 4  ;;  %s7132_s14 = sshll.u32 %s7128_s12, 4  ;;  %s7131_s13 = int_to_ptr.vmem [resolvable:$true] %s7130_s13  ;;  %s7133_s14 = int_to_ptr.hbm [resolvable:$true] %s7132_s14 }
  0x1f   : > { %v290_v4 = vadd.f32 %v288_v2, %v286_v0  ;;  %v7563_v5 = vadd.f32 %v289_v3, %v287_v1  ;;  %s7115_s21 = scalar_lea.sflag [#allocation4], %s261_s6  ;;  %s7390_s18 = sshra.s32 %s7133_s14, 4  ;;  %s7391_s18 = int_to_ptr.hbm [resolvable:$true] %s7390_s18 }
  0x20   : > { %s7392_s22 = scalar_lea.hbm %s7391_s18, 16  ;;  %s7396_s29 = scalar_lea.hbm %s13010_s4, 32 }
  0x21   : > { %v292_v6 = vfloor.f32 %v290_v4  ;;  %v293_v7 = vfloor.f32 %v7563_v5  ;;  %p7393_p1 = scmp.ne.s32.totalorder %s7391_s18, %s7392_s22  ;;  %p7397_p5 = scmp.lt.s32.totalorder %s7391_s18, %s13010_s4 }
  0x22   : > { %p7398_p6 = scmp.lt.s32.totalorder %s7396_s29, %s7392_s22 }
  0x23   : > { %v7274_v8 = vcvt.f32.s32 %v292_v6  ;;  %v298_v9 = vsub.f32 %v290_v4, %v292_v6  ;;  %v7568_v10 = vcvt.f32.s32 %v293_v7  ;;  %p7394_p2 = pnand %p7393_p1, %p7529_p4 }
  0x24   : > { %p7399_p7 = por %p7398_p6, %p7397_p5 }
  0x25   : > { %v7570_v11 = vadd.s32 1, %v7274_v8  ;;  %v300_v12 = vsub.f32 1.0, %v298_v9  ;;  %vm302_vm0 = vcmp.ge.s32.totalorder %v7274_v8, 0  ;;  %vm304_vm1 = vcmp.le.s32.totalorder %v7274_v8, 7  ;;  %p7395_p3 = pneg %p7394_p2 }
  0x26   : > { %vm303_vm2 = vcmp.ge.s32.totalorder %v7568_v10, 0  ;;  %vm305_vm3 = vcmp.le.s32.totalorder %v7568_v10, 7  ;;  %vm306_vm4 = vmand %vm302_vm0, %vm304_vm1  ;;  %v584_v13 = vmul.u32 8, %v7274_v8  ;;  %v592_v16 = vrot.slane %v7274_v8, 6 }
  0x27   : > { %v7261_v15 = vsel %vm306_vm4, 1.0, %v7463_v14  ;;  %vm312_vm5 = vcmp.ge.s32.totalorder %v7570_v11, 0  ;;  %vm314_vm6 = vcmp.le.s32.totalorder %v7570_v11, 7  ;;  %v582_v18 = vmul.u32 64, %v7274_v8  ;;  %vm307_vm8 = vmand %vm303_vm2, %vm305_vm3  ;;  %p7400_p9 = pnand %p7399_p7, %p7395_p3 }
  0x28   : > { %vm316_vm7 = vmand %vm312_vm5, %vm314_vm6  ;;  %v322_v17 = vmul.f32 %v7261_v15, %v300_v12  ;;  %v586_v19 = vrot.slane %v584_v13, 5  ;;  %v1150_v20 = vrot.slane %v7570_v11, 6  ;;  %v7579_v22 = vrot.slane %v592_v16, 4 }
  0x29   : > { %v7263_v21 = vsel %vm316_vm7, 1.0, %v7463_v14  ;;  %v1956_v23 = vmul.u32 8, %v7570_v11  ;;  %v3560_v24 = vmul.u32 64, %v7570_v11  ;;  %v7597_v35 = vsel %vm307_vm8, 1.0, %v7463_v14 }
  0x2a   : > { %v7587_v25 = vmul.f32 %v7263_v21, %v298_v9  ;;  %v587_v26 = vrot.slane %v586_v19, 4  ;;  %v600_v27 = vrot.slane %v322_v17, 5  ;;  %v608_v28 = vrot.slane %v322_v17, 6 }
  0x2b   : > { %v7589_v29 = vrot.slane %v1150_v20, 4  ;;  %v7591_v30 = vrot.slane %v1956_v23, 5 }
  0x2c   : > { %v590_v31 = vadd.s32 %v587_v26, %v582_v18  ;;  %v601_v32 = vrot.slane %v600_v27, 4  ;;  %v7593_v33 = vrot.slane %v608_v28, 4  ;;  %v1158_v34 = vrot.slane %v7587_v25, 6 }
  0x2d   : > { %v1959_v36 = vrot.slane %v7591_v30, 4  ;;  %v1966_v37 = vrot.slane %v7587_v25, 5  ;;  %v3562_v38 = vadd.s32 %v3560_v24, %v587_v26 }
  0x2e   : > { %v7604_v39 = vadd.s32 %v7579_v22, %v590_v31  ;;  %v606_v40 = vmul.f32 %v601_v32, %v322_v17  ;;  %v7607_v41 = vadd.s32 %v7589_v29, %v590_v31  ;;  %v7609_v42 = vrot.slane %v1158_v34, 4 }
  0x2f   : > { %v1962_v43 = vadd.s32 %v1959_v36, %v582_v18  ;;  %v1967_v44 = vrot.slane %v1966_v37, 4  ;;  %v7614_v45 = vadd.s32 %v3562_v38, %v7579_v22  ;;  %v3566_v46 = vmul.f32 %v601_v32, %v7587_v25 }
  0x30   : > { %v7618_v47 = vmul.f32 %v7593_v33, %v606_v40  ;;  %v616_v48 = vperm.slane %v7604_v39, 0  ;;  %v7622_v49 = vmul.f32 %v7609_v42, %v606_v40  ;;  %v1166_v50 = vperm.slane %v7607_v41, 0 }
  0x31   : > { %v7630_v53 = vadd.s32 %v1962_v43, %v7579_v22  ;;  %v1972_v54 = vmul.f32 %v1967_v44, %v322_v17  ;;  %v7633_v55 = vadd.s32 %v1962_v43, %v7589_v29  ;;  %v7636_v56 = vmul.f32 %v3566_v46, %v7593_v33 }
  0x32   : > { %v7638_v57 = vperm.slane %v616_v48, 0  ;;  %v882_v58 = vperm.slane %v7618_v47, 0  ;;  %v7641_v59 = vperm.slane %v1166_v50, 0  ;;  %v1432_v60 = vperm.slane %v7622_v49, 0 }
  0x33   : > { %v7645_v61 = vmul.f32 %v1972_v54, %v7593_v33  ;;  %v1976_v62 = vperm.slane %v7630_v53, 0  ;;  %v7649_v63 = vmul.f32 %v1972_v54, %v7609_v42  ;;  %v2770_v0 = vperm.slane %v7633_v55, 0 }
  0x34   : > { %vm680_vm9 = vcmp.eq.s32.totalorder %v7625_v51, %v7638_v57  ;;  %vm684_vm10 = vcmp.eq.s32.totalorder %v7627_v52, %v7638_v57  ;;  %v7656_v1 = vperm.slane %v882_v58, 0  ;;  %vm1230_vm11 = vcmp.eq.s32.totalorder %v7625_v51, %v7641_v59 }
  0x35   : > { %vm1234_vm12 = vcmp.eq.s32.totalorder %v7627_v52, %v7641_v59  ;;  %v7662_v2 = vperm.slane %v1432_v60, 0  ;;  %v7664_v3 = vperm.slane %v1976_v62, 0  ;;  %v2242_v4 = vperm.slane %v7645_v61, 0 }
  0x36   : > { %v950_v6 = vsel %vm680_vm9, %v7656_v1, 0.0  ;;  %v954_v8 = vsel %vm684_vm10, %v7656_v1, 0.0  ;;  %v7669_v9 = vperm.slane %v2770_v0, 0  ;;  %v3036_v12 = vperm.slane %v7649_v63, 0 }
  0x37   : > { %v1500_v13 = vsel %vm1230_vm11, %v7662_v2, 0.0  ;;  %v1504_v15 = vsel %vm1234_vm12, %v7662_v2, 0.0  ;;  %vm2040_vm13 = vcmp.eq.s32.totalorder %v7625_v51, %v7664_v3  ;;  %vm2044_vm14 = vcmp.eq.s32.totalorder %v7627_v52, %v7664_v3 }
  0x38   : > { %v1756_v16 = vadd.f32 %v1500_v13, %v950_v6  ;;  %v1760_v17 = vadd.f32 %v1504_v15, %v954_v8  ;;  %v7678_v18 = vperm.slane %v2242_v4, 0  ;;  %vm2834_vm15 = vcmp.eq.s32.totalorder %v7625_v51, %v7669_v9 }
  0x39   : > { %vm2838_vm0 = vcmp.eq.s32.totalorder %v7627_v52, %v7669_v9  ;;  %v7684_v19 = vperm.slane %v3036_v12, 0  ;;  %v3570_v20 = vperm.slane %v7614_v45, 0  ;;  %v3836_v21 = vperm.slane %v7636_v56, 0 }
  0x3a   : > { %v2310_v23 = vsel %vm2040_vm13, %v7678_v18, 0.0  ;;  %v2314_v26 = vsel %vm2044_vm14, %v7678_v18, 0.0  ;;  %v7691_v27 = vadd.s32 %v3562_v38, %v7589_v29  ;;  %v7694_v28 = vmul.f32 %v3566_v46, %v7609_v42 }
  0x3b   : > { %v2566_v31 = vadd.f32 %v2310_v23, %v1756_v16  ;;  %v2570_v32 = vadd.f32 %v2314_v26, %v1760_v17  ;;  %v3104_v34 = vsel %vm2834_vm15, %v7684_v19, 0.0  ;;  %v3108_v37 = vsel %vm2838_vm0, %v7684_v19, 0.0 }
  0x3c   : > { %v7698_v40 = vperm.slane %v3570_v20, 0  ;;  %v7700_v43 = vperm.slane %v3836_v21, 0  ;;  %v4364_v48 = vperm.slane %v7691_v27, 0  ;;  %v4630_v50 = vperm.slane %v7694_v28, 0 }
  0x3d   : > { %v3360_v54 = vadd.f32 %v3104_v34, %v2566_v31  ;;  %v3364_v38 = vadd.f32 %v3108_v37, %v2570_v32  ;;  %v5154_v46 = vadd.s32 %v3560_v24, %v1959_v36  ;;  %v5158_v58 = vmul.f32 %v1967_v44, %v7587_v25  ;;  %v7729_v36 = vld [vmem:[#allocation2 + $0x3c0] sm:$0xff] }
  0x3e   : > { %vm3634_vm1 = vcmp.eq.s32.totalorder %v7625_v51, %v7698_v40  ;;  %vm3638_vm2 = vcmp.eq.s32.totalorder %v7627_v52, %v7698_v40  ;;  %v7713_v60 = vperm.slane %v4364_v48, 0  ;;  %v7715_v62 = vperm.slane %v4630_v50, 0  ;;  %v7731_v44 = vld [vmem:[#allocation2 + $0x3e0] sm:$0xff] }
  0x3f   : > { %v3904_v0 = vsel %vm3634_vm1, %v7700_v43, 0.0  ;;  %v3908_v4 = vsel %vm3638_vm2, %v7700_v43, 0.0  ;;  %v7720_v30 = vadd.s32 %v5154_v46, %v7579_v22  ;;  %v7723_v11 = vmul.f32 %v5158_v58, %v7593_v33 }
  0x40   : > { %v4160_v24 = vadd.f32 %v3904_v0, %v3360_v54  ;;  %v4164_v25 = vadd.f32 %v3908_v4, %v3364_v38  ;;  %vm4428_vm3 = vcmp.eq.s32.totalorder %v7625_v51, %v7713_v60  ;;  %vm4432_vm4 = vcmp.eq.s32.totalorder %v7627_v52, %v7713_v60 }
  0x41   : > { %v4698_v6 = vsel %vm4428_vm3, %v7715_v62, 0.0  ;;  %v4702_v22 = vsel %vm4432_vm4, %v7715_v62, 0.0  ;;  %v5162_v8 = vperm.slane %v7720_v30, 0  ;;  %v5428_v33 = vperm.slane %v7723_v11, 0 }
  0x42   : > { %v4954_v12 = vadd.f32 %v4698_v6, %v4160_v24  ;;  %v4958_v13 = vadd.f32 %v4702_v22, %v4164_v25  ;;  %v7738_v15 = vadd.s32 %v5154_v46, %v7589_v29  ;;  %v7741_v16 = vmul.f32 %v5158_v58, %v7609_v42 }
  0x43   : > { %v7743_v17 = vperm.slane %v5162_v8, 0  ;;  %v7745_v20 = vperm.slane %v5428_v33, 0  ;;  %vm744_vm5 = vcmp.eq.s32.totalorder %v7729_v36, %v7638_v57  ;;  %vm748_vm6 = vcmp.eq.s32.totalorder %v7731_v44, %v7638_v57 }
  0x44   : > { %v5956_v21 = vperm.slane %v7738_v15, 0  ;;  %v6222_v23 = vperm.slane %v7741_v16, 0  ;;  %v1014_v29 = vsel %vm744_vm5, %v7656_v1, 0.0  ;;  %v1018_v26 = vsel %vm748_vm6, %v7656_v1, 0.0 }
  0x45   : > { %vm5226_vm7 = vcmp.eq.s32.totalorder %v7625_v51, %v7743_v17  ;;  %vm5230_vm8 = vcmp.eq.s32.totalorder %v7627_v52, %v7743_v17  ;;  %vm1294_vm9 = vcmp.eq.s32.totalorder %v7729_v36, %v7641_v59  ;;  %vm1298_vm10 = vcmp.eq.s32.totalorder %v7731_v44, %v7641_v59 }
  0x46   : > { %v5496_v42 = vsel %vm5226_vm7, %v7745_v20, 0.0  ;;  %v5500_v31 = vsel %vm5230_vm8, %v7745_v20, 0.0  ;;  %v7765_v32 = vperm.slane %v5956_v21, 0  ;;  %v7767_v34 = vperm.slane %v6222_v23, 0 }
  0x47   : > { %v5752_v37 = vadd.f32 %v5496_v42, %v4954_v12  ;;  %v5756_v48 = vadd.f32 %v5500_v31, %v4958_v13  ;;  %v1564_v50 = vsel %vm1294_vm9, %v7662_v2, 0.0  ;;  %v1568_v54 = vsel %vm1298_vm10, %v7662_v2, 0.0 }
  0x48   : > { %vm6020_vm11 = vcmp.eq.s32.totalorder %v7625_v51, %v7765_v32  ;;  %vm6024_vm12 = vcmp.eq.s32.totalorder %v7627_v52, %v7765_v32  ;;  %v1820_v38 = vadd.f32 %v1564_v50, %v1014_v29  ;;  %v1824_v46 = vadd.f32 %v1568_v54, %v1018_v26 }
  0x49   : > { %v6290_v58 = vsel %vm6020_vm11, %v7767_v34, 0.0  ;;  %v6294_v0 = vsel %vm6024_vm12, %v7767_v34, 0.0  ;;  %vm2104_vm13 = vcmp.eq.s32.totalorder %v7729_v36, %v7664_v3  ;;  %vm2108_vm14 = vcmp.eq.s32.totalorder %v7731_v44, %v7664_v3 }
  0x4a   : > { %v6546_v4 = vadd.f32 %v6290_v58, %v5752_v37  ;;  %v6550_v24 = vadd.f32 %v6294_v0, %v5756_v48  ;;  %v2374_v25 = vsel %vm2104_vm13, %v7678_v18, 0.0  ;;  %v2378_v51 = vsel %vm2108_vm14, %v7678_v18, 0.0  ;;  %v510_v37 = vld [vmem:[#allocation2 + $0x5c0] sm:$0xff] }
  0x4b   : > { %v2630_v6 = vadd.f32 %v2374_v25, %v1820_v38  ;;  %v2634_v52 = vadd.f32 %v2378_v51, %v1824_v46  ;;  %vm2898_vm15 = vcmp.eq.s32.totalorder %v7729_v36, %v7669_v9  ;;  %vm2902_vm0 = vcmp.eq.s32.totalorder %v7731_v44, %v7669_v9  ;;  %v514_v48 = vld [vmem:[#allocation2 + $0x5e0] sm:$0xff] }
  0x4c   : > { %v6793_v22 = vpack.c.bf16 %v6550_v24, %v6546_v4  ;;  %v3168_v8 = vsel %vm2898_vm15, %v7684_v19, 0.0  ;;  %v3172_v33 = vsel %vm2902_vm0, %v7684_v19, 0.0  ;;  %vm3698_vm1 = vcmp.eq.s32.totalorder %v7729_v36, %v7698_v40 }
  0x4d   : > { %v3424_v12 = vadd.f32 %v3168_v8, %v2630_v6  ;;  %v3428_v13 = vadd.f32 %v3172_v33, %v2634_v52  ;;  %vm3702_vm2 = vcmp.eq.s32.totalorder %v7731_v44, %v7698_v40  ;;  %v3968_v21 = vsel %vm3698_vm1, %v7700_v43, 0.0 }
  0x4e   : > { %6893 = vmatpush.bf16.msra.mxu0 %v6793_v22  ;;  %v3972_v23 = vsel %vm3702_vm2, %v7700_v43, 0.0  ;;  %vm4492_vm3 = vcmp.eq.s32.totalorder %v7729_v36, %v7713_v60  ;;  %vm4496_vm4 = vcmp.eq.s32.totalorder %v7731_v44, %v7713_v60  ;;  %vm5290_vm5 = vcmp.eq.s32.totalorder %v7729_v36, %v7743_v17 }
  0x4f   : > { %v4224_v29 = vadd.f32 %v3968_v21, %v3424_v12  ;;  %v4228_v26 = vadd.f32 %v3972_v23, %v3428_v13  ;;  %v4762_v42 = vsel %vm4492_vm3, %v7715_v62, 0.0  ;;  %v4766_v31 = vsel %vm4496_vm4, %v7715_v62, 0.0 }
  0x50   : > { %vm5294_vm6 = vcmp.eq.s32.totalorder %v7731_v44, %v7743_v17  ;;  %v5560_v50 = vsel %vm5290_vm5, %v7745_v20, 0.0  ;;  %vm6084_vm7 = vcmp.eq.s32.totalorder %v7729_v36, %v7765_v32  ;;  %vm6088_vm8 = vcmp.eq.s32.totalorder %v7731_v44, %v7765_v32 }
  0x51   : > { %v5018_v54 = vadd.f32 %v4762_v42, %v4224_v29  ;;  %v5022_v38 = vadd.f32 %v4766_v31, %v4228_v26  ;;  %v5564_v46 = vsel %vm5294_vm6, %v7745_v20, 0.0  ;;  %v6354_v58 = vsel %vm6084_vm7, %v7767_v34, 0.0 }
  0x52   : > { %v6358_v0 = vsel %vm6088_vm8, %v7767_v34, 0.0  ;;  %vm808_vm9 = vcmp.eq.s32.totalorder %v510_v37, %v7638_v57  ;;  %vm812_vm10 = vcmp.eq.s32.totalorder %v514_v48, %v7638_v57  ;;  %vm1358_vm11 = vcmp.eq.s32.totalorder %v510_v37, %v7641_v59 }
  0x53   : > { %v5816_v4 = vadd.f32 %v5560_v50, %v5018_v54  ;;  %v5820_v24 = vadd.f32 %v5564_v46, %v5022_v38  ;;  %v1078_v36 = vsel %vm808_vm9, %v7656_v1, 0.0  ;;  %v1082_v44 = vsel %vm812_vm10, %v7656_v1, 0.0  ;;  %v7837_v46 = vld [vmem:[#allocation2 + $0x7c0] sm:$0xff] }
  0x54   : > { %vm1362_vm12 = vcmp.eq.s32.totalorder %v514_v48, %v7641_v59  ;;  %v1628_v25 = vsel %vm1358_vm11, %v7662_v2, 0.0  ;;  %vm2168_vm13 = vcmp.eq.s32.totalorder %v510_v37, %v7664_v3  ;;  %vm2172_vm14 = vcmp.eq.s32.totalorder %v514_v48, %v7664_v3 }
  0x55   : > { %v6610_v51 = vadd.f32 %v6354_v58, %v5816_v4  ;;  %v6614_v6 = vadd.f32 %v6358_v0, %v5820_v24  ;;  %v1632_v52 = vsel %vm1362_vm12, %v7662_v2, 0.0  ;;  %v1884_v22 = vadd.f32 %v1628_v25, %v1078_v36  ;;  %v578_v24 = vld [vmem:[#allocation2 + $0x7e0] sm:$0xff] }
  0x56   : > { %v1888_v8 = vadd.f32 %v1632_v52, %v1082_v44  ;;  %v2438_v33 = vsel %vm2168_vm13, %v7678_v18, 0.0  ;;  %v2442_v12 = vsel %vm2172_vm14, %v7678_v18, 0.0  ;;  %vm2962_vm15 = vcmp.eq.s32.totalorder %v510_v37, %v7669_v9 }
  0x57   : > { %v6825_v13 = vpack.c.bf16 %v6614_v6, %v6610_v51  ;;  %v2694_v21 = vadd.f32 %v2438_v33, %v1884_v22  ;;  %vm2966_vm0 = vcmp.eq.s32.totalorder %v514_v48, %v7669_v9  ;;  %v3232_v23 = vsel %vm2962_vm15, %v7684_v19, 0.0 }
  0x58   : > { %v2698_v29 = vadd.f32 %v2442_v12, %v1888_v8  ;;  %v3236_v26 = vsel %vm2966_vm0, %v7684_v19, 0.0  ;;  %vm3762_vm1 = vcmp.eq.s32.totalorder %v510_v37, %v7698_v40  ;;  %vm3766_vm2 = vcmp.eq.s32.totalorder %v514_v48, %v7698_v40 }
  0x59   : > { %6906 = vmatpush.bf16.msra.mxu1 %v6825_v13  ;;  %v3488_v42 = vadd.f32 %v3232_v23, %v2694_v21  ;;  %v4032_v31 = vsel %vm3762_vm1, %v7700_v43, 0.0  ;;  %v4036_v50 = vsel %vm3766_vm2, %v7700_v43, 0.0  ;;  %vm4556_vm3 = vcmp.eq.s32.totalorder %v510_v37, %v7713_v60 }
  0x5a   : > { %v3492_v54 = vadd.f32 %v3236_v26, %v2698_v29  ;;  %vm4560_vm4 = vcmp.eq.s32.totalorder %v514_v48, %v7713_v60  ;;  %v4826_v38 = vsel %vm4556_vm3, %v7715_v62, 0.0  ;;  %vm5354_vm5 = vcmp.eq.s32.totalorder %v510_v37, %v7743_v17 }
  0x5b   : > { %v4288_v58 = vadd.f32 %v4032_v31, %v3488_v42  ;;  %v4830_v0 = vsel %vm4560_vm4, %v7715_v62, 0.0  ;;  %vm5358_vm6 = vcmp.eq.s32.totalorder %v514_v48, %v7743_v17  ;;  %v5624_v4 = vsel %vm5354_vm5, %v7745_v20, 0.0 }
  0x5c   : > { %v4292_v36 = vadd.f32 %v4036_v50, %v3492_v54  ;;  %v5628_v44 = vsel %vm5358_vm6, %v7745_v20, 0.0  ;;  %vm6148_vm7 = vcmp.eq.s32.totalorder %v510_v37, %v7765_v32  ;;  %vm6152_vm8 = vcmp.eq.s32.totalorder %v514_v48, %v7765_v32 }
  0x5d   : > { %v5082_v25 = vadd.f32 %v4826_v38, %v4288_v58  ;;  %v6418_v51 = vsel %vm6148_vm7, %v7767_v34, 0.0  ;;  %v6422_v6 = vsel %vm6152_vm8, %v7767_v34, 0.0  ;;  %vm872_vm9 = vcmp.eq.s32.totalorder %v7837_v46, %v7638_v57 }
  0x5e   : > { %v5086_v52 = vadd.f32 %v4830_v0, %v4292_v36  ;;  %vm876_vm10 = vcmp.eq.s32.totalorder %v578_v24, %v7638_v57  ;;  %v1142_v22 = vsel %vm872_vm9, %v7656_v1, 0.0  ;;  %vm1422_vm11 = vcmp.eq.s32.totalorder %v7837_v46, %v7641_v59 }
  0x5f   : > { %v5880_v8 = vadd.f32 %v5624_v4, %v5082_v25  ;;  %v1146_v37 = vsel %vm876_vm10, %v7656_v1, 0.0  ;;  %vm1426_vm12 = vcmp.eq.s32.totalorder %v578_v24, %v7641_v59  ;;  %v1692_v48 = vsel %vm1422_vm11, %v7662_v2, 0.0 }
  0x60   : > { %v5884_v33 = vadd.f32 %v5628_v44, %v5086_v52  ;;  %v1696_v12 = vsel %vm1426_vm12, %v7662_v2, 0.0  ;;  %v1948_v13 = vadd.f32 %v1692_v48, %v1142_v22  ;;  %vm2232_vm13 = vcmp.eq.s32.totalorder %v7837_v46, %v7664_v3 }
  0x61   : > { %v6674_v21 = vadd.f32 %v6418_v51, %v5880_v8  ;;  %v1952_v23 = vadd.f32 %v1696_v12, %v1146_v37  ;;  %vm2236_vm14 = vcmp.eq.s32.totalorder %v578_v24, %v7664_v3  ;;  %v2502_v29 = vsel %vm2232_vm13, %v7678_v18, 0.0  ;;  %v378_v37 = vld [vmem:[#allocation2 + $0x1a0] sm:$0xff] }
  0x62   : > { %v6678_v26 = vadd.f32 %v6422_v6, %v5884_v33  ;;  %v2506_v42 = vsel %vm2236_vm14, %v7678_v18, 0.0  ;;  %v2758_v31 = vadd.f32 %v2502_v29, %v1948_v13  ;;  %vm3026_vm15 = vcmp.eq.s32.totalorder %v7837_v46, %v7669_v9  ;;  %v374_v6 = vld [vmem:[#allocation2 + $0x180] sm:$0xff] }
  0x63   : > { %v2762_v50 = vadd.f32 %v2506_v42, %v1952_v23  ;;  %vm3030_vm0 = vcmp.eq.s32.totalorder %v578_v24, %v7669_v9  ;;  %v3296_v54 = vsel %vm3026_vm15, %v7684_v19, 0.0  ;;  %vm3826_vm1 = vcmp.eq.s32.totalorder %v7837_v46, %v7698_v40 }
  0x64   : > { %v6857_v38 = vpack.c.bf16 %v6678_v26, %v6674_v21  ;;  %v3300_v58 = vsel %vm3030_vm0, %v7684_v19, 0.0  ;;  %v3552_v0 = vadd.f32 %v3296_v54, %v2758_v31  ;;  %vm3830_vm2 = vcmp.eq.s32.totalorder %v578_v24, %v7698_v40 }
  0x65   : > { %v3556_v4 = vadd.f32 %v3300_v58, %v2762_v50  ;;  %v4096_v36 = vsel %vm3826_vm1, %v7700_v43, 0.0  ;;  %v4100_v44 = vsel %vm3830_vm2, %v7700_v43, 0.0  ;;  %vm4620_vm3 = vcmp.eq.s32.totalorder %v7837_v46, %v7713_v60 }
  0x66   : > { %6919 = vmatpush.bf16.msra.mxu2 %v6857_v38  ;;  %v4352_v25 = vadd.f32 %v4096_v36, %v3552_v0  ;;  %vm4624_vm4 = vcmp.eq.s32.totalorder %v578_v24, %v7713_v60  ;;  %v4890_v51 = vsel %vm4620_vm3, %v7715_v62, 0.0  ;;  %vm5418_vm5 = vcmp.eq.s32.totalorder %v7837_v46, %v7743_v17 }
  0x67   : > { %v4356_v52 = vadd.f32 %v4100_v44, %v3556_v4  ;;  %v4894_v22 = vsel %vm4624_vm4, %v7715_v62, 0.0  ;;  %vm5422_vm6 = vcmp.eq.s32.totalorder %v578_v24, %v7743_v17  ;;  %v5688_v8 = vsel %vm5418_vm5, %v7745_v20, 0.0 }
  0x68   : > { %v5146_v48 = vadd.f32 %v4890_v51, %v4352_v25  ;;  %v5692_v33 = vsel %vm5422_vm6, %v7745_v20, 0.0  ;;  %vm6212_vm7 = vcmp.eq.s32.totalorder %v7837_v46, %v7765_v32  ;;  %vm6216_vm8 = vcmp.eq.s32.totalorder %v578_v24, %v7765_v32 }
  0x69   : > { %v5150_v12 = vadd.f32 %v4894_v22, %v4356_v52  ;;  %v6482_v13 = vsel %vm6212_vm7, %v7767_v34, 0.0  ;;  %v6486_v21 = vsel %vm6216_vm8, %v7767_v34, 0.0  ;;  %vm672_vm9 = vcmp.eq.s32.totalorder %v374_v6, %v7638_v57 }
  0x6a   : > { %v5944_v23 = vadd.f32 %v5688_v8, %v5146_v48  ;;  %vm676_vm10 = vcmp.eq.s32.totalorder %v378_v37, %v7638_v57  ;;  %v942_v29 = vsel %vm672_vm9, %v7656_v1, 0.0  ;;  %vm1222_vm11 = vcmp.eq.s32.totalorder %v374_v6, %v7641_v59 }
  0x6b   : > { %v5948_v26 = vadd.f32 %v5692_v33, %v5150_v12  ;;  %v946_v42 = vsel %vm676_vm10, %v7656_v1, 0.0  ;;  %vm1226_vm12 = vcmp.eq.s32.totalorder %v378_v37, %v7641_v59  ;;  %v1492_v46 = vsel %vm1222_vm11, %v7662_v2, 0.0 }
  0x6c   : > { %v6738_v24 = vadd.f32 %v6482_v13, %v5944_v23  ;;  %v1496_v31 = vsel %vm1226_vm12, %v7662_v2, 0.0  ;;  %v1748_v50 = vadd.f32 %v1492_v46, %v942_v29  ;;  %vm2032_vm13 = vcmp.eq.s32.totalorder %v374_v6, %v7664_v3  ;;  %v442_v23 = vld [vmem:[#allocation2 + $0x3a0] sm:$0xff] }
  0x6d   : > { %v6742_v54 = vadd.f32 %v6486_v21, %v5948_v26  ;;  %v1752_v38 = vadd.f32 %v1496_v31, %v946_v42  ;;  %vm2036_vm14 = vcmp.eq.s32.totalorder %v378_v37, %v7664_v3  ;;  %v2302_v58 = vsel %vm2032_vm13, %v7678_v18, 0.0  ;;  %v438_v21 = vld [vmem:[#allocation2 + $0x380] sm:$0xff] }
  0x6e   : > { %v2306_v0 = vsel %vm2036_vm14, %v7678_v18, 0.0  ;;  %v2558_v4 = vadd.f32 %v2302_v58, %v1748_v50  ;;  %vm2826_vm15 = vcmp.eq.s32.totalorder %v374_v6, %v7669_v9  ;;  %vm2830_vm0 = vcmp.eq.s32.totalorder %v378_v37, %v7669_v9 }
  0x6f   : > { %v6889_v36 = vpack.c.bf16 %v6742_v54, %v6738_v24  ;;  %v2562_v44 = vadd.f32 %v2306_v0, %v1752_v38  ;;  %v3096_v25 = vsel %vm2826_vm15, %v7684_v19, 0.0  ;;  %v3100_v51 = vsel %vm2830_vm0, %v7684_v19, 0.0 }
  0x70   : > { %v3352_v52 = vadd.f32 %v3096_v25, %v2558_v4  ;;  %vm3626_vm1 = vcmp.eq.s32.totalorder %v374_v6, %v7698_v40  ;;  %vm3630_vm2 = vcmp.eq.s32.totalorder %v378_v37, %v7698_v40  ;;  %vm4420_vm3 = vcmp.eq.s32.totalorder %v374_v6, %v7713_v60 }
  0x71   : > { %6932 = vmatpush.bf16.msra.mxu3 %v6889_v36  ;;  %v3356_v22 = vadd.f32 %v3100_v51, %v2562_v44  ;;  %v3896_v8 = vsel %vm3626_vm1, %v7700_v43, 0.0  ;;  %v3900_v48 = vsel %vm3630_vm2, %v7700_v43, 0.0  ;;  %vm4424_vm4 = vcmp.eq.s32.totalorder %v378_v37, %v7713_v60 }
  0x72   : > { %v4152_v33 = vadd.f32 %v3896_v8, %v3352_v52  ;;  %v4690_v12 = vsel %vm4420_vm3, %v7715_v62, 0.0  ;;  %v4694_v13 = vsel %vm4424_vm4, %v7715_v62, 0.0  ;;  %vm5218_vm5 = vcmp.eq.s32.totalorder %v374_v6, %v7743_v17 }
  0x73   : > { %v4156_v29 = vadd.f32 %v3900_v48, %v3356_v22  ;;  %vm5222_vm6 = vcmp.eq.s32.totalorder %v378_v37, %v7743_v17  ;;  %v5488_v26 = vsel %vm5218_vm5, %v7745_v20, 0.0  ;;  %vm6012_vm7 = vcmp.eq.s32.totalorder %v374_v6, %v7765_v32 }
  0x74   : > { %v4946_v42 = vadd.f32 %v4690_v12, %v4152_v33  ;;  %v5492_v46 = vsel %vm5222_vm6, %v7745_v20, 0.0  ;;  %vm6016_vm8 = vcmp.eq.s32.totalorder %v378_v37, %v7765_v32  ;;  %v6282_v24 = vsel %vm6012_vm7, %v7767_v34, 0.0 }
  0x75   : > { %v4950_v31 = vadd.f32 %v4694_v13, %v4156_v29  ;;  %v6286_v50 = vsel %vm6016_vm8, %v7767_v34, 0.0  ;;  %vm736_vm9 = vcmp.eq.s32.totalorder %v438_v21, %v7638_v57  ;;  %vm740_vm10 = vcmp.eq.s32.totalorder %v442_v23, %v7638_v57 }
  0x76   : > { %v5744_v54 = vadd.f32 %v5488_v26, %v4946_v42  ;;  %v1006_v38 = vsel %vm736_vm9, %v7656_v1, 0.0  ;;  %v1010_v58 = vsel %vm740_vm10, %v7656_v1, 0.0  ;;  %vm1286_vm11 = vcmp.eq.s32.totalorder %v438_v21, %v7641_v59 }
  0x77   : > { %v5748_v6 = vadd.f32 %v5492_v46, %v4950_v31  ;;  %vm1290_vm12 = vcmp.eq.s32.totalorder %v442_v23, %v7641_v59  ;;  %v1556_v37 = vsel %vm1286_vm11, %v7662_v2, 0.0  ;;  %vm2096_vm13 = vcmp.eq.s32.totalorder %v438_v21, %v7664_v3 }
  0x78   : > { %v6538_v0 = vadd.f32 %v6282_v24, %v5744_v54  ;;  %v1560_v4 = vsel %vm1290_vm12, %v7662_v2, 0.0  ;;  %v1812_v36 = vadd.f32 %v1556_v37, %v1006_v38  ;;  %vm2100_vm14 = vcmp.eq.s32.totalorder %v442_v23, %v7664_v3  ;;  %v7942_v24 = vld [vmem:[#allocation2 + $0x580] sm:$0xff] }
  0x79   : > { %v6542_v44 = vadd.f32 %v6286_v50, %v5748_v6  ;;  %v1816_v25 = vadd.f32 %v1560_v4, %v1010_v58  ;;  %v2366_v51 = vsel %vm2096_vm13, %v7678_v18, 0.0  ;;  %v2370_v52 = vsel %vm2100_vm14, %v7678_v18, 0.0  ;;  %v506_v54 = vld [vmem:[#allocation2 + $0x5a0] sm:$0xff] }
  0x7a   : > { %v2622_v22 = vadd.f32 %v2366_v51, %v1812_v36  ;;  %vm2890_vm15 = vcmp.eq.s32.totalorder %v438_v21, %v7669_v9  ;;  %vm2894_vm0 = vcmp.eq.s32.totalorder %v442_v23, %v7669_v9  ;;  %vm3690_vm1 = vcmp.eq.s32.totalorder %v438_v21, %v7698_v40 }
  0x7b   : > { %v6789_v8 = vpack.c.bf16 %v6542_v44, %v6538_v0  ;;  %v2626_v48 = vadd.f32 %v2370_v52, %v1816_v25  ;;  %v3160_v33 = vsel %vm2890_vm15, %v7684_v19, 0.0  ;;  %v3164_v12 = vsel %vm2894_vm0, %v7684_v19, 0.0 }
  0x7c   : > { %v3416_v13 = vadd.f32 %v3160_v33, %v2622_v22  ;;  %vm3694_vm2 = vcmp.eq.s32.totalorder %v442_v23, %v7698_v40  ;;  %v3960_v29 = vsel %vm3690_vm1, %v7700_v43, 0.0  ;;  %vm4484_vm3 = vcmp.eq.s32.totalorder %v438_v21, %v7713_v60 }
  0x7d   : > { %6894 = vmatpush.bf16.msra.mxu0 %v6789_v8  ;;  %v3420_v26 = vadd.f32 %v3164_v12, %v2626_v48  ;;  %v3964_v42 = vsel %vm3694_vm2, %v7700_v43, 0.0  ;;  %vm4488_vm4 = vcmp.eq.s32.totalorder %v442_v23, %v7713_v60  ;;  %v4754_v46 = vsel %vm4484_vm3, %v7715_v62, 0.0 }
  0x7e   : > { %v4216_v31 = vadd.f32 %v3960_v29, %v3416_v13  ;;  %v4758_v50 = vsel %vm4488_vm4, %v7715_v62, 0.0  ;;  %vm5282_vm5 = vcmp.eq.s32.totalorder %v438_v21, %v7743_v17  ;;  %vm5286_vm6 = vcmp.eq.s32.totalorder %v442_v23, %v7743_v17 }
  0x7f   : > { %v4220_v38 = vadd.f32 %v3964_v42, %v3420_v26  ;;  %v5552_v58 = vsel %vm5282_vm5, %v7745_v20, 0.0  ;;  %v5556_v6 = vsel %vm5286_vm6, %v7745_v20, 0.0  ;;  %vm6076_vm7 = vcmp.eq.s32.totalorder %v438_v21, %v7765_v32 }
  0x80   : > { %v5010_v37 = vadd.f32 %v4754_v46, %v4216_v31  ;;  %vm6080_vm8 = vcmp.eq.s32.totalorder %v442_v23, %v7765_v32  ;;  %v6346_v0 = vsel %vm6076_vm7, %v7767_v34, 0.0  ;;  %vm800_vm9 = vcmp.eq.s32.totalorder %v7942_v24, %v7638_v57 }
  0x81   : > { %v5014_v4 = vadd.f32 %v4758_v50, %v4220_v38  ;;  %v6350_v36 = vsel %vm6080_vm8, %v7767_v34, 0.0  ;;  %vm804_vm10 = vcmp.eq.s32.totalorder %v506_v54, %v7638_v57  ;;  %v1070_v44 = vsel %vm800_vm9, %v7656_v1, 0.0 }
  0x82   : > { %v5808_v25 = vadd.f32 %v5552_v58, %v5010_v37  ;;  %v1074_v51 = vsel %vm804_vm10, %v7656_v1, 0.0  ;;  %vm1350_vm11 = vcmp.eq.s32.totalorder %v7942_v24, %v7641_v59  ;;  %vm1354_vm12 = vcmp.eq.s32.totalorder %v506_v54, %v7641_v59 }
  0x83   : > { %v5812_v21 = vadd.f32 %v5556_v6, %v5014_v4  ;;  %v1620_v23 = vsel %vm1350_vm11, %v7662_v2, 0.0  ;;  %v1624_v52 = vsel %vm1354_vm12, %v7662_v2, 0.0  ;;  %vm2160_vm13 = vcmp.eq.s32.totalorder %v7942_v24, %v7664_v3 }
  0x84   : > { %v6602_v22 = vadd.f32 %v6346_v0, %v5808_v25  ;;  %v1876_v8 = vadd.f32 %v1620_v23, %v1070_v44  ;;  %v1880_v48 = vadd.f32 %v1624_v52, %v1074_v51  ;;  %vm2164_vm14 = vcmp.eq.s32.totalorder %v506_v54, %v7664_v3  ;;  %v566_v44 = vld [vmem:[#allocation2 + $0x780] sm:$0xff] }
  0x85   : > { %v6606_v33 = vadd.f32 %v6350_v36, %v5812_v21  ;;  %v2430_v12 = vsel %vm2160_vm13, %v7678_v18, 0.0  ;;  %v2434_v13 = vsel %vm2164_vm14, %v7678_v18, 0.0  ;;  %vm2954_vm15 = vcmp.eq.s32.totalorder %v7942_v24, %v7669_v9  ;;  %v570_v25 = vld [vmem:[#allocation2 + $0x7a0] sm:$0xff] }
  0x86   : > { %v2686_v29 = vadd.f32 %v2430_v12, %v1876_v8  ;;  %v2690_v26 = vadd.f32 %v2434_v13, %v1880_v48  ;;  %vm2958_vm0 = vcmp.eq.s32.totalorder %v506_v54, %v7669_v9  ;;  %v3224_v42 = vsel %vm2954_vm15, %v7684_v19, 0.0 }
  0x87   : > { %v6821_v46 = vpack.c.bf16 %v6606_v33, %v6602_v22  ;;  %v3228_v31 = vsel %vm2958_vm0, %v7684_v19, 0.0  ;;  %vm3754_vm1 = vcmp.eq.s32.totalorder %v7942_v24, %v7698_v40  ;;  %vm3758_vm2 = vcmp.eq.s32.totalorder %v506_v54, %v7698_v40 }
  0x88   : > { %v3480_v50 = vadd.f32 %v3224_v42, %v2686_v29  ;;  %v3484_v38 = vadd.f32 %v3228_v31, %v2690_v26  ;;  %v4024_v58 = vsel %vm3754_vm1, %v7700_v43, 0.0  ;;  %v4028_v6 = vsel %vm3758_vm2, %v7700_v43, 0.0 }
  0x89   : > { %6907 = vmatpush.bf16.msra.mxu1 %v6821_v46  ;;  %vm4548_vm3 = vcmp.eq.s32.totalorder %v7942_v24, %v7713_v60  ;;  %vm4552_vm4 = vcmp.eq.s32.totalorder %v506_v54, %v7713_v60  ;;  %vm5346_vm5 = vcmp.eq.s32.totalorder %v7942_v24, %v7743_v17  ;;  %vm5350_vm6 = vcmp.eq.s32.totalorder %v506_v54, %v7743_v17 }
  0x8a   : > { %v4280_v37 = vadd.f32 %v4024_v58, %v3480_v50  ;;  %v4284_v0 = vadd.f32 %v4028_v6, %v3484_v38  ;;  %v4818_v4 = vsel %vm4548_vm3, %v7715_v62, 0.0  ;;  %v4822_v36 = vsel %vm4552_vm4, %v7715_v62, 0.0 }
  0x8b   : > { %v5616_v51 = vsel %vm5346_vm5, %v7745_v20, 0.0  ;;  %v5620_v21 = vsel %vm5350_vm6, %v7745_v20, 0.0  ;;  %vm6140_vm7 = vcmp.eq.s32.totalorder %v7942_v24, %v7765_v32  ;;  %vm6144_vm8 = vcmp.eq.s32.totalorder %v506_v54, %v7765_v32 }
  0x8c   : > { %v5074_v23 = vadd.f32 %v4818_v4, %v4280_v37  ;;  %v5078_v52 = vadd.f32 %v4822_v36, %v4284_v0  ;;  %v6410_v22 = vsel %vm6140_vm7, %v7767_v34, 0.0  ;;  %v6414_v8 = vsel %vm6144_vm8, %v7767_v34, 0.0 }
  0x8d   : > { %vm864_vm9 = vcmp.eq.s32.totalorder %v566_v44, %v7638_v57  ;;  %vm868_vm10 = vcmp.eq.s32.totalorder %v570_v25, %v7638_v57  ;;  %vm1414_vm11 = vcmp.eq.s32.totalorder %v566_v44, %v7641_v59  ;;  %vm1418_vm12 = vcmp.eq.s32.totalorder %v570_v25, %v7641_v59 }
  0x8e   : > { %v5872_v48 = vadd.f32 %v5616_v51, %v5074_v23  ;;  %v5876_v33 = vadd.f32 %v5620_v21, %v5078_v52  ;;  %v1134_v24 = vsel %vm864_vm9, %v7656_v1, 0.0  ;;  %v1138_v54 = vsel %vm868_vm10, %v7656_v1, 0.0  ;;  %v8014_v23 = vld [vmem:[#allocation2 + $0x140] sm:$0xff] }
  0x8f   : > { %v1684_v12 = vsel %vm1414_vm11, %v7662_v2, 0.0  ;;  %v1688_v13 = vsel %vm1418_vm12, %v7662_v2, 0.0  ;;  %vm2224_vm13 = vcmp.eq.s32.totalorder %v566_v44, %v7664_v3  ;;  %vm2228_vm14 = vcmp.eq.s32.totalorder %v570_v25, %v7664_v3 }
  0x90   : > { %v6666_v29 = vadd.f32 %v6410_v22, %v5872_v48  ;;  %v6670_v26 = vadd.f32 %v6414_v8, %v5876_v33  ;;  %v1940_v42 = vadd.f32 %v1684_v12, %v1134_v24  ;;  %v1944_v46 = vadd.f32 %v1688_v13, %v1138_v54  ;;  %v370_v24 = vld [vmem:[#allocation2 + $0x160] sm:$0xff] }
  0x91   : > { %v2494_v31 = vsel %vm2224_vm13, %v7678_v18, 0.0  ;;  %v2498_v50 = vsel %vm2228_vm14, %v7678_v18, 0.0  ;;  %vm3018_vm15 = vcmp.eq.s32.totalorder %v566_v44, %v7669_v9  ;;  %vm3022_vm0 = vcmp.eq.s32.totalorder %v570_v25, %v7669_v9 }
  0x92   : > { %v6853_v38 = vpack.c.bf16 %v6670_v26, %v6666_v29  ;;  %v2750_v58 = vadd.f32 %v2494_v31, %v1940_v42  ;;  %v2754_v6 = vadd.f32 %v2498_v50, %v1944_v46  ;;  %v3288_v37 = vsel %vm3018_vm15, %v7684_v19, 0.0 }
  0x93   : > { %v3292_v0 = vsel %vm3022_vm0, %v7684_v19, 0.0  ;;  %vm3818_vm1 = vcmp.eq.s32.totalorder %v566_v44, %v7698_v40  ;;  %vm3822_vm2 = vcmp.eq.s32.totalorder %v570_v25, %v7698_v40  ;;  %vm4612_vm3 = vcmp.eq.s32.totalorder %v566_v44, %v7713_v60 }
  0x94   : > { %6920 = vmatpush.bf16.msra.mxu2 %v6853_v38  ;;  %v3544_v4 = vadd.f32 %v3288_v37, %v2750_v58  ;;  %v3548_v36 = vadd.f32 %v3292_v0, %v2754_v6  ;;  %v4088_v51 = vsel %vm3818_vm1, %v7700_v43, 0.0  ;;  %v4092_v21 = vsel %vm3822_vm2, %v7700_v43, 0.0 }
  0x95   : > { %vm4616_vm4 = vcmp.eq.s32.totalorder %v570_v25, %v7713_v60  ;;  %v4882_v52 = vsel %vm4612_vm3, %v7715_v62, 0.0  ;;  %vm5410_vm5 = vcmp.eq.s32.totalorder %v566_v44, %v7743_v17  ;;  %vm5414_vm6 = vcmp.eq.s32.totalorder %v570_v25, %v7743_v17 }
  0x96   : > { %v4344_v22 = vadd.f32 %v4088_v51, %v3544_v4  ;;  %v4348_v8 = vadd.f32 %v4092_v21, %v3548_v36  ;;  %v4886_v48 = vsel %vm4616_vm4, %v7715_v62, 0.0  ;;  %v5680_v33 = vsel %vm5410_vm5, %v7745_v20, 0.0 }
  0x97   : > { %v5684_v54 = vsel %vm5414_vm6, %v7745_v20, 0.0  ;;  %vm6204_vm7 = vcmp.eq.s32.totalorder %v566_v44, %v7765_v32  ;;  %vm6208_vm8 = vcmp.eq.s32.totalorder %v570_v25, %v7765_v32  ;;  %vm664_vm9 = vcmp.eq.s32.totalorder %v8014_v23, %v7638_v57 }
  0x98   : > { %v5138_v12 = vadd.f32 %v4882_v52, %v4344_v22  ;;  %v5142_v13 = vadd.f32 %v4886_v48, %v4348_v8  ;;  %v6474_v29 = vsel %vm6204_vm7, %v7767_v34, 0.0  ;;  %v6478_v26 = vsel %vm6208_vm8, %v7767_v34, 0.0 }
  0x99   : > { %vm668_vm10 = vcmp.eq.s32.totalorder %v370_v24, %v7638_v57  ;;  %v934_v42 = vsel %vm664_vm9, %v7656_v1, 0.0  ;;  %vm1214_vm11 = vcmp.eq.s32.totalorder %v8014_v23, %v7641_v59  ;;  %vm1218_vm12 = vcmp.eq.s32.totalorder %v370_v24, %v7641_v59 }
  0x9a   : > { %v5936_v44 = vadd.f32 %v5680_v33, %v5138_v12  ;;  %v5940_v25 = vadd.f32 %v5684_v54, %v5142_v13  ;;  %v938_v46 = vsel %vm668_vm10, %v7656_v1, 0.0  ;;  %v1484_v31 = vsel %vm1214_vm11, %v7662_v2, 0.0 }
  0x9b   : > { %v1488_v50 = vsel %vm1218_vm12, %v7662_v2, 0.0  ;;  %v1740_v38 = vadd.f32 %v1484_v31, %v934_v42  ;;  %vm2024_vm13 = vcmp.eq.s32.totalorder %v8014_v23, %v7664_v3  ;;  %vm2028_vm14 = vcmp.eq.s32.totalorder %v370_v24, %v7664_v3  ;;  %v434_v42 = vld [vmem:[#allocation2 + $0x360] sm:$0xff] }
  0x9c   : > { %v6730_v58 = vadd.f32 %v6474_v29, %v5936_v44  ;;  %v6734_v6 = vadd.f32 %v6478_v26, %v5940_v25  ;;  %v1744_v37 = vadd.f32 %v1488_v50, %v938_v46  ;;  %v2294_v0 = vsel %vm2024_vm13, %v7678_v18, 0.0  ;;  %v430_v26 = vld [vmem:[#allocation2 + $0x340] sm:$0xff] }
  0x9d   : > { %v2298_v4 = vsel %vm2028_vm14, %v7678_v18, 0.0  ;;  %v2550_v36 = vadd.f32 %v2294_v0, %v1740_v38  ;;  %vm2818_vm15 = vcmp.eq.s32.totalorder %v8014_v23, %v7669_v9  ;;  %vm2822_vm0 = vcmp.eq.s32.totalorder %v370_v24, %v7669_v9 }
  0x9e   : > { %v6885_v51 = vpack.c.bf16 %v6734_v6, %v6730_v58  ;;  %v2554_v21 = vadd.f32 %v2298_v4, %v1744_v37  ;;  %v3088_v52 = vsel %vm2818_vm15, %v7684_v19, 0.0  ;;  %v3092_v22 = vsel %vm2822_vm0, %v7684_v19, 0.0 }
  0x9f   : > { %v3344_v8 = vadd.f32 %v3088_v52, %v2550_v36  ;;  %vm3618_vm1 = vcmp.eq.s32.totalorder %v8014_v23, %v7698_v40  ;;  %vm3622_vm2 = vcmp.eq.s32.totalorder %v370_v24, %v7698_v40  ;;  %vm4412_vm3 = vcmp.eq.s32.totalorder %v8014_v23, %v7713_v60 }
  0xa0   : > { %6933 = vmatpush.bf16.msra.mxu3 %v6885_v51  ;;  %v3348_v48 = vadd.f32 %v3092_v22, %v2554_v21  ;;  %v3888_v33 = vsel %vm3618_vm1, %v7700_v43, 0.0  ;;  %v3892_v54 = vsel %vm3622_vm2, %v7700_v43, 0.0  ;;  %vm4416_vm4 = vcmp.eq.s32.totalorder %v370_v24, %v7713_v60 }
  0xa1   : > { %v4144_v12 = vadd.f32 %v3888_v33, %v3344_v8  ;;  %v4682_v13 = vsel %vm4412_vm3, %v7715_v62, 0.0  ;;  %v4686_v29 = vsel %vm4416_vm4, %v7715_v62, 0.0  ;;  %vm5210_vm5 = vcmp.eq.s32.totalorder %v8014_v23, %v7743_v17 }
  0xa2   : > { %v4148_v44 = vadd.f32 %v3892_v54, %v3348_v48  ;;  %vm5214_vm6 = vcmp.eq.s32.totalorder %v370_v24, %v7743_v17  ;;  %v5480_v25 = vsel %vm5210_vm5, %v7745_v20, 0.0  ;;  %vm6004_vm7 = vcmp.eq.s32.totalorder %v8014_v23, %v7765_v32 }
  0xa3   : > { %v4938_v46 = vadd.f32 %v4682_v13, %v4144_v12  ;;  %v5484_v31 = vsel %vm5214_vm6, %v7745_v20, 0.0  ;;  %vm6008_vm8 = vcmp.eq.s32.totalorder %v370_v24, %v7765_v32  ;;  %v6274_v50 = vsel %vm6004_vm7, %v7767_v34, 0.0 }
  0xa4   : > { %v4942_v38 = vadd.f32 %v4686_v29, %v4148_v44  ;;  %v6278_v58 = vsel %vm6008_vm8, %v7767_v34, 0.0  ;;  %vm728_vm9 = vcmp.eq.s32.totalorder %v430_v26, %v7638_v57  ;;  %vm732_vm10 = vcmp.eq.s32.totalorder %v434_v42, %v7638_v57 }
  0xa5   : > { %v5736_v6 = vadd.f32 %v5480_v25, %v4938_v46  ;;  %v998_v37 = vsel %vm728_vm9, %v7656_v1, 0.0  ;;  %v1002_v0 = vsel %vm732_vm10, %v7656_v1, 0.0  ;;  %vm1278_vm11 = vcmp.eq.s32.totalorder %v430_v26, %v7641_v59 }
  0xa6   : > { %v5740_v23 = vadd.f32 %v5484_v31, %v4942_v38  ;;  %vm1282_vm12 = vcmp.eq.s32.totalorder %v434_v42, %v7641_v59  ;;  %v1548_v24 = vsel %vm1278_vm11, %v7662_v2, 0.0  ;;  %vm2088_vm13 = vcmp.eq.s32.totalorder %v430_v26, %v7664_v3 }
  0xa7   : > { %v6530_v4 = vadd.f32 %v6274_v50, %v5736_v6  ;;  %v1552_v36 = vsel %vm1282_vm12, %v7662_v2, 0.0  ;;  %v1804_v51 = vadd.f32 %v1548_v24, %v998_v37  ;;  %vm2092_vm14 = vcmp.eq.s32.totalorder %v434_v42, %v7664_v3  ;;  %v8090_v50 = vld [vmem:[#allocation2 + $0x540] sm:$0xff] }
  0xa8   : > { %v6534_v21 = vadd.f32 %v6278_v58, %v5740_v23  ;;  %v1808_v52 = vadd.f32 %v1552_v36, %v1002_v0  ;;  %v2358_v22 = vsel %vm2088_vm13, %v7678_v18, 0.0  ;;  %v2362_v8 = vsel %vm2092_vm14, %v7678_v18, 0.0  ;;  %v498_v6 = vld [vmem:[#allocation2 + $0x560] sm:$0xff] }
  0xa9   : > { %v2614_v48 = vadd.f32 %v2358_v22, %v1804_v51  ;;  %vm2882_vm15 = vcmp.eq.s32.totalorder %v430_v26, %v7669_v9  ;;  %vm2886_vm0 = vcmp.eq.s32.totalorder %v434_v42, %v7669_v9  ;;  %vm3682_vm1 = vcmp.eq.s32.totalorder %v430_v26, %v7698_v40 }
  0xaa   : > { %v6785_v33 = vpack.c.bf16 %v6534_v21, %v6530_v4  ;;  %v2618_v54 = vadd.f32 %v2362_v8, %v1808_v52  ;;  %v3152_v12 = vsel %vm2882_vm15, %v7684_v19, 0.0  ;;  %v3156_v13 = vsel %vm2886_vm0, %v7684_v19, 0.0 }
  0xab   : > { %v3408_v29 = vadd.f32 %v3152_v12, %v2614_v48  ;;  %vm3686_vm2 = vcmp.eq.s32.totalorder %v434_v42, %v7698_v40  ;;  %v3952_v44 = vsel %vm3682_vm1, %v7700_v43, 0.0  ;;  %vm4476_vm3 = vcmp.eq.s32.totalorder %v430_v26, %v7713_v60 }
  0xac   : > { %6895 = vmatpush.bf16.msra.mxu0 %v6785_v33  ;;  %v3412_v25 = vadd.f32 %v3156_v13, %v2618_v54  ;;  %v3956_v46 = vsel %vm3686_vm2, %v7700_v43, 0.0  ;;  %vm4480_vm4 = vcmp.eq.s32.totalorder %v434_v42, %v7713_v60  ;;  %v4746_v31 = vsel %vm4476_vm3, %v7715_v62, 0.0 }
  0xad   : > { %v4208_v38 = vadd.f32 %v3952_v44, %v3408_v29  ;;  %v4750_v58 = vsel %vm4480_vm4, %v7715_v62, 0.0  ;;  %vm5274_vm5 = vcmp.eq.s32.totalorder %v430_v26, %v7743_v17  ;;  %vm5278_vm6 = vcmp.eq.s32.totalorder %v434_v42, %v7743_v17 }
  0xae   : > { %v4212_v37 = vadd.f32 %v3956_v46, %v3412_v25  ;;  %v5544_v0 = vsel %vm5274_vm5, %v7745_v20, 0.0  ;;  %v5548_v23 = vsel %vm5278_vm6, %v7745_v20, 0.0  ;;  %vm6068_vm7 = vcmp.eq.s32.totalorder %v430_v26, %v7765_v32 }
  0xaf   : > { %v5002_v24 = vadd.f32 %v4746_v31, %v4208_v38  ;;  %vm6072_vm8 = vcmp.eq.s32.totalorder %v434_v42, %v7765_v32  ;;  %v6338_v4 = vsel %vm6068_vm7, %v7767_v34, 0.0  ;;  %vm792_vm9 = vcmp.eq.s32.totalorder %v8090_v50, %v7638_v57 }
  0xb0   : > { %v5006_v36 = vadd.f32 %v4750_v58, %v4212_v37  ;;  %v6342_v51 = vsel %vm6072_vm8, %v7767_v34, 0.0  ;;  %vm796_vm10 = vcmp.eq.s32.totalorder %v498_v6, %v7638_v57  ;;  %v1062_v21 = vsel %vm792_vm9, %v7656_v1, 0.0 }
  0xb1   : > { %v5800_v52 = vadd.f32 %v5544_v0, %v5002_v24  ;;  %v1066_v22 = vsel %vm796_vm10, %v7656_v1, 0.0  ;;  %vm1342_vm11 = vcmp.eq.s32.totalorder %v8090_v50, %v7641_v59  ;;  %vm1346_vm12 = vcmp.eq.s32.totalorder %v498_v6, %v7641_v59 }
  0xb2   : > { %v5804_v26 = vadd.f32 %v5548_v23, %v5006_v36  ;;  %v1612_v42 = vsel %vm1342_vm11, %v7662_v2, 0.0  ;;  %v1616_v8 = vsel %vm1346_vm12, %v7662_v2, 0.0  ;;  %vm2152_vm13 = vcmp.eq.s32.totalorder %v8090_v50, %v7664_v3 }
  0xb3   : > { %v6594_v48 = vadd.f32 %v6338_v4, %v5800_v52  ;;  %v1868_v33 = vadd.f32 %v1612_v42, %v1062_v21  ;;  %v1872_v54 = vadd.f32 %v1616_v8, %v1066_v22  ;;  %vm2156_vm14 = vcmp.eq.s32.totalorder %v498_v6, %v7664_v3  ;;  %v558_v21 = vld [vmem:[#allocation2 + $0x740] sm:$0xff] }
  0xb4   : > { %v6598_v12 = vadd.f32 %v6342_v51, %v5804_v26  ;;  %v2422_v13 = vsel %vm2152_vm13, %v7678_v18, 0.0  ;;  %v2426_v29 = vsel %vm2156_vm14, %v7678_v18, 0.0  ;;  %vm2946_vm15 = vcmp.eq.s32.totalorder %v8090_v50, %v7669_v9  ;;  %v562_v52 = vld [vmem:[#allocation2 + $0x760] sm:$0xff] }
  0xb5   : > { %v2678_v44 = vadd.f32 %v2422_v13, %v1868_v33  ;;  %v2682_v25 = vadd.f32 %v2426_v29, %v1872_v54  ;;  %vm2950_vm0 = vcmp.eq.s32.totalorder %v498_v6, %v7669_v9  ;;  %v3216_v46 = vsel %vm2946_vm15, %v7684_v19, 0.0 }
  0xb6   : > { %v6817_v31 = vpack.c.bf16 %v6598_v12, %v6594_v48  ;;  %v3220_v38 = vsel %vm2950_vm0, %v7684_v19, 0.0  ;;  %vm3746_vm1 = vcmp.eq.s32.totalorder %v8090_v50, %v7698_v40  ;;  %vm3750_vm2 = vcmp.eq.s32.totalorder %v498_v6, %v7698_v40 }
  0xb7   : > { %v3472_v58 = vadd.f32 %v3216_v46, %v2678_v44  ;;  %v3476_v37 = vadd.f32 %v3220_v38, %v2682_v25  ;;  %v4016_v0 = vsel %vm3746_vm1, %v7700_v43, 0.0  ;;  %v4020_v23 = vsel %vm3750_vm2, %v7700_v43, 0.0 }
  0xb8   : > { %6908 = vmatpush.bf16.msra.mxu1 %v6817_v31  ;;  %vm4540_vm3 = vcmp.eq.s32.totalorder %v8090_v50, %v7713_v60  ;;  %vm4544_vm4 = vcmp.eq.s32.totalorder %v498_v6, %v7713_v60  ;;  %vm5338_vm5 = vcmp.eq.s32.totalorder %v8090_v50, %v7743_v17  ;;  %vm5342_vm6 = vcmp.eq.s32.totalorder %v498_v6, %v7743_v17 }
  0xb9   : > { %v4272_v24 = vadd.f32 %v4016_v0, %v3472_v58  ;;  %v4276_v4 = vadd.f32 %v4020_v23, %v3476_v37  ;;  %v4810_v36 = vsel %vm4540_vm3, %v7715_v62, 0.0  ;;  %v4814_v51 = vsel %vm4544_vm4, %v7715_v62, 0.0 }
  0xba   : > { %v5608_v22 = vsel %vm5338_vm5, %v7745_v20, 0.0  ;;  %v5612_v26 = vsel %vm5342_vm6, %v7745_v20, 0.0  ;;  %vm6132_vm7 = vcmp.eq.s32.totalorder %v8090_v50, %v7765_v32  ;;  %vm6136_vm8 = vcmp.eq.s32.totalorder %v498_v6, %v7765_v32 }
  0xbb   : > { %v5066_v42 = vadd.f32 %v4810_v36, %v4272_v24  ;;  %v5070_v8 = vadd.f32 %v4814_v51, %v4276_v4  ;;  %v6402_v48 = vsel %vm6132_vm7, %v7767_v34, 0.0  ;;  %v6406_v33 = vsel %vm6136_vm8, %v7767_v34, 0.0 }
  0xbc   : > { %vm856_vm9 = vcmp.eq.s32.totalorder %v558_v21, %v7638_v57  ;;  %vm860_vm10 = vcmp.eq.s32.totalorder %v562_v52, %v7638_v57  ;;  %vm1406_vm11 = vcmp.eq.s32.totalorder %v558_v21, %v7641_v59  ;;  %vm1410_vm12 = vcmp.eq.s32.totalorder %v562_v52, %v7641_v59 }
  0xbd   : > { %v5864_v54 = vadd.f32 %v5608_v22, %v5066_v42  ;;  %v5868_v12 = vadd.f32 %v5612_v26, %v5070_v8  ;;  %v1126_v50 = vsel %vm856_vm9, %v7656_v1, 0.0  ;;  %v1130_v6 = vsel %vm860_vm10, %v7656_v1, 0.0  ;;  %v8162_v42 = vld [vmem:[#allocation2 + $0x100] sm:$0xff] }
  0xbe   : > { %v1676_v13 = vsel %vm1406_vm11, %v7662_v2, 0.0  ;;  %v1680_v29 = vsel %vm1410_vm12, %v7662_v2, 0.0  ;;  %vm2216_vm13 = vcmp.eq.s32.totalorder %v558_v21, %v7664_v3  ;;  %vm2220_vm14 = vcmp.eq.s32.totalorder %v562_v52, %v7664_v3 }
  0xbf   : > { %v6658_v44 = vadd.f32 %v6402_v48, %v5864_v54  ;;  %v6662_v25 = vadd.f32 %v6406_v33, %v5868_v12  ;;  %v1932_v46 = vadd.f32 %v1676_v13, %v1126_v50  ;;  %v1936_v31 = vadd.f32 %v1680_v29, %v1130_v6  ;;  %v362_v50 = vld [vmem:[#allocation2 + $0x120] sm:$0xff] }
  0xc0   : > { %v2486_v38 = vsel %vm2216_vm13, %v7678_v18, 0.0  ;;  %v2490_v58 = vsel %vm2220_vm14, %v7678_v18, 0.0  ;;  %vm3010_vm15 = vcmp.eq.s32.totalorder %v558_v21, %v7669_v9  ;;  %vm3014_vm0 = vcmp.eq.s32.totalorder %v562_v52, %v7669_v9 }
  0xc1   : > { %v6849_v37 = vpack.c.bf16 %v6662_v25, %v6658_v44  ;;  %v2742_v0 = vadd.f32 %v2486_v38, %v1932_v46  ;;  %v2746_v23 = vadd.f32 %v2490_v58, %v1936_v31  ;;  %v3280_v24 = vsel %vm3010_vm15, %v7684_v19, 0.0 }
  0xc2   : > { %v3284_v4 = vsel %vm3014_vm0, %v7684_v19, 0.0  ;;  %vm3810_vm1 = vcmp.eq.s32.totalorder %v558_v21, %v7698_v40  ;;  %vm3814_vm2 = vcmp.eq.s32.totalorder %v562_v52, %v7698_v40  ;;  %vm4604_vm3 = vcmp.eq.s32.totalorder %v558_v21, %v7713_v60 }
  0xc3   : > { %6921 = vmatpush.bf16.msra.mxu2 %v6849_v37  ;;  %v3536_v36 = vadd.f32 %v3280_v24, %v2742_v0  ;;  %v3540_v51 = vadd.f32 %v3284_v4, %v2746_v23  ;;  %v4080_v22 = vsel %vm3810_vm1, %v7700_v43, 0.0  ;;  %v4084_v26 = vsel %vm3814_vm2, %v7700_v43, 0.0 }
  0xc4   : > { %vm4608_vm4 = vcmp.eq.s32.totalorder %v562_v52, %v7713_v60  ;;  %v4874_v8 = vsel %vm4604_vm3, %v7715_v62, 0.0  ;;  %vm5402_vm5 = vcmp.eq.s32.totalorder %v558_v21, %v7743_v17  ;;  %vm5406_vm6 = vcmp.eq.s32.totalorder %v562_v52, %v7743_v17 }
  0xc5   : > { %v4336_v48 = vadd.f32 %v4080_v22, %v3536_v36  ;;  %v4340_v33 = vadd.f32 %v4084_v26, %v3540_v51  ;;  %v4878_v54 = vsel %vm4608_vm4, %v7715_v62, 0.0  ;;  %v5672_v12 = vsel %vm5402_vm5, %v7745_v20, 0.0 }
  0xc6   : > { %v5676_v6 = vsel %vm5406_vm6, %v7745_v20, 0.0  ;;  %vm6196_vm7 = vcmp.eq.s32.totalorder %v558_v21, %v7765_v32  ;;  %vm6200_vm8 = vcmp.eq.s32.totalorder %v562_v52, %v7765_v32  ;;  %vm656_vm9 = vcmp.eq.s32.totalorder %v8162_v42, %v7638_v57 }
  0xc7   : > { %v5130_v13 = vadd.f32 %v4874_v8, %v4336_v48  ;;  %v5134_v29 = vadd.f32 %v4878_v54, %v4340_v33  ;;  %v6466_v44 = vsel %vm6196_vm7, %v7767_v34, 0.0  ;;  %v6470_v25 = vsel %vm6200_vm8, %v7767_v34, 0.0 }
  0xc8   : > { %vm660_vm10 = vcmp.eq.s32.totalorder %v362_v50, %v7638_v57  ;;  %v926_v46 = vsel %vm656_vm9, %v7656_v1, 0.0  ;;  %vm1206_vm11 = vcmp.eq.s32.totalorder %v8162_v42, %v7641_v59  ;;  %vm1210_vm12 = vcmp.eq.s32.totalorder %v362_v50, %v7641_v59 }
  0xc9   : > { %v5928_v21 = vadd.f32 %v5672_v12, %v5130_v13  ;;  %v5932_v52 = vadd.f32 %v5676_v6, %v5134_v29  ;;  %v930_v31 = vsel %vm660_vm10, %v7656_v1, 0.0  ;;  %v1476_v38 = vsel %vm1206_vm11, %v7662_v2, 0.0 }
  0xca   : > { %v1480_v58 = vsel %vm1210_vm12, %v7662_v2, 0.0  ;;  %v1732_v37 = vadd.f32 %v1476_v38, %v926_v46  ;;  %vm2016_vm13 = vcmp.eq.s32.totalorder %v8162_v42, %v7664_v3  ;;  %vm2020_vm14 = vcmp.eq.s32.totalorder %v362_v50, %v7664_v3  ;;  %v426_v46 = vld [vmem:[#allocation2 + $0x320] sm:$0xff] }
  0xcb   : > { %v6722_v0 = vadd.f32 %v6466_v44, %v5928_v21  ;;  %v6726_v23 = vadd.f32 %v6470_v25, %v5932_v52  ;;  %v1736_v24 = vadd.f32 %v1480_v58, %v930_v31  ;;  %v2286_v4 = vsel %vm2016_vm13, %v7678_v18, 0.0  ;;  %v422_v25 = vld [vmem:[#allocation2 + $0x300] sm:$0xff] }
  0xcc   : > { %v2290_v36 = vsel %vm2020_vm14, %v7678_v18, 0.0  ;;  %v2542_v51 = vadd.f32 %v2286_v4, %v1732_v37  ;;  %vm2810_vm15 = vcmp.eq.s32.totalorder %v8162_v42, %v7669_v9  ;;  %vm2814_vm0 = vcmp.eq.s32.totalorder %v362_v50, %v7669_v9 }
  0xcd   : > { %v6881_v22 = vpack.c.bf16 %v6726_v23, %v6722_v0  ;;  %v2546_v26 = vadd.f32 %v2290_v36, %v1736_v24  ;;  %v3080_v8 = vsel %vm2810_vm15, %v7684_v19, 0.0  ;;  %v3084_v48 = vsel %vm2814_vm0, %v7684_v19, 0.0 }
  0xce   : > { %v3336_v33 = vadd.f32 %v3080_v8, %v2542_v51  ;;  %vm3610_vm1 = vcmp.eq.s32.totalorder %v8162_v42, %v7698_v40  ;;  %vm3614_vm2 = vcmp.eq.s32.totalorder %v362_v50, %v7698_v40  ;;  %vm4404_vm3 = vcmp.eq.s32.totalorder %v8162_v42, %v7713_v60 }
  0xcf   : > { %6934 = vmatpush.bf16.msra.mxu3 %v6881_v22  ;;  %v3340_v54 = vadd.f32 %v3084_v48, %v2546_v26  ;;  %v3880_v12 = vsel %vm3610_vm1, %v7700_v43, 0.0  ;;  %v3884_v6 = vsel %vm3614_vm2, %v7700_v43, 0.0  ;;  %vm4408_vm4 = vcmp.eq.s32.totalorder %v362_v50, %v7713_v60 }
  0xd0   : > { %v4136_v13 = vadd.f32 %v3880_v12, %v3336_v33  ;;  %v4674_v29 = vsel %vm4404_vm3, %v7715_v62, 0.0  ;;  %v4678_v44 = vsel %vm4408_vm4, %v7715_v62, 0.0  ;;  %vm5202_vm5 = vcmp.eq.s32.totalorder %v8162_v42, %v7743_v17 }
  0xd1   : > { %v4140_v21 = vadd.f32 %v3884_v6, %v3340_v54  ;;  %vm5206_vm6 = vcmp.eq.s32.totalorder %v362_v50, %v7743_v17  ;;  %v5472_v52 = vsel %vm5202_vm5, %v7745_v20, 0.0  ;;  %vm5996_vm7 = vcmp.eq.s32.totalorder %v8162_v42, %v7765_v32 }
  0xd2   : > { %v4930_v31 = vadd.f32 %v4674_v29, %v4136_v13  ;;  %v5476_v38 = vsel %vm5206_vm6, %v7745_v20, 0.0  ;;  %vm6000_vm8 = vcmp.eq.s32.totalorder %v362_v50, %v7765_v32  ;;  %v6266_v58 = vsel %vm5996_vm7, %v7767_v34, 0.0 }
  0xd3   : > { %v4934_v37 = vadd.f32 %v4678_v44, %v4140_v21  ;;  %v6270_v0 = vsel %vm6000_vm8, %v7767_v34, 0.0  ;;  %vm720_vm9 = vcmp.eq.s32.totalorder %v422_v25, %v7638_v57  ;;  %vm724_vm10 = vcmp.eq.s32.totalorder %v426_v46, %v7638_v57 }
  0xd4   : > { %v5728_v23 = vadd.f32 %v5472_v52, %v4930_v31  ;;  %v990_v24 = vsel %vm720_vm9, %v7656_v1, 0.0  ;;  %v994_v4 = vsel %vm724_vm10, %v7656_v1, 0.0  ;;  %vm1270_vm11 = vcmp.eq.s32.totalorder %v422_v25, %v7641_v59 }
  0xd5   : > { %v5732_v42 = vadd.f32 %v5476_v38, %v4934_v37  ;;  %vm1274_vm12 = vcmp.eq.s32.totalorder %v426_v46, %v7641_v59  ;;  %v1540_v50 = vsel %vm1270_vm11, %v7662_v2, 0.0  ;;  %vm2080_vm13 = vcmp.eq.s32.totalorder %v422_v25, %v7664_v3 }
  0xd6   : > { %v6522_v36 = vadd.f32 %v6266_v58, %v5728_v23  ;;  %v1544_v51 = vsel %vm1274_vm12, %v7662_v2, 0.0  ;;  %v1796_v22 = vadd.f32 %v1540_v50, %v990_v24  ;;  %vm2084_vm14 = vcmp.eq.s32.totalorder %v426_v46, %v7664_v3  ;;  %v8238_v58 = vld [vmem:[#allocation2 + $0x500] sm:$0xff] }
  0xd7   : > { %v6526_v26 = vadd.f32 %v6270_v0, %v5732_v42  ;;  %v1800_v8 = vadd.f32 %v1544_v51, %v994_v4  ;;  %v2350_v48 = vsel %vm2080_vm13, %v7678_v18, 0.0  ;;  %v2354_v33 = vsel %vm2084_vm14, %v7678_v18, 0.0  ;;  %v490_v23 = vld [vmem:[#allocation2 + $0x520] sm:$0xff] }
  0xd8   : > { %v2606_v54 = vadd.f32 %v2350_v48, %v1796_v22  ;;  %vm2874_vm15 = vcmp.eq.s32.totalorder %v422_v25, %v7669_v9  ;;  %vm2878_vm0 = vcmp.eq.s32.totalorder %v426_v46, %v7669_v9  ;;  %vm3674_vm1 = vcmp.eq.s32.totalorder %v422_v25, %v7698_v40 }
  0xd9   : > { %v6781_v12 = vpack.c.bf16 %v6526_v26, %v6522_v36  ;;  %v2610_v6 = vadd.f32 %v2354_v33, %v1800_v8  ;;  %v3144_v13 = vsel %vm2874_vm15, %v7684_v19, 0.0  ;;  %v3148_v29 = vsel %vm2878_vm0, %v7684_v19, 0.0 }
  0xda   : > { %v3400_v44 = vadd.f32 %v3144_v13, %v2606_v54  ;;  %vm3678_vm2 = vcmp.eq.s32.totalorder %v426_v46, %v7698_v40  ;;  %v3944_v21 = vsel %vm3674_vm1, %v7700_v43, 0.0  ;;  %vm4468_vm3 = vcmp.eq.s32.totalorder %v422_v25, %v7713_v60 }
  0xdb   : > { %6896 = vmatpush.bf16.msra.mxu0 %v6781_v12  ;;  %v3404_v52 = vadd.f32 %v3148_v29, %v2610_v6  ;;  %v3948_v31 = vsel %vm3678_vm2, %v7700_v43, 0.0  ;;  %vm4472_vm4 = vcmp.eq.s32.totalorder %v426_v46, %v7713_v60  ;;  %v4738_v38 = vsel %vm4468_vm3, %v7715_v62, 0.0 }
  0xdc   : > { %v4200_v37 = vadd.f32 %v3944_v21, %v3400_v44  ;;  %v4742_v0 = vsel %vm4472_vm4, %v7715_v62, 0.0  ;;  %vm5266_vm5 = vcmp.eq.s32.totalorder %v422_v25, %v7743_v17  ;;  %vm5270_vm6 = vcmp.eq.s32.totalorder %v426_v46, %v7743_v17 }
  0xdd   : > { %v4204_v24 = vadd.f32 %v3948_v31, %v3404_v52  ;;  %v5536_v4 = vsel %vm5266_vm5, %v7745_v20, 0.0  ;;  %v5540_v42 = vsel %vm5270_vm6, %v7745_v20, 0.0  ;;  %vm6060_vm7 = vcmp.eq.s32.totalorder %v422_v25, %v7765_v32 }
  0xde   : > { %v4994_v50 = vadd.f32 %v4738_v38, %v4200_v37  ;;  %vm6064_vm8 = vcmp.eq.s32.totalorder %v426_v46, %v7765_v32  ;;  %v6330_v36 = vsel %vm6060_vm7, %v7767_v34, 0.0  ;;  %vm784_vm9 = vcmp.eq.s32.totalorder %v8238_v58, %v7638_v57 }
  0xdf   : > { %v4998_v51 = vadd.f32 %v4742_v0, %v4204_v24  ;;  %v6334_v22 = vsel %vm6064_vm8, %v7767_v34, 0.0  ;;  %vm788_vm10 = vcmp.eq.s32.totalorder %v490_v23, %v7638_v57  ;;  %v1054_v26 = vsel %vm784_vm9, %v7656_v1, 0.0 }
  0xe0   : > { %v5792_v8 = vadd.f32 %v5536_v4, %v4994_v50  ;;  %v1058_v48 = vsel %vm788_vm10, %v7656_v1, 0.0  ;;  %vm1334_vm11 = vcmp.eq.s32.totalorder %v8238_v58, %v7641_v59  ;;  %vm1338_vm12 = vcmp.eq.s32.totalorder %v490_v23, %v7641_v59 }
  0xe1   : > { %v5796_v25 = vadd.f32 %v5540_v42, %v4998_v51  ;;  %v1604_v46 = vsel %vm1334_vm11, %v7662_v2, 0.0  ;;  %v1608_v33 = vsel %vm1338_vm12, %v7662_v2, 0.0  ;;  %vm2144_vm13 = vcmp.eq.s32.totalorder %v8238_v58, %v7664_v3 }
  0xe2   : > { %v6586_v54 = vadd.f32 %v6330_v36, %v5792_v8  ;;  %v1860_v12 = vadd.f32 %v1604_v46, %v1054_v26  ;;  %v1864_v6 = vadd.f32 %v1608_v33, %v1058_v48  ;;  %vm2148_vm14 = vcmp.eq.s32.totalorder %v490_v23, %v7664_v3  ;;  %v550_v26 = vld [vmem:[#allocation2 + $0x700] sm:$0xff] }
  0xe3   : > { %v6590_v13 = vadd.f32 %v6334_v22, %v5796_v25  ;;  %v2414_v29 = vsel %vm2144_vm13, %v7678_v18, 0.0  ;;  %v2418_v44 = vsel %vm2148_vm14, %v7678_v18, 0.0  ;;  %vm2938_vm15 = vcmp.eq.s32.totalorder %v8238_v58, %v7669_v9  ;;  %v554_v8 = vld [vmem:[#allocation2 + $0x720] sm:$0xff] }
  0xe4   : > { %v2670_v21 = vadd.f32 %v2414_v29, %v1860_v12  ;;  %v2674_v52 = vadd.f32 %v2418_v44, %v1864_v6  ;;  %vm2942_vm0 = vcmp.eq.s32.totalorder %v490_v23, %v7669_v9  ;;  %v3208_v31 = vsel %vm2938_vm15, %v7684_v19, 0.0 }
  0xe5   : > { %v6813_v38 = vpack.c.bf16 %v6590_v13, %v6586_v54  ;;  %v3212_v37 = vsel %vm2942_vm0, %v7684_v19, 0.0  ;;  %vm3738_vm1 = vcmp.eq.s32.totalorder %v8238_v58, %v7698_v40  ;;  %vm3742_vm2 = vcmp.eq.s32.totalorder %v490_v23, %v7698_v40 }
  0xe6   : > { %v3464_v0 = vadd.f32 %v3208_v31, %v2670_v21  ;;  %v3468_v24 = vadd.f32 %v3212_v37, %v2674_v52  ;;  %v4008_v4 = vsel %vm3738_vm1, %v7700_v43, 0.0  ;;  %v4012_v42 = vsel %vm3742_vm2, %v7700_v43, 0.0 }
  0xe7   : > { %6909 = vmatpush.bf16.msra.mxu1 %v6813_v38  ;;  %vm4532_vm3 = vcmp.eq.s32.totalorder %v8238_v58, %v7713_v60  ;;  %vm4536_vm4 = vcmp.eq.s32.totalorder %v490_v23, %v7713_v60  ;;  %vm5330_vm5 = vcmp.eq.s32.totalorder %v8238_v58, %v7743_v17  ;;  %vm5334_vm6 = vcmp.eq.s32.totalorder %v490_v23, %v7743_v17 }
  0xe8   : > { %v4264_v50 = vadd.f32 %v4008_v4, %v3464_v0  ;;  %v4268_v36 = vadd.f32 %v4012_v42, %v3468_v24  ;;  %v4802_v51 = vsel %vm4532_vm3, %v7715_v62, 0.0  ;;  %v4806_v22 = vsel %vm4536_vm4, %v7715_v62, 0.0 }
  0xe9   : > { %v5600_v48 = vsel %vm5330_vm5, %v7745_v20, 0.0  ;;  %v5604_v25 = vsel %vm5334_vm6, %v7745_v20, 0.0  ;;  %vm6124_vm7 = vcmp.eq.s32.totalorder %v8238_v58, %v7765_v32  ;;  %vm6128_vm8 = vcmp.eq.s32.totalorder %v490_v23, %v7765_v32 }
  0xea   : > { %v5058_v46 = vadd.f32 %v4802_v51, %v4264_v50  ;;  %v5062_v33 = vadd.f32 %v4806_v22, %v4268_v36  ;;  %v6394_v54 = vsel %vm6124_vm7, %v7767_v34, 0.0  ;;  %v6398_v12 = vsel %vm6128_vm8, %v7767_v34, 0.0 }
  0xeb   : > { %vm848_vm9 = vcmp.eq.s32.totalorder %v550_v26, %v7638_v57  ;;  %vm852_vm10 = vcmp.eq.s32.totalorder %v554_v8, %v7638_v57  ;;  %vm1398_vm11 = vcmp.eq.s32.totalorder %v550_v26, %v7641_v59  ;;  %vm1402_vm12 = vcmp.eq.s32.totalorder %v554_v8, %v7641_v59 }
  0xec   : > { %v5856_v6 = vadd.f32 %v5600_v48, %v5058_v46  ;;  %v5860_v13 = vadd.f32 %v5604_v25, %v5062_v33  ;;  %v1118_v58 = vsel %vm848_vm9, %v7656_v1, 0.0  ;;  %v1122_v23 = vsel %vm852_vm10, %v7656_v1, 0.0  ;;  %v8310_v46 = vld [vmem:[#allocation2 + $0xc0] sm:$0xff] }
  0xed   : > { %v1668_v29 = vsel %vm1398_vm11, %v7662_v2, 0.0  ;;  %v1672_v44 = vsel %vm1402_vm12, %v7662_v2, 0.0  ;;  %vm2208_vm13 = vcmp.eq.s32.totalorder %v550_v26, %v7664_v3  ;;  %vm2212_vm14 = vcmp.eq.s32.totalorder %v554_v8, %v7664_v3 }
  0xee   : > { %v6650_v21 = vadd.f32 %v6394_v54, %v5856_v6  ;;  %v6654_v52 = vadd.f32 %v6398_v12, %v5860_v13  ;;  %v1924_v31 = vadd.f32 %v1668_v29, %v1118_v58  ;;  %v1928_v38 = vadd.f32 %v1672_v44, %v1122_v23  ;;  %v354_v58 = vld [vmem:[#allocation2 + $0xe0] sm:$0xff] }
  0xef   : > { %v2478_v37 = vsel %vm2208_vm13, %v7678_v18, 0.0  ;;  %v2482_v0 = vsel %vm2212_vm14, %v7678_v18, 0.0  ;;  %vm3002_vm15 = vcmp.eq.s32.totalorder %v550_v26, %v7669_v9  ;;  %vm3006_vm0 = vcmp.eq.s32.totalorder %v554_v8, %v7669_v9 }
  0xf0   : > { %v6845_v24 = vpack.c.bf16 %v6654_v52, %v6650_v21  ;;  %v2734_v4 = vadd.f32 %v2478_v37, %v1924_v31  ;;  %v2738_v42 = vadd.f32 %v2482_v0, %v1928_v38  ;;  %v3272_v50 = vsel %vm3002_vm15, %v7684_v19, 0.0 }
  0xf1   : > { %v3276_v36 = vsel %vm3006_vm0, %v7684_v19, 0.0  ;;  %vm3802_vm1 = vcmp.eq.s32.totalorder %v550_v26, %v7698_v40  ;;  %vm3806_vm2 = vcmp.eq.s32.totalorder %v554_v8, %v7698_v40  ;;  %vm4596_vm3 = vcmp.eq.s32.totalorder %v550_v26, %v7713_v60 }
  0xf2   : > { %6922 = vmatpush.bf16.msra.mxu2 %v6845_v24  ;;  %v3528_v51 = vadd.f32 %v3272_v50, %v2734_v4  ;;  %v3532_v22 = vadd.f32 %v3276_v36, %v2738_v42  ;;  %v4072_v48 = vsel %vm3802_vm1, %v7700_v43, 0.0  ;;  %v4076_v25 = vsel %vm3806_vm2, %v7700_v43, 0.0 }
  0xf3   : > { %vm4600_vm4 = vcmp.eq.s32.totalorder %v554_v8, %v7713_v60  ;;  %v4866_v33 = vsel %vm4596_vm3, %v7715_v62, 0.0  ;;  %vm5394_vm5 = vcmp.eq.s32.totalorder %v550_v26, %v7743_v17  ;;  %vm5398_vm6 = vcmp.eq.s32.totalorder %v554_v8, %v7743_v17 }
  0xf4   : > { %v4328_v54 = vadd.f32 %v4072_v48, %v3528_v51  ;;  %v4332_v12 = vadd.f32 %v4076_v25, %v3532_v22  ;;  %v4870_v6 = vsel %vm4600_vm4, %v7715_v62, 0.0  ;;  %v5664_v13 = vsel %vm5394_vm5, %v7745_v20, 0.0 }
  0xf5   : > { %v5668_v23 = vsel %vm5398_vm6, %v7745_v20, 0.0  ;;  %vm6188_vm7 = vcmp.eq.s32.totalorder %v550_v26, %v7765_v32  ;;  %vm6192_vm8 = vcmp.eq.s32.totalorder %v554_v8, %v7765_v32  ;;  %vm648_vm9 = vcmp.eq.s32.totalorder %v8310_v46, %v7638_v57 }
  0xf6   : > { %v5122_v29 = vadd.f32 %v4866_v33, %v4328_v54  ;;  %v5126_v44 = vadd.f32 %v4870_v6, %v4332_v12  ;;  %v6458_v21 = vsel %vm6188_vm7, %v7767_v34, 0.0  ;;  %v6462_v52 = vsel %vm6192_vm8, %v7767_v34, 0.0 }
  0xf7   : > { %vm652_vm10 = vcmp.eq.s32.totalorder %v354_v58, %v7638_v57  ;;  %v918_v31 = vsel %vm648_vm9, %v7656_v1, 0.0  ;;  %vm1198_vm11 = vcmp.eq.s32.totalorder %v8310_v46, %v7641_v59  ;;  %vm1202_vm12 = vcmp.eq.s32.totalorder %v354_v58, %v7641_v59 }
  0xf8   : > { %v5920_v26 = vadd.f32 %v5664_v13, %v5122_v29  ;;  %v5924_v8 = vadd.f32 %v5668_v23, %v5126_v44  ;;  %v922_v38 = vsel %vm652_vm10, %v7656_v1, 0.0  ;;  %v1468_v37 = vsel %vm1198_vm11, %v7662_v2, 0.0 }
  0xf9   : > { %v1472_v0 = vsel %vm1202_vm12, %v7662_v2, 0.0  ;;  %v1724_v24 = vadd.f32 %v1468_v37, %v918_v31  ;;  %vm2008_vm13 = vcmp.eq.s32.totalorder %v8310_v46, %v7664_v3  ;;  %vm2012_vm14 = vcmp.eq.s32.totalorder %v354_v58, %v7664_v3  ;;  %v418_v31 = vld [vmem:[#allocation2 + $0x2e0] sm:$0xff] }
  0xfa   : > { %v6714_v4 = vadd.f32 %v6458_v21, %v5920_v26  ;;  %v6718_v42 = vadd.f32 %v6462_v52, %v5924_v8  ;;  %v1728_v50 = vadd.f32 %v1472_v0, %v922_v38  ;;  %v2278_v36 = vsel %vm2008_vm13, %v7678_v18, 0.0  ;;  %v414_v52 = vld [vmem:[#allocation2 + $0x2c0] sm:$0xff] }
  0xfb   : > { %v2282_v51 = vsel %vm2012_vm14, %v7678_v18, 0.0  ;;  %v2534_v22 = vadd.f32 %v2278_v36, %v1724_v24  ;;  %vm2802_vm15 = vcmp.eq.s32.totalorder %v8310_v46, %v7669_v9  ;;  %vm2806_vm0 = vcmp.eq.s32.totalorder %v354_v58, %v7669_v9 }
  0xfc   : > { %v6877_v48 = vpack.c.bf16 %v6718_v42, %v6714_v4  ;;  %v2538_v25 = vadd.f32 %v2282_v51, %v1728_v50  ;;  %v3072_v33 = vsel %vm2802_vm15, %v7684_v19, 0.0  ;;  %v3076_v54 = vsel %vm2806_vm0, %v7684_v19, 0.0 }
  0xfd   : > { %v3328_v12 = vadd.f32 %v3072_v33, %v2534_v22  ;;  %vm3602_vm1 = vcmp.eq.s32.totalorder %v8310_v46, %v7698_v40  ;;  %vm3606_vm2 = vcmp.eq.s32.totalorder %v354_v58, %v7698_v40  ;;  %vm4396_vm3 = vcmp.eq.s32.totalorder %v8310_v46, %v7713_v60 }
  0xfe   : > { %6935 = vmatpush.bf16.msra.mxu3 %v6877_v48  ;;  %v3332_v6 = vadd.f32 %v3076_v54, %v2538_v25  ;;  %v3872_v13 = vsel %vm3602_vm1, %v7700_v43, 0.0  ;;  %v3876_v23 = vsel %vm3606_vm2, %v7700_v43, 0.0  ;;  %vm4400_vm4 = vcmp.eq.s32.totalorder %v354_v58, %v7713_v60 }
  0xff   : > { %v4128_v29 = vadd.f32 %v3872_v13, %v3328_v12  ;;  %v4666_v44 = vsel %vm4396_vm3, %v7715_v62, 0.0  ;;  %v4670_v21 = vsel %vm4400_vm4, %v7715_v62, 0.0  ;;  %vm5194_vm5 = vcmp.eq.s32.totalorder %v8310_v46, %v7743_v17 }
 0x100   : > { %v4132_v26 = vadd.f32 %v3876_v23, %v3332_v6  ;;  %vm5198_vm6 = vcmp.eq.s32.totalorder %v354_v58, %v7743_v17  ;;  %v5464_v8 = vsel %vm5194_vm5, %v7745_v20, 0.0  ;;  %vm5988_vm7 = vcmp.eq.s32.totalorder %v8310_v46, %v7765_v32 }
 0x101   : > { %v4922_v38 = vadd.f32 %v4666_v44, %v4128_v29  ;;  %v5468_v37 = vsel %vm5198_vm6, %v7745_v20, 0.0  ;;  %vm5992_vm8 = vcmp.eq.s32.totalorder %v354_v58, %v7765_v32  ;;  %v6258_v0 = vsel %vm5988_vm7, %v7767_v34, 0.0 }
 0x102   : > { %v4926_v24 = vadd.f32 %v4670_v21, %v4132_v26  ;;  %v6262_v4 = vsel %vm5992_vm8, %v7767_v34, 0.0  ;;  %vm712_vm9 = vcmp.eq.s32.totalorder %v414_v52, %v7638_v57  ;;  %vm716_vm10 = vcmp.eq.s32.totalorder %v418_v31, %v7638_v57 }
 0x103   : > { %v5720_v42 = vadd.f32 %v5464_v8, %v4922_v38  ;;  %v982_v50 = vsel %vm712_vm9, %v7656_v1, 0.0  ;;  %v986_v36 = vsel %vm716_vm10, %v7656_v1, 0.0  ;;  %vm1262_vm11 = vcmp.eq.s32.totalorder %v414_v52, %v7641_v59 }
 0x104   : > { %v5724_v46 = vadd.f32 %v5468_v37, %v4926_v24  ;;  %vm1266_vm12 = vcmp.eq.s32.totalorder %v418_v31, %v7641_v59  ;;  %v1532_v58 = vsel %vm1262_vm11, %v7662_v2, 0.0  ;;  %vm2072_vm13 = vcmp.eq.s32.totalorder %v414_v52, %v7664_v3 }
 0x105   : > { %v6514_v51 = vadd.f32 %v6258_v0, %v5720_v42  ;;  %v1536_v22 = vsel %vm1266_vm12, %v7662_v2, 0.0  ;;  %v1788_v48 = vadd.f32 %v1532_v58, %v982_v50  ;;  %vm2076_vm14 = vcmp.eq.s32.totalorder %v418_v31, %v7664_v3  ;;  %v8386_v0 = vld [vmem:[#allocation2 + $0x4c0] sm:$0xff] }
 0x106   : > { %v6518_v25 = vadd.f32 %v6262_v4, %v5724_v46  ;;  %v1792_v33 = vadd.f32 %v1536_v22, %v986_v36  ;;  %v2342_v54 = vsel %vm2072_vm13, %v7678_v18, 0.0  ;;  %v2346_v12 = vsel %vm2076_vm14, %v7678_v18, 0.0  ;;  %v482_v42 = vld [vmem:[#allocation2 + $0x4e0] sm:$0xff] }
 0x107   : > { %v2598_v6 = vadd.f32 %v2342_v54, %v1788_v48  ;;  %vm2866_vm15 = vcmp.eq.s32.totalorder %v414_v52, %v7669_v9  ;;  %vm2870_vm0 = vcmp.eq.s32.totalorder %v418_v31, %v7669_v9  ;;  %vm3666_vm1 = vcmp.eq.s32.totalorder %v414_v52, %v7698_v40 }
 0x108   : > { %v6777_v13 = vpack.c.bf16 %v6518_v25, %v6514_v51  ;;  %v2602_v23 = vadd.f32 %v2346_v12, %v1792_v33  ;;  %v3136_v29 = vsel %vm2866_vm15, %v7684_v19, 0.0  ;;  %v3140_v44 = vsel %vm2870_vm0, %v7684_v19, 0.0 }
 0x109   : > { %v3392_v21 = vadd.f32 %v3136_v29, %v2598_v6  ;;  %vm3670_vm2 = vcmp.eq.s32.totalorder %v418_v31, %v7698_v40  ;;  %v3936_v26 = vsel %vm3666_vm1, %v7700_v43, 0.0  ;;  %vm4460_vm3 = vcmp.eq.s32.totalorder %v414_v52, %v7713_v60 }
 0x10a   : > { %6897 = vmatpush.bf16.msra.mxu0 %v6777_v13  ;;  %v3396_v8 = vadd.f32 %v3140_v44, %v2602_v23  ;;  %v3940_v38 = vsel %vm3670_vm2, %v7700_v43, 0.0  ;;  %vm4464_vm4 = vcmp.eq.s32.totalorder %v418_v31, %v7713_v60  ;;  %v4730_v37 = vsel %vm4460_vm3, %v7715_v62, 0.0 }
 0x10b   : > { %v4192_v24 = vadd.f32 %v3936_v26, %v3392_v21  ;;  %v4734_v4 = vsel %vm4464_vm4, %v7715_v62, 0.0  ;;  %vm5258_vm5 = vcmp.eq.s32.totalorder %v414_v52, %v7743_v17  ;;  %vm5262_vm6 = vcmp.eq.s32.totalorder %v418_v31, %v7743_v17 }
 0x10c   : > { %v4196_v50 = vadd.f32 %v3940_v38, %v3396_v8  ;;  %v5528_v36 = vsel %vm5258_vm5, %v7745_v20, 0.0  ;;  %v5532_v46 = vsel %vm5262_vm6, %v7745_v20, 0.0  ;;  %vm6052_vm7 = vcmp.eq.s32.totalorder %v414_v52, %v7765_v32 }
 0x10d   : > { %v4986_v58 = vadd.f32 %v4730_v37, %v4192_v24  ;;  %vm6056_vm8 = vcmp.eq.s32.totalorder %v418_v31, %v7765_v32  ;;  %v6322_v51 = vsel %vm6052_vm7, %v7767_v34, 0.0  ;;  %vm776_vm9 = vcmp.eq.s32.totalorder %v8386_v0, %v7638_v57 }
 0x10e   : > { %v4990_v22 = vadd.f32 %v4734_v4, %v4196_v50  ;;  %v6326_v48 = vsel %vm6056_vm8, %v7767_v34, 0.0  ;;  %vm780_vm10 = vcmp.eq.s32.totalorder %v482_v42, %v7638_v57  ;;  %v1046_v25 = vsel %vm776_vm9, %v7656_v1, 0.0 }
 0x10f   : > { %v5784_v33 = vadd.f32 %v5528_v36, %v4986_v58  ;;  %v1050_v54 = vsel %vm780_vm10, %v7656_v1, 0.0  ;;  %vm1326_vm11 = vcmp.eq.s32.totalorder %v8386_v0, %v7641_v59  ;;  %vm1330_vm12 = vcmp.eq.s32.totalorder %v482_v42, %v7641_v59 }
 0x110   : > { %v5788_v52 = vadd.f32 %v5532_v46, %v4990_v22  ;;  %v1596_v31 = vsel %vm1326_vm11, %v7662_v2, 0.0  ;;  %v1600_v12 = vsel %vm1330_vm12, %v7662_v2, 0.0  ;;  %vm2136_vm13 = vcmp.eq.s32.totalorder %v8386_v0, %v7664_v3 }
 0x111   : > { %v6578_v6 = vadd.f32 %v6322_v51, %v5784_v33  ;;  %v1852_v13 = vadd.f32 %v1596_v31, %v1046_v25  ;;  %v1856_v23 = vadd.f32 %v1600_v12, %v1050_v54  ;;  %vm2140_vm14 = vcmp.eq.s32.totalorder %v482_v42, %v7664_v3  ;;  %v542_v25 = vld [vmem:[#allocation2 + $0x6c0] sm:$0xff] }
 0x112   : > { %v6582_v29 = vadd.f32 %v6326_v48, %v5788_v52  ;;  %v2406_v44 = vsel %vm2136_vm13, %v7678_v18, 0.0  ;;  %v2410_v21 = vsel %vm2140_vm14, %v7678_v18, 0.0  ;;  %vm2930_vm15 = vcmp.eq.s32.totalorder %v8386_v0, %v7669_v9  ;;  %v546_v33 = vld [vmem:[#allocation2 + $0x6e0] sm:$0xff] }
 0x113   : > { %v2662_v26 = vadd.f32 %v2406_v44, %v1852_v13  ;;  %v2666_v8 = vadd.f32 %v2410_v21, %v1856_v23  ;;  %vm2934_vm0 = vcmp.eq.s32.totalorder %v482_v42, %v7669_v9  ;;  %v3200_v38 = vsel %vm2930_vm15, %v7684_v19, 0.0 }
 0x114   : > { %v6809_v37 = vpack.c.bf16 %v6582_v29, %v6578_v6  ;;  %v3204_v24 = vsel %vm2934_vm0, %v7684_v19, 0.0  ;;  %vm3730_vm1 = vcmp.eq.s32.totalorder %v8386_v0, %v7698_v40  ;;  %vm3734_vm2 = vcmp.eq.s32.totalorder %v482_v42, %v7698_v40 }
 0x115   : > { %v3456_v4 = vadd.f32 %v3200_v38, %v2662_v26  ;;  %v3460_v50 = vadd.f32 %v3204_v24, %v2666_v8  ;;  %v4000_v36 = vsel %vm3730_vm1, %v7700_v43, 0.0  ;;  %v4004_v46 = vsel %vm3734_vm2, %v7700_v43, 0.0 }
 0x116   : > { %6910 = vmatpush.bf16.msra.mxu1 %v6809_v37  ;;  %vm4524_vm3 = vcmp.eq.s32.totalorder %v8386_v0, %v7713_v60  ;;  %vm4528_vm4 = vcmp.eq.s32.totalorder %v482_v42, %v7713_v60  ;;  %vm5322_vm5 = vcmp.eq.s32.totalorder %v8386_v0, %v7743_v17  ;;  %vm5326_vm6 = vcmp.eq.s32.totalorder %v482_v42, %v7743_v17 }
 0x117   : > { %v4256_v58 = vadd.f32 %v4000_v36, %v3456_v4  ;;  %v4260_v51 = vadd.f32 %v4004_v46, %v3460_v50  ;;  %v4794_v22 = vsel %vm4524_vm3, %v7715_v62, 0.0  ;;  %v4798_v48 = vsel %vm4528_vm4, %v7715_v62, 0.0 }
 0x118   : > { %v5592_v54 = vsel %vm5322_vm5, %v7745_v20, 0.0  ;;  %v5596_v52 = vsel %vm5326_vm6, %v7745_v20, 0.0  ;;  %vm6116_vm7 = vcmp.eq.s32.totalorder %v8386_v0, %v7765_v32  ;;  %vm6120_vm8 = vcmp.eq.s32.totalorder %v482_v42, %v7765_v32 }
 0x119   : > { %v5050_v31 = vadd.f32 %v4794_v22, %v4256_v58  ;;  %v5054_v12 = vadd.f32 %v4798_v48, %v4260_v51  ;;  %v6386_v6 = vsel %vm6116_vm7, %v7767_v34, 0.0  ;;  %v6390_v13 = vsel %vm6120_vm8, %v7767_v34, 0.0 }
 0x11a   : > { %vm840_vm9 = vcmp.eq.s32.totalorder %v542_v25, %v7638_v57  ;;  %vm844_vm10 = vcmp.eq.s32.totalorder %v546_v33, %v7638_v57  ;;  %vm1390_vm11 = vcmp.eq.s32.totalorder %v542_v25, %v7641_v59  ;;  %vm1394_vm12 = vcmp.eq.s32.totalorder %v546_v33, %v7641_v59 }
 0x11b   : > { %v5848_v23 = vadd.f32 %v5592_v54, %v5050_v31  ;;  %v5852_v29 = vadd.f32 %v5596_v52, %v5054_v12  ;;  %v1110_v0 = vsel %vm840_vm9, %v7656_v1, 0.0  ;;  %v1114_v42 = vsel %vm844_vm10, %v7656_v1, 0.0  ;;  %v8458_v31 = vld [vmem:[#allocation2 + $0x80] sm:$0xff] }
 0x11c   : > { %v1660_v44 = vsel %vm1390_vm11, %v7662_v2, 0.0  ;;  %v1664_v21 = vsel %vm1394_vm12, %v7662_v2, 0.0  ;;  %vm2200_vm13 = vcmp.eq.s32.totalorder %v542_v25, %v7664_v3  ;;  %vm2204_vm14 = vcmp.eq.s32.totalorder %v546_v33, %v7664_v3 }
 0x11d   : > { %v6642_v26 = vadd.f32 %v6386_v6, %v5848_v23  ;;  %v6646_v8 = vadd.f32 %v6390_v13, %v5852_v29  ;;  %v1916_v38 = vadd.f32 %v1660_v44, %v1110_v0  ;;  %v1920_v37 = vadd.f32 %v1664_v21, %v1114_v42  ;;  %v346_v0 = vld [vmem:[#allocation2 + $0xa0] sm:$0xff] }
 0x11e   : > { %v2470_v24 = vsel %vm2200_vm13, %v7678_v18, 0.0  ;;  %v2474_v4 = vsel %vm2204_vm14, %v7678_v18, 0.0  ;;  %vm2994_vm15 = vcmp.eq.s32.totalorder %v542_v25, %v7669_v9  ;;  %vm2998_vm0 = vcmp.eq.s32.totalorder %v546_v33, %v7669_v9 }
 0x11f   : > { %v6841_v50 = vpack.c.bf16 %v6646_v8, %v6642_v26  ;;  %v2726_v36 = vadd.f32 %v2470_v24, %v1916_v38  ;;  %v2730_v46 = vadd.f32 %v2474_v4, %v1920_v37  ;;  %v3264_v58 = vsel %vm2994_vm15, %v7684_v19, 0.0 }
 0x120   : > { %v3268_v51 = vsel %vm2998_vm0, %v7684_v19, 0.0  ;;  %vm3794_vm1 = vcmp.eq.s32.totalorder %v542_v25, %v7698_v40  ;;  %vm3798_vm2 = vcmp.eq.s32.totalorder %v546_v33, %v7698_v40  ;;  %vm4588_vm3 = vcmp.eq.s32.totalorder %v542_v25, %v7713_v60 }
 0x121   : > { %6923 = vmatpush.bf16.msra.mxu2 %v6841_v50  ;;  %v3520_v22 = vadd.f32 %v3264_v58, %v2726_v36  ;;  %v3524_v48 = vadd.f32 %v3268_v51, %v2730_v46  ;;  %v4064_v54 = vsel %vm3794_vm1, %v7700_v43, 0.0  ;;  %v4068_v52 = vsel %vm3798_vm2, %v7700_v43, 0.0 }
 0x122   : > { %vm4592_vm4 = vcmp.eq.s32.totalorder %v546_v33, %v7713_v60  ;;  %v4858_v12 = vsel %vm4588_vm3, %v7715_v62, 0.0  ;;  %vm5386_vm5 = vcmp.eq.s32.totalorder %v542_v25, %v7743_v17  ;;  %vm5390_vm6 = vcmp.eq.s32.totalorder %v546_v33, %v7743_v17 }
 0x123   : > { %v4320_v6 = vadd.f32 %v4064_v54, %v3520_v22  ;;  %v4324_v13 = vadd.f32 %v4068_v52, %v3524_v48  ;;  %v4862_v23 = vsel %vm4592_vm4, %v7715_v62, 0.0  ;;  %v5656_v29 = vsel %vm5386_vm5, %v7745_v20, 0.0 }
 0x124   : > { %v5660_v42 = vsel %vm5390_vm6, %v7745_v20, 0.0  ;;  %vm6180_vm7 = vcmp.eq.s32.totalorder %v542_v25, %v7765_v32  ;;  %vm6184_vm8 = vcmp.eq.s32.totalorder %v546_v33, %v7765_v32  ;;  %vm640_vm9 = vcmp.eq.s32.totalorder %v8458_v31, %v7638_v57 }
 0x125   : > { %v5114_v44 = vadd.f32 %v4858_v12, %v4320_v6  ;;  %v5118_v21 = vadd.f32 %v4862_v23, %v4324_v13  ;;  %v6450_v26 = vsel %vm6180_vm7, %v7767_v34, 0.0  ;;  %v6454_v8 = vsel %vm6184_vm8, %v7767_v34, 0.0 }
 0x126   : > { %vm644_vm10 = vcmp.eq.s32.totalorder %v346_v0, %v7638_v57  ;;  %v910_v38 = vsel %vm640_vm9, %v7656_v1, 0.0  ;;  %vm1190_vm11 = vcmp.eq.s32.totalorder %v8458_v31, %v7641_v59  ;;  %vm1194_vm12 = vcmp.eq.s32.totalorder %v346_v0, %v7641_v59 }
 0x127   : > { %v5912_v25 = vadd.f32 %v5656_v29, %v5114_v44  ;;  %v5916_v33 = vadd.f32 %v5660_v42, %v5118_v21  ;;  %v914_v37 = vsel %vm644_vm10, %v7656_v1, 0.0  ;;  %v1460_v24 = vsel %vm1190_vm11, %v7662_v2, 0.0 }
 0x128   : > { %v1464_v4 = vsel %vm1194_vm12, %v7662_v2, 0.0  ;;  %v1716_v50 = vadd.f32 %v1460_v24, %v910_v38  ;;  %vm2000_vm13 = vcmp.eq.s32.totalorder %v8458_v31, %v7664_v3  ;;  %vm2004_vm14 = vcmp.eq.s32.totalorder %v346_v0, %v7664_v3  ;;  %v410_v38 = vld [vmem:[#allocation2 + $0x2a0] sm:$0xff] }
 0x129   : > { %v6706_v36 = vadd.f32 %v6450_v26, %v5912_v25  ;;  %v6710_v46 = vadd.f32 %v6454_v8, %v5916_v33  ;;  %v1720_v58 = vadd.f32 %v1464_v4, %v914_v37  ;;  %v2270_v51 = vsel %vm2000_vm13, %v7678_v18, 0.0  ;;  %v406_v8 = vld [vmem:[#allocation2 + $0x280] sm:$0xff] }
 0x12a   : > { %v2274_v22 = vsel %vm2004_vm14, %v7678_v18, 0.0  ;;  %v2526_v48 = vadd.f32 %v2270_v51, %v1716_v50  ;;  %vm2794_vm15 = vcmp.eq.s32.totalorder %v8458_v31, %v7669_v9  ;;  %vm2798_vm0 = vcmp.eq.s32.totalorder %v346_v0, %v7669_v9 }
 0x12b   : > { %v6873_v54 = vpack.c.bf16 %v6710_v46, %v6706_v36  ;;  %v2530_v52 = vadd.f32 %v2274_v22, %v1720_v58  ;;  %v3064_v12 = vsel %vm2794_vm15, %v7684_v19, 0.0  ;;  %v3068_v6 = vsel %vm2798_vm0, %v7684_v19, 0.0 }
 0x12c   : > { %v3320_v13 = vadd.f32 %v3064_v12, %v2526_v48  ;;  %vm3594_vm1 = vcmp.eq.s32.totalorder %v8458_v31, %v7698_v40  ;;  %vm3598_vm2 = vcmp.eq.s32.totalorder %v346_v0, %v7698_v40  ;;  %vm4388_vm3 = vcmp.eq.s32.totalorder %v8458_v31, %v7713_v60 }
 0x12d   : > { %6936 = vmatpush.bf16.msra.mxu3 %v6873_v54  ;;  %v3324_v23 = vadd.f32 %v3068_v6, %v2530_v52  ;;  %v3864_v29 = vsel %vm3594_vm1, %v7700_v43, 0.0  ;;  %v3868_v42 = vsel %vm3598_vm2, %v7700_v43, 0.0  ;;  %vm4392_vm4 = vcmp.eq.s32.totalorder %v346_v0, %v7713_v60 }
 0x12e   : > { %v4120_v44 = vadd.f32 %v3864_v29, %v3320_v13  ;;  %v4658_v21 = vsel %vm4388_vm3, %v7715_v62, 0.0  ;;  %v4662_v26 = vsel %vm4392_vm4, %v7715_v62, 0.0  ;;  %vm5186_vm5 = vcmp.eq.s32.totalorder %v8458_v31, %v7743_v17 }
 0x12f   : > { %v4124_v25 = vadd.f32 %v3868_v42, %v3324_v23  ;;  %vm5190_vm6 = vcmp.eq.s32.totalorder %v346_v0, %v7743_v17  ;;  %v5456_v33 = vsel %vm5186_vm5, %v7745_v20, 0.0  ;;  %vm5980_vm7 = vcmp.eq.s32.totalorder %v8458_v31, %v7765_v32 }
 0x130   : > { %v4914_v37 = vadd.f32 %v4658_v21, %v4120_v44  ;;  %v5460_v24 = vsel %vm5190_vm6, %v7745_v20, 0.0  ;;  %vm5984_vm8 = vcmp.eq.s32.totalorder %v346_v0, %v7765_v32  ;;  %v6250_v4 = vsel %vm5980_vm7, %v7767_v34, 0.0 }
 0x131   : > { %v4918_v50 = vadd.f32 %v4662_v26, %v4124_v25  ;;  %v6254_v36 = vsel %vm5984_vm8, %v7767_v34, 0.0  ;;  %vm704_vm9 = vcmp.eq.s32.totalorder %v406_v8, %v7638_v57  ;;  %vm708_vm10 = vcmp.eq.s32.totalorder %v410_v38, %v7638_v57 }
 0x132   : > { %v5712_v46 = vadd.f32 %v5456_v33, %v4914_v37  ;;  %v974_v58 = vsel %vm704_vm9, %v7656_v1, 0.0  ;;  %v978_v51 = vsel %vm708_vm10, %v7656_v1, 0.0  ;;  %vm1254_vm11 = vcmp.eq.s32.totalorder %v406_v8, %v7641_v59 }
 0x133   : > { %v5716_v31 = vadd.f32 %v5460_v24, %v4918_v50  ;;  %vm1258_vm12 = vcmp.eq.s32.totalorder %v410_v38, %v7641_v59  ;;  %v1524_v0 = vsel %vm1254_vm11, %v7662_v2, 0.0  ;;  %vm2064_vm13 = vcmp.eq.s32.totalorder %v406_v8, %v7664_v3 }
 0x134   : > { %v6506_v22 = vadd.f32 %v6250_v4, %v5712_v46  ;;  %v1528_v48 = vsel %vm1258_vm12, %v7662_v2, 0.0  ;;  %v1780_v54 = vadd.f32 %v1524_v0, %v974_v58  ;;  %vm2068_vm14 = vcmp.eq.s32.totalorder %v410_v38, %v7664_v3  ;;  %v8534_v4 = vld [vmem:[#allocation2 + $0x480] sm:$0xff] }
 0x135   : > { %v6510_v52 = vadd.f32 %v6254_v36, %v5716_v31  ;;  %v1784_v12 = vadd.f32 %v1528_v48, %v978_v51  ;;  %v2334_v6 = vsel %vm2064_vm13, %v7678_v18, 0.0  ;;  %v2338_v13 = vsel %vm2068_vm14, %v7678_v18, 0.0  ;;  %v474_v46 = vld [vmem:[#allocation2 + $0x4a0] sm:$0xff] }
 0x136   : > { %v2590_v23 = vadd.f32 %v2334_v6, %v1780_v54  ;;  %vm2858_vm15 = vcmp.eq.s32.totalorder %v406_v8, %v7669_v9  ;;  %vm2862_vm0 = vcmp.eq.s32.totalorder %v410_v38, %v7669_v9  ;;  %vm3658_vm1 = vcmp.eq.s32.totalorder %v406_v8, %v7698_v40 }
 0x137   : > { %v6773_v29 = vpack.c.bf16 %v6510_v52, %v6506_v22  ;;  %v2594_v42 = vadd.f32 %v2338_v13, %v1784_v12  ;;  %v3128_v44 = vsel %vm2858_vm15, %v7684_v19, 0.0  ;;  %v3132_v21 = vsel %vm2862_vm0, %v7684_v19, 0.0 }
 0x138   : > { %v3384_v26 = vadd.f32 %v3128_v44, %v2590_v23  ;;  %vm3662_vm2 = vcmp.eq.s32.totalorder %v410_v38, %v7698_v40  ;;  %v3928_v25 = vsel %vm3658_vm1, %v7700_v43, 0.0  ;;  %vm4452_vm3 = vcmp.eq.s32.totalorder %v406_v8, %v7713_v60 }
 0x139   : > { %6898 = vmatpush.bf16.msra.mxu0 %v6773_v29  ;;  %v3388_v33 = vadd.f32 %v3132_v21, %v2594_v42  ;;  %v3932_v37 = vsel %vm3662_vm2, %v7700_v43, 0.0  ;;  %vm4456_vm4 = vcmp.eq.s32.totalorder %v410_v38, %v7713_v60  ;;  %v4722_v24 = vsel %vm4452_vm3, %v7715_v62, 0.0 }
 0x13a   : > { %v4184_v50 = vadd.f32 %v3928_v25, %v3384_v26  ;;  %v4726_v36 = vsel %vm4456_vm4, %v7715_v62, 0.0  ;;  %vm5250_vm5 = vcmp.eq.s32.totalorder %v406_v8, %v7743_v17  ;;  %vm5254_vm6 = vcmp.eq.s32.totalorder %v410_v38, %v7743_v17 }
 0x13b   : > { %v4188_v58 = vadd.f32 %v3932_v37, %v3388_v33  ;;  %v5520_v51 = vsel %vm5250_vm5, %v7745_v20, 0.0  ;;  %v5524_v31 = vsel %vm5254_vm6, %v7745_v20, 0.0  ;;  %vm6044_vm7 = vcmp.eq.s32.totalorder %v406_v8, %v7765_v32 }
 0x13c   : > { %v4978_v0 = vadd.f32 %v4722_v24, %v4184_v50  ;;  %vm6048_vm8 = vcmp.eq.s32.totalorder %v410_v38, %v7765_v32  ;;  %v6314_v22 = vsel %vm6044_vm7, %v7767_v34, 0.0  ;;  %vm768_vm9 = vcmp.eq.s32.totalorder %v8534_v4, %v7638_v57 }
 0x13d   : > { %v4982_v48 = vadd.f32 %v4726_v36, %v4188_v58  ;;  %v6318_v54 = vsel %vm6048_vm8, %v7767_v34, 0.0  ;;  %vm772_vm10 = vcmp.eq.s32.totalorder %v474_v46, %v7638_v57  ;;  %v1038_v52 = vsel %vm768_vm9, %v7656_v1, 0.0 }
 0x13e   : > { %v5776_v12 = vadd.f32 %v5520_v51, %v4978_v0  ;;  %v1042_v6 = vsel %vm772_vm10, %v7656_v1, 0.0  ;;  %vm1318_vm11 = vcmp.eq.s32.totalorder %v8534_v4, %v7641_v59  ;;  %vm1322_vm12 = vcmp.eq.s32.totalorder %v474_v46, %v7641_v59 }
 0x13f   : > { %v5780_v8 = vadd.f32 %v5524_v31, %v4982_v48  ;;  %v1588_v38 = vsel %vm1318_vm11, %v7662_v2, 0.0  ;;  %v1592_v13 = vsel %vm1322_vm12, %v7662_v2, 0.0  ;;  %vm2128_vm13 = vcmp.eq.s32.totalorder %v8534_v4, %v7664_v3 }
 0x140   : > { %v6570_v23 = vadd.f32 %v6314_v22, %v5776_v12  ;;  %v1844_v29 = vadd.f32 %v1588_v38, %v1038_v52  ;;  %v1848_v42 = vadd.f32 %v1592_v13, %v1042_v6  ;;  %vm2132_vm14 = vcmp.eq.s32.totalorder %v474_v46, %v7664_v3  ;;  %v534_v52 = vld [vmem:[#allocation2 + $0x680] sm:$0xff] }
 0x141   : > { %v6574_v44 = vadd.f32 %v6318_v54, %v5780_v8  ;;  %v2398_v21 = vsel %vm2128_vm13, %v7678_v18, 0.0  ;;  %v2402_v26 = vsel %vm2132_vm14, %v7678_v18, 0.0  ;;  %vm2922_vm15 = vcmp.eq.s32.totalorder %v8534_v4, %v7669_v9  ;;  %v538_v12 = vld [vmem:[#allocation2 + $0x6a0] sm:$0xff] }
 0x142   : > { %v2654_v25 = vadd.f32 %v2398_v21, %v1844_v29  ;;  %v2658_v33 = vadd.f32 %v2402_v26, %v1848_v42  ;;  %vm2926_vm0 = vcmp.eq.s32.totalorder %v474_v46, %v7669_v9  ;;  %v3192_v37 = vsel %vm2922_vm15, %v7684_v19, 0.0 }
 0x143   : > { %v6805_v24 = vpack.c.bf16 %v6574_v44, %v6570_v23  ;;  %v3196_v50 = vsel %vm2926_vm0, %v7684_v19, 0.0  ;;  %vm3722_vm1 = vcmp.eq.s32.totalorder %v8534_v4, %v7698_v40  ;;  %vm3726_vm2 = vcmp.eq.s32.totalorder %v474_v46, %v7698_v40 }
 0x144   : > { %v3448_v36 = vadd.f32 %v3192_v37, %v2654_v25  ;;  %v3452_v58 = vadd.f32 %v3196_v50, %v2658_v33  ;;  %v3992_v51 = vsel %vm3722_vm1, %v7700_v43, 0.0  ;;  %v3996_v31 = vsel %vm3726_vm2, %v7700_v43, 0.0 }
 0x145   : > { %6911 = vmatpush.bf16.msra.mxu1 %v6805_v24  ;;  %vm4516_vm3 = vcmp.eq.s32.totalorder %v8534_v4, %v7713_v60  ;;  %vm4520_vm4 = vcmp.eq.s32.totalorder %v474_v46, %v7713_v60  ;;  %vm5314_vm5 = vcmp.eq.s32.totalorder %v8534_v4, %v7743_v17  ;;  %vm5318_vm6 = vcmp.eq.s32.totalorder %v474_v46, %v7743_v17 }
 0x146   : > { %v4248_v0 = vadd.f32 %v3992_v51, %v3448_v36  ;;  %v4252_v22 = vadd.f32 %v3996_v31, %v3452_v58  ;;  %v4786_v48 = vsel %vm4516_vm3, %v7715_v62, 0.0  ;;  %v4790_v54 = vsel %vm4520_vm4, %v7715_v62, 0.0 }
 0x147   : > { %v5584_v6 = vsel %vm5314_vm5, %v7745_v20, 0.0  ;;  %v5588_v8 = vsel %vm5318_vm6, %v7745_v20, 0.0  ;;  %vm6108_vm7 = vcmp.eq.s32.totalorder %v8534_v4, %v7765_v32  ;;  %vm6112_vm8 = vcmp.eq.s32.totalorder %v474_v46, %v7765_v32 }
 0x148   : > { %v5042_v38 = vadd.f32 %v4786_v48, %v4248_v0  ;;  %v5046_v13 = vadd.f32 %v4790_v54, %v4252_v22  ;;  %v6378_v23 = vsel %vm6108_vm7, %v7767_v34, 0.0  ;;  %v6382_v29 = vsel %vm6112_vm8, %v7767_v34, 0.0 }
 0x149   : > { %vm832_vm9 = vcmp.eq.s32.totalorder %v534_v52, %v7638_v57  ;;  %vm836_vm10 = vcmp.eq.s32.totalorder %v538_v12, %v7638_v57  ;;  %vm1382_vm11 = vcmp.eq.s32.totalorder %v534_v52, %v7641_v59  ;;  %vm1386_vm12 = vcmp.eq.s32.totalorder %v538_v12, %v7641_v59 }
 0x14a   : > { %v5840_v42 = vadd.f32 %v5584_v6, %v5042_v38  ;;  %v5844_v44 = vadd.f32 %v5588_v8, %v5046_v13  ;;  %v1102_v4 = vsel %vm832_vm9, %v7656_v1, 0.0  ;;  %v1106_v46 = vsel %vm836_vm10, %v7656_v1, 0.0  ;;  %v8606_v38 = vld [vmem:[#allocation2 + $0x40] sm:$0xff] }
 0x14b   : > { %v1652_v21 = vsel %vm1382_vm11, %v7662_v2, 0.0  ;;  %v1656_v26 = vsel %vm1386_vm12, %v7662_v2, 0.0  ;;  %vm2192_vm13 = vcmp.eq.s32.totalorder %v534_v52, %v7664_v3  ;;  %vm2196_vm14 = vcmp.eq.s32.totalorder %v538_v12, %v7664_v3 }
 0x14c   : > { %v6634_v25 = vadd.f32 %v6378_v23, %v5840_v42  ;;  %v6638_v33 = vadd.f32 %v6382_v29, %v5844_v44  ;;  %v1908_v37 = vadd.f32 %v1652_v21, %v1102_v4  ;;  %v1912_v24 = vadd.f32 %v1656_v26, %v1106_v46  ;;  %v338_v4 = vld [vmem:[#allocation2 + $0x60] sm:$0xff] }
 0x14d   : > { %v2462_v50 = vsel %vm2192_vm13, %v7678_v18, 0.0  ;;  %v2466_v36 = vsel %vm2196_vm14, %v7678_v18, 0.0  ;;  %vm2986_vm15 = vcmp.eq.s32.totalorder %v534_v52, %v7669_v9  ;;  %vm2990_vm0 = vcmp.eq.s32.totalorder %v538_v12, %v7669_v9 }
 0x14e   : > { %v6837_v58 = vpack.c.bf16 %v6638_v33, %v6634_v25  ;;  %v2718_v51 = vadd.f32 %v2462_v50, %v1908_v37  ;;  %v2722_v31 = vadd.f32 %v2466_v36, %v1912_v24  ;;  %v3256_v0 = vsel %vm2986_vm15, %v7684_v19, 0.0 }
 0x14f   : > { %v3260_v22 = vsel %vm2990_vm0, %v7684_v19, 0.0  ;;  %vm3786_vm1 = vcmp.eq.s32.totalorder %v534_v52, %v7698_v40  ;;  %vm3790_vm2 = vcmp.eq.s32.totalorder %v538_v12, %v7698_v40  ;;  %vm4580_vm3 = vcmp.eq.s32.totalorder %v534_v52, %v7713_v60 }
 0x150   : > { %6924 = vmatpush.bf16.msra.mxu2 %v6837_v58  ;;  %v3512_v48 = vadd.f32 %v3256_v0, %v2718_v51  ;;  %v3516_v54 = vadd.f32 %v3260_v22, %v2722_v31  ;;  %v4056_v6 = vsel %vm3786_vm1, %v7700_v43, 0.0  ;;  %v4060_v8 = vsel %vm3790_vm2, %v7700_v43, 0.0 }
 0x151   : > { %vm4584_vm4 = vcmp.eq.s32.totalorder %v538_v12, %v7713_v60  ;;  %v4850_v13 = vsel %vm4580_vm3, %v7715_v62, 0.0  ;;  %vm5378_vm5 = vcmp.eq.s32.totalorder %v534_v52, %v7743_v17  ;;  %vm5382_vm6 = vcmp.eq.s32.totalorder %v538_v12, %v7743_v17 }
 0x152   : > { %v4312_v23 = vadd.f32 %v4056_v6, %v3512_v48  ;;  %v4316_v29 = vadd.f32 %v4060_v8, %v3516_v54  ;;  %v4854_v42 = vsel %vm4584_vm4, %v7715_v62, 0.0  ;;  %v5648_v44 = vsel %vm5378_vm5, %v7745_v20, 0.0 }
 0x153   : > { %v5652_v46 = vsel %vm5382_vm6, %v7745_v20, 0.0  ;;  %vm6172_vm7 = vcmp.eq.s32.totalorder %v534_v52, %v7765_v32  ;;  %vm6176_vm8 = vcmp.eq.s32.totalorder %v538_v12, %v7765_v32  ;;  %vm632_vm9 = vcmp.eq.s32.totalorder %v8606_v38, %v7638_v57 }
 0x154   : > { %v5106_v21 = vadd.f32 %v4850_v13, %v4312_v23  ;;  %v5110_v26 = vadd.f32 %v4854_v42, %v4316_v29  ;;  %v6442_v25 = vsel %vm6172_vm7, %v7767_v34, 0.0  ;;  %v6446_v33 = vsel %vm6176_vm8, %v7767_v34, 0.0 }
 0x155   : > { %vm636_vm10 = vcmp.eq.s32.totalorder %v338_v4, %v7638_v57  ;;  %v902_v37 = vsel %vm632_vm9, %v7656_v1, 0.0  ;;  %vm1182_vm11 = vcmp.eq.s32.totalorder %v8606_v38, %v7641_v59  ;;  %vm1186_vm12 = vcmp.eq.s32.totalorder %v338_v4, %v7641_v59 }
 0x156   : > { %v5904_v52 = vadd.f32 %v5648_v44, %v5106_v21  ;;  %v5908_v12 = vadd.f32 %v5652_v46, %v5110_v26  ;;  %v906_v24 = vsel %vm636_vm10, %v7656_v1, 0.0  ;;  %v1452_v50 = vsel %vm1182_vm11, %v7662_v2, 0.0 }
 0x157   : > { %v1456_v36 = vsel %vm1186_vm12, %v7662_v2, 0.0  ;;  %v1708_v58 = vadd.f32 %v1452_v50, %v902_v37  ;;  %vm1992_vm13 = vcmp.eq.s32.totalorder %v8606_v38, %v7664_v3  ;;  %vm1996_vm14 = vcmp.eq.s32.totalorder %v338_v4, %v7664_v3  ;;  %v402_v37 = vld [vmem:[#allocation2 + $0x260] sm:$0xff] }
 0x158   : > { %v6698_v51 = vadd.f32 %v6442_v25, %v5904_v52  ;;  %v6702_v31 = vadd.f32 %v6446_v33, %v5908_v12  ;;  %v1712_v0 = vadd.f32 %v1456_v36, %v906_v24  ;;  %v2262_v22 = vsel %vm1992_vm13, %v7678_v18, 0.0  ;;  %v398_v33 = vld [vmem:[#allocation2 + $0x240] sm:$0xff] }
 0x159   : > { %v2266_v48 = vsel %vm1996_vm14, %v7678_v18, 0.0  ;;  %v2518_v54 = vadd.f32 %v2262_v22, %v1708_v58  ;;  %vm2786_vm15 = vcmp.eq.s32.totalorder %v8606_v38, %v7669_v9  ;;  %vm2790_vm0 = vcmp.eq.s32.totalorder %v338_v4, %v7669_v9 }
 0x15a   : > { %v6869_v6 = vpack.c.bf16 %v6702_v31, %v6698_v51  ;;  %v2522_v8 = vadd.f32 %v2266_v48, %v1712_v0  ;;  %v3056_v13 = vsel %vm2786_vm15, %v7684_v19, 0.0  ;;  %v3060_v23 = vsel %vm2790_vm0, %v7684_v19, 0.0 }
 0x15b   : > { %v3312_v29 = vadd.f32 %v3056_v13, %v2518_v54  ;;  %vm3586_vm1 = vcmp.eq.s32.totalorder %v8606_v38, %v7698_v40  ;;  %vm3590_vm2 = vcmp.eq.s32.totalorder %v338_v4, %v7698_v40  ;;  %vm4380_vm3 = vcmp.eq.s32.totalorder %v8606_v38, %v7713_v60 }
 0x15c   : > { %6937 = vmatpush.bf16.msra.mxu3 %v6869_v6  ;;  %v3316_v42 = vadd.f32 %v3060_v23, %v2522_v8  ;;  %v3856_v44 = vsel %vm3586_vm1, %v7700_v43, 0.0  ;;  %v3860_v46 = vsel %vm3590_vm2, %v7700_v43, 0.0  ;;  %vm4384_vm4 = vcmp.eq.s32.totalorder %v338_v4, %v7713_v60 }
 0x15d   : > { %v4112_v21 = vadd.f32 %v3856_v44, %v3312_v29  ;;  %v4650_v26 = vsel %vm4380_vm3, %v7715_v62, 0.0  ;;  %v4654_v25 = vsel %vm4384_vm4, %v7715_v62, 0.0  ;;  %vm5178_vm5 = vcmp.eq.s32.totalorder %v8606_v38, %v7743_v17 }
 0x15e   : > { %v4116_v52 = vadd.f32 %v3860_v46, %v3316_v42  ;;  %vm5182_vm6 = vcmp.eq.s32.totalorder %v338_v4, %v7743_v17  ;;  %v5448_v12 = vsel %vm5178_vm5, %v7745_v20, 0.0  ;;  %vm5972_vm7 = vcmp.eq.s32.totalorder %v8606_v38, %v7765_v32 }
 0x15f   : > { %v4906_v24 = vadd.f32 %v4650_v26, %v4112_v21  ;;  %v5452_v50 = vsel %vm5182_vm6, %v7745_v20, 0.0  ;;  %vm5976_vm8 = vcmp.eq.s32.totalorder %v338_v4, %v7765_v32  ;;  %v6242_v36 = vsel %vm5972_vm7, %v7767_v34, 0.0 }
 0x160   : > { %v4910_v58 = vadd.f32 %v4654_v25, %v4116_v52  ;;  %v6246_v51 = vsel %vm5976_vm8, %v7767_v34, 0.0  ;;  %vm696_vm9 = vcmp.eq.s32.totalorder %v398_v33, %v7638_v57  ;;  %vm700_vm10 = vcmp.eq.s32.totalorder %v402_v37, %v7638_v57 }
 0x161   : > { %v5704_v31 = vadd.f32 %v5448_v12, %v4906_v24  ;;  %v966_v0 = vsel %vm696_vm9, %v7656_v1, 0.0  ;;  %v970_v22 = vsel %vm700_vm10, %v7656_v1, 0.0  ;;  %vm1246_vm11 = vcmp.eq.s32.totalorder %v398_v33, %v7641_v59 }
 0x162   : > { %v5708_v38 = vadd.f32 %v5452_v50, %v4910_v58  ;;  %vm1250_vm12 = vcmp.eq.s32.totalorder %v402_v37, %v7641_v59  ;;  %v1516_v4 = vsel %vm1246_vm11, %v7662_v2, 0.0  ;;  %vm2056_vm13 = vcmp.eq.s32.totalorder %v398_v33, %v7664_v3 }
 0x163   : > { %v6498_v48 = vadd.f32 %v6242_v36, %v5704_v31  ;;  %v1520_v54 = vsel %vm1250_vm12, %v7662_v2, 0.0  ;;  %v1772_v6 = vadd.f32 %v1516_v4, %v966_v0  ;;  %vm2060_vm14 = vcmp.eq.s32.totalorder %v402_v37, %v7664_v3  ;;  %v8682_v36 = vld [vmem:[#allocation2 + $0x440] sm:$0xff] }
 0x164   : > { %v6502_v8 = vadd.f32 %v6246_v51, %v5708_v38  ;;  %v1776_v13 = vadd.f32 %v1520_v54, %v970_v22  ;;  %v2326_v23 = vsel %vm2056_vm13, %v7678_v18, 0.0  ;;  %v2330_v29 = vsel %vm2060_vm14, %v7678_v18, 0.0  ;;  %v466_v31 = vld [vmem:[#allocation2 + $0x460] sm:$0xff] }
 0x165   : > { %v2582_v42 = vadd.f32 %v2326_v23, %v1772_v6  ;;  %vm2850_vm15 = vcmp.eq.s32.totalorder %v398_v33, %v7669_v9  ;;  %vm2854_vm0 = vcmp.eq.s32.totalorder %v402_v37, %v7669_v9  ;;  %vm3650_vm1 = vcmp.eq.s32.totalorder %v398_v33, %v7698_v40 }
 0x166   : > { %v6769_v44 = vpack.c.bf16 %v6502_v8, %v6498_v48  ;;  %v2586_v46 = vadd.f32 %v2330_v29, %v1776_v13  ;;  %v3120_v21 = vsel %vm2850_vm15, %v7684_v19, 0.0  ;;  %v3124_v26 = vsel %vm2854_vm0, %v7684_v19, 0.0 }
 0x167   : > { %v3376_v25 = vadd.f32 %v3120_v21, %v2582_v42  ;;  %vm3654_vm2 = vcmp.eq.s32.totalorder %v402_v37, %v7698_v40  ;;  %v3920_v52 = vsel %vm3650_vm1, %v7700_v43, 0.0  ;;  %vm4444_vm3 = vcmp.eq.s32.totalorder %v398_v33, %v7713_v60 }
 0x168   : > { %6899 = vmatpush.bf16.msra.mxu0 %v6769_v44  ;;  %v3380_v12 = vadd.f32 %v3124_v26, %v2586_v46  ;;  %v3924_v24 = vsel %vm3654_vm2, %v7700_v43, 0.0  ;;  %vm4448_vm4 = vcmp.eq.s32.totalorder %v402_v37, %v7713_v60  ;;  %v4714_v50 = vsel %vm4444_vm3, %v7715_v62, 0.0 }
 0x169   : > { %v4176_v58 = vadd.f32 %v3920_v52, %v3376_v25  ;;  %v4718_v51 = vsel %vm4448_vm4, %v7715_v62, 0.0  ;;  %vm5242_vm5 = vcmp.eq.s32.totalorder %v398_v33, %v7743_v17  ;;  %vm5246_vm6 = vcmp.eq.s32.totalorder %v402_v37, %v7743_v17 }
 0x16a   : > { %v4180_v0 = vadd.f32 %v3924_v24, %v3380_v12  ;;  %v5512_v22 = vsel %vm5242_vm5, %v7745_v20, 0.0  ;;  %v5516_v38 = vsel %vm5246_vm6, %v7745_v20, 0.0  ;;  %vm6036_vm7 = vcmp.eq.s32.totalorder %v398_v33, %v7765_v32 }
 0x16b   : > { %v4970_v4 = vadd.f32 %v4714_v50, %v4176_v58  ;;  %vm6040_vm8 = vcmp.eq.s32.totalorder %v402_v37, %v7765_v32  ;;  %v6306_v48 = vsel %vm6036_vm7, %v7767_v34, 0.0  ;;  %vm760_vm9 = vcmp.eq.s32.totalorder %v8682_v36, %v7638_v57 }
 0x16c   : > { %v4974_v54 = vadd.f32 %v4718_v51, %v4180_v0  ;;  %v6310_v6 = vsel %vm6040_vm8, %v7767_v34, 0.0  ;;  %vm764_vm10 = vcmp.eq.s32.totalorder %v466_v31, %v7638_v57  ;;  %v1030_v8 = vsel %vm760_vm9, %v7656_v1, 0.0 }
 0x16d   : > { %v5768_v13 = vadd.f32 %v5512_v22, %v4970_v4  ;;  %v1034_v23 = vsel %vm764_vm10, %v7656_v1, 0.0  ;;  %vm1310_vm11 = vcmp.eq.s32.totalorder %v8682_v36, %v7641_v59  ;;  %vm1314_vm12 = vcmp.eq.s32.totalorder %v466_v31, %v7641_v59 }
 0x16e   : > { %v5772_v33 = vadd.f32 %v5516_v38, %v4974_v54  ;;  %v1580_v37 = vsel %vm1310_vm11, %v7662_v2, 0.0  ;;  %v1584_v29 = vsel %vm1314_vm12, %v7662_v2, 0.0  ;;  %vm2120_vm13 = vcmp.eq.s32.totalorder %v8682_v36, %v7664_v3 }
 0x16f   : > { %v6562_v42 = vadd.f32 %v6306_v48, %v5768_v13  ;;  %v1836_v44 = vadd.f32 %v1580_v37, %v1030_v8  ;;  %v1840_v46 = vadd.f32 %v1584_v29, %v1034_v23  ;;  %vm2124_vm14 = vcmp.eq.s32.totalorder %v466_v31, %v7664_v3  ;;  %v526_v8 = vld [vmem:[#allocation2 + $0x640] sm:$0xff] }
 0x170   : > { %v6566_v21 = vadd.f32 %v6310_v6, %v5772_v33  ;;  %v2390_v26 = vsel %vm2120_vm13, %v7678_v18, 0.0  ;;  %v2394_v25 = vsel %vm2124_vm14, %v7678_v18, 0.0  ;;  %vm2914_vm15 = vcmp.eq.s32.totalorder %v8682_v36, %v7669_v9  ;;  %v530_v13 = vld [vmem:[#allocation2 + $0x660] sm:$0xff] }
 0x171   : > { %v2646_v52 = vadd.f32 %v2390_v26, %v1836_v44  ;;  %v2650_v12 = vadd.f32 %v2394_v25, %v1840_v46  ;;  %vm2918_vm0 = vcmp.eq.s32.totalorder %v466_v31, %v7669_v9  ;;  %v3184_v24 = vsel %vm2914_vm15, %v7684_v19, 0.0 }
 0x172   : > { %v6801_v50 = vpack.c.bf16 %v6566_v21, %v6562_v42  ;;  %v3188_v58 = vsel %vm2918_vm0, %v7684_v19, 0.0  ;;  %vm3714_vm1 = vcmp.eq.s32.totalorder %v8682_v36, %v7698_v40  ;;  %vm3718_vm2 = vcmp.eq.s32.totalorder %v466_v31, %v7698_v40 }
 0x173   : > { %v3440_v51 = vadd.f32 %v3184_v24, %v2646_v52  ;;  %v3444_v0 = vadd.f32 %v3188_v58, %v2650_v12  ;;  %v3984_v22 = vsel %vm3714_vm1, %v7700_v43, 0.0  ;;  %v3988_v38 = vsel %vm3718_vm2, %v7700_v43, 0.0 }
 0x174   : > { %6912 = vmatpush.bf16.msra.mxu1 %v6801_v50  ;;  %vm4508_vm3 = vcmp.eq.s32.totalorder %v8682_v36, %v7713_v60  ;;  %vm4512_vm4 = vcmp.eq.s32.totalorder %v466_v31, %v7713_v60  ;;  %vm5306_vm5 = vcmp.eq.s32.totalorder %v8682_v36, %v7743_v17  ;;  %vm5310_vm6 = vcmp.eq.s32.totalorder %v466_v31, %v7743_v17 }
 0x175   : > { %v4240_v4 = vadd.f32 %v3984_v22, %v3440_v51  ;;  %v4244_v48 = vadd.f32 %v3988_v38, %v3444_v0  ;;  %v4778_v54 = vsel %vm4508_vm3, %v7715_v62, 0.0  ;;  %v4782_v6 = vsel %vm4512_vm4, %v7715_v62, 0.0 }
 0x176   : > { %v5576_v23 = vsel %vm5306_vm5, %v7745_v20, 0.0  ;;  %v5580_v33 = vsel %vm5310_vm6, %v7745_v20, 0.0  ;;  %vm6100_vm7 = vcmp.eq.s32.totalorder %v8682_v36, %v7765_v32  ;;  %vm6104_vm8 = vcmp.eq.s32.totalorder %v466_v31, %v7765_v32 }
 0x177   : > { %v5034_v37 = vadd.f32 %v4778_v54, %v4240_v4  ;;  %v5038_v29 = vadd.f32 %v4782_v6, %v4244_v48  ;;  %v6370_v42 = vsel %vm6100_vm7, %v7767_v34, 0.0  ;;  %v6374_v44 = vsel %vm6104_vm8, %v7767_v34, 0.0 }
 0x178   : > { %vm824_vm9 = vcmp.eq.s32.totalorder %v526_v8, %v7638_v57  ;;  %vm828_vm10 = vcmp.eq.s32.totalorder %v530_v13, %v7638_v57  ;;  %vm1374_vm11 = vcmp.eq.s32.totalorder %v526_v8, %v7641_v59  ;;  %vm1378_vm12 = vcmp.eq.s32.totalorder %v530_v13, %v7641_v59 }
 0x179   : > { %v5832_v46 = vadd.f32 %v5576_v23, %v5034_v37  ;;  %v5836_v21 = vadd.f32 %v5580_v33, %v5038_v29  ;;  %v1094_v36 = vsel %vm824_vm9, %v7656_v1, 0.0  ;;  %v1098_v31 = vsel %vm828_vm10, %v7656_v1, 0.0  ;;  %v8754_v37 = vld [vmem:[#allocation2] sm:$0xff] }
 0x17a   : > { %v1644_v26 = vsel %vm1374_vm11, %v7662_v2, 0.0  ;;  %v1648_v25 = vsel %vm1378_vm12, %v7662_v2, 0.0  ;;  %vm2184_vm13 = vcmp.eq.s32.totalorder %v526_v8, %v7664_v3  ;;  %vm2188_vm14 = vcmp.eq.s32.totalorder %v530_v13, %v7664_v3 }
 0x17b   : > { %v6626_v52 = vadd.f32 %v6370_v42, %v5832_v46  ;;  %v6630_v12 = vadd.f32 %v6374_v44, %v5836_v21  ;;  %v1900_v24 = vadd.f32 %v1644_v26, %v1094_v36  ;;  %v1904_v50 = vadd.f32 %v1648_v25, %v1098_v31  ;;  %v330_v36 = vld [vmem:[#allocation2 + $0x20] sm:$0xff] }
 0x17c   : > { %v2454_v58 = vsel %vm2184_vm13, %v7678_v18, 0.0  ;;  %v2458_v51 = vsel %vm2188_vm14, %v7678_v18, 0.0  ;;  %vm2978_vm15 = vcmp.eq.s32.totalorder %v526_v8, %v7669_v9  ;;  %vm2982_vm0 = vcmp.eq.s32.totalorder %v530_v13, %v7669_v9 }
 0x17d   : > { %v6833_v0 = vpack.c.bf16 %v6630_v12, %v6626_v52  ;;  %v2710_v22 = vadd.f32 %v2454_v58, %v1900_v24  ;;  %v2714_v38 = vadd.f32 %v2458_v51, %v1904_v50  ;;  %v3248_v4 = vsel %vm2978_vm15, %v7684_v19, 0.0 }
 0x17e   : > { %v3252_v48 = vsel %vm2982_vm0, %v7684_v19, 0.0  ;;  %vm3778_vm1 = vcmp.eq.s32.totalorder %v526_v8, %v7698_v40  ;;  %vm3782_vm2 = vcmp.eq.s32.totalorder %v530_v13, %v7698_v40  ;;  %vm4572_vm3 = vcmp.eq.s32.totalorder %v526_v8, %v7713_v60 }
 0x17f   : > { %6925 = vmatpush.bf16.msra.mxu2 %v6833_v0  ;;  %v3504_v54 = vadd.f32 %v3248_v4, %v2710_v22  ;;  %v3508_v6 = vadd.f32 %v3252_v48, %v2714_v38  ;;  %v4048_v23 = vsel %vm3778_vm1, %v7700_v43, 0.0  ;;  %v4052_v33 = vsel %vm3782_vm2, %v7700_v43, 0.0 }
 0x180   : > { %vm4576_vm4 = vcmp.eq.s32.totalorder %v530_v13, %v7713_v60  ;;  %v4842_v29 = vsel %vm4572_vm3, %v7715_v62, 0.0  ;;  %vm5370_vm5 = vcmp.eq.s32.totalorder %v526_v8, %v7743_v17  ;;  %vm5374_vm6 = vcmp.eq.s32.totalorder %v530_v13, %v7743_v17 }
 0x181   : > { %v4304_v42 = vadd.f32 %v4048_v23, %v3504_v54  ;;  %v4308_v44 = vadd.f32 %v4052_v33, %v3508_v6  ;;  %v4846_v46 = vsel %vm4576_vm4, %v7715_v62, 0.0  ;;  %v5640_v21 = vsel %vm5370_vm5, %v7745_v20, 0.0 }
 0x182   : > { %v5644_v31 = vsel %vm5374_vm6, %v7745_v20, 0.0  ;;  %vm6164_vm7 = vcmp.eq.s32.totalorder %v526_v8, %v7765_v32  ;;  %vm6168_vm8 = vcmp.eq.s32.totalorder %v530_v13, %v7765_v32  ;;  %vm624_vm9 = vcmp.eq.s32.totalorder %v8754_v37, %v7638_v57 }
 0x183   : > { %v5098_v26 = vadd.f32 %v4842_v29, %v4304_v42  ;;  %v5102_v25 = vadd.f32 %v4846_v46, %v4308_v44  ;;  %v6434_v52 = vsel %vm6164_vm7, %v7767_v34, 0.0  ;;  %v6438_v12 = vsel %vm6168_vm8, %v7767_v34, 0.0 }
 0x184   : > { %vm628_vm10 = vcmp.eq.s32.totalorder %v330_v36, %v7638_v57  ;;  %v894_v24 = vsel %vm624_vm9, %v7656_v1, 0.0  ;;  %vm1174_vm11 = vcmp.eq.s32.totalorder %v8754_v37, %v7641_v59  ;;  %vm1178_vm12 = vcmp.eq.s32.totalorder %v330_v36, %v7641_v59 }
 0x185   : > { %v5896_v8 = vadd.f32 %v5640_v21, %v5098_v26  ;;  %v5900_v13 = vadd.f32 %v5644_v31, %v5102_v25  ;;  %v898_v50 = vsel %vm628_vm10, %v7656_v1, 0.0  ;;  %v1444_v58 = vsel %vm1174_vm11, %v7662_v2, 0.0 }
 0x186   : > { %v1448_v51 = vsel %vm1178_vm12, %v7662_v2, 0.0  ;;  %v1700_v0 = vadd.f32 %v1444_v58, %v894_v24  ;;  %vm1984_vm13 = vcmp.eq.s32.totalorder %v8754_v37, %v7664_v3  ;;  %vm1988_vm14 = vcmp.eq.s32.totalorder %v330_v36, %v7664_v3  ;;  %v394_v24 = vld [vmem:[#allocation2 + $0x220] sm:$0xff] }
 0x187   : > { %v6690_v22 = vadd.f32 %v6434_v52, %v5896_v8  ;;  %v6694_v38 = vadd.f32 %v6438_v12, %v5900_v13  ;;  %v1704_v4 = vadd.f32 %v1448_v51, %v898_v50  ;;  %v2254_v48 = vsel %vm1984_vm13, %v7678_v18, 0.0  ;;  %v390_v12 = vld [vmem:[#allocation2 + $0x200] sm:$0xff] }
 0x188   : > { %v2258_v54 = vsel %vm1988_vm14, %v7678_v18, 0.0  ;;  %v2510_v6 = vadd.f32 %v2254_v48, %v1700_v0  ;;  %vm2778_vm15 = vcmp.eq.s32.totalorder %v8754_v37, %v7669_v9  ;;  %vm2782_vm0 = vcmp.eq.s32.totalorder %v330_v36, %v7669_v9 }
 0x189   : > { %v6865_v23 = vpack.c.bf16 %v6694_v38, %v6690_v22  ;;  %v2514_v33 = vadd.f32 %v2258_v54, %v1704_v4  ;;  %v3048_v29 = vsel %vm2778_vm15, %v7684_v19, 0.0  ;;  %v3052_v42 = vsel %vm2782_vm0, %v7684_v19, 0.0 }
 0x18a   : > { %v3304_v44 = vadd.f32 %v3048_v29, %v2510_v6  ;;  %vm3578_vm1 = vcmp.eq.s32.totalorder %v8754_v37, %v7698_v40  ;;  %vm3582_vm2 = vcmp.eq.s32.totalorder %v330_v36, %v7698_v40  ;;  %vm4372_vm3 = vcmp.eq.s32.totalorder %v8754_v37, %v7713_v60 }
 0x18b   : > { %6938 = vmatpush.bf16.msra.mxu3 %v6865_v23  ;;  %v3308_v46 = vadd.f32 %v3052_v42, %v2514_v33  ;;  %v3848_v21 = vsel %vm3578_vm1, %v7700_v43, 0.0  ;;  %v3852_v31 = vsel %vm3582_vm2, %v7700_v43, 0.0  ;;  %vm4376_vm4 = vcmp.eq.s32.totalorder %v330_v36, %v7713_v60 }
 0x18c   : > { %v4104_v26 = vadd.f32 %v3848_v21, %v3304_v44  ;;  %v4642_v25 = vsel %vm4372_vm3, %v7715_v62, 0.0  ;;  %v4646_v52 = vsel %vm4376_vm4, %v7715_v62, 0.0  ;;  %vm5170_vm5 = vcmp.eq.s32.totalorder %v8754_v37, %v7743_v17 }
 0x18d   : > { %v4108_v8 = vadd.f32 %v3852_v31, %v3308_v46  ;;  %vm5174_vm6 = vcmp.eq.s32.totalorder %v330_v36, %v7743_v17  ;;  %v5440_v13 = vsel %vm5170_vm5, %v7745_v20, 0.0  ;;  %vm5964_vm7 = vcmp.eq.s32.totalorder %v8754_v37, %v7765_v32 }
 0x18e   : > { %v4898_v50 = vadd.f32 %v4642_v25, %v4104_v26  ;;  %v5444_v58 = vsel %vm5174_vm6, %v7745_v20, 0.0  ;;  %vm5968_vm8 = vcmp.eq.s32.totalorder %v330_v36, %v7765_v32  ;;  %v6234_v51 = vsel %vm5964_vm7, %v7767_v34, 0.0 }
 0x18f   : > { %v4902_v0 = vadd.f32 %v4646_v52, %v4108_v8  ;;  %v6238_v22 = vsel %vm5968_vm8, %v7767_v34, 0.0  ;;  %vm688_vm9 = vcmp.eq.s32.totalorder %v390_v12, %v7638_v57  ;;  %vm692_vm10 = vcmp.eq.s32.totalorder %v394_v24, %v7638_v57 }
 0x190   : > { %v5696_v38 = vadd.f32 %v5440_v13, %v4898_v50  ;;  %v958_v4 = vsel %vm688_vm9, %v7656_v1, 0.0  ;;  %v962_v48 = vsel %vm692_vm10, %v7656_v1, 0.0  ;;  %vm1238_vm11 = vcmp.eq.s32.totalorder %v390_v12, %v7641_v59 }
 0x191   : > { %v5700_v37 = vadd.f32 %v5444_v58, %v4902_v0  ;;  %vm1242_vm12 = vcmp.eq.s32.totalorder %v394_v24, %v7641_v59  ;;  %v1508_v36 = vsel %vm1238_vm11, %v7662_v2, 0.0  ;;  %vm2048_vm13 = vcmp.eq.s32.totalorder %v390_v12, %v7664_v3 }
 0x192   : > { %v6490_v54 = vadd.f32 %v6234_v51, %v5696_v38  ;;  %v1512_v6 = vsel %vm1242_vm12, %v7662_v2, 0.0  ;;  %v1764_v23 = vadd.f32 %v1508_v36, %v958_v4  ;;  %vm2052_vm14 = vcmp.eq.s32.totalorder %v394_v24, %v7664_v3  ;;  %v8830_v51 = vld [vmem:[#allocation2 + $0x400] sm:$0xff] }
 0x193   : > { %v6494_v33 = vadd.f32 %v6238_v22, %v5700_v37  ;;  %v1768_v29 = vadd.f32 %v1512_v6, %v962_v48  ;;  %v2318_v42 = vsel %vm2048_vm13, %v7678_v18, 0.0  ;;  %v2322_v44 = vsel %vm2052_vm14, %v7678_v18, 0.0  ;;  %v458_v38 = vld [vmem:[#allocation2 + $0x420] sm:$0xff] }
 0x194   : > { %v2574_v46 = vadd.f32 %v2318_v42, %v1764_v23  ;;  %vm2842_vm15 = vcmp.eq.s32.totalorder %v390_v12, %v7669_v9  ;;  %vm2846_vm0 = vcmp.eq.s32.totalorder %v394_v24, %v7669_v9  ;;  %vm3642_vm1 = vcmp.eq.s32.totalorder %v390_v12, %v7698_v40 }
 0x195   : > { %v6765_v21 = vpack.c.bf16 %v6494_v33, %v6490_v54  ;;  %v2578_v31 = vadd.f32 %v2322_v44, %v1768_v29  ;;  %v3112_v26 = vsel %vm2842_vm15, %v7684_v19, 0.0  ;;  %v3116_v25 = vsel %vm2846_vm0, %v7684_v19, 0.0 }
 0x196   : > { %v3368_v52 = vadd.f32 %v3112_v26, %v2574_v46  ;;  %vm3646_vm2 = vcmp.eq.s32.totalorder %v394_v24, %v7698_v40  ;;  %v3912_v8 = vsel %vm3642_vm1, %v7700_v43, 0.0  ;;  %vm4436_vm3 = vcmp.eq.s32.totalorder %v390_v12, %v7713_v60 }
 0x197   : > { %6900 = vmatpush.bf16.msra.mxu0 %v6765_v21  ;;  %v3372_v13 = vadd.f32 %v3116_v25, %v2578_v31  ;;  %v3916_v50 = vsel %vm3646_vm2, %v7700_v43, 0.0  ;;  %vm4440_vm4 = vcmp.eq.s32.totalorder %v394_v24, %v7713_v60  ;;  %v4706_v58 = vsel %vm4436_vm3, %v7715_v62, 0.0 }
 0x198   : > { %v4168_v0 = vadd.f32 %v3912_v8, %v3368_v52  ;;  %v4710_v22 = vsel %vm4440_vm4, %v7715_v62, 0.0  ;;  %vm5234_vm5 = vcmp.eq.s32.totalorder %v390_v12, %v7743_v17  ;;  %vm5238_vm6 = vcmp.eq.s32.totalorder %v394_v24, %v7743_v17 }
 0x199   : > { %v4172_v4 = vadd.f32 %v3916_v50, %v3372_v13  ;;  %v5504_v48 = vsel %vm5234_vm5, %v7745_v20, 0.0  ;;  %v5508_v37 = vsel %vm5238_vm6, %v7745_v20, 0.0  ;;  %vm6028_vm7 = vcmp.eq.s32.totalorder %v390_v12, %v7765_v32 }
 0x19a   : > { %v4962_v36 = vadd.f32 %v4706_v58, %v4168_v0  ;;  %vm6032_vm8 = vcmp.eq.s32.totalorder %v394_v24, %v7765_v32  ;;  %v6298_v54 = vsel %vm6028_vm7, %v7767_v34, 0.0  ;;  %vm752_vm9 = vcmp.eq.s32.totalorder %v8830_v51, %v7638_v57 }
 0x19b   : > { %v4966_v6 = vadd.f32 %v4710_v22, %v4172_v4  ;;  %v6302_v23 = vsel %vm6032_vm8, %v7767_v34, 0.0  ;;  %vm756_vm10 = vcmp.eq.s32.totalorder %v458_v38, %v7638_v57  ;;  %v1022_v33 = vsel %vm752_vm9, %v7656_v1, 0.0 }
 0x19c   : > { %v5760_v29 = vadd.f32 %v5504_v48, %v4962_v36  ;;  %v1026_v42 = vsel %vm756_vm10, %v7656_v1, 0.0  ;;  %vm1302_vm11 = vcmp.eq.s32.totalorder %v8830_v51, %v7641_v59  ;;  %vm1306_vm12 = vcmp.eq.s32.totalorder %v458_v38, %v7641_v59 }
 0x19d   : > { %v5764_v12 = vadd.f32 %v5508_v37, %v4966_v6  ;;  %v1572_v24 = vsel %vm1302_vm11, %v7662_v2, 0.0  ;;  %v1576_v44 = vsel %vm1306_vm12, %v7662_v2, 0.0  ;;  %vm2112_vm13 = vcmp.eq.s32.totalorder %v8830_v51, %v7664_v3 }
 0x19e   : > { %v6554_v46 = vadd.f32 %v6298_v54, %v5760_v29  ;;  %v1828_v21 = vadd.f32 %v1572_v24, %v1022_v33  ;;  %v1832_v31 = vadd.f32 %v1576_v44, %v1026_v42  ;;  %vm2116_vm14 = vcmp.eq.s32.totalorder %v458_v38, %v7664_v3  ;;  %v518_v33 = vld [vmem:[#allocation2 + $0x600] sm:$0xff] }
 0x19f   : > { %v6558_v26 = vadd.f32 %v6302_v23, %v5764_v12  ;;  %v2382_v25 = vsel %vm2112_vm13, %v7678_v18, 0.0  ;;  %v2386_v52 = vsel %vm2116_vm14, %v7678_v18, 0.0  ;;  %vm2906_vm15 = vcmp.eq.s32.totalorder %v8830_v51, %v7669_v9  ;;  %v522_v29 = vld [vmem:[#allocation2 + $0x620] sm:$0xff] }
 0x1a0   : > { %v2638_v8 = vadd.f32 %v2382_v25, %v1828_v21  ;;  %v2642_v13 = vadd.f32 %v2386_v52, %v1832_v31  ;;  %vm2910_vm0 = vcmp.eq.s32.totalorder %v458_v38, %v7669_v9  ;;  %v3176_v50 = vsel %vm2906_vm15, %v7684_v19, 0.0 }
 0x1a1   : > { %v6797_v58 = vpack.c.bf16 %v6558_v26, %v6554_v46  ;;  %v3180_v0 = vsel %vm2910_vm0, %v7684_v19, 0.0  ;;  %vm3706_vm1 = vcmp.eq.s32.totalorder %v8830_v51, %v7698_v40  ;;  %vm3710_vm2 = vcmp.eq.s32.totalorder %v458_v38, %v7698_v40 }
 0x1a2   : > { %v3432_v22 = vadd.f32 %v3176_v50, %v2638_v8  ;;  %v3436_v4 = vadd.f32 %v3180_v0, %v2642_v13  ;;  %v3976_v48 = vsel %vm3706_vm1, %v7700_v43, 0.0  ;;  %v3980_v37 = vsel %vm3710_vm2, %v7700_v43, 0.0 }
 0x1a3   : > { %6913 = vmatpush.bf16.msra.mxu1 %v6797_v58  ;;  %vm4500_vm3 = vcmp.eq.s32.totalorder %v8830_v51, %v7713_v60  ;;  %vm4504_vm4 = vcmp.eq.s32.totalorder %v458_v38, %v7713_v60  ;;  %vm5298_vm5 = vcmp.eq.s32.totalorder %v8830_v51, %v7743_v17  ;;  %vm5302_vm6 = vcmp.eq.s32.totalorder %v458_v38, %v7743_v17 }
 0x1a4   : > { %v4232_v36 = vadd.f32 %v3976_v48, %v3432_v22  ;;  %v4236_v54 = vadd.f32 %v3980_v37, %v3436_v4  ;;  %v4770_v6 = vsel %vm4500_vm3, %v7715_v62, 0.0  ;;  %v4774_v23 = vsel %vm4504_vm4, %v7715_v62, 0.0 }
 0x1a5   : > { %v5568_v42 = vsel %vm5298_vm5, %v7745_v20, 0.0  ;;  %v5572_v12 = vsel %vm5302_vm6, %v7745_v20, 0.0  ;;  %vm6092_vm7 = vcmp.eq.s32.totalorder %v8830_v51, %v7765_v32  ;;  %vm6096_vm8 = vcmp.eq.s32.totalorder %v458_v38, %v7765_v32 }
 0x1a6   : > { %v5026_v24 = vadd.f32 %v4770_v6, %v4232_v36  ;;  %v5030_v44 = vadd.f32 %v4774_v23, %v4236_v54  ;;  %v6362_v46 = vsel %vm6092_vm7, %v7767_v34, 0.0  ;;  %v6366_v21 = vsel %vm6096_vm8, %v7767_v34, 0.0 }
 0x1a7   : > { %vm816_vm9 = vcmp.eq.s32.totalorder %v518_v33, %v7638_v57  ;;  %vm820_vm10 = vcmp.eq.s32.totalorder %v522_v29, %v7638_v57  ;;  %vm1366_vm11 = vcmp.eq.s32.totalorder %v518_v33, %v7641_v59  ;;  %vm1370_vm12 = vcmp.eq.s32.totalorder %v522_v29, %v7641_v59 }
 0x1a8   : > { %v5824_v31 = vadd.f32 %v5568_v42, %v5026_v24  ;;  %v5828_v26 = vadd.f32 %v5572_v12, %v5030_v44  ;;  %v1086_v51 = vsel %vm816_vm9, %v7656_v1, 0.0  ;;  %v1090_v38 = vsel %vm820_vm10, %v7656_v1, 0.0  ;;  %v8914_v12 = vld [vmem:[#allocation2 + $0x1c8] sm:$0xff] }
 0x1a9   : > { %v1636_v25 = vsel %vm1366_vm11, %v7662_v2, 0.0  ;;  %v1640_v52 = vsel %vm1370_vm12, %v7662_v2, 0.0  ;;  %vm2176_vm13 = vcmp.eq.s32.totalorder %v518_v33, %v7664_v3  ;;  %vm2180_vm14 = vcmp.eq.s32.totalorder %v522_v29, %v7664_v3  ;;  %v8916_v24 = vld [vmem:[#allocation2 + $0x1e8] sm:$0xff] }
 0x1aa   : > { %v6618_v8 = vadd.f32 %v6362_v46, %v5824_v31  ;;  %v6622_v57 = vadd.f32 %v6366_v21, %v5828_v26  ;;  %v1892_v13 = vadd.f32 %v1636_v25, %v1086_v51  ;;  %v1896_v50 = vadd.f32 %v1640_v52, %v1090_v38 }
 0x1ab   : > { %v2446_v59 = vsel %vm2176_vm13, %v7678_v18, 0.0  ;;  %v2450_v58 = vsel %vm2180_vm14, %v7678_v18, 0.0  ;;  %vm2970_vm15 = vcmp.eq.s32.totalorder %v518_v33, %v7669_v9  ;;  %vm2974_vm0 = vcmp.eq.s32.totalorder %v522_v29, %v7669_v9 }
 0x1ac   : > { %v6829_v1 = vpack.c.bf16 %v6622_v57, %v6618_v8  ;;  %v2702_v0 = vadd.f32 %v2446_v59, %v1892_v13  ;;  %v2706_v22 = vadd.f32 %v2450_v58, %v1896_v50  ;;  %v3240_v2 = vsel %vm2970_vm15, %v7684_v19, 0.0 }
 0x1ad   : > { %v3244_v4 = vsel %vm2974_vm0, %v7684_v19, 0.0  ;;  %vm3770_vm1 = vcmp.eq.s32.totalorder %v518_v33, %v7698_v40  ;;  %vm3774_vm2 = vcmp.eq.s32.totalorder %v522_v29, %v7698_v40  ;;  %vm4564_vm3 = vcmp.eq.s32.totalorder %v518_v33, %v7713_v60 }
 0x1ae   : > { %6926 = vmatpush.bf16.msra.mxu2 %v6829_v1  ;;  %v3496_v3 = vadd.f32 %v3240_v2, %v2702_v0  ;;  %v3500_v18 = vadd.f32 %v3244_v4, %v2706_v22  ;;  %v4040_v48 = vsel %vm3770_vm1, %v7700_v43, 0.0  ;;  %v4044_v9 = vsel %vm3774_vm2, %v7700_v43, 0.0 }
 0x1af   : > { %vm4568_vm4 = vcmp.eq.s32.totalorder %v522_v29, %v7713_v60  ;;  %v4834_v37 = vsel %vm4564_vm3, %v7715_v62, 0.0  ;;  %vm5362_vm5 = vcmp.eq.s32.totalorder %v518_v33, %v7743_v17  ;;  %vm5366_vm6 = vcmp.eq.s32.totalorder %v522_v29, %v7743_v17 }
 0x1b0   : > { %v4296_v19 = vadd.f32 %v4040_v48, %v3496_v3  ;;  %v4300_v36 = vadd.f32 %v4044_v9, %v3500_v18  ;;  %v4838_v40 = vsel %vm4568_vm4, %v7715_v62, 0.0  ;;  %v5632_v54 = vsel %vm5362_vm5, %v7745_v20, 0.0 }
 0x1b1   : > { %v5636_v6 = vsel %vm5366_vm6, %v7745_v20, 0.0  ;;  %vm6156_vm7 = vcmp.eq.s32.totalorder %v518_v33, %v7765_v32  ;;  %vm6160_vm8 = vcmp.eq.s32.totalorder %v522_v29, %v7765_v32  ;;  %v617_v43 = vperm.slane %v7604_v39, 4 }
 0x1b2   : > { %v5090_v60 = vadd.f32 %v4834_v37, %v4296_v19  ;;  %v5094_v23 = vadd.f32 %v4838_v40, %v4300_v36  ;;  %v6426_v42 = vsel %vm6156_vm7, %v7767_v34, 0.0  ;;  %v6430_v17 = vsel %vm6160_vm8, %v7767_v34, 0.0 }
 0x1b3   : > { %v8918_v62 = vperm.slane %v617_v43, 0  ;;  %v883_v20 = vperm.slane %v7618_v47, 4  ;;  %v1167_v33 = vperm.slane %v7607_v41, 4  ;;  %v1433_v32 = vperm.slane %v7622_v49, 4 }
 0x1b4   : > { %v5888_v29 = vadd.f32 %v5632_v54, %v5090_v60  ;;  %v5892_v39 = vadd.f32 %v5636_v6, %v5094_v23  ;;  %v1977_v44 = vperm.slane %v7630_v53, 4  ;;  %v2243_v46 = vperm.slane %v7645_v61, 4  ;;  %v8995_v23 = vld [vmem:[#allocation2 + $0x3c8] sm:$0xff] }
 0x1b5   : > { %vm681_vm9 = vcmp.eq.s32.totalorder %v8914_v12, %v8918_v62  ;;  %vm685_vm10 = vcmp.eq.s32.totalorder %v8916_v24, %v8918_v62  ;;  %v8929_v34 = vperm.slane %v883_v20, 0  ;;  %v8931_v21 = vperm.slane %v1167_v33, 0 }
 0x1b6   : > { %v6682_v47 = vadd.f32 %v6426_v42, %v5888_v29  ;;  %v6686_v41 = vadd.f32 %v6430_v17, %v5892_v39  ;;  %v8933_v31 = vperm.slane %v1433_v32, 0  ;;  %v8935_v49 = vperm.slane %v1977_v44, 0  ;;  %v8997_v42 = vld [vmem:[#allocation2 + $0x3e8] sm:$0xff] }
 0x1b7   : > { %v951_v53 = vsel %vm681_vm9, %v8929_v34, 0.0  ;;  %v955_v61 = vsel %vm685_vm10, %v8929_v34, 0.0  ;;  %vm1231_vm11 = vcmp.eq.s32.totalorder %v8914_v12, %v8931_v21  ;;  %vm1235_vm12 = vcmp.eq.s32.totalorder %v8916_v24, %v8931_v21 }
 0x1b8   : > { %v6861_v26 = vpack.c.bf16 %v6686_v41, %v6682_v47  ;;  %v1501_v51 = vsel %vm1231_vm11, %v8933_v31, 0.0  ;;  %v1505_v38 = vsel %vm1235_vm12, %v8933_v31, 0.0  ;;  %vm2041_vm13 = vcmp.eq.s32.totalorder %v8914_v12, %v8935_v49 }
 0x1b9   : > { %v1757_v25 = vadd.f32 %v1501_v51, %v951_v53  ;;  %v1761_v52 = vadd.f32 %v1505_v38, %v955_v61  ;;  %vm2045_vm14 = vcmp.eq.s32.totalorder %v8916_v24, %v8935_v49  ;;  %v8949_v8 = vperm.slane %v2243_v46, 0 }
 0x1ba   : > { %6939 = vmatpush.bf16.msra.mxu3 %v6861_v26  ;;  %v2771_v57 = vperm.slane %v7633_v55, 4  ;;  %v3037_v13 = vperm.slane %v7649_v63, 4  ;;  %v3571_v50 = vperm.slane %v7614_v45, 4  ;;  %v3837_v59 = vperm.slane %v7636_v56, 4 }
 0x1bb   : > { %v2311_v58 = vsel %vm2041_vm13, %v8949_v8, 0.0  ;;  %v2315_v1 = vsel %vm2045_vm14, %v8949_v8, 0.0  ;;  %v4365_v0 = vperm.slane %v7691_v27, 4  ;;  %v4631_v22 = vperm.slane %v7694_v28, 4 }
 0x1bc   : > { %v2567_v2 = vadd.f32 %v2311_v58, %v1757_v25  ;;  %v2571_v4 = vadd.f32 %v2315_v1, %v1761_v52  ;;  %v8959_v3 = vperm.slane %v2771_v57, 0  ;;  %v8961_v18 = vperm.slane %v3037_v13, 0 }
 0x1bd   : > { %v8963_v55 = vperm.slane %v3571_v50, 0  ;;  %v8965_v63 = vperm.slane %v3837_v59, 0  ;;  %v8967_v45 = vperm.slane %v4365_v0, 0  ;;  %v8969_v56 = vperm.slane %v4631_v22, 0 }
 0x1be   : > { %vm2835_vm15 = vcmp.eq.s32.totalorder %v8914_v12, %v8959_v3  ;;  %vm2839_vm0 = vcmp.eq.s32.totalorder %v8916_v24, %v8959_v3  ;;  %v5163_v27 = vperm.slane %v7720_v30, 4  ;;  %v5429_v28 = vperm.slane %v7723_v11, 4 }
 0x1bf   : > { %v3105_v48 = vsel %vm2835_vm15, %v8961_v18, 0.0  ;;  %v3109_v9 = vsel %vm2839_vm0, %v8961_v18, 0.0  ;;  %vm3635_vm1 = vcmp.eq.s32.totalorder %v8914_v12, %v8963_v55  ;;  %vm3639_vm2 = vcmp.eq.s32.totalorder %v8916_v24, %v8963_v55 }
 0x1c0   : > { %v3361_v37 = vadd.f32 %v3105_v48, %v2567_v2  ;;  %v3365_v19 = vadd.f32 %v3109_v9, %v2571_v4  ;;  %v3905_v36 = vsel %vm3635_vm1, %v8965_v63, 0.0  ;;  %v3909_v40 = vsel %vm3639_vm2, %v8965_v63, 0.0  ;;  %v9054_v48 = vld [vmem:[#allocation2 + $0x5e8] sm:$0xff] }
 0x1c1   : > { %vm4429_vm3 = vcmp.eq.s32.totalorder %v8914_v12, %v8967_v45  ;;  %vm4433_vm4 = vcmp.eq.s32.totalorder %v8916_v24, %v8967_v45  ;;  %v8989_v30 = vperm.slane %v5163_v27, 0  ;;  %v8991_v11 = vperm.slane %v5429_v28, 0  ;;  %v9052_v28 = vld [vmem:[#allocation2 + $0x5c8] sm:$0xff] }
 0x1c2   : > { %v4161_v54 = vadd.f32 %v3905_v36, %v3361_v37  ;;  %v4165_v6 = vadd.f32 %v3909_v40, %v3365_v19  ;;  %v4699_v43 = vsel %vm4429_vm3, %v8969_v56, 0.0  ;;  %v4703_v60 = vsel %vm4433_vm4, %v8969_v56, 0.0 }
 0x1c3   : > { %vm5227_vm5 = vcmp.eq.s32.totalorder %v8914_v12, %v8989_v30  ;;  %vm5231_vm6 = vcmp.eq.s32.totalorder %v8916_v24, %v8989_v30  ;;  %v5957_v17 = vperm.slane %v7738_v15, 4  ;;  %v6223_v20 = vperm.slane %v7741_v16, 4 }
 0x1c4   : > { %v4955_v33 = vadd.f32 %v4699_v43, %v4161_v54  ;;  %v4959_v32 = vadd.f32 %v4703_v60, %v4165_v6  ;;  %v5497_v29 = vsel %vm5227_vm5, %v8991_v11, 0.0  ;;  %v5501_v39 = vsel %vm5231_vm6, %v8991_v11, 0.0 }
 0x1c5   : > { %v9007_v44 = vperm.slane %v5957_v17, 0  ;;  %v9009_v46 = vperm.slane %v6223_v20, 0  ;;  %vm745_vm7 = vcmp.eq.s32.totalorder %v8995_v23, %v8918_v62  ;;  %vm749_vm8 = vcmp.eq.s32.totalorder %v8997_v42, %v8918_v62 }
 0x1c6   : > { %v5753_v47 = vadd.f32 %v5497_v29, %v4955_v33  ;;  %v5757_v15 = vadd.f32 %v5501_v39, %v4959_v32  ;;  %v1015_v16 = vsel %vm745_vm7, %v8929_v34, 0.0  ;;  %v1019_v41 = vsel %vm749_vm8, %v8929_v34, 0.0 }
 0x1c7   : > { %vm6021_vm9 = vcmp.eq.s32.totalorder %v8914_v12, %v9007_v44  ;;  %vm6025_vm10 = vcmp.eq.s32.totalorder %v8916_v24, %v9007_v44  ;;  %vm1295_vm11 = vcmp.eq.s32.totalorder %v8995_v23, %v8931_v21  ;;  %vm1299_vm12 = vcmp.eq.s32.totalorder %v8997_v42, %v8931_v21 }
 0x1c8   : > { %v6291_v53 = vsel %vm6021_vm9, %v9009_v46, 0.0  ;;  %v6295_v61 = vsel %vm6025_vm10, %v9009_v46, 0.0  ;;  %v1565_v26 = vsel %vm1295_vm11, %v8933_v31, 0.0  ;;  %v1569_v51 = vsel %vm1299_vm12, %v8933_v31, 0.0 }
 0x1c9   : > { %v6547_v38 = vadd.f32 %v6291_v53, %v5753_v47  ;;  %v6551_v25 = vadd.f32 %v6295_v61, %v5757_v15  ;;  %v1821_v12 = vadd.f32 %v1565_v26, %v1015_v16  ;;  %v1825_v52 = vadd.f32 %v1569_v51, %v1019_v41 }
 0x1ca   : > { %vm2105_vm13 = vcmp.eq.s32.totalorder %v8995_v23, %v8935_v49  ;;  %vm2109_vm14 = vcmp.eq.s32.totalorder %v8997_v42, %v8935_v49  ;;  %vm2899_vm15 = vcmp.eq.s32.totalorder %v8995_v23, %v8959_v3  ;;  %vm2903_vm0 = vcmp.eq.s32.totalorder %v8997_v42, %v8959_v3 }
 0x1cb   : > { %v6794_v24 = vpack.c.bf16 %v6551_v25, %v6547_v38  ;;  %v2375_v57 = vsel %vm2105_vm13, %v8949_v8, 0.0  ;;  %v2379_v13 = vsel %vm2109_vm14, %v8949_v8, 0.0  ;;  %v3169_v50 = vsel %vm2899_vm15, %v8961_v18, 0.0 }
 0x1cc   : > { %v2631_v59 = vadd.f32 %v2375_v57, %v1821_v12  ;;  %v2635_v58 = vadd.f32 %v2379_v13, %v1825_v52  ;;  %v3173_v1 = vsel %vm2903_vm0, %v8961_v18, 0.0  ;;  %vm3699_vm1 = vcmp.eq.s32.totalorder %v8995_v23, %v8963_v55 }
 0x1cd   : > { %6945 = vmatpush.bf16.msrb.mxu0 %v6794_v24  ;;  %vm3703_vm2 = vcmp.eq.s32.totalorder %v8997_v42, %v8963_v55  ;;  %v3969_v0 = vsel %vm3699_vm1, %v8965_v63, 0.0  ;;  %vm4493_vm3 = vcmp.eq.s32.totalorder %v8995_v23, %v8967_v45  ;;  %vm4497_vm4 = vcmp.eq.s32.totalorder %v8997_v42, %v8967_v45 }
 0x1ce   : > { %v3425_v22 = vadd.f32 %v3169_v50, %v2631_v59  ;;  %v3429_v2 = vadd.f32 %v3173_v1, %v2635_v58  ;;  %v3973_v4 = vsel %vm3703_vm2, %v8965_v63, 0.0  ;;  %v4763_v27 = vsel %vm4493_vm3, %v8969_v56, 0.0  ;;  %v575_v58 = vld [vmem:[#allocation2 + $0x7c8] sm:$0xff] }
 0x1cf   : > { %v4767_v9 = vsel %vm4497_vm4, %v8969_v56, 0.0  ;;  %vm5291_vm5 = vcmp.eq.s32.totalorder %v8995_v23, %v8989_v30  ;;  %vm5295_vm6 = vcmp.eq.s32.totalorder %v8997_v42, %v8989_v30  ;;  %vm6085_vm7 = vcmp.eq.s32.totalorder %v8995_v23, %v9007_v44  ;;  %v579_v1 = vld [vmem:[#allocation2 + $0x7e8] sm:$0xff] }
 0x1d0   : > { %v4225_v37 = vadd.f32 %v3969_v0, %v3425_v22  ;;  %v4229_v19 = vadd.f32 %v3973_v4, %v3429_v2  ;;  %v5561_v36 = vsel %vm5291_vm5, %v8991_v11, 0.0  ;;  %v5565_v40 = vsel %vm5295_vm6, %v8991_v11, 0.0 }
 0x1d1   : > { %vm6089_vm8 = vcmp.eq.s32.totalorder %v8997_v42, %v9007_v44  ;;  %v6355_v54 = vsel %vm6085_vm7, %v9009_v46, 0.0  ;;  %vm809_vm9 = vcmp.eq.s32.totalorder %v9052_v28, %v8918_v62  ;;  %vm813_vm10 = vcmp.eq.s32.totalorder %v9054_v48, %v8918_v62 }
 0x1d2   : > { %v5019_v6 = vadd.f32 %v4763_v27, %v4225_v37  ;;  %v5023_v43 = vadd.f32 %v4767_v9, %v4229_v19  ;;  %v6359_v60 = vsel %vm6089_vm8, %v9009_v46, 0.0  ;;  %v1079_v23 = vsel %vm809_vm9, %v8929_v34, 0.0 }
 0x1d3   : > { %v1083_v17 = vsel %vm813_vm10, %v8929_v34, 0.0  ;;  %vm1359_vm11 = vcmp.eq.s32.totalorder %v9052_v28, %v8931_v21  ;;  %vm1363_vm12 = vcmp.eq.s32.totalorder %v9054_v48, %v8931_v21  ;;  %vm2169_vm13 = vcmp.eq.s32.totalorder %v9052_v28, %v8935_v49 }
 0x1d4   : > { %v5817_v42 = vadd.f32 %v5561_v36, %v5019_v6  ;;  %v5821_v20 = vadd.f32 %v5565_v40, %v5023_v43  ;;  %v1629_v33 = vsel %vm1359_vm11, %v8933_v31, 0.0  ;;  %v1633_v32 = vsel %vm1363_vm12, %v8933_v31, 0.0 }
 0x1d5   : > { %v1885_v29 = vadd.f32 %v1629_v33, %v1079_v23  ;;  %v1889_v39 = vadd.f32 %v1633_v32, %v1083_v17  ;;  %vm2173_vm14 = vcmp.eq.s32.totalorder %v9054_v48, %v8935_v49  ;;  %v2439_v47 = vsel %vm2169_vm13, %v8949_v8, 0.0 }
 0x1d6   : > { %v6611_v15 = vadd.f32 %v6355_v54, %v5817_v42  ;;  %v6615_v16 = vadd.f32 %v6359_v60, %v5821_v20  ;;  %v2443_v41 = vsel %vm2173_vm14, %v8949_v8, 0.0  ;;  %vm2963_vm15 = vcmp.eq.s32.totalorder %v9052_v28, %v8959_v3 }
 0x1d7   : > { %v2695_v53 = vadd.f32 %v2439_v47, %v1885_v29  ;;  %v2699_v61 = vadd.f32 %v2443_v41, %v1889_v39  ;;  %vm2967_vm0 = vcmp.eq.s32.totalorder %v9054_v48, %v8959_v3  ;;  %v3233_v26 = vsel %vm2963_vm15, %v8961_v18, 0.0  ;;  %v9138_v41 = vld [vmem:[#allocation2 + $0x188] sm:$0xff] }
 0x1d8   : > { %v6826_v51 = vpack.c.bf16 %v6615_v16, %v6611_v15  ;;  %v3237_v38 = vsel %vm2967_vm0, %v8961_v18, 0.0  ;;  %vm3763_vm1 = vcmp.eq.s32.totalorder %v9052_v28, %v8963_v55  ;;  %vm3767_vm2 = vcmp.eq.s32.totalorder %v9054_v48, %v8963_v55 }
 0x1d9   : > { %v3489_v25 = vadd.f32 %v3233_v26, %v2695_v53  ;;  %v3493_v12 = vadd.f32 %v3237_v38, %v2699_v61  ;;  %v4033_v52 = vsel %vm3763_vm1, %v8965_v63, 0.0  ;;  %v4037_v24 = vsel %vm3767_vm2, %v8965_v63, 0.0 }
 0x1da   : > { %6958 = vmatpush.bf16.msrb.mxu1 %v6826_v51  ;;  %vm4557_vm3 = vcmp.eq.s32.totalorder %v9052_v28, %v8967_v45  ;;  %vm4561_vm4 = vcmp.eq.s32.totalorder %v9054_v48, %v8967_v45  ;;  %vm5355_vm5 = vcmp.eq.s32.totalorder %v9052_v28, %v8989_v30  ;;  %vm5359_vm6 = vcmp.eq.s32.totalorder %v9054_v48, %v8989_v30 }
 0x1db   : > { %v4289_v57 = vadd.f32 %v4033_v52, %v3489_v25  ;;  %v4293_v13 = vadd.f32 %v4037_v24, %v3493_v12  ;;  %v4827_v50 = vsel %vm4557_vm3, %v8969_v56, 0.0  ;;  %v4831_v59 = vsel %vm4561_vm4, %v8969_v56, 0.0  ;;  %v379_v25 = vld [vmem:[#allocation2 + $0x1a8] sm:$0xff] }
 0x1dc   : > { %v5625_v0 = vsel %vm5355_vm5, %v8991_v11, 0.0  ;;  %v5629_v22 = vsel %vm5359_vm6, %v8991_v11, 0.0  ;;  %vm6149_vm7 = vcmp.eq.s32.totalorder %v9052_v28, %v9007_v44  ;;  %vm6153_vm8 = vcmp.eq.s32.totalorder %v9054_v48, %v9007_v44 }
 0x1dd   : > { %v5083_v2 = vadd.f32 %v4827_v50, %v4289_v57  ;;  %v5087_v4 = vadd.f32 %v4831_v59, %v4293_v13  ;;  %v6419_v27 = vsel %vm6149_vm7, %v9009_v46, 0.0  ;;  %v6423_v9 = vsel %vm6153_vm8, %v9009_v46, 0.0 }
 0x1de   : > { %vm873_vm9 = vcmp.eq.s32.totalorder %v575_v58, %v8918_v62  ;;  %vm877_vm10 = vcmp.eq.s32.totalorder %v579_v1, %v8918_v62  ;;  %vm1423_vm11 = vcmp.eq.s32.totalorder %v575_v58, %v8931_v21  ;;  %vm1427_vm12 = vcmp.eq.s32.totalorder %v579_v1, %v8931_v21 }
 0x1df   : > { %v5881_v37 = vadd.f32 %v5625_v0, %v5083_v2  ;;  %v5885_v19 = vadd.f32 %v5629_v22, %v5087_v4  ;;  %v1143_v28 = vsel %vm873_vm9, %v8929_v34, 0.0  ;;  %v1147_v48 = vsel %vm877_vm10, %v8929_v34, 0.0 }
 0x1e0   : > { %v1693_v36 = vsel %vm1423_vm11, %v8933_v31, 0.0  ;;  %v1697_v40 = vsel %vm1427_vm12, %v8933_v31, 0.0  ;;  %vm2233_vm13 = vcmp.eq.s32.totalorder %v575_v58, %v8935_v49  ;;  %vm2237_vm14 = vcmp.eq.s32.totalorder %v579_v1, %v8935_v49 }
 0x1e1   : > { %v6675_v54 = vadd.f32 %v6419_v27, %v5881_v37  ;;  %v6679_v6 = vadd.f32 %v6423_v9, %v5885_v19  ;;  %v1949_v43 = vadd.f32 %v1693_v36, %v1143_v28  ;;  %v1953_v60 = vadd.f32 %v1697_v40, %v1147_v48 }
 0x1e2   : > { %v2503_v23 = vsel %vm2233_vm13, %v8949_v8, 0.0  ;;  %v2507_v17 = vsel %vm2237_vm14, %v8949_v8, 0.0  ;;  %vm3027_vm15 = vcmp.eq.s32.totalorder %v575_v58, %v8959_v3  ;;  %vm3031_vm0 = vcmp.eq.s32.totalorder %v579_v1, %v8959_v3 }
 0x1e3   : > { %v6858_v42 = vpack.c.bf16 %v6679_v6, %v6675_v54  ;;  %v2759_v20 = vadd.f32 %v2503_v23, %v1949_v43  ;;  %v2763_v33 = vadd.f32 %v2507_v17, %v1953_v60  ;;  %v3297_v32 = vsel %vm3027_vm15, %v8961_v18, 0.0 }
 0x1e4   : > { %v3301_v29 = vsel %vm3031_vm0, %v8961_v18, 0.0  ;;  %vm3827_vm1 = vcmp.eq.s32.totalorder %v575_v58, %v8963_v55  ;;  %vm3831_vm2 = vcmp.eq.s32.totalorder %v579_v1, %v8963_v55  ;;  %vm4621_vm3 = vcmp.eq.s32.totalorder %v575_v58, %v8967_v45 }
 0x1e5   : > { %6971 = vmatpush.bf16.msrb.mxu2 %v6858_v42  ;;  %v3553_v39 = vadd.f32 %v3297_v32, %v2759_v20  ;;  %v3557_v47 = vadd.f32 %v3301_v29, %v2763_v33  ;;  %v4097_v15 = vsel %vm3827_vm1, %v8965_v63, 0.0  ;;  %v4101_v16 = vsel %vm3831_vm2, %v8965_v63, 0.0  ;;  %v439_v33 = vld [vmem:[#allocation2 + $0x388] sm:$0xff] }
 0x1e6   : > { %vm4625_vm4 = vcmp.eq.s32.totalorder %v579_v1, %v8967_v45  ;;  %v4891_v53 = vsel %vm4621_vm3, %v8969_v56, 0.0  ;;  %vm5419_vm5 = vcmp.eq.s32.totalorder %v575_v58, %v8989_v30  ;;  %vm5423_vm6 = vcmp.eq.s32.totalorder %v579_v1, %v8989_v30  ;;  %v443_v32 = vld [vmem:[#allocation2 + $0x3a8] sm:$0xff] }
 0x1e7   : > { %v4353_v61 = vadd.f32 %v4097_v15, %v3553_v39  ;;  %v4357_v26 = vadd.f32 %v4101_v16, %v3557_v47  ;;  %v4895_v51 = vsel %vm4625_vm4, %v8969_v56, 0.0  ;;  %v5689_v38 = vsel %vm5419_vm5, %v8991_v11, 0.0 }
 0x1e8   : > { %v5693_v12 = vsel %vm5423_vm6, %v8991_v11, 0.0  ;;  %vm6213_vm7 = vcmp.eq.s32.totalorder %v575_v58, %v9007_v44  ;;  %vm6217_vm8 = vcmp.eq.s32.totalorder %v579_v1, %v9007_v44  ;;  %vm673_vm9 = vcmp.eq.s32.totalorder %v9138_v41, %v8918_v62 }
 0x1e9   : > { %v5147_v52 = vadd.f32 %v4891_v53, %v4353_v61  ;;  %v5151_v24 = vadd.f32 %v4895_v51, %v4357_v26  ;;  %v6483_v57 = vsel %vm6213_vm7, %v9009_v46, 0.0  ;;  %v6487_v13 = vsel %vm6217_vm8, %v9009_v46, 0.0 }
 0x1ea   : > { %vm677_vm10 = vcmp.eq.s32.totalorder %v379_v25, %v8918_v62  ;;  %v943_v50 = vsel %vm673_vm9, %v8929_v34, 0.0  ;;  %vm1223_vm11 = vcmp.eq.s32.totalorder %v9138_v41, %v8931_v21  ;;  %vm1227_vm12 = vcmp.eq.s32.totalorder %v379_v25, %v8931_v21 }
 0x1eb   : > { %v5945_v59 = vadd.f32 %v5689_v38, %v5147_v52  ;;  %v5949_v58 = vadd.f32 %v5693_v12, %v5151_v24  ;;  %v947_v1 = vsel %vm677_vm10, %v8929_v34, 0.0  ;;  %v1493_v0 = vsel %vm1223_vm11, %v8933_v31, 0.0 }
 0x1ec   : > { %v1497_v22 = vsel %vm1227_vm12, %v8933_v31, 0.0  ;;  %v1749_v2 = vadd.f32 %v1493_v0, %v943_v50  ;;  %vm2033_vm13 = vcmp.eq.s32.totalorder %v9138_v41, %v8935_v49  ;;  %vm2037_vm14 = vcmp.eq.s32.totalorder %v379_v25, %v8935_v49 }
 0x1ed   : > { %v6739_v4 = vadd.f32 %v6483_v57, %v5945_v59  ;;  %v6743_v27 = vadd.f32 %v6487_v13, %v5949_v58  ;;  %v1753_v9 = vadd.f32 %v1497_v22, %v947_v1  ;;  %v2303_v37 = vsel %vm2033_vm13, %v8949_v8, 0.0 }
 0x1ee   : > { %v2307_v19 = vsel %vm2037_vm14, %v8949_v8, 0.0  ;;  %v2559_v28 = vadd.f32 %v2303_v37, %v1749_v2  ;;  %vm2827_vm15 = vcmp.eq.s32.totalorder %v9138_v41, %v8959_v3  ;;  %vm2831_vm0 = vcmp.eq.s32.totalorder %v379_v25, %v8959_v3 }
 0x1ef   : > { %v6890_v48 = vpack.c.bf16 %v6743_v27, %v6739_v4  ;;  %v2563_v36 = vadd.f32 %v2307_v19, %v1753_v9  ;;  %v3097_v40 = vsel %vm2827_vm15, %v8961_v18, 0.0  ;;  %v3101_v54 = vsel %vm2831_vm0, %v8961_v18, 0.0 }
 0x1f0   : > { %v3353_v6 = vadd.f32 %v3097_v40, %v2559_v28  ;;  %vm3627_vm1 = vcmp.eq.s32.totalorder %v9138_v41, %v8963_v55  ;;  %vm3631_vm2 = vcmp.eq.s32.totalorder %v379_v25, %v8963_v55  ;;  %vm4421_vm3 = vcmp.eq.s32.totalorder %v9138_v41, %v8967_v45  ;;  %v9214_v28 = vld [vmem:[#allocation2 + $0x588] sm:$0xff] }
 0x1f1   : > { %6984 = vmatpush.bf16.msrb.mxu3 %v6890_v48  ;;  %v3357_v43 = vadd.f32 %v3101_v54, %v2563_v36  ;;  %v3897_v60 = vsel %vm3627_vm1, %v8965_v63, 0.0  ;;  %v3901_v23 = vsel %vm3631_vm2, %v8965_v63, 0.0  ;;  %vm4425_vm4 = vcmp.eq.s32.totalorder %v379_v25, %v8967_v45  ;;  %v507_v40 = vld [vmem:[#allocation2 + $0x5a8] sm:$0xff] }
 0x1f2   : > { %v4153_v17 = vadd.f32 %v3897_v60, %v3353_v6  ;;  %v4691_v42 = vsel %vm4421_vm3, %v8969_v56, 0.0  ;;  %v4695_v20 = vsel %vm4425_vm4, %v8969_v56, 0.0  ;;  %vm5219_vm5 = vcmp.eq.s32.totalorder %v9138_v41, %v8989_v30 }
 0x1f3   : > { %v4157_v29 = vadd.f32 %v3901_v23, %v3357_v43  ;;  %vm5223_vm6 = vcmp.eq.s32.totalorder %v379_v25, %v8989_v30  ;;  %v5489_v39 = vsel %vm5219_vm5, %v8991_v11, 0.0  ;;  %vm6013_vm7 = vcmp.eq.s32.totalorder %v9138_v41, %v9007_v44 }
 0x1f4   : > { %v4947_v47 = vadd.f32 %v4691_v42, %v4153_v17  ;;  %v5493_v15 = vsel %vm5223_vm6, %v8991_v11, 0.0  ;;  %vm6017_vm8 = vcmp.eq.s32.totalorder %v379_v25, %v9007_v44  ;;  %v6283_v16 = vsel %vm6013_vm7, %v9009_v46, 0.0 }
 0x1f5   : > { %v4951_v53 = vadd.f32 %v4695_v20, %v4157_v29  ;;  %v6287_v61 = vsel %vm6017_vm8, %v9009_v46, 0.0  ;;  %vm737_vm9 = vcmp.eq.s32.totalorder %v439_v33, %v8918_v62  ;;  %vm741_vm10 = vcmp.eq.s32.totalorder %v443_v32, %v8918_v62 }
 0x1f6   : > { %v5745_v26 = vadd.f32 %v5489_v39, %v4947_v47  ;;  %v1007_v51 = vsel %vm737_vm9, %v8929_v34, 0.0  ;;  %v1011_v38 = vsel %vm741_vm10, %v8929_v34, 0.0  ;;  %vm1287_vm11 = vcmp.eq.s32.totalorder %v439_v33, %v8931_v21 }
 0x1f7   : > { %v5749_v41 = vadd.f32 %v5493_v15, %v4951_v53  ;;  %vm1291_vm12 = vcmp.eq.s32.totalorder %v443_v32, %v8931_v21  ;;  %v1557_v25 = vsel %vm1287_vm11, %v8933_v31, 0.0  ;;  %vm2097_vm13 = vcmp.eq.s32.totalorder %v439_v33, %v8935_v49 }
 0x1f8   : > { %v6539_v12 = vadd.f32 %v6283_v16, %v5745_v26  ;;  %v1561_v52 = vsel %vm1291_vm12, %v8933_v31, 0.0  ;;  %v1813_v24 = vadd.f32 %v1557_v25, %v1007_v51  ;;  %vm2101_vm14 = vcmp.eq.s32.totalorder %v443_v32, %v8935_v49 }
 0x1f9   : > { %v6543_v57 = vadd.f32 %v6287_v61, %v5749_v41  ;;  %v1817_v13 = vadd.f32 %v1561_v52, %v1011_v38  ;;  %v2367_v50 = vsel %vm2097_vm13, %v8949_v8, 0.0  ;;  %v2371_v59 = vsel %vm2101_vm14, %v8949_v8, 0.0 }
 0x1fa   : > { %v2623_v58 = vadd.f32 %v2367_v50, %v1813_v24  ;;  %vm2891_vm15 = vcmp.eq.s32.totalorder %v439_v33, %v8959_v3  ;;  %vm2895_vm0 = vcmp.eq.s32.totalorder %v443_v32, %v8959_v3  ;;  %vm3691_vm1 = vcmp.eq.s32.totalorder %v439_v33, %v8963_v55 }
 0x1fb   : > { %v6790_v1 = vpack.c.bf16 %v6543_v57, %v6539_v12  ;;  %v2627_v0 = vadd.f32 %v2371_v59, %v1817_v13  ;;  %v3161_v22 = vsel %vm2891_vm15, %v8961_v18, 0.0  ;;  %v3165_v2 = vsel %vm2895_vm0, %v8961_v18, 0.0 }
 0x1fc   : > { %v3417_v4 = vadd.f32 %v3161_v22, %v2623_v58  ;;  %vm3695_vm2 = vcmp.eq.s32.totalorder %v443_v32, %v8963_v55  ;;  %v3961_v27 = vsel %vm3691_vm1, %v8965_v63, 0.0  ;;  %vm4485_vm3 = vcmp.eq.s32.totalorder %v439_v33, %v8967_v45  ;;  %v567_v22 = vld [vmem:[#allocation2 + $0x788] sm:$0xff] }
 0x1fd   : > { %6946 = vmatpush.bf16.msrb.mxu0 %v6790_v1  ;;  %v3421_v9 = vadd.f32 %v3165_v2, %v2627_v0  ;;  %v3965_v37 = vsel %vm3695_vm2, %v8965_v63, 0.0  ;;  %vm4489_vm4 = vcmp.eq.s32.totalorder %v443_v32, %v8967_v45  ;;  %v4755_v19 = vsel %vm4485_vm3, %v8969_v56, 0.0  ;;  %v571_v2 = vld [vmem:[#allocation2 + $0x7a8] sm:$0xff] }
 0x1fe   : > { %v4217_v48 = vadd.f32 %v3961_v27, %v3417_v4  ;;  %v4759_v36 = vsel %vm4489_vm4, %v8969_v56, 0.0  ;;  %vm5283_vm5 = vcmp.eq.s32.totalorder %v439_v33, %v8989_v30  ;;  %vm5287_vm6 = vcmp.eq.s32.totalorder %v443_v32, %v8989_v30 }
 0x1ff   : > { %v4221_v54 = vadd.f32 %v3965_v37, %v3421_v9  ;;  %v5553_v6 = vsel %vm5283_vm5, %v8991_v11, 0.0  ;;  %v5557_v43 = vsel %vm5287_vm6, %v8991_v11, 0.0  ;;  %vm6077_vm7 = vcmp.eq.s32.totalorder %v439_v33, %v9007_v44 }
 0x200   : > { %v5011_v60 = vadd.f32 %v4755_v19, %v4217_v48  ;;  %vm6081_vm8 = vcmp.eq.s32.totalorder %v443_v32, %v9007_v44  ;;  %v6347_v23 = vsel %vm6077_vm7, %v9009_v46, 0.0  ;;  %vm801_vm9 = vcmp.eq.s32.totalorder %v9214_v28, %v8918_v62 }
 0x201   : > { %v5015_v17 = vadd.f32 %v4759_v36, %v4221_v54  ;;  %v6351_v42 = vsel %vm6081_vm8, %v9009_v46, 0.0  ;;  %vm805_vm10 = vcmp.eq.s32.totalorder %v507_v40, %v8918_v62  ;;  %v1071_v20 = vsel %vm801_vm9, %v8929_v34, 0.0 }
 0x202   : > { %v5809_v29 = vadd.f32 %v5553_v6, %v5011_v60  ;;  %v1075_v39 = vsel %vm805_vm10, %v8929_v34, 0.0  ;;  %vm1351_vm11 = vcmp.eq.s32.totalorder %v9214_v28, %v8931_v21  ;;  %vm1355_vm12 = vcmp.eq.s32.totalorder %v507_v40, %v8931_v21 }
 0x203   : > { %v5813_v33 = vadd.f32 %v5557_v43, %v5015_v17  ;;  %v1621_v32 = vsel %vm1351_vm11, %v8933_v31, 0.0  ;;  %v1625_v47 = vsel %vm1355_vm12, %v8933_v31, 0.0  ;;  %vm2161_vm13 = vcmp.eq.s32.totalorder %v9214_v28, %v8935_v49 }
 0x204   : > { %v6603_v15 = vadd.f32 %v6347_v23, %v5809_v29  ;;  %v1877_v16 = vadd.f32 %v1621_v32, %v1071_v20  ;;  %v1881_v53 = vadd.f32 %v1625_v47, %v1075_v39  ;;  %vm2165_vm14 = vcmp.eq.s32.totalorder %v507_v40, %v8935_v49 }
 0x205   : > { %v6607_v61 = vadd.f32 %v6351_v42, %v5813_v33  ;;  %v2431_v26 = vsel %vm2161_vm13, %v8949_v8, 0.0  ;;  %v2435_v51 = vsel %vm2165_vm14, %v8949_v8, 0.0  ;;  %vm2955_vm15 = vcmp.eq.s32.totalorder %v9214_v28, %v8959_v3 }
 0x206   : > { %v2687_v38 = vadd.f32 %v2431_v26, %v1877_v16  ;;  %v2691_v41 = vadd.f32 %v2435_v51, %v1881_v53  ;;  %vm2959_vm0 = vcmp.eq.s32.totalorder %v507_v40, %v8959_v3  ;;  %v3225_v25 = vsel %vm2955_vm15, %v8961_v18, 0.0  ;;  %v9286_v51 = vld [vmem:[#allocation2 + $0x148] sm:$0xff] }
 0x207   : > { %v6822_v12 = vpack.c.bf16 %v6607_v61, %v6603_v15  ;;  %v3229_v52 = vsel %vm2959_vm0, %v8961_v18, 0.0  ;;  %vm3755_vm1 = vcmp.eq.s32.totalorder %v9214_v28, %v8963_v55  ;;  %vm3759_vm2 = vcmp.eq.s32.totalorder %v507_v40, %v8963_v55 }
 0x208   : > { %v3481_v24 = vadd.f32 %v3225_v25, %v2687_v38  ;;  %v3485_v57 = vadd.f32 %v3229_v52, %v2691_v41  ;;  %v4025_v13 = vsel %vm3755_vm1, %v8965_v63, 0.0  ;;  %v4029_v50 = vsel %vm3759_vm2, %v8965_v63, 0.0 }
 0x209   : > { %6959 = vmatpush.bf16.msrb.mxu1 %v6822_v12  ;;  %vm4549_vm3 = vcmp.eq.s32.totalorder %v9214_v28, %v8967_v45  ;;  %vm4553_vm4 = vcmp.eq.s32.totalorder %v507_v40, %v8967_v45  ;;  %vm5347_vm5 = vcmp.eq.s32.totalorder %v9214_v28, %v8989_v30  ;;  %vm5351_vm6 = vcmp.eq.s32.totalorder %v507_v40, %v8989_v30 }
 0x20a   : > { %v4281_v59 = vadd.f32 %v4025_v13, %v3481_v24  ;;  %v4285_v58 = vadd.f32 %v4029_v50, %v3485_v57  ;;  %v4819_v1 = vsel %vm4549_vm3, %v8969_v56, 0.0  ;;  %v4823_v0 = vsel %vm4553_vm4, %v8969_v56, 0.0  ;;  %v371_v24 = vld [vmem:[#allocation2 + $0x168] sm:$0xff] }
 0x20b   : > { %v5617_v4 = vsel %vm5347_vm5, %v8991_v11, 0.0  ;;  %v5621_v27 = vsel %vm5351_vm6, %v8991_v11, 0.0  ;;  %vm6141_vm7 = vcmp.eq.s32.totalorder %v9214_v28, %v9007_v44  ;;  %vm6145_vm8 = vcmp.eq.s32.totalorder %v507_v40, %v9007_v44 }
 0x20c   : > { %v5075_v9 = vadd.f32 %v4819_v1, %v4281_v59  ;;  %v5079_v37 = vadd.f32 %v4823_v0, %v4285_v58  ;;  %v6411_v19 = vsel %vm6141_vm7, %v9009_v46, 0.0  ;;  %v6415_v48 = vsel %vm6145_vm8, %v9009_v46, 0.0 }
 0x20d   : > { %vm865_vm9 = vcmp.eq.s32.totalorder %v567_v22, %v8918_v62  ;;  %vm869_vm10 = vcmp.eq.s32.totalorder %v571_v2, %v8918_v62  ;;  %vm1415_vm11 = vcmp.eq.s32.totalorder %v567_v22, %v8931_v21  ;;  %vm1419_vm12 = vcmp.eq.s32.totalorder %v571_v2, %v8931_v21 }
 0x20e   : > { %v5873_v36 = vadd.f32 %v5617_v4, %v5075_v9  ;;  %v5877_v54 = vadd.f32 %v5621_v27, %v5079_v37  ;;  %v1135_v28 = vsel %vm865_vm9, %v8929_v34, 0.0  ;;  %v1139_v40 = vsel %vm869_vm10, %v8929_v34, 0.0 }
 0x20f   : > { %v1685_v6 = vsel %vm1415_vm11, %v8933_v31, 0.0  ;;  %v1689_v43 = vsel %vm1419_vm12, %v8933_v31, 0.0  ;;  %vm2225_vm13 = vcmp.eq.s32.totalorder %v567_v22, %v8935_v49  ;;  %vm2229_vm14 = vcmp.eq.s32.totalorder %v571_v2, %v8935_v49 }
 0x210   : > { %v6667_v60 = vadd.f32 %v6411_v19, %v5873_v36  ;;  %v6671_v23 = vadd.f32 %v6415_v48, %v5877_v54  ;;  %v1941_v17 = vadd.f32 %v1685_v6, %v1135_v28  ;;  %v1945_v42 = vadd.f32 %v1689_v43, %v1139_v40 }
 0x211   : > { %v2495_v20 = vsel %vm2225_vm13, %v8949_v8, 0.0  ;;  %v2499_v29 = vsel %vm2229_vm14, %v8949_v8, 0.0  ;;  %vm3019_vm15 = vcmp.eq.s32.totalorder %v567_v22, %v8959_v3  ;;  %vm3023_vm0 = vcmp.eq.s32.totalorder %v571_v2, %v8959_v3 }
 0x212   : > { %v6854_v39 = vpack.c.bf16 %v6671_v23, %v6667_v60  ;;  %v2751_v33 = vadd.f32 %v2495_v20, %v1941_v17  ;;  %v2755_v32 = vadd.f32 %v2499_v29, %v1945_v42  ;;  %v3289_v47 = vsel %vm3019_vm15, %v8961_v18, 0.0 }
 0x213   : > { %v3293_v15 = vsel %vm3023_vm0, %v8961_v18, 0.0  ;;  %vm3819_vm1 = vcmp.eq.s32.totalorder %v567_v22, %v8963_v55  ;;  %vm3823_vm2 = vcmp.eq.s32.totalorder %v571_v2, %v8963_v55  ;;  %vm4613_vm3 = vcmp.eq.s32.totalorder %v567_v22, %v8967_v45 }
 0x214   : > { %6972 = vmatpush.bf16.msrb.mxu2 %v6854_v39  ;;  %v3545_v16 = vadd.f32 %v3289_v47, %v2751_v33  ;;  %v3549_v53 = vadd.f32 %v3293_v15, %v2755_v32  ;;  %v4089_v61 = vsel %vm3819_vm1, %v8965_v63, 0.0  ;;  %v4093_v26 = vsel %vm3823_vm2, %v8965_v63, 0.0  ;;  %v431_v32 = vld [vmem:[#allocation2 + $0x348] sm:$0xff] }
 0x215   : > { %vm4617_vm4 = vcmp.eq.s32.totalorder %v571_v2, %v8967_v45  ;;  %v4883_v38 = vsel %vm4613_vm3, %v8969_v56, 0.0  ;;  %vm5411_vm5 = vcmp.eq.s32.totalorder %v567_v22, %v8989_v30  ;;  %vm5415_vm6 = vcmp.eq.s32.totalorder %v571_v2, %v8989_v30  ;;  %v435_v47 = vld [vmem:[#allocation2 + $0x368] sm:$0xff] }
 0x216   : > { %v4345_v41 = vadd.f32 %v4089_v61, %v3545_v16  ;;  %v4349_v25 = vadd.f32 %v4093_v26, %v3549_v53  ;;  %v4887_v12 = vsel %vm4617_vm4, %v8969_v56, 0.0  ;;  %v5681_v52 = vsel %vm5411_vm5, %v8991_v11, 0.0 }
 0x217   : > { %v5685_v57 = vsel %vm5415_vm6, %v8991_v11, 0.0  ;;  %vm6205_vm7 = vcmp.eq.s32.totalorder %v567_v22, %v9007_v44  ;;  %vm6209_vm8 = vcmp.eq.s32.totalorder %v571_v2, %v9007_v44  ;;  %vm665_vm9 = vcmp.eq.s32.totalorder %v9286_v51, %v8918_v62 }
 0x218   : > { %v5139_v13 = vadd.f32 %v4883_v38, %v4345_v41  ;;  %v5143_v50 = vadd.f32 %v4887_v12, %v4349_v25  ;;  %v6475_v59 = vsel %vm6205_vm7, %v9009_v46, 0.0  ;;  %v6479_v58 = vsel %vm6209_vm8, %v9009_v46, 0.0 }
 0x219   : > { %vm669_vm10 = vcmp.eq.s32.totalorder %v371_v24, %v8918_v62  ;;  %v935_v1 = vsel %vm665_vm9, %v8929_v34, 0.0  ;;  %vm1215_vm11 = vcmp.eq.s32.totalorder %v9286_v51, %v8931_v21  ;;  %vm1219_vm12 = vcmp.eq.s32.totalorder %v371_v24, %v8931_v21 }
 0x21a   : > { %v5937_v0 = vadd.f32 %v5681_v52, %v5139_v13  ;;  %v5941_v22 = vadd.f32 %v5685_v57, %v5143_v50  ;;  %v939_v2 = vsel %vm669_vm10, %v8929_v34, 0.0  ;;  %v1485_v4 = vsel %vm1215_vm11, %v8933_v31, 0.0 }
 0x21b   : > { %v1489_v27 = vsel %vm1219_vm12, %v8933_v31, 0.0  ;;  %v1741_v9 = vadd.f32 %v1485_v4, %v935_v1  ;;  %vm2025_vm13 = vcmp.eq.s32.totalorder %v9286_v51, %v8935_v49  ;;  %vm2029_vm14 = vcmp.eq.s32.totalorder %v371_v24, %v8935_v49 }
 0x21c   : > { %v6731_v37 = vadd.f32 %v6475_v59, %v5937_v0  ;;  %v6735_v19 = vadd.f32 %v6479_v58, %v5941_v22  ;;  %v1745_v48 = vadd.f32 %v1489_v27, %v939_v2  ;;  %v2295_v36 = vsel %vm2025_vm13, %v8949_v8, 0.0 }
 0x21d   : > { %v2299_v54 = vsel %vm2029_vm14, %v8949_v8, 0.0  ;;  %v2551_v28 = vadd.f32 %v2295_v36, %v1741_v9  ;;  %vm2819_vm15 = vcmp.eq.s32.totalorder %v9286_v51, %v8959_v3  ;;  %vm2823_vm0 = vcmp.eq.s32.totalorder %v371_v24, %v8959_v3 }
 0x21e   : > { %v6886_v40 = vpack.c.bf16 %v6735_v19, %v6731_v37  ;;  %v2555_v6 = vadd.f32 %v2299_v54, %v1745_v48  ;;  %v3089_v43 = vsel %vm2819_vm15, %v8961_v18, 0.0  ;;  %v3093_v60 = vsel %vm2823_vm0, %v8961_v18, 0.0 }
 0x21f   : > { %v3345_v23 = vadd.f32 %v3089_v43, %v2551_v28  ;;  %vm3619_vm1 = vcmp.eq.s32.totalorder %v9286_v51, %v8963_v55  ;;  %vm3623_vm2 = vcmp.eq.s32.totalorder %v371_v24, %v8963_v55  ;;  %vm4413_vm3 = vcmp.eq.s32.totalorder %v9286_v51, %v8967_v45  ;;  %v9362_v28 = vld [vmem:[#allocation2 + $0x548] sm:$0xff] }
 0x220   : > { %6985 = vmatpush.bf16.msrb.mxu3 %v6886_v40  ;;  %v3349_v17 = vadd.f32 %v3093_v60, %v2555_v6  ;;  %v3889_v42 = vsel %vm3619_vm1, %v8965_v63, 0.0  ;;  %v3893_v20 = vsel %vm3623_vm2, %v8965_v63, 0.0  ;;  %vm4417_vm4 = vcmp.eq.s32.totalorder %v371_v24, %v8967_v45  ;;  %v499_v43 = vld [vmem:[#allocation2 + $0x568] sm:$0xff] }
 0x221   : > { %v4145_v29 = vadd.f32 %v3889_v42, %v3345_v23  ;;  %v4683_v39 = vsel %vm4413_vm3, %v8969_v56, 0.0  ;;  %v4687_v33 = vsel %vm4417_vm4, %v8969_v56, 0.0  ;;  %vm5211_vm5 = vcmp.eq.s32.totalorder %v9286_v51, %v8989_v30 }
 0x222   : > { %v4149_v15 = vadd.f32 %v3893_v20, %v3349_v17  ;;  %vm5215_vm6 = vcmp.eq.s32.totalorder %v371_v24, %v8989_v30  ;;  %v5481_v16 = vsel %vm5211_vm5, %v8991_v11, 0.0  ;;  %vm6005_vm7 = vcmp.eq.s32.totalorder %v9286_v51, %v9007_v44 }
 0x223   : > { %v4939_v53 = vadd.f32 %v4683_v39, %v4145_v29  ;;  %v5485_v61 = vsel %vm5215_vm6, %v8991_v11, 0.0  ;;  %vm6009_vm8 = vcmp.eq.s32.totalorder %v371_v24, %v9007_v44  ;;  %v6275_v26 = vsel %vm6005_vm7, %v9009_v46, 0.0 }
 0x224   : > { %v4943_v38 = vadd.f32 %v4687_v33, %v4149_v15  ;;  %v6279_v41 = vsel %vm6009_vm8, %v9009_v46, 0.0  ;;  %vm729_vm9 = vcmp.eq.s32.totalorder %v431_v32, %v8918_v62  ;;  %vm733_vm10 = vcmp.eq.s32.totalorder %v435_v47, %v8918_v62 }
 0x225   : > { %v5737_v25 = vadd.f32 %v5481_v16, %v4939_v53  ;;  %v999_v12 = vsel %vm729_vm9, %v8929_v34, 0.0  ;;  %v1003_v52 = vsel %vm733_vm10, %v8929_v34, 0.0  ;;  %vm1279_vm11 = vcmp.eq.s32.totalorder %v431_v32, %v8931_v21 }
 0x226   : > { %v5741_v51 = vadd.f32 %v5485_v61, %v4943_v38  ;;  %vm1283_vm12 = vcmp.eq.s32.totalorder %v435_v47, %v8931_v21  ;;  %v1549_v24 = vsel %vm1279_vm11, %v8933_v31, 0.0  ;;  %vm2089_vm13 = vcmp.eq.s32.totalorder %v431_v32, %v8935_v49 }
 0x227   : > { %v6531_v57 = vadd.f32 %v6275_v26, %v5737_v25  ;;  %v1553_v13 = vsel %vm1283_vm12, %v8933_v31, 0.0  ;;  %v1805_v50 = vadd.f32 %v1549_v24, %v999_v12  ;;  %vm2093_vm14 = vcmp.eq.s32.totalorder %v435_v47, %v8935_v49 }
 0x228   : > { %v6535_v59 = vadd.f32 %v6279_v41, %v5741_v51  ;;  %v1809_v58 = vadd.f32 %v1553_v13, %v1003_v52  ;;  %v2359_v1 = vsel %vm2089_vm13, %v8949_v8, 0.0  ;;  %v2363_v0 = vsel %vm2093_vm14, %v8949_v8, 0.0 }
 0x229   : > { %v2615_v22 = vadd.f32 %v2359_v1, %v1805_v50  ;;  %vm2883_vm15 = vcmp.eq.s32.totalorder %v431_v32, %v8959_v3  ;;  %vm2887_vm0 = vcmp.eq.s32.totalorder %v435_v47, %v8959_v3  ;;  %vm3683_vm1 = vcmp.eq.s32.totalorder %v431_v32, %v8963_v55 }
 0x22a   : > { %v6786_v2 = vpack.c.bf16 %v6535_v59, %v6531_v57  ;;  %v2619_v4 = vadd.f32 %v2363_v0, %v1809_v58  ;;  %v3153_v27 = vsel %vm2883_vm15, %v8961_v18, 0.0  ;;  %v3157_v9 = vsel %vm2887_vm0, %v8961_v18, 0.0 }
 0x22b   : > { %v3409_v37 = vadd.f32 %v3153_v27, %v2615_v22  ;;  %vm3687_vm2 = vcmp.eq.s32.totalorder %v435_v47, %v8963_v55  ;;  %v3953_v19 = vsel %vm3683_vm1, %v8965_v63, 0.0  ;;  %vm4477_vm3 = vcmp.eq.s32.totalorder %v431_v32, %v8967_v45  ;;  %v559_v27 = vld [vmem:[#allocation2 + $0x748] sm:$0xff] }
 0x22c   : > { %6947 = vmatpush.bf16.msrb.mxu0 %v6786_v2  ;;  %v3413_v48 = vadd.f32 %v3157_v9, %v2619_v4  ;;  %v3957_v36 = vsel %vm3687_vm2, %v8965_v63, 0.0  ;;  %vm4481_vm4 = vcmp.eq.s32.totalorder %v435_v47, %v8967_v45  ;;  %v4747_v54 = vsel %vm4477_vm3, %v8969_v56, 0.0  ;;  %v563_v9 = vld [vmem:[#allocation2 + $0x768] sm:$0xff] }
 0x22d   : > { %v4209_v40 = vadd.f32 %v3953_v19, %v3409_v37  ;;  %v4751_v6 = vsel %vm4481_vm4, %v8969_v56, 0.0  ;;  %vm5275_vm5 = vcmp.eq.s32.totalorder %v431_v32, %v8989_v30  ;;  %vm5279_vm6 = vcmp.eq.s32.totalorder %v435_v47, %v8989_v30 }
 0x22e   : > { %v4213_v60 = vadd.f32 %v3957_v36, %v3413_v48  ;;  %v5545_v23 = vsel %vm5275_vm5, %v8991_v11, 0.0  ;;  %v5549_v17 = vsel %vm5279_vm6, %v8991_v11, 0.0  ;;  %vm6069_vm7 = vcmp.eq.s32.totalorder %v431_v32, %v9007_v44 }
 0x22f   : > { %v5003_v42 = vadd.f32 %v4747_v54, %v4209_v40  ;;  %vm6073_vm8 = vcmp.eq.s32.totalorder %v435_v47, %v9007_v44  ;;  %v6339_v20 = vsel %vm6069_vm7, %v9009_v46, 0.0  ;;  %vm793_vm9 = vcmp.eq.s32.totalorder %v9362_v28, %v8918_v62 }
 0x230   : > { %v5007_v29 = vadd.f32 %v4751_v6, %v4213_v60  ;;  %v6343_v39 = vsel %vm6073_vm8, %v9009_v46, 0.0  ;;  %vm797_vm10 = vcmp.eq.s32.totalorder %v499_v43, %v8918_v62  ;;  %v1063_v33 = vsel %vm793_vm9, %v8929_v34, 0.0 }
 0x231   : > { %v5801_v15 = vadd.f32 %v5545_v23, %v5003_v42  ;;  %v1067_v16 = vsel %vm797_vm10, %v8929_v34, 0.0  ;;  %vm1343_vm11 = vcmp.eq.s32.totalorder %v9362_v28, %v8931_v21  ;;  %vm1347_vm12 = vcmp.eq.s32.totalorder %v499_v43, %v8931_v21 }
 0x232   : > { %v5805_v32 = vadd.f32 %v5549_v17, %v5007_v29  ;;  %v1613_v47 = vsel %vm1343_vm11, %v8933_v31, 0.0  ;;  %v1617_v53 = vsel %vm1347_vm12, %v8933_v31, 0.0  ;;  %vm2153_vm13 = vcmp.eq.s32.totalorder %v9362_v28, %v8935_v49 }
 0x233   : > { %v6595_v61 = vadd.f32 %v6339_v20, %v5801_v15  ;;  %v1869_v26 = vadd.f32 %v1613_v47, %v1063_v33  ;;  %v1873_v38 = vadd.f32 %v1617_v53, %v1067_v16  ;;  %vm2157_vm14 = vcmp.eq.s32.totalorder %v499_v43, %v8935_v49 }
 0x234   : > { %v6599_v41 = vadd.f32 %v6343_v39, %v5805_v32  ;;  %v2423_v25 = vsel %vm2153_vm13, %v8949_v8, 0.0  ;;  %v2427_v12 = vsel %vm2157_vm14, %v8949_v8, 0.0  ;;  %vm2947_vm15 = vcmp.eq.s32.totalorder %v9362_v28, %v8959_v3 }
 0x235   : > { %v2679_v52 = vadd.f32 %v2423_v25, %v1869_v26  ;;  %v2683_v51 = vadd.f32 %v2427_v12, %v1873_v38  ;;  %vm2951_vm0 = vcmp.eq.s32.totalorder %v499_v43, %v8959_v3  ;;  %v3217_v24 = vsel %vm2947_vm15, %v8961_v18, 0.0  ;;  %v9434_v12 = vld [vmem:[#allocation2 + $0x108] sm:$0xff] }
 0x236   : > { %v6818_v57 = vpack.c.bf16 %v6599_v41, %v6595_v61  ;;  %v3221_v13 = vsel %vm2951_vm0, %v8961_v18, 0.0  ;;  %vm3747_vm1 = vcmp.eq.s32.totalorder %v9362_v28, %v8963_v55  ;;  %vm3751_vm2 = vcmp.eq.s32.totalorder %v499_v43, %v8963_v55 }
 0x237   : > { %v3473_v50 = vadd.f32 %v3217_v24, %v2679_v52  ;;  %v3477_v59 = vadd.f32 %v3221_v13, %v2683_v51  ;;  %v4017_v58 = vsel %vm3747_vm1, %v8965_v63, 0.0  ;;  %v4021_v1 = vsel %vm3751_vm2, %v8965_v63, 0.0 }
 0x238   : > { %6960 = vmatpush.bf16.msrb.mxu1 %v6818_v57  ;;  %vm4541_vm3 = vcmp.eq.s32.totalorder %v9362_v28, %v8967_v45  ;;  %vm4545_vm4 = vcmp.eq.s32.totalorder %v499_v43, %v8967_v45  ;;  %vm5339_vm5 = vcmp.eq.s32.totalorder %v9362_v28, %v8989_v30  ;;  %vm5343_vm6 = vcmp.eq.s32.totalorder %v499_v43, %v8989_v30 }
 0x239   : > { %v4273_v0 = vadd.f32 %v4017_v58, %v3473_v50  ;;  %v4277_v22 = vadd.f32 %v4021_v1, %v3477_v59  ;;  %v4811_v2 = vsel %vm4541_vm3, %v8969_v56, 0.0  ;;  %v4815_v4 = vsel %vm4545_vm4, %v8969_v56, 0.0  ;;  %v363_v50 = vld [vmem:[#allocation2 + $0x128] sm:$0xff] }
 0x23a   : > { %v5609_v37 = vsel %vm5339_vm5, %v8991_v11, 0.0  ;;  %v5613_v19 = vsel %vm5343_vm6, %v8991_v11, 0.0  ;;  %vm6133_vm7 = vcmp.eq.s32.totalorder %v9362_v28, %v9007_v44  ;;  %vm6137_vm8 = vcmp.eq.s32.totalorder %v499_v43, %v9007_v44 }
 0x23b   : > { %v5067_v48 = vadd.f32 %v4811_v2, %v4273_v0  ;;  %v5071_v36 = vadd.f32 %v4815_v4, %v4277_v22  ;;  %v6403_v54 = vsel %vm6133_vm7, %v9009_v46, 0.0  ;;  %v6407_v40 = vsel %vm6137_vm8, %v9009_v46, 0.0 }
 0x23c   : > { %vm857_vm9 = vcmp.eq.s32.totalorder %v559_v27, %v8918_v62  ;;  %vm861_vm10 = vcmp.eq.s32.totalorder %v563_v9, %v8918_v62  ;;  %vm1407_vm11 = vcmp.eq.s32.totalorder %v559_v27, %v8931_v21  ;;  %vm1411_vm12 = vcmp.eq.s32.totalorder %v563_v9, %v8931_v21 }
 0x23d   : > { %v5865_v6 = vadd.f32 %v5609_v37, %v5067_v48  ;;  %v5869_v60 = vadd.f32 %v5613_v19, %v5071_v36  ;;  %v1127_v28 = vsel %vm857_vm9, %v8929_v34, 0.0  ;;  %v1131_v43 = vsel %vm861_vm10, %v8929_v34, 0.0 }
 0x23e   : > { %v1677_v23 = vsel %vm1407_vm11, %v8933_v31, 0.0  ;;  %v1681_v17 = vsel %vm1411_vm12, %v8933_v31, 0.0  ;;  %vm2217_vm13 = vcmp.eq.s32.totalorder %v559_v27, %v8935_v49  ;;  %vm2221_vm14 = vcmp.eq.s32.totalorder %v563_v9, %v8935_v49 }
 0x23f   : > { %v6659_v42 = vadd.f32 %v6403_v54, %v5865_v6  ;;  %v6663_v20 = vadd.f32 %v6407_v40, %v5869_v60  ;;  %v1933_v29 = vadd.f32 %v1677_v23, %v1127_v28  ;;  %v1937_v39 = vadd.f32 %v1681_v17, %v1131_v43 }
 0x240   : > { %v2487_v33 = vsel %vm2217_vm13, %v8949_v8, 0.0  ;;  %v2491_v15 = vsel %vm2221_vm14, %v8949_v8, 0.0  ;;  %vm3011_vm15 = vcmp.eq.s32.totalorder %v559_v27, %v8959_v3  ;;  %vm3015_vm0 = vcmp.eq.s32.totalorder %v563_v9, %v8959_v3 }
 0x241   : > { %v6850_v16 = vpack.c.bf16 %v6663_v20, %v6659_v42  ;;  %v2743_v32 = vadd.f32 %v2487_v33, %v1933_v29  ;;  %v2747_v47 = vadd.f32 %v2491_v15, %v1937_v39  ;;  %v3281_v53 = vsel %vm3011_vm15, %v8961_v18, 0.0 }
 0x242   : > { %v3285_v61 = vsel %vm3015_vm0, %v8961_v18, 0.0  ;;  %vm3811_vm1 = vcmp.eq.s32.totalorder %v559_v27, %v8963_v55  ;;  %vm3815_vm2 = vcmp.eq.s32.totalorder %v563_v9, %v8963_v55  ;;  %vm4605_vm3 = vcmp.eq.s32.totalorder %v559_v27, %v8967_v45 }
 0x243   : > { %6973 = vmatpush.bf16.msrb.mxu2 %v6850_v16  ;;  %v3537_v26 = vadd.f32 %v3281_v53, %v2743_v32  ;;  %v3541_v38 = vadd.f32 %v3285_v61, %v2747_v47  ;;  %v4081_v41 = vsel %vm3811_vm1, %v8965_v63, 0.0  ;;  %v4085_v25 = vsel %vm3815_vm2, %v8965_v63, 0.0  ;;  %v9479_v47 = vld [vmem:[#allocation2 + $0x308] sm:$0xff] }
 0x244   : > { %vm4609_vm4 = vcmp.eq.s32.totalorder %v563_v9, %v8967_v45  ;;  %v4875_v52 = vsel %vm4605_vm3, %v8969_v56, 0.0  ;;  %vm5403_vm5 = vcmp.eq.s32.totalorder %v559_v27, %v8989_v30  ;;  %vm5407_vm6 = vcmp.eq.s32.totalorder %v563_v9, %v8989_v30  ;;  %v9481_v53 = vld [vmem:[#allocation2 + $0x328] sm:$0xff] }
 0x245   : > { %v4337_v51 = vadd.f32 %v4081_v41, %v3537_v26  ;;  %v4341_v24 = vadd.f32 %v4085_v25, %v3541_v38  ;;  %v4879_v57 = vsel %vm4609_vm4, %v8969_v56, 0.0  ;;  %v5673_v13 = vsel %vm5403_vm5, %v8991_v11, 0.0 }
 0x246   : > { %v5677_v59 = vsel %vm5407_vm6, %v8991_v11, 0.0  ;;  %vm6197_vm7 = vcmp.eq.s32.totalorder %v559_v27, %v9007_v44  ;;  %vm6201_vm8 = vcmp.eq.s32.totalorder %v563_v9, %v9007_v44  ;;  %vm657_vm9 = vcmp.eq.s32.totalorder %v9434_v12, %v8918_v62 }
 0x247   : > { %v5131_v58 = vadd.f32 %v4875_v52, %v4337_v51  ;;  %v5135_v1 = vadd.f32 %v4879_v57, %v4341_v24  ;;  %v6467_v0 = vsel %vm6197_vm7, %v9009_v46, 0.0  ;;  %v6471_v22 = vsel %vm6201_vm8, %v9009_v46, 0.0 }
 0x248   : > { %vm661_vm10 = vcmp.eq.s32.totalorder %v363_v50, %v8918_v62  ;;  %v927_v2 = vsel %vm657_vm9, %v8929_v34, 0.0  ;;  %vm1207_vm11 = vcmp.eq.s32.totalorder %v9434_v12, %v8931_v21  ;;  %vm1211_vm12 = vcmp.eq.s32.totalorder %v363_v50, %v8931_v21 }
 0x249   : > { %v5929_v4 = vadd.f32 %v5673_v13, %v5131_v58  ;;  %v5933_v27 = vadd.f32 %v5677_v59, %v5135_v1  ;;  %v931_v9 = vsel %vm661_vm10, %v8929_v34, 0.0  ;;  %v1477_v37 = vsel %vm1207_vm11, %v8933_v31, 0.0 }
 0x24a   : > { %v1481_v19 = vsel %vm1211_vm12, %v8933_v31, 0.0  ;;  %v1733_v48 = vadd.f32 %v1477_v37, %v927_v2  ;;  %vm2017_vm13 = vcmp.eq.s32.totalorder %v9434_v12, %v8935_v49  ;;  %vm2021_vm14 = vcmp.eq.s32.totalorder %v363_v50, %v8935_v49 }
 0x24b   : > { %v6723_v36 = vadd.f32 %v6467_v0, %v5929_v4  ;;  %v6727_v54 = vadd.f32 %v6471_v22, %v5933_v27  ;;  %v1737_v40 = vadd.f32 %v1481_v19, %v931_v9  ;;  %v2287_v6 = vsel %vm2017_vm13, %v8949_v8, 0.0  ;;  %v6747_v0 = vld [vmem:[%s9500_s5 + $0x8] sm:$0xff] }
 0x24c   : > { %v2291_v60 = vsel %vm2021_vm14, %v8949_v8, 0.0  ;;  %v2543_v28 = vadd.f32 %v2287_v6, %v1733_v48  ;;  %vm2811_vm15 = vcmp.eq.s32.totalorder %v9434_v12, %v8959_v3  ;;  %vm2815_vm0 = vcmp.eq.s32.totalorder %v363_v50, %v8959_v3  ;;  %6752 = vst [vmem:[#allocation1 + $0x10] ss:$2 sm:$0xff] %v6747_v0 }
 0x24d   : > { %v6882_v43 = vpack.c.bf16 %v6727_v54, %v6723_v36  ;;  %v2547_v23 = vadd.f32 %v2291_v60, %v1737_v40  ;;  %v3081_v17 = vsel %vm2811_vm15, %v8961_v18, 0.0  ;;  %v3085_v42 = vsel %vm2815_vm0, %v8961_v18, 0.0 }
 0x24e   : > { %v3337_v20 = vadd.f32 %v3081_v17, %v2543_v28  ;;  %vm3611_vm1 = vcmp.eq.s32.totalorder %v9434_v12, %v8963_v55  ;;  %vm3615_vm2 = vcmp.eq.s32.totalorder %v363_v50, %v8963_v55  ;;  %vm4405_vm3 = vcmp.eq.s32.totalorder %v9434_v12, %v8967_v45 }
 0x24f   : > { %6986 = vmatpush.bf16.msrb.mxu3 %v6882_v43  ;;  %v3341_v29 = vadd.f32 %v3085_v42, %v2547_v23  ;;  %v3881_v39 = vsel %vm3611_vm1, %v8965_v63, 0.0  ;;  %v3885_v33 = vsel %vm3615_vm2, %v8965_v63, 0.0  ;;  %vm4409_vm4 = vcmp.eq.s32.totalorder %v363_v50, %v8967_v45  ;;  %v9534_v43 = vld [vmem:[#allocation2 + $0x508] sm:$0xff] }
 0x250   : > { %v4137_v15 = vadd.f32 %v3881_v39, %v3337_v20  ;;  %v4675_v16 = vsel %vm4405_vm3, %v8969_v56, 0.0  ;;  %v4679_v32 = vsel %vm4409_vm4, %v8969_v56, 0.0  ;;  %vm5203_vm5 = vcmp.eq.s32.totalorder %v9434_v12, %v8989_v30  ;;  %v491_v42 = vld [vmem:[#allocation2 + $0x528] sm:$0xff] }
 0x251   : > { %v4141_v61 = vadd.f32 %v3885_v33, %v3341_v29  ;;  %vm5207_vm6 = vcmp.eq.s32.totalorder %v363_v50, %v8989_v30  ;;  %v5473_v26 = vsel %vm5203_vm5, %v8991_v11, 0.0  ;;  %vm5997_vm7 = vcmp.eq.s32.totalorder %v9434_v12, %v9007_v44 }
 0x252   : > { %v4931_v38 = vadd.f32 %v4675_v16, %v4137_v15  ;;  %v5477_v41 = vsel %vm5207_vm6, %v8991_v11, 0.0  ;;  %vm6001_vm8 = vcmp.eq.s32.totalorder %v363_v50, %v9007_v44  ;;  %v6267_v25 = vsel %vm5997_vm7, %v9009_v46, 0.0 }
 0x253   : > { %v4935_v52 = vadd.f32 %v4679_v32, %v4141_v61  ;;  %v6271_v51 = vsel %vm6001_vm8, %v9009_v46, 0.0  ;;  %vm721_vm9 = vcmp.eq.s32.totalorder %v9479_v47, %v8918_v62  ;;  %vm725_vm10 = vcmp.eq.s32.totalorder %v9481_v53, %v8918_v62 }
 0x254   : > { %v5729_v12 = vadd.f32 %v5473_v26, %v4931_v38  ;;  %v991_v24 = vsel %vm721_vm9, %v8929_v34, 0.0  ;;  %v995_v57 = vsel %vm725_vm10, %v8929_v34, 0.0  ;;  %vm1271_vm11 = vcmp.eq.s32.totalorder %v9479_v47, %v8931_v21 }
 0x255   : > { %v5733_v13 = vadd.f32 %v5477_v41, %v4935_v52  ;;  %vm1275_vm12 = vcmp.eq.s32.totalorder %v9481_v53, %v8931_v21  ;;  %v1541_v50 = vsel %vm1271_vm11, %v8933_v31, 0.0  ;;  %vm2081_vm13 = vcmp.eq.s32.totalorder %v9479_v47, %v8935_v49 }
 0x256   : > { %v6523_v59 = vadd.f32 %v6267_v25, %v5729_v12  ;;  %v1545_v58 = vsel %vm1275_vm12, %v8933_v31, 0.0  ;;  %v1797_v1 = vadd.f32 %v1541_v50, %v991_v24  ;;  %vm2085_vm14 = vcmp.eq.s32.totalorder %v9481_v53, %v8935_v49 }
 0x257   : > { %v6527_v22 = vadd.f32 %v6271_v51, %v5733_v13  ;;  %v1801_v2 = vadd.f32 %v1545_v58, %v995_v57  ;;  %v2351_v4 = vsel %vm2081_vm13, %v8949_v8, 0.0  ;;  %v2355_v27 = vsel %vm2085_vm14, %v8949_v8, 0.0 }
 0x258   : > { %v2607_v9 = vadd.f32 %v2351_v4, %v1797_v1  ;;  %vm2875_vm15 = vcmp.eq.s32.totalorder %v9479_v47, %v8959_v3  ;;  %vm2879_vm0 = vcmp.eq.s32.totalorder %v9481_v53, %v8959_v3  ;;  %vm3675_vm1 = vcmp.eq.s32.totalorder %v9479_v47, %v8963_v55 }
 0x259   : > { %v6782_v37 = vpack.c.bf16 %v6527_v22, %v6523_v59  ;;  %v2611_v19 = vadd.f32 %v2355_v27, %v1801_v2  ;;  %v3145_v48 = vsel %vm2875_vm15, %v8961_v18, 0.0  ;;  %v3149_v36 = vsel %vm2879_vm0, %v8961_v18, 0.0 }
 0x25a   : > { %v3401_v54 = vadd.f32 %v3145_v48, %v2607_v9  ;;  %vm3679_vm2 = vcmp.eq.s32.totalorder %v9481_v53, %v8963_v55  ;;  %v3945_v40 = vsel %vm3675_vm1, %v8965_v63, 0.0  ;;  %vm4469_vm3 = vcmp.eq.s32.totalorder %v9479_v47, %v8967_v45  ;;  %v551_v48 = vld [vmem:[#allocation2 + $0x708] sm:$0xff] }
 0x25b   : > { %6948 = vmatpush.bf16.msrb.mxu0 %v6782_v37  ;;  %v3405_v6 = vadd.f32 %v3149_v36, %v2611_v19  ;;  %v3949_v60 = vsel %vm3679_vm2, %v8965_v63, 0.0  ;;  %vm4473_vm4 = vcmp.eq.s32.totalorder %v9481_v53, %v8967_v45  ;;  %v4739_v28 = vsel %vm4469_vm3, %v8969_v56, 0.0  ;;  %v555_v36 = vld [vmem:[#allocation2 + $0x728] sm:$0xff] }
 0x25c   : > { %v4201_v23 = vadd.f32 %v3945_v40, %v3401_v54  ;;  %v4743_v17 = vsel %vm4473_vm4, %v8969_v56, 0.0  ;;  %vm5267_vm5 = vcmp.eq.s32.totalorder %v9479_v47, %v8989_v30  ;;  %vm5271_vm6 = vcmp.eq.s32.totalorder %v9481_v53, %v8989_v30 }
 0x25d   : > { %v4205_v20 = vadd.f32 %v3949_v60, %v3405_v6  ;;  %v5537_v29 = vsel %vm5267_vm5, %v8991_v11, 0.0  ;;  %v5541_v39 = vsel %vm5271_vm6, %v8991_v11, 0.0  ;;  %vm6061_vm7 = vcmp.eq.s32.totalorder %v9479_v47, %v9007_v44 }
 0x25e   : > { %v4995_v33 = vadd.f32 %v4739_v28, %v4201_v23  ;;  %vm6065_vm8 = vcmp.eq.s32.totalorder %v9481_v53, %v9007_v44  ;;  %v6331_v15 = vsel %vm6061_vm7, %v9009_v46, 0.0  ;;  %vm785_vm9 = vcmp.eq.s32.totalorder %v9534_v43, %v8918_v62 }
 0x25f   : > { %v4999_v16 = vadd.f32 %v4743_v17, %v4205_v20  ;;  %v6335_v32 = vsel %vm6065_vm8, %v9009_v46, 0.0  ;;  %vm789_vm10 = vcmp.eq.s32.totalorder %v491_v42, %v8918_v62  ;;  %v1055_v61 = vsel %vm785_vm9, %v8929_v34, 0.0 }
 0x260   : > { %v5793_v26 = vadd.f32 %v5537_v29, %v4995_v33  ;;  %v1059_v38 = vsel %vm789_vm10, %v8929_v34, 0.0  ;;  %vm1335_vm11 = vcmp.eq.s32.totalorder %v9534_v43, %v8931_v21  ;;  %vm1339_vm12 = vcmp.eq.s32.totalorder %v491_v42, %v8931_v21 }
 0x261   : > { %v5797_v47 = vadd.f32 %v5541_v39, %v4999_v16  ;;  %v1605_v53 = vsel %vm1335_vm11, %v8933_v31, 0.0  ;;  %v1609_v41 = vsel %vm1339_vm12, %v8933_v31, 0.0  ;;  %vm2145_vm13 = vcmp.eq.s32.totalorder %v9534_v43, %v8935_v49 }
 0x262   : > { %v6587_v25 = vadd.f32 %v6331_v15, %v5793_v26  ;;  %v1861_v52 = vadd.f32 %v1605_v53, %v1055_v61  ;;  %v1865_v51 = vadd.f32 %v1609_v41, %v1059_v38  ;;  %vm2149_vm14 = vcmp.eq.s32.totalorder %v491_v42, %v8935_v49 }
 0x263   : > { %v6591_v12 = vadd.f32 %v6335_v32, %v5797_v47  ;;  %v2415_v24 = vsel %vm2145_vm13, %v8949_v8, 0.0  ;;  %v2419_v57 = vsel %vm2149_vm14, %v8949_v8, 0.0  ;;  %vm2939_vm15 = vcmp.eq.s32.totalorder %v9534_v43, %v8959_v3 }
 0x264   : > { %v2671_v13 = vadd.f32 %v2415_v24, %v1861_v52  ;;  %v2675_v50 = vadd.f32 %v2419_v57, %v1865_v51  ;;  %vm2943_vm0 = vcmp.eq.s32.totalorder %v491_v42, %v8959_v3  ;;  %v3209_v59 = vsel %vm2939_vm15, %v8961_v18, 0.0  ;;  %v6755_v57 = vld.sshfl [vmem:[#allocation1 + $0x10] sm:$0xff pattern:$0x75316420] }
 0x265   : > { %v6814_v58 = vpack.c.bf16 %v6591_v12, %v6587_v25  ;;  %v3213_v1 = vsel %vm2943_vm0, %v8961_v18, 0.0  ;;  %vm3739_vm1 = vcmp.eq.s32.totalorder %v9534_v43, %v8963_v55  ;;  %vm3743_vm2 = vcmp.eq.s32.totalorder %v491_v42, %v8963_v55 }
 0x266   : > { %v3465_v0 = vadd.f32 %v3209_v59, %v2671_v13  ;;  %v3469_v22 = vadd.f32 %v3213_v1, %v2675_v50  ;;  %v4009_v2 = vsel %vm3739_vm1, %v8965_v63, 0.0  ;;  %v4013_v4 = vsel %vm3743_vm2, %v8965_v63, 0.0 }
 0x267   : > { %6961 = vmatpush.bf16.msrb.mxu1 %v6814_v58  ;;  %vm4533_vm3 = vcmp.eq.s32.totalorder %v9534_v43, %v8967_v45  ;;  %vm4537_vm4 = vcmp.eq.s32.totalorder %v491_v42, %v8967_v45  ;;  %vm5331_vm5 = vcmp.eq.s32.totalorder %v9534_v43, %v8989_v30  ;;  %vm5335_vm6 = vcmp.eq.s32.totalorder %v491_v42, %v8989_v30 }
 0x268   : > { %v4265_v27 = vadd.f32 %v4009_v2, %v3465_v0  ;;  %v4269_v9 = vadd.f32 %v4013_v4, %v3469_v22  ;;  %v4803_v37 = vsel %vm4533_vm3, %v8969_v56, 0.0  ;;  %v4807_v19 = vsel %vm4537_vm4, %v8969_v56, 0.0  ;;  %v351_v0 = vld [vmem:[#allocation2 + $0xc8] sm:$0xff] }
 0x269   : > { %v5601_v54 = vsel %vm5331_vm5, %v8991_v11, 0.0  ;;  %v5605_v40 = vsel %vm5335_vm6, %v8991_v11, 0.0  ;;  %vm6125_vm7 = vcmp.eq.s32.totalorder %v9534_v43, %v9007_v44  ;;  %vm6129_vm8 = vcmp.eq.s32.totalorder %v491_v42, %v9007_v44  ;;  %v355_v22 = vld [vmem:[#allocation2 + $0xe8] sm:$0xff] }
 0x26a   : > { %v5059_v6 = vadd.f32 %v4803_v37, %v4265_v27  ;;  %v5063_v60 = vadd.f32 %v4807_v19, %v4269_v9  ;;  %v6395_v28 = vsel %vm6125_vm7, %v9009_v46, 0.0  ;;  %v6399_v23 = vsel %vm6129_vm8, %v9009_v46, 0.0 }
 0x26b   : > { %vm849_vm9 = vcmp.eq.s32.totalorder %v551_v48, %v8918_v62  ;;  %vm853_vm10 = vcmp.eq.s32.totalorder %v555_v36, %v8918_v62  ;;  %vm1399_vm11 = vcmp.eq.s32.totalorder %v551_v48, %v8931_v21  ;;  %vm1403_vm12 = vcmp.eq.s32.totalorder %v555_v36, %v8931_v21 }
 0x26c   : > { %v5857_v17 = vadd.f32 %v5601_v54, %v5059_v6  ;;  %v5861_v20 = vadd.f32 %v5605_v40, %v5063_v60  ;;  %v1119_v43 = vsel %vm849_vm9, %v8929_v34, 0.0  ;;  %v1123_v42 = vsel %vm853_vm10, %v8929_v34, 0.0 }
 0x26d   : > { %v1669_v29 = vsel %vm1399_vm11, %v8933_v31, 0.0  ;;  %v1673_v39 = vsel %vm1403_vm12, %v8933_v31, 0.0  ;;  %vm2209_vm13 = vcmp.eq.s32.totalorder %v551_v48, %v8935_v49  ;;  %vm2213_vm14 = vcmp.eq.s32.totalorder %v555_v36, %v8935_v49 }
 0x26e   : > { %v6651_v33 = vadd.f32 %v6395_v28, %v5857_v17  ;;  %v6655_v15 = vadd.f32 %v6399_v23, %v5861_v20  ;;  %v1925_v16 = vadd.f32 %v1669_v29, %v1119_v43  ;;  %v1929_v32 = vadd.f32 %v1673_v39, %v1123_v42 }
 0x26f   : > { %v2479_v61 = vsel %vm2209_vm13, %v8949_v8, 0.0  ;;  %v2483_v26 = vsel %vm2213_vm14, %v8949_v8, 0.0  ;;  %vm3003_vm15 = vcmp.eq.s32.totalorder %v551_v48, %v8959_v3  ;;  %vm3007_vm0 = vcmp.eq.s32.totalorder %v555_v36, %v8959_v3 }
 0x270   : > { %v6846_v38 = vpack.c.bf16 %v6655_v15, %v6651_v33  ;;  %v2735_v47 = vadd.f32 %v2479_v61, %v1925_v16  ;;  %v2739_v53 = vadd.f32 %v2483_v26, %v1929_v32  ;;  %v3273_v41 = vsel %vm3003_vm15, %v8961_v18, 0.0 }
 0x271   : > { %v3277_v25 = vsel %vm3007_vm0, %v8961_v18, 0.0  ;;  %vm3803_vm1 = vcmp.eq.s32.totalorder %v551_v48, %v8963_v55  ;;  %vm3807_vm2 = vcmp.eq.s32.totalorder %v555_v36, %v8963_v55  ;;  %vm4597_vm3 = vcmp.eq.s32.totalorder %v551_v48, %v8967_v45 }
 0x272   : > { %6974 = vmatpush.bf16.msrb.mxu2 %v6846_v38  ;;  %v3529_v52 = vadd.f32 %v3273_v41, %v2735_v47  ;;  %v3533_v51 = vadd.f32 %v3277_v25, %v2739_v53  ;;  %v4073_v12 = vsel %vm3803_vm1, %v8965_v63, 0.0  ;;  %v4077_v24 = vsel %vm3807_vm2, %v8965_v63, 0.0  ;;  %v9645_v47 = vld [vmem:[#allocation2 + $0x2c8] sm:$0xff] }
 0x273   : > { %vm4601_vm4 = vcmp.eq.s32.totalorder %v555_v36, %v8967_v45  ;;  %v4867_v13 = vsel %vm4597_vm3, %v8969_v56, 0.0  ;;  %vm5395_vm5 = vcmp.eq.s32.totalorder %v551_v48, %v8989_v30  ;;  %vm5399_vm6 = vcmp.eq.s32.totalorder %v555_v36, %v8989_v30 }
 0x274   : > { %v4329_v50 = vadd.f32 %v4073_v12, %v3529_v52  ;;  %v4333_v59 = vadd.f32 %v4077_v24, %v3533_v51  ;;  %v4871_v58 = vsel %vm4601_vm4, %v8969_v56, 0.0  ;;  %v5665_v1 = vsel %vm5395_vm5, %v8991_v11, 0.0  ;;  %v419_v12 = vld [vmem:[#allocation2 + $0x2e8] sm:$0xff] }
 0x275   : > { %v5669_v2 = vsel %vm5399_vm6, %v8991_v11, 0.0  ;;  %vm6189_vm7 = vcmp.eq.s32.totalorder %v551_v48, %v9007_v44  ;;  %vm6193_vm8 = vcmp.eq.s32.totalorder %v555_v36, %v9007_v44  ;;  %v9619_v4 = vpack.c.bf16 %v6755_v57, %v6755_v57 }
 0x276   : > { %v5123_v27 = vadd.f32 %v4867_v13, %v4329_v50  ;;  %v5127_v9 = vadd.f32 %v4871_v58, %v4333_v59  ;;  %v6459_v37 = vsel %vm6189_vm7, %v9009_v46, 0.0  ;;  %v6463_v19 = vsel %vm6193_vm8, %v9009_v46, 0.0 }
 0x277   : > { %6927 = vmatmul.bf16.vlgmr.msra.gmra.mxu2 %v9619_v4  ;;  %vm649_vm9 = vcmp.eq.s32.totalorder %v351_v0, %v8918_v62  ;;  %vm653_vm10 = vcmp.eq.s32.totalorder %v355_v22, %v8918_v62  ;;  %vm1199_vm11 = vcmp.eq.s32.totalorder %v351_v0, %v8931_v21  ;;  %vm1203_vm12 = vcmp.eq.s32.totalorder %v355_v22, %v8931_v21 }
 0x278   : > { %v5921_v48 = vadd.f32 %v5665_v1, %v5123_v27  ;;  %v5925_v36 = vadd.f32 %v5669_v2, %v5127_v9  ;;  %v919_v54 = vsel %vm649_vm9, %v8929_v34, 0.0  ;;  %v923_v40 = vsel %vm653_vm10, %v8929_v34, 0.0 }
 0x279   : > { %v1469_v6 = vsel %vm1199_vm11, %v8933_v31, 0.0  ;;  %v1473_v60 = vsel %vm1203_vm12, %v8933_v31, 0.0  ;;  %vm2009_vm13 = vcmp.eq.s32.totalorder %v351_v0, %v8935_v49  ;;  %vm2013_vm14 = vcmp.eq.s32.totalorder %v355_v22, %v8935_v49 }
 0x27a   : > { %v6715_v28 = vadd.f32 %v6459_v37, %v5921_v48  ;;  %v6719_v23 = vadd.f32 %v6463_v19, %v5925_v36  ;;  %v1725_v17 = vadd.f32 %v1469_v6, %v919_v54  ;;  %v1729_v20 = vadd.f32 %v1473_v60, %v923_v40  ;;  %v6746_v37 = vld [vmem:[%s9500_s5] sm:$0xff] }
 0x27b   : > { %v2279_v43 = vsel %vm2009_vm13, %v8949_v8, 0.0  ;;  %v2283_v42 = vsel %vm2013_vm14, %v8949_v8, 0.0  ;;  %vm2803_vm15 = vcmp.eq.s32.totalorder %v351_v0, %v8959_v3  ;;  %vm2807_vm0 = vcmp.eq.s32.totalorder %v355_v22, %v8959_v3  ;;  %6750 = vst [vmem:[#allocation1] ss:$2 sm:$0xff] %v6746_v37 }
 0x27c   : > { %v6878_v29 = vpack.c.bf16 %v6719_v23, %v6715_v28  ;;  %v2535_v39 = vadd.f32 %v2279_v43, %v1725_v17  ;;  %v2539_v33 = vadd.f32 %v2283_v42, %v1729_v20  ;;  %v3073_v15 = vsel %vm2803_vm15, %v8961_v18, 0.0 }
 0x27d   : > { %v3077_v16 = vsel %vm2807_vm0, %v8961_v18, 0.0  ;;  %vm3603_vm1 = vcmp.eq.s32.totalorder %v351_v0, %v8963_v55  ;;  %vm3607_vm2 = vcmp.eq.s32.totalorder %v355_v22, %v8963_v55  ;;  %vm4397_vm3 = vcmp.eq.s32.totalorder %v351_v0, %v8967_v45 }
 0x27e   : > { %6987 = vmatpush.bf16.msrb.mxu3 %v6878_v29  ;;  %v3329_v32 = vadd.f32 %v3073_v15, %v2535_v39  ;;  %v3333_v61 = vadd.f32 %v3077_v16, %v2539_v33  ;;  %v3873_v26 = vsel %vm3603_vm1, %v8965_v63, 0.0  ;;  %v3877_v38 = vsel %vm3607_vm2, %v8965_v63, 0.0  ;;  %v479_v16 = vld [vmem:[#allocation2 + $0x4c8] sm:$0xff] }
 0x27f   : > { %vm4401_vm4 = vcmp.eq.s32.totalorder %v355_v22, %v8967_v45  ;;  %v4667_v53 = vsel %vm4397_vm3, %v8969_v56, 0.0  ;;  %vm5195_vm5 = vcmp.eq.s32.totalorder %v351_v0, %v8989_v30  ;;  %vm5199_vm6 = vcmp.eq.s32.totalorder %v355_v22, %v8989_v30 }
 0x280   : > { %v4129_v41 = vadd.f32 %v3873_v26, %v3329_v32  ;;  %v4133_v25 = vadd.f32 %v3877_v38, %v3333_v61  ;;  %v4671_v52 = vsel %vm4401_vm4, %v8969_v56, 0.0  ;;  %v5465_v51 = vsel %vm5195_vm5, %v8991_v11, 0.0  ;;  %v483_v32 = vld [vmem:[#allocation2 + $0x4e8] sm:$0xff] }
 0x281   : > { %v5469_v24 = vsel %vm5199_vm6, %v8991_v11, 0.0  ;;  %vm5989_vm7 = vcmp.eq.s32.totalorder %v351_v0, %v9007_v44  ;;  %vm5993_vm8 = vcmp.eq.s32.totalorder %v355_v22, %v9007_v44  ;;  %vm713_vm9 = vcmp.eq.s32.totalorder %v9645_v47, %v8918_v62 }
 0x282   : > { %v4923_v57 = vadd.f32 %v4667_v53, %v4129_v41  ;;  %v4927_v13 = vadd.f32 %v4671_v52, %v4133_v25  ;;  %v6259_v50 = vsel %vm5989_vm7, %v9009_v46, 0.0  ;;  %v6263_v59 = vsel %vm5993_vm8, %v9009_v46, 0.0 }
 0x283   : > { %vm717_vm10 = vcmp.eq.s32.totalorder %v419_v12, %v8918_v62  ;;  %v983_v58 = vsel %vm713_vm9, %v8929_v34, 0.0  ;;  %vm1263_vm11 = vcmp.eq.s32.totalorder %v9645_v47, %v8931_v21  ;;  %vm1267_vm12 = vcmp.eq.s32.totalorder %v419_v12, %v8931_v21 }
 0x284   : > { %v5721_v1 = vadd.f32 %v5465_v51, %v4923_v57  ;;  %v5725_v0 = vadd.f32 %v5469_v24, %v4927_v13  ;;  %v987_v22 = vsel %vm717_vm10, %v8929_v34, 0.0  ;;  %v1533_v2 = vsel %vm1263_vm11, %v8933_v31, 0.0 }
 0x285   : > { %v1537_v27 = vsel %vm1267_vm12, %v8933_v31, 0.0  ;;  %v1789_v9 = vadd.f32 %v1533_v2, %v983_v58  ;;  %vm2073_vm13 = vcmp.eq.s32.totalorder %v9645_v47, %v8935_v49  ;;  %vm2077_vm14 = vcmp.eq.s32.totalorder %v419_v12, %v8935_v49 }
 0x286   : > { %v6515_v19 = vadd.f32 %v6259_v50, %v5721_v1  ;;  %v6519_v48 = vadd.f32 %v6263_v59, %v5725_v0  ;;  %v1793_v36 = vadd.f32 %v1537_v27, %v987_v22  ;;  %v2343_v54 = vsel %vm2073_vm13, %v8949_v8, 0.0 }
 0x287   : > { %v2347_v40 = vsel %vm2077_vm14, %v8949_v8, 0.0  ;;  %v2599_v6 = vadd.f32 %v2343_v54, %v1789_v9  ;;  %vm2867_vm15 = vcmp.eq.s32.totalorder %v9645_v47, %v8959_v3  ;;  %vm2871_vm0 = vcmp.eq.s32.totalorder %v419_v12, %v8959_v3 }
 0x288   : > { %v6778_v60 = vpack.c.bf16 %v6519_v48, %v6515_v19  ;;  %v2603_v28 = vadd.f32 %v2347_v40, %v1793_v36  ;;  %v3137_v23 = vsel %vm2867_vm15, %v8961_v18, 0.0  ;;  %v3141_v17 = vsel %vm2871_vm0, %v8961_v18, 0.0 }
 0x289   : > { %v3393_v20 = vadd.f32 %v3137_v23, %v2599_v6  ;;  %vm3667_vm1 = vcmp.eq.s32.totalorder %v9645_v47, %v8963_v55  ;;  %vm3671_vm2 = vcmp.eq.s32.totalorder %v419_v12, %v8963_v55  ;;  %vm4461_vm3 = vcmp.eq.s32.totalorder %v9645_v47, %v8967_v45 }
 0x28a   : > { %6949 = vmatpush.bf16.msrb.mxu0 %v6778_v60  ;;  %v3397_v43 = vadd.f32 %v3141_v17, %v2603_v28  ;;  %v3937_v42 = vsel %vm3667_vm1, %v8965_v63, 0.0  ;;  %v3941_v29 = vsel %vm3671_vm2, %v8965_v63, 0.0  ;;  %vm4465_vm4 = vcmp.eq.s32.totalorder %v419_v12, %v8967_v45  ;;  %v9722_v60 = vld [vmem:[#allocation2 + $0x6c8] sm:$0xff] }
 0x28b   : > { %v4193_v39 = vadd.f32 %v3937_v42, %v3393_v20  ;;  %v4731_v33 = vsel %vm4461_vm3, %v8969_v56, 0.0  ;;  %v4735_v15 = vsel %vm4465_vm4, %v8969_v56, 0.0  ;;  %vm5259_vm5 = vcmp.eq.s32.totalorder %v9645_v47, %v8989_v30  ;;  %v9727_v17 = vld [vmem:[#allocation2 + $0x6e8] sm:$0xff] }
 0x28c   : > { %v4197_v61 = vadd.f32 %v3941_v29, %v3397_v43  ;;  %vm5263_vm6 = vcmp.eq.s32.totalorder %v419_v12, %v8989_v30  ;;  %v5529_v26 = vsel %vm5259_vm5, %v8991_v11, 0.0  ;;  %vm6053_vm7 = vcmp.eq.s32.totalorder %v9645_v47, %v9007_v44 }
 0x28d   : > { %v4987_v38 = vadd.f32 %v4731_v33, %v4193_v39  ;;  %v5533_v53 = vsel %vm5263_vm6, %v8991_v11, 0.0  ;;  %vm6057_vm8 = vcmp.eq.s32.totalorder %v419_v12, %v9007_v44  ;;  %v6323_v41 = vsel %vm6053_vm7, %v9009_v46, 0.0 }
 0x28e   : > { %v4991_v25 = vadd.f32 %v4735_v15, %v4197_v61  ;;  %v6327_v52 = vsel %vm6057_vm8, %v9009_v46, 0.0  ;;  %vm777_vm9 = vcmp.eq.s32.totalorder %v479_v16, %v8918_v62  ;;  %vm781_vm10 = vcmp.eq.s32.totalorder %v483_v32, %v8918_v62 }
 0x28f   : > { %v5785_v51 = vadd.f32 %v5529_v26, %v4987_v38  ;;  %v1047_v24 = vsel %vm777_vm9, %v8929_v34, 0.0  ;;  %v1051_v57 = vsel %vm781_vm10, %v8929_v34, 0.0  ;;  %vm1327_vm11 = vcmp.eq.s32.totalorder %v479_v16, %v8931_v21 }
 0x290   : > { %v5789_v47 = vadd.f32 %v5533_v53, %v4991_v25  ;;  %vm1331_vm12 = vcmp.eq.s32.totalorder %v483_v32, %v8931_v21  ;;  %v1597_v12 = vsel %vm1327_vm11, %v8933_v31, 0.0  ;;  %vm2137_vm13 = vcmp.eq.s32.totalorder %v479_v16, %v8935_v49 }
 0x291   : > { %v6579_v13 = vadd.f32 %v6323_v41, %v5785_v51  ;;  %v1601_v50 = vsel %vm1331_vm12, %v8933_v31, 0.0  ;;  %v1853_v59 = vadd.f32 %v1597_v12, %v1047_v24  ;;  %vm2141_vm14 = vcmp.eq.s32.totalorder %v483_v32, %v8935_v49 }
 0x292   : > { %v6583_v58 = vadd.f32 %v6327_v52, %v5789_v47  ;;  %v1857_v1 = vadd.f32 %v1601_v50, %v1051_v57  ;;  %v2407_v0 = vsel %vm2137_vm13, %v8949_v8, 0.0  ;;  %v2411_v22 = vsel %vm2141_vm14, %v8949_v8, 0.0 }
 0x293   : > { %v2663_v2 = vadd.f32 %v2407_v0, %v1853_v59  ;;  %vm2931_vm15 = vcmp.eq.s32.totalorder %v479_v16, %v8959_v3  ;;  %vm2935_vm0 = vcmp.eq.s32.totalorder %v483_v32, %v8959_v3  ;;  %vm3731_vm1 = vcmp.eq.s32.totalorder %v479_v16, %v8963_v55 }
 0x294   : > { %v6810_v27 = vpack.c.bf16 %v6583_v58, %v6579_v13  ;;  %v2667_v9 = vadd.f32 %v2411_v22, %v1857_v1  ;;  %v3201_v37 = vsel %vm2931_vm15, %v8961_v18, 0.0  ;;  %v3205_v19 = vsel %vm2935_vm0, %v8961_v18, 0.0 }
 0x295   : > { %v3457_v48 = vadd.f32 %v3201_v37, %v2663_v2  ;;  %vm3735_vm2 = vcmp.eq.s32.totalorder %v483_v32, %v8963_v55  ;;  %v4001_v36 = vsel %vm3731_vm1, %v8965_v63, 0.0  ;;  %vm4525_vm3 = vcmp.eq.s32.totalorder %v479_v16, %v8967_v45  ;;  %v6756_v2 = vld.sshfl [vmem:[#allocation1 + $0x18] sm:$0xff pattern:$0x75316420] }
 0x296   : > { %6962 = vmatpush.bf16.msrb.mxu1 %v6810_v27  ;;  %v3461_v54 = vadd.f32 %v3205_v19, %v2667_v9  ;;  %v4005_v40 = vsel %vm3735_vm2, %v8965_v63, 0.0  ;;  %vm4529_vm4 = vcmp.eq.s32.totalorder %v483_v32, %v8967_v45  ;;  %v4795_v6 = vsel %vm4525_vm3, %v8969_v56, 0.0  ;;  %v6753_v27 = vld.sshfl [vmem:[#allocation1] sm:$0xff pattern:$0x75316420] }
 0x297   : > { %v4257_v28 = vadd.f32 %v4001_v36, %v3457_v48  ;;  %v4799_v23 = vsel %vm4529_vm4, %v8969_v56, 0.0  ;;  %vm5323_vm5 = vcmp.eq.s32.totalorder %v479_v16, %v8989_v30  ;;  %vm5327_vm6 = vcmp.eq.s32.totalorder %v483_v32, %v8989_v30  ;;  %v6754_v36 = vld.sshfl [vmem:[#allocation1 + $0x8] sm:$0xff pattern:$0x75316420] }
 0x298   : > { %v4261_v20 = vadd.f32 %v4005_v40, %v3461_v54  ;;  %v5593_v43 = vsel %vm5323_vm5, %v8991_v11, 0.0  ;;  %v5597_v42 = vsel %vm5327_vm6, %v8991_v11, 0.0  ;;  %vm6117_vm7 = vcmp.eq.s32.totalorder %v479_v16, %v9007_v44  ;;  %v9775_v54 = vld [vmem:[#allocation2 + $0x88] sm:$0xff] }
 0x299   : > { %v5051_v29 = vadd.f32 %v4795_v6, %v4257_v28  ;;  %vm6121_vm8 = vcmp.eq.s32.totalorder %v483_v32, %v9007_v44  ;;  %v6387_v39 = vsel %vm6117_vm7, %v9009_v46, 0.0  ;;  %vm841_vm9 = vcmp.eq.s32.totalorder %v9722_v60, %v8918_v62  ;;  %v9783_v28 = vld [vmem:[#allocation2 + $0xa8] sm:$0xff] }
 0x29a   : > { %v5055_v33 = vadd.f32 %v4799_v23, %v4261_v20  ;;  %v6391_v15 = vsel %vm6121_vm8, %v9009_v46, 0.0  ;;  %vm845_vm10 = vcmp.eq.s32.totalorder %v9727_v17, %v8918_v62  ;;  %v1111_v61 = vsel %vm841_vm9, %v8929_v34, 0.0 }
 0x29b   : > { %v5849_v26 = vadd.f32 %v5593_v43, %v5051_v29  ;;  %v1115_v38 = vsel %vm845_vm10, %v8929_v34, 0.0  ;;  %vm1391_vm11 = vcmp.eq.s32.totalorder %v9722_v60, %v8931_v21  ;;  %vm1395_vm12 = vcmp.eq.s32.totalorder %v9727_v17, %v8931_v21 }
 0x29c   : > { %v5853_v16 = vadd.f32 %v5597_v42, %v5055_v33  ;;  %v1661_v32 = vsel %vm1391_vm11, %v8933_v31, 0.0  ;;  %v1665_v53 = vsel %vm1395_vm12, %v8933_v31, 0.0  ;;  %vm2201_vm13 = vcmp.eq.s32.totalorder %v9722_v60, %v8935_v49 }
 0x29d   : > { %v6643_v41 = vadd.f32 %v6387_v39, %v5849_v26  ;;  %v1917_v25 = vadd.f32 %v1661_v32, %v1111_v61  ;;  %v1921_v52 = vadd.f32 %v1665_v53, %v1115_v38  ;;  %vm2205_vm14 = vcmp.eq.s32.totalorder %v9727_v17, %v8935_v49 }
 0x29e   : > { %v6647_v51 = vadd.f32 %v6391_v15, %v5853_v16  ;;  %v2471_v24 = vsel %vm2201_vm13, %v8949_v8, 0.0  ;;  %v2475_v57 = vsel %vm2205_vm14, %v8949_v8, 0.0  ;;  %vm2995_vm15 = vcmp.eq.s32.totalorder %v9722_v60, %v8959_v3 }
 0x29f   : > { %v2727_v47 = vadd.f32 %v2471_v24, %v1917_v25  ;;  %v2731_v12 = vadd.f32 %v2475_v57, %v1921_v52  ;;  %vm2999_vm0 = vcmp.eq.s32.totalorder %v9727_v17, %v8959_v3  ;;  %v3265_v13 = vsel %vm2995_vm15, %v8961_v18, 0.0 }
 0x2a0   : > { %v6842_v50 = vpack.c.bf16 %v6647_v51, %v6643_v41  ;;  %v3269_v59 = vsel %vm2999_vm0, %v8961_v18, 0.0  ;;  %vm3795_vm1 = vcmp.eq.s32.totalorder %v9722_v60, %v8963_v55  ;;  %vm3799_vm2 = vcmp.eq.s32.totalorder %v9727_v17, %v8963_v55 }
 0x2a1   : > { %v3521_v58 = vadd.f32 %v3265_v13, %v2727_v47  ;;  %v3525_v1 = vadd.f32 %v3269_v59, %v2731_v12  ;;  %v4065_v0 = vsel %vm3795_vm1, %v8965_v63, 0.0  ;;  %v4069_v22 = vsel %vm3799_vm2, %v8965_v63, 0.0 }
 0x2a2   : > { %6975 = vmatpush.bf16.msrb.mxu2 %v6842_v50  ;;  %vm4589_vm3 = vcmp.eq.s32.totalorder %v9722_v60, %v8967_v45  ;;  %vm4593_vm4 = vcmp.eq.s32.totalorder %v9727_v17, %v8967_v45  ;;  %vm5387_vm5 = vcmp.eq.s32.totalorder %v9722_v60, %v8989_v30  ;;  %vm5391_vm6 = vcmp.eq.s32.totalorder %v9727_v17, %v8989_v30 }
 0x2a3   : > { %v4321_v9 = vadd.f32 %v4065_v0, %v3521_v58  ;;  %v4325_v37 = vadd.f32 %v4069_v22, %v3525_v1  ;;  %v4859_v19 = vsel %vm4589_vm3, %v8969_v56, 0.0  ;;  %v4863_v48 = vsel %vm4593_vm4, %v8969_v56, 0.0  ;;  %v9830_v1 = vld [vmem:[#allocation2 + $0x288] sm:$0xff] }
 0x2a4   : > { %v5657_v40 = vsel %vm5387_vm5, %v8991_v11, 0.0  ;;  %v5661_v6 = vsel %vm5391_vm6, %v8991_v11, 0.0  ;;  %vm6181_vm7 = vcmp.eq.s32.totalorder %v9722_v60, %v9007_v44  ;;  %vm6185_vm8 = vcmp.eq.s32.totalorder %v9727_v17, %v9007_v44  ;;  %v9832_v0 = vld [vmem:[#allocation2 + $0x2a8] sm:$0xff] }
 0x2a5   : > { %v5115_v23 = vadd.f32 %v4859_v19, %v4321_v9  ;;  %v5119_v20 = vadd.f32 %v4863_v48, %v4325_v37  ;;  %v6451_v43 = vsel %vm6181_vm7, %v9009_v46, 0.0  ;;  %v6455_v42 = vsel %vm6185_vm8, %v9009_v46, 0.0 }
 0x2a6   : > { %v9787_v29 = vpack.c.bf16 %v6756_v2, %v6756_v2  ;;  %v9789_v39 = vpack.c.bf16 %v6753_v27, %v6753_v27  ;;  %v9791_v33 = vpack.c.bf16 %v6754_v36, %v6754_v36  ;;  %vm641_vm9 = vcmp.eq.s32.totalorder %v9775_v54, %v8918_v62 }
 0x2a7   : > { %v5913_v60 = vadd.f32 %v5657_v40, %v5115_v23  ;;  %v5917_v15 = vadd.f32 %v5661_v6, %v5119_v20  ;;  %vm645_vm10 = vcmp.eq.s32.totalorder %v9783_v28, %v8918_v62  ;;  %v911_v17 = vsel %vm641_vm9, %v8929_v34, 0.0 }
 0x2a8   : > { %6940 = vmatmul.bf16.vlgmr.msra.gmra.mxu3 %v9787_v29  ;;  %6901 = vmatmul.bf16.vlgmr.msra.gmra.mxu0 %v9789_v39  ;;  %v915_v61 = vsel %vm645_vm10, %v8929_v34, 0.0  ;;  %vm1191_vm11 = vcmp.eq.s32.totalorder %v9775_v54, %v8931_v21  ;;  %vm1195_vm12 = vcmp.eq.s32.totalorder %v9783_v28, %v8931_v21  ;;  %vm2001_vm13 = vcmp.eq.s32.totalorder %v9775_v54, %v8935_v49 }
 0x2a9   : > { %v6707_v26 = vadd.f32 %v6451_v43, %v5913_v60  ;;  %v6711_v38 = vadd.f32 %v6455_v42, %v5917_v15  ;;  %6914 = vmatmul.bf16.vlgmr.msra.gmra.mxu1 %v9791_v33  ;;  %v1461_v16 = vsel %vm1191_vm11, %v8933_v31, 0.0  ;;  %v1465_v32 = vsel %vm1195_vm12, %v8933_v31, 0.0 }
 0x2aa   : > { %v1717_v53 = vadd.f32 %v1461_v16, %v911_v17  ;;  %v1721_v41 = vadd.f32 %v1465_v32, %v915_v61  ;;  %vm2005_vm14 = vcmp.eq.s32.totalorder %v9783_v28, %v8935_v49  ;;  %v2271_v25 = vsel %vm2001_vm13, %v8949_v8, 0.0 }
 0x2ab   : > { %v6874_v52 = vpack.c.bf16 %v6711_v38, %v6707_v26  ;;  %v2275_v51 = vsel %vm2005_vm14, %v8949_v8, 0.0  ;;  %vm2795_vm15 = vcmp.eq.s32.totalorder %v9775_v54, %v8959_v3  ;;  %vm2799_vm0 = vcmp.eq.s32.totalorder %v9783_v28, %v8959_v3 }
 0x2ac   : > { %v2527_v24 = vadd.f32 %v2271_v25, %v1717_v53  ;;  %v2531_v57 = vadd.f32 %v2275_v51, %v1721_v41  ;;  %v3065_v47 = vsel %vm2795_vm15, %v8961_v18, 0.0  ;;  %v3069_v12 = vsel %vm2799_vm0, %v8961_v18, 0.0 }
 0x2ad   : > { %6988 = vmatpush.bf16.msrb.mxu3 %v6874_v52  ;;  %vm3595_vm1 = vcmp.eq.s32.totalorder %v9775_v54, %v8963_v55  ;;  %vm3599_vm2 = vcmp.eq.s32.totalorder %v9783_v28, %v8963_v55  ;;  %vm4389_vm3 = vcmp.eq.s32.totalorder %v9775_v54, %v8967_v45  ;;  %vm4393_vm4 = vcmp.eq.s32.totalorder %v9783_v28, %v8967_v45 }
 0x2ae   : > { %v3321_v13 = vadd.f32 %v3065_v47, %v2527_v24  ;;  %v3325_v50 = vadd.f32 %v3069_v12, %v2531_v57  ;;  %v3865_v59 = vsel %vm3595_vm1, %v8965_v63, 0.0  ;;  %v3869_v58 = vsel %vm3599_vm2, %v8965_v63, 0.0 }
 0x2af   : > { %v4659_v22 = vsel %vm4389_vm3, %v8969_v56, 0.0  ;;  %v4663_v2 = vsel %vm4393_vm4, %v8969_v56, 0.0  ;;  %vm5187_vm5 = vcmp.eq.s32.totalorder %v9775_v54, %v8989_v30  ;;  %vm5191_vm6 = vcmp.eq.s32.totalorder %v9783_v28, %v8989_v30 }
 0x2b0   : > { %v4121_v27 = vadd.f32 %v3865_v59, %v3321_v13  ;;  %v4125_v9 = vadd.f32 %v3869_v58, %v3325_v50  ;;  %v5457_v37 = vsel %vm5187_vm5, %v8991_v11, 0.0  ;;  %v5461_v19 = vsel %vm5191_vm6, %v8991_v11, 0.0  ;;  %v471_v59 = vld [vmem:[#allocation2 + $0x488] sm:$0xff] }
 0x2b1   : > { %vm5981_vm7 = vcmp.eq.s32.totalorder %v9775_v54, %v9007_v44  ;;  %vm5985_vm8 = vcmp.eq.s32.totalorder %v9783_v28, %v9007_v44  ;;  %vm705_vm9 = vcmp.eq.s32.totalorder %v9830_v1, %v8918_v62  ;;  %vm709_vm10 = vcmp.eq.s32.totalorder %v9832_v0, %v8918_v62  ;;  %v475_v58 = vld [vmem:[#allocation2 + $0x4a8] sm:$0xff] }
 0x2b2   : > { %v4915_v48 = vadd.f32 %v4659_v22, %v4121_v27  ;;  %v4919_v36 = vadd.f32 %v4663_v2, %v4125_v9  ;;  %v6251_v40 = vsel %vm5981_vm7, %v9009_v46, 0.0  ;;  %v6255_v6 = vsel %vm5985_vm8, %v9009_v46, 0.0 }
 0x2b3   : > { %v975_v23 = vsel %vm705_vm9, %v8929_v34, 0.0  ;;  %v979_v20 = vsel %vm709_vm10, %v8929_v34, 0.0  ;;  %vm1255_vm11 = vcmp.eq.s32.totalorder %v9830_v1, %v8931_v21  ;;  %vm1259_vm12 = vcmp.eq.s32.totalorder %v9832_v0, %v8931_v21 }
 0x2b4   : > { %v5713_v54 = vadd.f32 %v5457_v37, %v4915_v48  ;;  %v5717_v28 = vadd.f32 %v5461_v19, %v4919_v36  ;;  %v1525_v43 = vsel %vm1255_vm11, %v8933_v31, 0.0  ;;  %v1529_v42 = vsel %vm1259_vm12, %v8933_v31, 0.0 }
 0x2b5   : > { %v1781_v60 = vadd.f32 %v1525_v43, %v975_v23  ;;  %v1785_v15 = vadd.f32 %v1529_v42, %v979_v20  ;;  %vm2065_vm13 = vcmp.eq.s32.totalorder %v9830_v1, %v8935_v49  ;;  %vm2069_vm14 = vcmp.eq.s32.totalorder %v9832_v0, %v8935_v49 }
 0x2b6   : > { %v6507_v17 = vadd.f32 %v6251_v40, %v5713_v54  ;;  %v6511_v61 = vadd.f32 %v6255_v6, %v5717_v28  ;;  %v2335_v26 = vsel %vm2065_vm13, %v8949_v8, 0.0  ;;  %v2339_v38 = vsel %vm2069_vm14, %v8949_v8, 0.0 }
 0x2b7   : > { %v2591_v16 = vadd.f32 %v2335_v26, %v1781_v60  ;;  %v2595_v32 = vadd.f32 %v2339_v38, %v1785_v15  ;;  %vm2859_vm15 = vcmp.eq.s32.totalorder %v9830_v1, %v8959_v3  ;;  %vm2863_vm0 = vcmp.eq.s32.totalorder %v9832_v0, %v8959_v3 }
 0x2b8   : > { %v6774_v53 = vpack.c.bf16 %v6511_v61, %v6507_v17  ;;  %v3129_v41 = vsel %vm2859_vm15, %v8961_v18, 0.0  ;;  %v3133_v25 = vsel %vm2863_vm0, %v8961_v18, 0.0  ;;  %vm3659_vm1 = vcmp.eq.s32.totalorder %v9830_v1, %v8963_v55 }
 0x2b9   : > { %v3385_v52 = vadd.f32 %v3129_v41, %v2591_v16  ;;  %v3389_v51 = vadd.f32 %v3133_v25, %v2595_v32  ;;  %vm3663_vm2 = vcmp.eq.s32.totalorder %v9832_v0, %v8963_v55  ;;  %v3929_v24 = vsel %vm3659_vm1, %v8965_v63, 0.0  ;;  %v9920_v25 = vld [vmem:[#allocation2 + $0x688] sm:$0xff] }
 0x2ba   : > { %6950 = vmatpush.bf16.msrb.mxu0 %v6774_v53  ;;  %v3933_v57 = vsel %vm3663_vm2, %v8965_v63, 0.0  ;;  %vm4453_vm3 = vcmp.eq.s32.totalorder %v9830_v1, %v8967_v45  ;;  %vm4457_vm4 = vcmp.eq.s32.totalorder %v9832_v0, %v8967_v45  ;;  %vm5251_vm5 = vcmp.eq.s32.totalorder %v9830_v1, %v8989_v30 }
 0x2bb   : > { %v4185_v47 = vadd.f32 %v3929_v24, %v3385_v52  ;;  %v4189_v12 = vadd.f32 %v3933_v57, %v3389_v51  ;;  %v4723_v13 = vsel %vm4453_vm3, %v8969_v56, 0.0  ;;  %v4727_v50 = vsel %vm4457_vm4, %v8969_v56, 0.0  ;;  %v539_v57 = vld [vmem:[#allocation2 + $0x6a8] sm:$0xff] }
 0x2bc   : > { %vm5255_vm6 = vcmp.eq.s32.totalorder %v9832_v0, %v8989_v30  ;;  %v5521_v22 = vsel %vm5251_vm5, %v8991_v11, 0.0  ;;  %vm6045_vm7 = vcmp.eq.s32.totalorder %v9830_v1, %v9007_v44  ;;  %vm6049_vm8 = vcmp.eq.s32.totalorder %v9832_v0, %v9007_v44 }
 0x2bd   : > { %v4979_v2 = vadd.f32 %v4723_v13, %v4185_v47  ;;  %v4983_v27 = vadd.f32 %v4727_v50, %v4189_v12  ;;  %v5525_v9 = vsel %vm5255_vm6, %v8991_v11, 0.0  ;;  %v6315_v37 = vsel %vm6045_vm7, %v9009_v46, 0.0 }
 0x2be   : > { %v6319_v19 = vsel %vm6049_vm8, %v9009_v46, 0.0  ;;  %vm769_vm9 = vcmp.eq.s32.totalorder %v471_v59, %v8918_v62  ;;  %vm773_vm10 = vcmp.eq.s32.totalorder %v475_v58, %v8918_v62  ;;  %vm1319_vm11 = vcmp.eq.s32.totalorder %v471_v59, %v8931_v21 }
 0x2bf   : > { %v5777_v48 = vadd.f32 %v5521_v22, %v4979_v2  ;;  %v5781_v36 = vadd.f32 %v5525_v9, %v4983_v27  ;;  %v1039_v1 = vsel %vm769_vm9, %v8929_v34, 0.0  ;;  %v1043_v0 = vsel %vm773_vm10, %v8929_v34, 0.0 }
 0x2c0   : > { %vm1323_vm12 = vcmp.eq.s32.totalorder %v475_v58, %v8931_v21  ;;  %v1589_v40 = vsel %vm1319_vm11, %v8933_v31, 0.0  ;;  %vm2129_vm13 = vcmp.eq.s32.totalorder %v471_v59, %v8935_v49  ;;  %vm2133_vm14 = vcmp.eq.s32.totalorder %v475_v58, %v8935_v49 }
 0x2c1   : > { %v6571_v6 = vadd.f32 %v6315_v37, %v5777_v48  ;;  %v6575_v23 = vadd.f32 %v6319_v19, %v5781_v36  ;;  %v1593_v20 = vsel %vm1323_vm12, %v8933_v31, 0.0  ;;  %v1845_v54 = vadd.f32 %v1589_v40, %v1039_v1 }
 0x2c2   : > { %v1849_v28 = vadd.f32 %v1593_v20, %v1043_v0  ;;  %v2399_v43 = vsel %vm2129_vm13, %v8949_v8, 0.0  ;;  %v2403_v42 = vsel %vm2133_vm14, %v8949_v8, 0.0  ;;  %vm2923_vm15 = vcmp.eq.s32.totalorder %v471_v59, %v8959_v3 }
 0x2c3   : > { %v6806_v60 = vpack.c.bf16 %v6575_v23, %v6571_v6  ;;  %v2655_v15 = vadd.f32 %v2399_v43, %v1845_v54  ;;  %vm2927_vm0 = vcmp.eq.s32.totalorder %v475_v58, %v8959_v3  ;;  %v3193_v17 = vsel %vm2923_vm15, %v8961_v18, 0.0 }
 0x2c4   : > { %v2659_v61 = vadd.f32 %v2403_v42, %v1849_v28  ;;  %v3197_v26 = vsel %vm2927_vm0, %v8961_v18, 0.0  ;;  %vm3723_vm1 = vcmp.eq.s32.totalorder %v471_v59, %v8963_v55  ;;  %vm3727_vm2 = vcmp.eq.s32.totalorder %v475_v58, %v8963_v55 }
 0x2c5   : > { %6963 = vmatpush.bf16.msrb.mxu1 %v6806_v60  ;;  %v3449_v38 = vadd.f32 %v3193_v17, %v2655_v15  ;;  %v3993_v16 = vsel %vm3723_vm1, %v8965_v63, 0.0  ;;  %v3997_v32 = vsel %vm3727_vm2, %v8965_v63, 0.0  ;;  %vm4517_vm3 = vcmp.eq.s32.totalorder %v471_v59, %v8967_v45 }
 0x2c6   : > { %v3453_v53 = vadd.f32 %v3197_v26, %v2659_v61  ;;  %vm4521_vm4 = vcmp.eq.s32.totalorder %v475_v58, %v8967_v45  ;;  %v4787_v41 = vsel %vm4517_vm3, %v8969_v56, 0.0  ;;  %vm5315_vm5 = vcmp.eq.s32.totalorder %v471_v59, %v8989_v30 }
 0x2c7   : > { %v4249_v52 = vadd.f32 %v3993_v16, %v3449_v38  ;;  %v4791_v51 = vsel %vm4521_vm4, %v8969_v56, 0.0  ;;  %vm5319_vm6 = vcmp.eq.s32.totalorder %v475_v58, %v8989_v30  ;;  %v5585_v24 = vsel %vm5315_vm5, %v8991_v11, 0.0  ;;  %v335_v38 = vld [vmem:[#allocation2 + $0x48] sm:$0xff] }
 0x2c8   : > { %v4253_v47 = vadd.f32 %v3997_v32, %v3453_v53  ;;  %v5589_v12 = vsel %vm5319_vm6, %v8991_v11, 0.0  ;;  %vm6109_vm7 = vcmp.eq.s32.totalorder %v471_v59, %v9007_v44  ;;  %vm6113_vm8 = vcmp.eq.s32.totalorder %v475_v58, %v9007_v44 }
 0x2c9   : > { %v5043_v13 = vadd.f32 %v4787_v41, %v4249_v52  ;;  %v6379_v50 = vsel %vm6109_vm7, %v9009_v46, 0.0  ;;  %v6383_v22 = vsel %vm6113_vm8, %v9009_v46, 0.0  ;;  %vm833_vm9 = vcmp.eq.s32.totalorder %v9920_v25, %v8918_v62  ;;  %v339_v41 = vld [vmem:[#allocation2 + $0x68] sm:$0xff] }
 0x2ca   : > { %v5047_v2 = vadd.f32 %v4791_v51, %v4253_v47  ;;  %vm837_vm10 = vcmp.eq.s32.totalorder %v539_v57, %v8918_v62  ;;  %v1103_v27 = vsel %vm833_vm9, %v8929_v34, 0.0  ;;  %vm1383_vm11 = vcmp.eq.s32.totalorder %v9920_v25, %v8931_v21 }
 0x2cb   : > { %v5841_v9 = vadd.f32 %v5585_v24, %v5043_v13  ;;  %v1107_v59 = vsel %vm837_vm10, %v8929_v34, 0.0  ;;  %vm1387_vm12 = vcmp.eq.s32.totalorder %v539_v57, %v8931_v21  ;;  %v1653_v58 = vsel %vm1383_vm11, %v8933_v31, 0.0 }
 0x2cc   : > { %v5845_v37 = vadd.f32 %v5589_v12, %v5047_v2  ;;  %v1657_v19 = vsel %vm1387_vm12, %v8933_v31, 0.0  ;;  %v1909_v48 = vadd.f32 %v1653_v58, %v1103_v27  ;;  %vm2193_vm13 = vcmp.eq.s32.totalorder %v9920_v25, %v8935_v49 }
 0x2cd   : > { %v6635_v36 = vadd.f32 %v6379_v50, %v5841_v9  ;;  %v1913_v1 = vadd.f32 %v1657_v19, %v1107_v59  ;;  %vm2197_vm14 = vcmp.eq.s32.totalorder %v539_v57, %v8935_v49  ;;  %v2463_v0 = vsel %vm2193_vm13, %v8949_v8, 0.0 }
 0x2ce   : > { %v6639_v40 = vadd.f32 %v6383_v22, %v5845_v37  ;;  %v2467_v6 = vsel %vm2197_vm14, %v8949_v8, 0.0  ;;  %v2719_v23 = vadd.f32 %v2463_v0, %v1909_v48  ;;  %vm2987_vm15 = vcmp.eq.s32.totalorder %v9920_v25, %v8959_v3 }
 0x2cf   : > { %v2723_v20 = vadd.f32 %v2467_v6, %v1913_v1  ;;  %vm2991_vm0 = vcmp.eq.s32.totalorder %v539_v57, %v8959_v3  ;;  %v3257_v54 = vsel %vm2987_vm15, %v8961_v18, 0.0  ;;  %vm3787_vm1 = vcmp.eq.s32.totalorder %v9920_v25, %v8963_v55 }
 0x2d0   : > { %v6838_v28 = vpack.c.bf16 %v6639_v40, %v6635_v36  ;;  %v3261_v43 = vsel %vm2991_vm0, %v8961_v18, 0.0  ;;  %v3513_v42 = vadd.f32 %v3257_v54, %v2719_v23  ;;  %vm3791_vm2 = vcmp.eq.s32.totalorder %v539_v57, %v8963_v55 }
 0x2d1   : > { %v3517_v60 = vadd.f32 %v3261_v43, %v2723_v20  ;;  %v4057_v15 = vsel %vm3787_vm1, %v8965_v63, 0.0  ;;  %v4061_v17 = vsel %vm3791_vm2, %v8965_v63, 0.0  ;;  %vm4581_vm3 = vcmp.eq.s32.totalorder %v9920_v25, %v8967_v45 }
 0x2d2   : > { %6976 = vmatpush.bf16.msrb.mxu2 %v6838_v28  ;;  %v4313_v61 = vadd.f32 %v4057_v15, %v3513_v42  ;;  %vm4585_vm4 = vcmp.eq.s32.totalorder %v539_v57, %v8967_v45  ;;  %v4851_v26 = vsel %vm4581_vm3, %v8969_v56, 0.0  ;;  %vm5379_vm5 = vcmp.eq.s32.totalorder %v9920_v25, %v8989_v30  ;;  %v403_v15 = vld [vmem:[#allocation2 + $0x268] sm:$0xff] }
 0x2d3   : > { %v4317_v16 = vadd.f32 %v4061_v17, %v3517_v60  ;;  %v4855_v32 = vsel %vm4585_vm4, %v8969_v56, 0.0  ;;  %vm5383_vm6 = vcmp.eq.s32.totalorder %v539_v57, %v8989_v30  ;;  %v5649_v53 = vsel %vm5379_vm5, %v8991_v11, 0.0  ;;  %v399_v60 = vld [vmem:[#allocation2 + $0x248] sm:$0xff] }
 0x2d4   : > { %v5107_v52 = vadd.f32 %v4851_v26, %v4313_v61  ;;  %v5653_v51 = vsel %vm5383_vm6, %v8991_v11, 0.0  ;;  %vm6173_vm7 = vcmp.eq.s32.totalorder %v9920_v25, %v9007_v44  ;;  %vm6177_vm8 = vcmp.eq.s32.totalorder %v539_v57, %v9007_v44 }
 0x2d5   : > { %v5111_v24 = vadd.f32 %v4855_v32, %v4317_v16  ;;  %v6443_v47 = vsel %vm6173_vm7, %v9009_v46, 0.0  ;;  %v6447_v12 = vsel %vm6177_vm8, %v9009_v46, 0.0  ;;  %vm633_vm9 = vcmp.eq.s32.totalorder %v335_v38, %v8918_v62 }
 0x2d6   : > { %v5905_v13 = vadd.f32 %v5649_v53, %v5107_v52  ;;  %vm637_vm10 = vcmp.eq.s32.totalorder %v339_v41, %v8918_v62  ;;  %v903_v50 = vsel %vm633_vm9, %v8929_v34, 0.0  ;;  %vm1183_vm11 = vcmp.eq.s32.totalorder %v335_v38, %v8931_v21 }
 0x2d7   : > { %v5909_v22 = vadd.f32 %v5653_v51, %v5111_v24  ;;  %v907_v2 = vsel %vm637_vm10, %v8929_v34, 0.0  ;;  %vm1187_vm12 = vcmp.eq.s32.totalorder %v339_v41, %v8931_v21  ;;  %v1453_v25 = vsel %vm1183_vm11, %v8933_v31, 0.0 }
 0x2d8   : > { %v6699_v57 = vadd.f32 %v6443_v47, %v5905_v13  ;;  %v1457_v27 = vsel %vm1187_vm12, %v8933_v31, 0.0  ;;  %v1709_v9 = vadd.f32 %v1453_v25, %v903_v50  ;;  %vm1993_vm13 = vcmp.eq.s32.totalorder %v335_v38, %v8935_v49 }
 0x2d9   : > { %v6703_v59 = vadd.f32 %v6447_v12, %v5909_v22  ;;  %v1713_v58 = vadd.f32 %v1457_v27, %v907_v2  ;;  %vm1997_vm14 = vcmp.eq.s32.totalorder %v339_v41, %v8935_v49  ;;  %v2263_v37 = vsel %vm1993_vm13, %v8949_v8, 0.0 }
 0x2da   : > { %v2267_v19 = vsel %vm1997_vm14, %v8949_v8, 0.0  ;;  %v2519_v48 = vadd.f32 %v2263_v37, %v1709_v9  ;;  %vm2787_vm15 = vcmp.eq.s32.totalorder %v335_v38, %v8959_v3  ;;  %vm2791_vm0 = vcmp.eq.s32.totalorder %v339_v41, %v8959_v3 }
 0x2db   : > { %v6870_v36 = vpack.c.bf16 %v6703_v59, %v6699_v57  ;;  %v2523_v1 = vadd.f32 %v2267_v19, %v1713_v58  ;;  %v3057_v0 = vsel %vm2787_vm15, %v8961_v18, 0.0  ;;  %v3061_v40 = vsel %vm2791_vm0, %v8961_v18, 0.0 }
 0x2dc   : > { %v3313_v6 = vadd.f32 %v3057_v0, %v2519_v48  ;;  %vm3587_vm1 = vcmp.eq.s32.totalorder %v335_v38, %v8963_v55  ;;  %vm3591_vm2 = vcmp.eq.s32.totalorder %v339_v41, %v8963_v55  ;;  %vm4381_vm3 = vcmp.eq.s32.totalorder %v335_v38, %v8967_v45 }
 0x2dd   : > { %6989 = vmatpush.bf16.msrb.mxu3 %v6870_v36  ;;  %v3317_v23 = vadd.f32 %v3061_v40, %v2523_v1  ;;  %v3857_v20 = vsel %vm3587_vm1, %v8965_v63, 0.0  ;;  %v3861_v54 = vsel %vm3591_vm2, %v8965_v63, 0.0  ;;  %vm4385_vm4 = vcmp.eq.s32.totalorder %v339_v41, %v8967_v45  ;;  %v10025_v40 = vld [vmem:[#allocation2 + $0x448] sm:$0xff] }
 0x2de   : > { %v4113_v28 = vadd.f32 %v3857_v20, %v3313_v6  ;;  %v4651_v43 = vsel %vm4381_vm3, %v8969_v56, 0.0  ;;  %v4655_v42 = vsel %vm4385_vm4, %v8969_v56, 0.0  ;;  %vm5179_vm5 = vcmp.eq.s32.totalorder %v335_v38, %v8989_v30  ;;  %v467_v20 = vld [vmem:[#allocation2 + $0x468] sm:$0xff] }
 0x2df   : > { %v4117_v17 = vadd.f32 %v3861_v54, %v3317_v23  ;;  %vm5183_vm6 = vcmp.eq.s32.totalorder %v339_v41, %v8989_v30  ;;  %v5449_v61 = vsel %vm5179_vm5, %v8991_v11, 0.0  ;;  %vm5973_vm7 = vcmp.eq.s32.totalorder %v335_v38, %v9007_v44 }
 0x2e0   : > { %v4907_v26 = vadd.f32 %v4651_v43, %v4113_v28  ;;  %v5453_v16 = vsel %vm5183_vm6, %v8991_v11, 0.0  ;;  %vm5977_vm8 = vcmp.eq.s32.totalorder %v339_v41, %v9007_v44  ;;  %v6243_v32 = vsel %vm5973_vm7, %v9009_v46, 0.0 }
 0x2e1   : > { %v4911_v53 = vadd.f32 %v4655_v42, %v4117_v17  ;;  %v6247_v52 = vsel %vm5977_vm8, %v9009_v46, 0.0  ;;  %vm697_vm9 = vcmp.eq.s32.totalorder %v399_v60, %v8918_v62  ;;  %vm701_vm10 = vcmp.eq.s32.totalorder %v403_v15, %v8918_v62 }
 0x2e2   : > { %v5705_v51 = vadd.f32 %v5449_v61, %v4907_v26  ;;  %v967_v24 = vsel %vm697_vm9, %v8929_v34, 0.0  ;;  %v971_v47 = vsel %vm701_vm10, %v8929_v34, 0.0  ;;  %vm1247_vm11 = vcmp.eq.s32.totalorder %v399_v60, %v8931_v21 }
 0x2e3   : > { %v5709_v38 = vadd.f32 %v5453_v16, %v4911_v53  ;;  %vm1251_vm12 = vcmp.eq.s32.totalorder %v403_v15, %v8931_v21  ;;  %v1517_v41 = vsel %vm1247_vm11, %v8933_v31, 0.0  ;;  %vm2057_vm13 = vcmp.eq.s32.totalorder %v399_v60, %v8935_v49 }
 0x2e4   : > { %v6499_v12 = vadd.f32 %v6243_v32, %v5705_v51  ;;  %v1521_v13 = vsel %vm1251_vm12, %v8933_v31, 0.0  ;;  %v1773_v50 = vadd.f32 %v1517_v41, %v967_v24  ;;  %vm2061_vm14 = vcmp.eq.s32.totalorder %v403_v15, %v8935_v49 }
 0x2e5   : > { %v6503_v22 = vadd.f32 %v6247_v52, %v5709_v38  ;;  %v1777_v2 = vadd.f32 %v1521_v13, %v971_v47  ;;  %v2327_v25 = vsel %vm2057_vm13, %v8949_v8, 0.0  ;;  %v2331_v57 = vsel %vm2061_vm14, %v8949_v8, 0.0 }
 0x2e6   : > { %v2583_v27 = vadd.f32 %v2327_v25, %v1773_v50  ;;  %vm2851_vm15 = vcmp.eq.s32.totalorder %v399_v60, %v8959_v3  ;;  %vm2855_vm0 = vcmp.eq.s32.totalorder %v403_v15, %v8959_v3  ;;  %vm3651_vm1 = vcmp.eq.s32.totalorder %v399_v60, %v8963_v55 }
 0x2e7   : > { %v6770_v9 = vpack.c.bf16 %v6503_v22, %v6499_v12  ;;  %v2587_v59 = vadd.f32 %v2331_v57, %v1777_v2  ;;  %v3121_v58 = vsel %vm2851_vm15, %v8961_v18, 0.0  ;;  %v3125_v37 = vsel %vm2855_vm0, %v8961_v18, 0.0 }
 0x2e8   : > { %v3377_v19 = vadd.f32 %v3121_v58, %v2583_v27  ;;  %vm3655_vm2 = vcmp.eq.s32.totalorder %v403_v15, %v8963_v55  ;;  %v3921_v48 = vsel %vm3651_vm1, %v8965_v63, 0.0  ;;  %vm4445_vm3 = vcmp.eq.s32.totalorder %v399_v60, %v8967_v45 }
 0x2e9   : > { %6951 = vmatpush.bf16.msrb.mxu0 %v6770_v9  ;;  %v3381_v36 = vadd.f32 %v3125_v37, %v2587_v59  ;;  %v3925_v1 = vsel %vm3655_vm2, %v8965_v63, 0.0  ;;  %vm4449_vm4 = vcmp.eq.s32.totalorder %v403_v15, %v8967_v45  ;;  %v4715_v0 = vsel %vm4445_vm3, %v8969_v56, 0.0 }
 0x2ea   : > { %v4177_v6 = vadd.f32 %v3921_v48, %v3377_v19  ;;  %v4719_v23 = vsel %vm4449_vm4, %v8969_v56, 0.0  ;;  %vm5243_vm5 = vcmp.eq.s32.totalorder %v399_v60, %v8989_v30  ;;  %vm5247_vm6 = vcmp.eq.s32.totalorder %v403_v15, %v8989_v30 }
 0x2eb   : > { %v4181_v54 = vadd.f32 %v3925_v1, %v3381_v36  ;;  %v5513_v28 = vsel %vm5243_vm5, %v8991_v11, 0.0  ;;  %v5517_v43 = vsel %vm5247_vm6, %v8991_v11, 0.0  ;;  %vm6037_vm7 = vcmp.eq.s32.totalorder %v399_v60, %v9007_v44  ;;  %v527_v36 = vld [vmem:[#allocation2 + $0x648] sm:$0xff] }
 0x2ec   : > { %v4971_v42 = vadd.f32 %v4715_v0, %v4177_v6  ;;  %vm6041_vm8 = vcmp.eq.s32.totalorder %v403_v15, %v9007_v44  ;;  %v6307_v17 = vsel %vm6037_vm7, %v9009_v46, 0.0  ;;  %vm761_vm9 = vcmp.eq.s32.totalorder %v10025_v40, %v8918_v62  ;;  %v531_v1 = vld [vmem:[#allocation2 + $0x668] sm:$0xff] }
 0x2ed   : > { %v4975_v61 = vadd.f32 %v4719_v23, %v4181_v54  ;;  %v6311_v26 = vsel %vm6041_vm8, %v9009_v46, 0.0  ;;  %vm765_vm10 = vcmp.eq.s32.totalorder %v467_v20, %v8918_v62  ;;  %v1031_v16 = vsel %vm761_vm9, %v8929_v34, 0.0 }
 0x2ee   : > { %v5769_v32 = vadd.f32 %v5513_v28, %v4971_v42  ;;  %v1035_v53 = vsel %vm765_vm10, %v8929_v34, 0.0  ;;  %vm1311_vm11 = vcmp.eq.s32.totalorder %v10025_v40, %v8931_v21  ;;  %vm1315_vm12 = vcmp.eq.s32.totalorder %v467_v20, %v8931_v21 }
 0x2ef   : > { %v5773_v60 = vadd.f32 %v5517_v43, %v4975_v61  ;;  %v1581_v15 = vsel %vm1311_vm11, %v8933_v31, 0.0  ;;  %v1585_v52 = vsel %vm1315_vm12, %v8933_v31, 0.0  ;;  %vm2121_vm13 = vcmp.eq.s32.totalorder %v10025_v40, %v8935_v49 }
 0x2f0   : > { %v6563_v51 = vadd.f32 %v6307_v17, %v5769_v32  ;;  %v1837_v24 = vadd.f32 %v1581_v15, %v1031_v16  ;;  %v1841_v47 = vadd.f32 %v1585_v52, %v1035_v53  ;;  %vm2125_vm14 = vcmp.eq.s32.totalorder %v467_v20, %v8935_v49 }
 0x2f1   : > { %v6567_v38 = vadd.f32 %v6311_v26, %v5773_v60  ;;  %v2391_v41 = vsel %vm2121_vm13, %v8949_v8, 0.0  ;;  %v2395_v12 = vsel %vm2125_vm14, %v8949_v8, 0.0  ;;  %vm2915_vm15 = vcmp.eq.s32.totalorder %v10025_v40, %v8959_v3 }
 0x2f2   : > { %v2647_v13 = vadd.f32 %v2391_v41, %v1837_v24  ;;  %v2651_v50 = vadd.f32 %v2395_v12, %v1841_v47  ;;  %vm2919_vm0 = vcmp.eq.s32.totalorder %v467_v20, %v8959_v3  ;;  %v3185_v22 = vsel %vm2915_vm15, %v8961_v18, 0.0 }
 0x2f3   : > { %v6802_v2 = vpack.c.bf16 %v6567_v38, %v6563_v51  ;;  %v3189_v25 = vsel %vm2919_vm0, %v8961_v18, 0.0  ;;  %vm3715_vm1 = vcmp.eq.s32.totalorder %v10025_v40, %v8963_v55  ;;  %vm3719_vm2 = vcmp.eq.s32.totalorder %v467_v20, %v8963_v55 }
 0x2f4   : > { %v3441_v57 = vadd.f32 %v3185_v22, %v2647_v13  ;;  %v3445_v27 = vadd.f32 %v3189_v25, %v2651_v50  ;;  %v3985_v9 = vsel %vm3715_vm1, %v8965_v63, 0.0  ;;  %v3989_v59 = vsel %vm3719_vm2, %v8965_v63, 0.0 }
 0x2f5   : > { %6964 = vmatpush.bf16.msrb.mxu1 %v6802_v2  ;;  %vm4509_vm3 = vcmp.eq.s32.totalorder %v10025_v40, %v8967_v45  ;;  %vm4513_vm4 = vcmp.eq.s32.totalorder %v467_v20, %v8967_v45  ;;  %vm5307_vm5 = vcmp.eq.s32.totalorder %v10025_v40, %v8989_v30  ;;  %vm5311_vm6 = vcmp.eq.s32.totalorder %v467_v20, %v8989_v30  ;;  %v10097_v2 = vld [vmem:[#allocation2 + $0x8] sm:$0xff] }
 0x2f6   : > { %v4241_v58 = vadd.f32 %v3985_v9, %v3441_v57  ;;  %v4245_v37 = vadd.f32 %v3989_v59, %v3445_v27  ;;  %v4779_v19 = vsel %vm4509_vm3, %v8969_v56, 0.0  ;;  %v4783_v48 = vsel %vm4513_vm4, %v8969_v56, 0.0 }
 0x2f7   : > { %v5577_v0 = vsel %vm5307_vm5, %v8991_v11, 0.0  ;;  %v5581_v6 = vsel %vm5311_vm6, %v8991_v11, 0.0  ;;  %vm6101_vm7 = vcmp.eq.s32.totalorder %v10025_v40, %v9007_v44  ;;  %vm6105_vm8 = vcmp.eq.s32.totalorder %v467_v20, %v9007_v44 }
 0x2f8   : > { %v5035_v23 = vadd.f32 %v4779_v19, %v4241_v58  ;;  %v5039_v54 = vadd.f32 %v4783_v48, %v4245_v37  ;;  %v6371_v28 = vsel %vm6101_vm7, %v9009_v46, 0.0  ;;  %v6375_v43 = vsel %vm6105_vm8, %v9009_v46, 0.0  ;;  %v331_v58 = vld [vmem:[#allocation2 + $0x28] sm:$0xff] }
 0x2f9   : > { %vm825_vm9 = vcmp.eq.s32.totalorder %v527_v36, %v8918_v62  ;;  %vm829_vm10 = vcmp.eq.s32.totalorder %v531_v1, %v8918_v62  ;;  %vm1375_vm11 = vcmp.eq.s32.totalorder %v527_v36, %v8931_v21  ;;  %vm1379_vm12 = vcmp.eq.s32.totalorder %v531_v1, %v8931_v21 }
 0x2fa   : > { %v5833_v42 = vadd.f32 %v5577_v0, %v5035_v23  ;;  %v5837_v17 = vadd.f32 %v5581_v6, %v5039_v54  ;;  %v1095_v40 = vsel %vm825_vm9, %v8929_v34, 0.0  ;;  %v1099_v20 = vsel %vm829_vm10, %v8929_v34, 0.0 }
 0x2fb   : > { %v1645_v61 = vsel %vm1375_vm11, %v8933_v31, 0.0  ;;  %v1649_v26 = vsel %vm1379_vm12, %v8933_v31, 0.0  ;;  %vm2185_vm13 = vcmp.eq.s32.totalorder %v527_v36, %v8935_v49  ;;  %vm2189_vm14 = vcmp.eq.s32.totalorder %v531_v1, %v8935_v49 }
 0x2fc   : > { %v6627_v16 = vadd.f32 %v6371_v28, %v5833_v42  ;;  %v6631_v32 = vadd.f32 %v6375_v43, %v5837_v17  ;;  %v1901_v53 = vadd.f32 %v1645_v61, %v1095_v40  ;;  %v1905_v60 = vadd.f32 %v1649_v26, %v1099_v20 }
 0x2fd   : > { %v2455_v15 = vsel %vm2185_vm13, %v8949_v8, 0.0  ;;  %v2459_v52 = vsel %vm2189_vm14, %v8949_v8, 0.0  ;;  %vm2979_vm15 = vcmp.eq.s32.totalorder %v527_v36, %v8959_v3  ;;  %vm2983_vm0 = vcmp.eq.s32.totalorder %v531_v1, %v8959_v3 }
 0x2fe   : > { %v6834_v51 = vpack.c.bf16 %v6631_v32, %v6627_v16  ;;  %v2711_v24 = vadd.f32 %v2455_v15, %v1901_v53  ;;  %v2715_v47 = vadd.f32 %v2459_v52, %v1905_v60  ;;  %v3249_v38 = vsel %vm2979_vm15, %v8961_v18, 0.0 }
 0x2ff   : > { %v3253_v41 = vsel %vm2983_vm0, %v8961_v18, 0.0  ;;  %vm3779_vm1 = vcmp.eq.s32.totalorder %v527_v36, %v8963_v55  ;;  %vm3783_vm2 = vcmp.eq.s32.totalorder %v531_v1, %v8963_v55  ;;  %vm4573_vm3 = vcmp.eq.s32.totalorder %v527_v36, %v8967_v45 }
 0x300   : > { %6977 = vmatpush.bf16.msrb.mxu2 %v6834_v51  ;;  %v3505_v12 = vadd.f32 %v3249_v38, %v2711_v24  ;;  %v3509_v13 = vadd.f32 %v3253_v41, %v2715_v47  ;;  %v4049_v50 = vsel %vm3779_vm1, %v8965_v63, 0.0  ;;  %v4053_v22 = vsel %vm3783_vm2, %v8965_v63, 0.0 }
 0x301   : > { %vm4577_vm4 = vcmp.eq.s32.totalorder %v531_v1, %v8967_v45  ;;  %v4843_v25 = vsel %vm4573_vm3, %v8969_v56, 0.0  ;;  %vm5371_vm5 = vcmp.eq.s32.totalorder %v527_v36, %v8989_v30  ;;  %vm5375_vm6 = vcmp.eq.s32.totalorder %v531_v1, %v8989_v30 }
 0x302   : > { %v4305_v57 = vadd.f32 %v4049_v50, %v3505_v12  ;;  %v4309_v27 = vadd.f32 %v4053_v22, %v3509_v13  ;;  %v4847_v9 = vsel %vm4577_vm4, %v8969_v56, 0.0  ;;  %v5641_v59 = vsel %vm5371_vm5, %v8991_v11, 0.0  ;;  %v391_v13 = vld [vmem:[#allocation2 + $0x208] sm:$0xff] }
 0x303   : > { %v5645_v37 = vsel %vm5375_vm6, %v8991_v11, 0.0  ;;  %vm6165_vm7 = vcmp.eq.s32.totalorder %v527_v36, %v9007_v44  ;;  %vm6169_vm8 = vcmp.eq.s32.totalorder %v531_v1, %v9007_v44  ;;  %vm625_vm9 = vcmp.eq.s32.totalorder %v10097_v2, %v8918_v62  ;;  %v10142_v50 = vld [vmem:[#allocation2 + $0x228] sm:$0xff] }
 0x304   : > { %v5099_v19 = vadd.f32 %v4843_v25, %v4305_v57  ;;  %v5103_v48 = vadd.f32 %v4847_v9, %v4309_v27  ;;  %v6435_v0 = vsel %vm6165_vm7, %v9009_v46, 0.0  ;;  %v6439_v6 = vsel %vm6169_vm8, %v9009_v46, 0.0 }
 0x305   : > { %vm629_vm10 = vcmp.eq.s32.totalorder %v331_v58, %v8918_v62  ;;  %v895_v23 = vsel %vm625_vm9, %v8929_v34, 0.0  ;;  %vm1175_vm11 = vcmp.eq.s32.totalorder %v10097_v2, %v8931_v21  ;;  %vm1179_vm12 = vcmp.eq.s32.totalorder %v331_v58, %v8931_v21 }
 0x306   : > { %v5897_v36 = vadd.f32 %v5641_v59, %v5099_v19  ;;  %v5901_v1 = vadd.f32 %v5645_v37, %v5103_v48  ;;  %v899_v54 = vsel %vm629_vm10, %v8929_v34, 0.0  ;;  %v1445_v28 = vsel %vm1175_vm11, %v8933_v31, 0.0 }
 0x307   : > { %v1449_v43 = vsel %vm1179_vm12, %v8933_v31, 0.0  ;;  %v1701_v42 = vadd.f32 %v1445_v28, %v895_v23  ;;  %vm1985_vm13 = vcmp.eq.s32.totalorder %v10097_v2, %v8935_v49  ;;  %vm1989_vm14 = vcmp.eq.s32.totalorder %v331_v58, %v8935_v49 }
 0x308   : > { %v6691_v17 = vadd.f32 %v6435_v0, %v5897_v36  ;;  %v6695_v40 = vadd.f32 %v6439_v6, %v5901_v1  ;;  %v1705_v20 = vadd.f32 %v1449_v43, %v899_v54  ;;  %v2255_v61 = vsel %vm1985_vm13, %v8949_v8, 0.0 }
 0x309   : > { %v2259_v26 = vsel %vm1989_vm14, %v8949_v8, 0.0  ;;  %v2511_v16 = vadd.f32 %v2255_v61, %v1701_v42  ;;  %vm2779_vm15 = vcmp.eq.s32.totalorder %v10097_v2, %v8959_v3  ;;  %vm2783_vm0 = vcmp.eq.s32.totalorder %v331_v58, %v8959_v3 }
 0x30a   : > { %v6866_v32 = vpack.c.bf16 %v6695_v40, %v6691_v17  ;;  %v2515_v53 = vadd.f32 %v2259_v26, %v1705_v20  ;;  %v3049_v60 = vsel %vm2779_vm15, %v8961_v18, 0.0  ;;  %v3053_v15 = vsel %vm2783_vm0, %v8961_v18, 0.0 }
 0x30b   : > { %v3305_v52 = vadd.f32 %v3049_v60, %v2511_v16  ;;  %vm3579_vm1 = vcmp.eq.s32.totalorder %v10097_v2, %v8963_v55  ;;  %vm3583_vm2 = vcmp.eq.s32.totalorder %v331_v58, %v8963_v55  ;;  %vm4373_vm3 = vcmp.eq.s32.totalorder %v10097_v2, %v8967_v45 }
 0x30c   : > { %6990 = vmatpush.bf16.msrb.mxu3 %v6866_v32  ;;  %v3309_v51 = vadd.f32 %v3053_v15, %v2515_v53  ;;  %v3849_v24 = vsel %vm3579_vm1, %v8965_v63, 0.0  ;;  %v3853_v47 = vsel %vm3583_vm2, %v8965_v63, 0.0  ;;  %vm4377_vm4 = vcmp.eq.s32.totalorder %v331_v58, %v8967_v45  ;;  %v10181_v15 = vld [vmem:[#allocation2 + $0x408] sm:$0xff] }
 0x30d   : > { %v4105_v38 = vadd.f32 %v3849_v24, %v3305_v52  ;;  %v4643_v41 = vsel %vm4373_vm3, %v8969_v56, 0.0  ;;  %v4647_v12 = vsel %vm4377_vm4, %v8969_v56, 0.0  ;;  %vm5171_vm5 = vcmp.eq.s32.totalorder %v10097_v2, %v8989_v30  ;;  %v459_v24 = vld [vmem:[#allocation2 + $0x428] sm:$0xff] }
 0x30e   : > { %v4109_v22 = vadd.f32 %v3853_v47, %v3309_v51  ;;  %vm5175_vm6 = vcmp.eq.s32.totalorder %v331_v58, %v8989_v30  ;;  %v5441_v25 = vsel %vm5171_vm5, %v8991_v11, 0.0  ;;  %vm5965_vm7 = vcmp.eq.s32.totalorder %v10097_v2, %v9007_v44 }
 0x30f   : > { %v4899_v57 = vadd.f32 %v4643_v41, %v4105_v38  ;;  %v5445_v27 = vsel %vm5175_vm6, %v8991_v11, 0.0  ;;  %vm5969_vm8 = vcmp.eq.s32.totalorder %v331_v58, %v9007_v44  ;;  %v6235_v9 = vsel %vm5965_vm7, %v9009_v46, 0.0 }
 0x310   : > { %v4903_v59 = vadd.f32 %v4647_v12, %v4109_v22  ;;  %v6239_v37 = vsel %vm5969_vm8, %v9009_v46, 0.0  ;;  %vm689_vm9 = vcmp.eq.s32.totalorder %v391_v13, %v8918_v62  ;;  %vm693_vm10 = vcmp.eq.s32.totalorder %v10142_v50, %v8918_v62 }
 0x311   : > { %v5697_v19 = vadd.f32 %v5441_v25, %v4899_v57  ;;  %v959_v48 = vsel %vm689_vm9, %v8929_v34, 0.0  ;;  %v963_v2 = vsel %vm693_vm10, %v8929_v34, 0.0  ;;  %vm1239_vm11 = vcmp.eq.s32.totalorder %v391_v13, %v8931_v21 }
 0x312   : > { %v5701_v0 = vadd.f32 %v5445_v27, %v4903_v59  ;;  %vm1243_vm12 = vcmp.eq.s32.totalorder %v10142_v50, %v8931_v21  ;;  %v1509_v58 = vsel %vm1239_vm11, %v8933_v31, 0.0  ;;  %vm2049_vm13 = vcmp.eq.s32.totalorder %v391_v13, %v8935_v49 }
 0x313   : > { %v6491_v6 = vadd.f32 %v6235_v9, %v5697_v19  ;;  %v1513_v23 = vsel %vm1243_vm12, %v8933_v31, 0.0  ;;  %v1765_v36 = vadd.f32 %v1509_v58, %v959_v48  ;;  %vm2053_vm14 = vcmp.eq.s32.totalorder %v10142_v50, %v8935_v49 }
 0x314   : > { %v6495_v1 = vadd.f32 %v6239_v37, %v5701_v0  ;;  %v1769_v54 = vadd.f32 %v1513_v23, %v963_v2  ;;  %v2319_v28 = vsel %vm2049_vm13, %v8949_v8, 0.0  ;;  %v2323_v43 = vsel %vm2053_vm14, %v8949_v8, 0.0 }
 0x315   : > { %v2575_v42 = vadd.f32 %v2319_v28, %v1765_v36  ;;  %vm2843_vm15 = vcmp.eq.s32.totalorder %v391_v13, %v8959_v3  ;;  %vm2847_vm0 = vcmp.eq.s32.totalorder %v10142_v50, %v8959_v3  ;;  %vm3643_vm1 = vcmp.eq.s32.totalorder %v391_v13, %v8963_v55 }
 0x316   : > { %v6766_v17 = vpack.c.bf16 %v6495_v1, %v6491_v6  ;;  %v2579_v40 = vadd.f32 %v2323_v43, %v1769_v54  ;;  %v3113_v20 = vsel %vm2843_vm15, %v8961_v18, 0.0  ;;  %v3117_v61 = vsel %vm2847_vm0, %v8961_v18, 0.0 }
 0x317   : > { %v3369_v26 = vadd.f32 %v3113_v20, %v2575_v42  ;;  %vm3647_vm2 = vcmp.eq.s32.totalorder %v10142_v50, %v8963_v55  ;;  %v3913_v16 = vsel %vm3643_vm1, %v8965_v63, 0.0  ;;  %vm4437_vm3 = vcmp.eq.s32.totalorder %v391_v13, %v8967_v45 }
 0x318   : > { %6952 = vmatpush.bf16.msrb.mxu0 %v6766_v17  ;;  %v3373_v32 = vadd.f32 %v3117_v61, %v2579_v40  ;;  %v3917_v53 = vsel %vm3647_vm2, %v8965_v63, 0.0  ;;  %vm4441_vm4 = vcmp.eq.s32.totalorder %v10142_v50, %v8967_v45  ;;  %v4707_v60 = vsel %vm4437_vm3, %v8969_v56, 0.0 }
 0x319   : > { %v4169_v52 = vadd.f32 %v3913_v16, %v3369_v26  ;;  %v4711_v51 = vsel %vm4441_vm4, %v8969_v56, 0.0  ;;  %vm5235_vm5 = vcmp.eq.s32.totalorder %v391_v13, %v8989_v30  ;;  %vm5239_vm6 = vcmp.eq.s32.totalorder %v10142_v50, %v8989_v30 }
 0x31a   : > { %v4173_v47 = vadd.f32 %v3917_v53, %v3373_v32  ;;  %v5505_v38 = vsel %vm5235_vm5, %v8991_v11, 0.0  ;;  %v5509_v41 = vsel %vm5239_vm6, %v8991_v11, 0.0  ;;  %vm6029_vm7 = vcmp.eq.s32.totalorder %v391_v13, %v9007_v44  ;;  %v519_v32 = vld [vmem:[#allocation2 + $0x608] sm:$0xff] }
 0x31b   : > { %v4963_v12 = vadd.f32 %v4707_v60, %v4169_v52  ;;  %vm6033_vm8 = vcmp.eq.s32.totalorder %v10142_v50, %v9007_v44  ;;  %v6299_v22 = vsel %vm6029_vm7, %v9009_v46, 0.0  ;;  %vm753_vm9 = vcmp.eq.s32.totalorder %v10181_v15, %v8918_v62  ;;  %6953 = vmatmul.bf16.vlgmr.msrb.gmra.mxu0 %v9789_v39  ;;  %v523_v53 = vld [vmem:[#allocation2 + $0x628] sm:$0xff] }
 0x31c   : > { %v4967_v25 = vadd.f32 %v4711_v51, %v4173_v47  ;;  %v6303_v57 = vsel %vm6033_vm8, %v9009_v46, 0.0  ;;  %vm757_vm10 = vcmp.eq.s32.totalorder %v459_v24, %v8918_v62  ;;  %v1023_v27 = vsel %vm753_vm9, %v8929_v34, 0.0 }
 0x31d   : > { %v5761_v9 = vadd.f32 %v5505_v38, %v4963_v12  ;;  %v1027_v13 = vsel %vm757_vm10, %v8929_v34, 0.0  ;;  %vm1303_vm11 = vcmp.eq.s32.totalorder %v10181_v15, %v8931_v21  ;;  %vm1307_vm12 = vcmp.eq.s32.totalorder %v459_v24, %v8931_v21 }
 0x31e   : > { %v5765_v50 = vadd.f32 %v5509_v41, %v4967_v25  ;;  %v1573_v59 = vsel %vm1303_vm11, %v8933_v31, 0.0  ;;  %v1577_v37 = vsel %vm1307_vm12, %v8933_v31, 0.0  ;;  %vm2113_vm13 = vcmp.eq.s32.totalorder %v10181_v15, %v8935_v49 }
 0x31f   : > { %v6555_v19 = vadd.f32 %v6299_v22, %v5761_v9  ;;  %v1829_v48 = vadd.f32 %v1573_v59, %v1023_v27  ;;  %v1833_v2 = vadd.f32 %v1577_v37, %v1027_v13  ;;  %vm2117_vm14 = vcmp.eq.s32.totalorder %v459_v24, %v8935_v49 }
 0x320   : > { %v6559_v0 = vadd.f32 %v6303_v57, %v5765_v50  ;;  %v2383_v58 = vsel %vm2113_vm13, %v8949_v8, 0.0  ;;  %v2387_v6 = vsel %vm2117_vm14, %v8949_v8, 0.0  ;;  %vm2907_vm15 = vcmp.eq.s32.totalorder %v10181_v15, %v8959_v3 }
 0x321   : > { %v2639_v23 = vadd.f32 %v2383_v58, %v1829_v48  ;;  %v2643_v36 = vadd.f32 %v2387_v6, %v1833_v2  ;;  %vm2911_vm0 = vcmp.eq.s32.totalorder %v459_v24, %v8959_v3  ;;  %v3177_v1 = vsel %vm2907_vm15, %v8961_v18, 0.0 }
 0x322   : > { %v6798_v54 = vpack.c.bf16 %v6559_v0, %v6555_v19  ;;  %v3181_v28 = vsel %vm2911_vm0, %v8961_v18, 0.0  ;;  %vm3707_vm1 = vcmp.eq.s32.totalorder %v10181_v15, %v8963_v55  ;;  %vm3711_vm2 = vcmp.eq.s32.totalorder %v459_v24, %v8963_v55 }
 0x323   : > { %v3433_v43 = vadd.f32 %v3177_v1, %v2639_v23  ;;  %v3437_v42 = vadd.f32 %v3181_v28, %v2643_v36  ;;  %v3977_v17 = vsel %vm3707_vm1, %v8965_v63, 0.0  ;;  %v3981_v40 = vsel %vm3711_vm2, %v8965_v63, 0.0 }
 0x324   : > { %6965 = vmatpush.bf16.msrb.mxu1 %v6798_v54  ;;  %vm4501_vm3 = vcmp.eq.s32.totalorder %v10181_v15, %v8967_v45  ;;  %vm4505_vm4 = vcmp.eq.s32.totalorder %v459_v24, %v8967_v45  ;;  %vm5299_vm5 = vcmp.eq.s32.totalorder %v10181_v15, %v8989_v30  ;;  %vm5303_vm6 = vcmp.eq.s32.totalorder %v459_v24, %v8989_v30 }
 0x325   : > { %v4233_v20 = vadd.f32 %v3977_v17, %v3433_v43  ;;  %v4237_v61 = vadd.f32 %v3981_v40, %v3437_v42  ;;  %v4771_v26 = vsel %vm4501_vm3, %v8969_v56, 0.0  ;;  %v4775_v16 = vsel %vm4505_vm4, %v8969_v56, 0.0 }
 0x326   : > { %v5569_v60 = vsel %vm5299_vm5, %v8991_v11, 0.0  ;;  %v5573_v52 = vsel %vm5303_vm6, %v8991_v11, 0.0  ;;  %vm6093_vm7 = vcmp.eq.s32.totalorder %v10181_v15, %v9007_v44  ;;  %vm6097_vm8 = vcmp.eq.s32.totalorder %v459_v24, %v9007_v44 }
 0x327   : > { %v5027_v51 = vadd.f32 %v4771_v26, %v4233_v20  ;;  %v5031_v47 = vadd.f32 %v4775_v16, %v4237_v61  ;;  %v6363_v38 = vsel %vm6093_vm7, %v9009_v46, 0.0  ;;  %v6367_v41 = vsel %vm6097_vm8, %v9009_v46, 0.0  ;;  %6966 = vmatmul.bf16.vlgmr.msrb.gmra.mxu1 %v9791_v33 }
 0x328   : > { %vm817_vm9 = vcmp.eq.s32.totalorder %v519_v32, %v8918_v62  ;;  %vm821_vm10 = vcmp.eq.s32.totalorder %v523_v53, %v8918_v62  ;;  %vm1367_vm11 = vcmp.eq.s32.totalorder %v519_v32, %v8931_v21  ;;  %vm1371_vm12 = vcmp.eq.s32.totalorder %v523_v53, %v8931_v21 }
 0x329   : > { %v5825_v12 = vadd.f32 %v5569_v60, %v5027_v51  ;;  %v5829_v15 = vadd.f32 %v5573_v52, %v5031_v47  ;;  %v1087_v24 = vsel %vm817_vm9, %v8929_v34, 0.0  ;;  %v1091_v22 = vsel %vm821_vm10, %v8929_v34, 0.0 }
 0x32a   : > { %v1637_v25 = vsel %vm1367_vm11, %v8933_v31, 0.0  ;;  %v1641_v57 = vsel %vm1371_vm12, %v8933_v31, 0.0  ;;  %vm2177_vm13 = vcmp.eq.s32.totalorder %v519_v32, %v8935_v49  ;;  %vm2181_vm14 = vcmp.eq.s32.totalorder %v523_v53, %v8935_v49 }
 0x32b   : > { %v6619_v27 = vadd.f32 %v6363_v38, %v5825_v12  ;;  %v6623_v62 = vadd.f32 %v6367_v41, %v5829_v15  ;;  %v1893_v9 = vadd.f32 %v1637_v25, %v1087_v24  ;;  %v1897_v13 = vadd.f32 %v1641_v57, %v1091_v22 }
 0x32c   : > { %v2447_v21 = vsel %vm2177_vm13, %v8949_v8, 0.0  ;;  %v2451_v50 = vsel %vm2181_vm14, %v8949_v8, 0.0  ;;  %vm2971_vm15 = vcmp.eq.s32.totalorder %v519_v32, %v8959_v3  ;;  %vm2975_vm0 = vcmp.eq.s32.totalorder %v523_v53, %v8959_v3 }
 0x32d   : > { %v6830_v34 = vpack.c.bf16 %v6623_v62, %v6619_v27  ;;  %v2703_v59 = vadd.f32 %v2447_v21, %v1893_v9  ;;  %v2707_v37 = vadd.f32 %v2451_v50, %v1897_v13  ;;  %v3241_v31 = vsel %vm2971_vm15, %v8961_v18, 0.0 }
 0x32e   : > { %v3245_v19 = vsel %vm2975_vm0, %v8961_v18, 0.0  ;;  %vm3771_vm1 = vcmp.eq.s32.totalorder %v519_v32, %v8963_v55  ;;  %vm3775_vm2 = vcmp.eq.s32.totalorder %v523_v53, %v8963_v55  ;;  %vm4565_vm3 = vcmp.eq.s32.totalorder %v519_v32, %v8967_v45 }
 0x32f   : > { %6978 = vmatpush.bf16.msrb.mxu2 %v6830_v34  ;;  %v3497_v49 = vadd.f32 %v3241_v31, %v2703_v59  ;;  %v3501_v8 = vadd.f32 %v3245_v19, %v2707_v37  ;;  %v4041_v48 = vsel %vm3771_vm1, %v8965_v63, 0.0  ;;  %v4045_v3 = vsel %vm3775_vm2, %v8965_v63, 0.0 }
 0x330   : > { %vm4569_vm4 = vcmp.eq.s32.totalorder %v523_v53, %v8967_v45  ;;  %v4835_v2 = vsel %vm4565_vm3, %v8969_v56, 0.0  ;;  %vm5363_vm5 = vcmp.eq.s32.totalorder %v519_v32, %v8989_v30  ;;  %vm5367_vm6 = vcmp.eq.s32.totalorder %v523_v53, %v8989_v30 }
 0x331   : > { %v4297_v18 = vadd.f32 %v4041_v48, %v3497_v49  ;;  %v4301_v0 = vadd.f32 %v4045_v3, %v3501_v8  ;;  %v4839_v55 = vsel %vm4569_vm4, %v8969_v56, 0.0  ;;  %v5633_v58 = vsel %vm5363_vm5, %v8991_v11, 0.0  ;;  %v10319_v49 = vld [vmem:[#allocation2 + $0x1d0] sm:$0xff] }
 0x332   : > { %v5637_v6 = vsel %vm5367_vm6, %v8991_v11, 0.0  ;;  %vm6157_vm7 = vcmp.eq.s32.totalorder %v519_v32, %v9007_v44  ;;  %vm6161_vm8 = vcmp.eq.s32.totalorder %v523_v53, %v9007_v44  ;;  %v297_v63 = vadd.s32 1, %v7568_v10  ;;  %6979 = vmatmul.bf16.vlgmr.msrb.gmra.mxu2 %v9619_v4  ;;  %v10321_v8 = vld [vmem:[#allocation2 + $0x1f0] sm:$0xff] }
 0x333   : > { %v5091_v45 = vadd.f32 %v4835_v2, %v4297_v18  ;;  %v5095_v23 = vadd.f32 %v4839_v55, %v4301_v0  ;;  %v6427_v30 = vsel %vm6157_vm7, %v9009_v46, 0.0  ;;  %v6431_v36 = vsel %vm6161_vm8, %v9009_v46, 0.0 }
 0x334   : > { %v299_v56 = vsub.f32 %v7563_v5, %v293_v7  ;;  %vm313_vm9 = vcmp.ge.s32.totalorder %v297_v63, 0  ;;  %vm315_vm10 = vcmp.le.s32.totalorder %v297_v63, 7  ;;  %v583_v11 = vmul.u32 64, %v7568_v10 }
 0x335   : > { %v5889_v1 = vadd.f32 %v5633_v58, %v5091_v45  ;;  %v5893_v44 = vadd.f32 %v5637_v6, %v5095_v23  ;;  %vm317_vm11 = vmand %vm313_vm9, %vm315_vm10  ;;  %v585_v54 = vmul.u32 8, %v7568_v10  ;;  %v594_v28 = vrot.slane %v7568_v10, 6 }
 0x336   : > { %v301_v43 = vsub.f32 1.0, %v299_v56  ;;  %v7264_v42 = vsel %vm317_vm11, 1.0, %v7463_v14  ;;  %v1152_v17 = vrot.slane %v297_v63, 6  ;;  %v1957_v46 = vmul.u32 8, %v297_v63 }
 0x337   : > { %v6683_v40 = vadd.f32 %v6427_v30, %v5889_v1  ;;  %v6687_v20 = vadd.f32 %v6431_v36, %v5893_v44  ;;  %v10277_v61 = vmul.f32 %v7264_v42, %v299_v56  ;;  %v588_v5 = vrot.slane %v585_v54, 5 }
 0x338   : > { %v323_v7 = vmul.f32 %v7597_v35, %v301_v43  ;;  %v10280_v26 = vrot.slane %v594_v28, 4  ;;  %v10282_v16 = vrot.slane %v1152_v17, 4  ;;  %v1960_v32 = vrot.slane %v1957_v46, 5 }
 0x339   : > { %v6862_v53 = vpack.c.bf16 %v6687_v20, %v6683_v40  ;;  %v589_v60 = vrot.slane %v588_v5, 4  ;;  %v1160_v10 = vrot.slane %v10277_v61, 6  ;;  %v1968_v14 = vrot.slane %v10277_v61, 5 }
 0x33a   : > { %v602_v52 = vrot.slane %v323_v7, 5  ;;  %v610_v51 = vrot.slane %v323_v7, 6  ;;  %v1961_v47 = vrot.slane %v1960_v32, 4  ;;  %v3561_v38 = vmul.u32 64, %v297_v63 }
 0x33b   : > { %6991 = vmatpush.bf16.msrb.mxu3 %v6862_v53  ;;  %v591_v41 = vadd.s32 %v589_v60, %v583_v11  ;;  %v10286_v12 = vrot.slane %v1160_v10, 4  ;;  %v10288_v35 = vrot.slane %v1968_v14, 4 }
 0x33c   : > { %v603_v15 = vrot.slane %v602_v52, 4  ;;  %v10290_v24 = vrot.slane %v610_v51, 4  ;;  %v1963_v22 = vadd.s32 %v1961_v47, %v583_v11  ;;  %v3563_v25 = vadd.s32 %v3561_v38, %v589_v60 }
 0x33d   : > { %v10293_v57 = vadd.s32 %v10280_v26, %v591_v41  ;;  %v10296_v27 = vadd.s32 %v10282_v16, %v591_v41  ;;  %v1973_v62 = vmul.f32 %v10288_v35, %v323_v7  ;;  %v10299_v9 = vadd.s32 %v3561_v38, %v1961_v47 }
 0x33e   : > { %v607_v13 = vmul.f32 %v603_v15, %v323_v7  ;;  %v10302_v21 = vadd.s32 %v1963_v22, %v10280_v26  ;;  %v10305_v50 = vadd.s32 %v1963_v22, %v10282_v16  ;;  %v10308_v34 = vadd.s32 %v3563_v25, %v10280_v26  ;;  %6992 = vmatmul.bf16.vlgmr.msrb.gmra.mxu3 %v9787_v29 }
 0x33f   : > { %v618_v59 = vperm.slane %v10293_v57, 0  ;;  %v1168_v37 = vperm.slane %v10296_v27, 0  ;;  %v10314_v31 = vmul.f32 %v1973_v62, %v10290_v24  ;;  %v10317_v19 = vmul.f32 %v1973_v62, %v10286_v12  ;;  %v10396_v62 = vld [vmem:[#allocation2 + $0x3d0] sm:$0xff] }
 0x340   : > { %v10324_v48 = vmul.f32 %v10290_v24, %v607_v13  ;;  %v10327_v3 = vmul.f32 %v10286_v12, %v607_v13  ;;  %v1978_v2 = vperm.slane %v10302_v21, 0  ;;  %v2772_v18 = vperm.slane %v10305_v50, 0 }
 0x341   : > { %v10331_v0 = vperm.slane %v618_v59, 0  ;;  %v10333_v55 = vperm.slane %v1168_v37, 0  ;;  %v2244_v58 = vperm.slane %v10314_v31, 0  ;;  %v3038_v6 = vperm.slane %v10317_v19, 0 }
 0x342   : > { %v884_v63 = vperm.slane %v10324_v48, 0  ;;  %v1434_v45 = vperm.slane %v10327_v3, 0  ;;  %v10339_v23 = vperm.slane %v1978_v2, 0  ;;  %v10341_v30 = vperm.slane %v2772_v18, 0 }
 0x343   : > { %vm682_vm12 = vcmp.eq.s32.totalorder %v10319_v49, %v10331_v0  ;;  %vm686_vm13 = vcmp.eq.s32.totalorder %v10321_v8, %v10331_v0  ;;  %vm1232_vm14 = vcmp.eq.s32.totalorder %v10319_v49, %v10333_v55  ;;  %vm1236_vm15 = vcmp.eq.s32.totalorder %v10321_v8, %v10333_v55 }
 0x344   : > { %v10351_v36 = vperm.slane %v884_v63, 0  ;;  %v10353_v56 = vperm.slane %v1434_v45, 0  ;;  %vm2042_vm0 = vcmp.eq.s32.totalorder %v10319_v49, %v10339_v23  ;;  %vm2046_vm1 = vcmp.eq.s32.totalorder %v10321_v8, %v10339_v23 }
 0x345   : > { %v10359_v11 = vperm.slane %v2244_v58, 0  ;;  %vm2836_vm2 = vcmp.eq.s32.totalorder %v10319_v49, %v10341_v30  ;;  %vm2840_vm3 = vcmp.eq.s32.totalorder %v10321_v8, %v10341_v30  ;;  %v10365_v1 = vperm.slane %v3038_v6, 0 }
 0x346   : > { %v952_v44 = vsel %vm682_vm12, %v10351_v36, 0.0  ;;  %v956_v54 = vsel %vm686_vm13, %v10351_v36, 0.0  ;;  %v1502_v28 = vsel %vm1232_vm14, %v10353_v56, 0.0  ;;  %v1506_v43 = vsel %vm1236_vm15, %v10353_v56, 0.0 }
 0x347   : > { %v1758_v42 = vadd.f32 %v1502_v28, %v952_v44  ;;  %v1762_v17 = vadd.f32 %v1506_v43, %v956_v54  ;;  %v2312_v46 = vsel %vm2042_vm0, %v10359_v11, 0.0  ;;  %v2316_v40 = vsel %vm2046_vm1, %v10359_v11, 0.0 }
 0x348   : > { %v3106_v20 = vsel %vm2836_vm2, %v10365_v1, 0.0  ;;  %v3110_v5 = vsel %vm2840_vm3, %v10365_v1, 0.0  ;;  %v3567_v7 = vmul.f32 %v603_v15, %v10277_v61  ;;  %v3572_v32 = vperm.slane %v10308_v34, 0 }
 0x349   : > { %v2568_v53 = vadd.f32 %v2312_v46, %v1758_v42  ;;  %v2572_v60 = vadd.f32 %v2316_v40, %v1762_v17  ;;  %v10378_v10 = vadd.s32 %v3563_v25, %v10282_v16  ;;  %v10382_v14 = vadd.s32 %v10299_v9, %v10280_v26 }
 0x34a   : > { %v10385_v52 = vmul.f32 %v3567_v7, %v10290_v24  ;;  %v10387_v51 = vperm.slane %v3572_v32, 0  ;;  %v10390_v47 = vmul.f32 %v3567_v7, %v10286_v12  ;;  %v5159_v38 = vmul.f32 %v10288_v35, %v10277_v61 }
 0x34b   : > { %v3362_v41 = vadd.f32 %v3106_v20, %v2568_v53  ;;  %v3366_v15 = vadd.f32 %v3110_v5, %v2572_v60  ;;  %v4366_v22 = vperm.slane %v10378_v10, 0  ;;  %v5164_v25 = vperm.slane %v10382_v14, 0 }
 0x34c   : > { %vm3636_vm4 = vcmp.eq.s32.totalorder %v10319_v49, %v10387_v51  ;;  %vm3640_vm5 = vcmp.eq.s32.totalorder %v10321_v8, %v10387_v51  ;;  %v3838_v26 = vperm.slane %v10385_v52, 0  ;;  %v4632_v13 = vperm.slane %v10390_v47, 0 }
 0x34d   : > { %v10404_v59 = vperm.slane %v4366_v22, 0  ;;  %v10407_v61 = vmul.f32 %v5159_v38, %v10290_v24  ;;  %v10409_v35 = vperm.slane %v5164_v25, 0  ;;  %v10413_v37 = vadd.s32 %v10299_v9, %v10282_v16  ;;  %v10432_v16 = vld [vmem:[#allocation2 + $0x3f0] sm:$0xff] }
 0x34e   : > { %v10415_v2 = vperm.slane %v3838_v26, 0  ;;  %v10417_v18 = vperm.slane %v4632_v13, 0  ;;  %v10420_v58 = vmul.f32 %v5159_v38, %v10286_v12  ;;  %vm746_vm6 = vcmp.eq.s32.totalorder %v10396_v62, %v10331_v0 }
 0x34f   : > { %vm4430_vm7 = vcmp.eq.s32.totalorder %v10319_v49, %v10404_v59  ;;  %vm4434_vm8 = vcmp.eq.s32.totalorder %v10321_v8, %v10404_v59  ;;  %vm5228_vm9 = vcmp.eq.s32.totalorder %v10319_v49, %v10409_v35  ;;  %vm5232_vm10 = vcmp.eq.s32.totalorder %v10321_v8, %v10409_v35 }
 0x350   : > { %v3906_v12 = vsel %vm3636_vm4, %v10415_v2, 0.0  ;;  %v3910_v24 = vsel %vm3640_vm5, %v10415_v2, 0.0  ;;  %v4700_v9 = vsel %vm4430_vm7, %v10417_v18, 0.0  ;;  %v4704_v6 = vsel %vm4434_vm8, %v10417_v18, 0.0 }
 0x351   : > { %v4162_v63 = vadd.f32 %v3906_v12, %v3362_v41  ;;  %v4166_v45 = vadd.f32 %v3910_v24, %v3366_v15  ;;  %v5430_v44 = vperm.slane %v10407_v61, 0  ;;  %v5958_v54 = vperm.slane %v10413_v37, 0 }
 0x352   : > { %v6224_v28 = vperm.slane %v10420_v58, 0  ;;  %vm750_vm11 = vcmp.eq.s32.totalorder %v10432_v16, %v10331_v0  ;;  %v1016_v43 = vsel %vm746_vm6, %v10351_v36, 0.0  ;;  %vm1296_vm12 = vcmp.eq.s32.totalorder %v10396_v62, %v10333_v55 }
 0x353   : > { %v4956_v42 = vadd.f32 %v4700_v9, %v4162_v63  ;;  %v4960_v17 = vadd.f32 %v4704_v6, %v4166_v45  ;;  %v10455_v46 = vperm.slane %v5430_v44, 0  ;;  %v10457_v40 = vperm.slane %v5958_v54, 0 }
 0x354   : > { %v10459_v20 = vperm.slane %v6224_v28, 0  ;;  %v1020_v5 = vsel %vm750_vm11, %v10351_v36, 0.0  ;;  %vm1300_vm13 = vcmp.eq.s32.totalorder %v10432_v16, %v10333_v55  ;;  %v1566_v7 = vsel %vm1296_vm12, %v10353_v56, 0.0 }
 0x355   : > { %v5498_v32 = vsel %vm5228_vm9, %v10455_v46, 0.0  ;;  %v5502_v53 = vsel %vm5232_vm10, %v10455_v46, 0.0  ;;  %vm6022_vm14 = vcmp.eq.s32.totalorder %v10319_v49, %v10457_v40  ;;  %vm6026_vm15 = vcmp.eq.s32.totalorder %v10321_v8, %v10457_v40 }
 0x356   : > { %v5754_v60 = vadd.f32 %v5498_v32, %v4956_v42  ;;  %v5758_v38 = vadd.f32 %v5502_v53, %v4960_v17  ;;  %v6292_v41 = vsel %vm6022_vm14, %v10459_v20, 0.0  ;;  %v6296_v15 = vsel %vm6026_vm15, %v10459_v20, 0.0  ;;  %v516_v32 = vld [vmem:[#allocation2 + $0x5f0] sm:$0xff] }
 0x357   : > { %v1570_v22 = vsel %vm1300_vm13, %v10353_v56, 0.0  ;;  %v1822_v25 = vadd.f32 %v1566_v7, %v1016_v43  ;;  %vm2106_vm0 = vcmp.eq.s32.totalorder %v10396_v62, %v10339_v23  ;;  %vm2110_vm1 = vcmp.eq.s32.totalorder %v10432_v16, %v10339_v23  ;;  %v512_v7 = vld [vmem:[#allocation2 + $0x5d0] sm:$0xff] }
 0x358   : > { %v6548_v26 = vadd.f32 %v6292_v41, %v5754_v60  ;;  %v6552_v49 = vadd.f32 %v6296_v15, %v5758_v38  ;;  %v1826_v13 = vadd.f32 %v1570_v22, %v1020_v5  ;;  %v2376_v8 = vsel %vm2106_vm0, %v10359_v11, 0.0 }
 0x359   : > { %v2380_v12 = vsel %vm2110_vm1, %v10359_v11, 0.0  ;;  %v2632_v24 = vadd.f32 %v2376_v8, %v1822_v25  ;;  %vm2900_vm2 = vcmp.eq.s32.totalorder %v10396_v62, %v10341_v30  ;;  %vm2904_vm3 = vcmp.eq.s32.totalorder %v10432_v16, %v10341_v30 }
 0x35a   : > { %v6795_v9 = vpack.c.bf16 %v6552_v49, %v6548_v26  ;;  %v2636_v6 = vadd.f32 %v2380_v12, %v1826_v13  ;;  %v3170_v63 = vsel %vm2900_vm2, %v10365_v1, 0.0  ;;  %v3174_v45 = vsel %vm2904_vm3, %v10365_v1, 0.0 }
 0x35b   : > { %v3426_v44 = vadd.f32 %v3170_v63, %v2632_v24  ;;  %vm3700_vm4 = vcmp.eq.s32.totalorder %v10396_v62, %v10387_v51  ;;  %vm3704_vm5 = vcmp.eq.s32.totalorder %v10432_v16, %v10387_v51  ;;  %vm4494_vm6 = vcmp.eq.s32.totalorder %v10396_v62, %v10404_v59 }
 0x35c   : > { %6997 = vmatpush.bf16.msra.mxu0 %v6795_v9  ;;  %v3430_v54 = vadd.f32 %v3174_v45, %v2636_v6  ;;  %v3970_v28 = vsel %vm3700_vm4, %v10415_v2, 0.0  ;;  %v3974_v43 = vsel %vm3704_vm5, %v10415_v2, 0.0  ;;  %vm4498_vm7 = vcmp.eq.s32.totalorder %v10432_v16, %v10404_v59 }
 0x35d   : > { %v4226_v42 = vadd.f32 %v3970_v28, %v3426_v44  ;;  %v4764_v17 = vsel %vm4494_vm6, %v10417_v18, 0.0  ;;  %v4768_v5 = vsel %vm4498_vm7, %v10417_v18, 0.0  ;;  %vm5292_vm8 = vcmp.eq.s32.totalorder %v10396_v62, %v10409_v35 }
 0x35e   : > { %v4230_v53 = vadd.f32 %v3974_v43, %v3430_v54  ;;  %vm5296_vm9 = vcmp.eq.s32.totalorder %v10432_v16, %v10409_v35  ;;  %v5562_v60 = vsel %vm5292_vm8, %v10455_v46, 0.0  ;;  %vm6086_vm10 = vcmp.eq.s32.totalorder %v10396_v62, %v10457_v40 }
 0x35f   : > { %v5020_v38 = vadd.f32 %v4764_v17, %v4226_v42  ;;  %v5566_v41 = vsel %vm5296_vm9, %v10455_v46, 0.0  ;;  %vm6090_vm11 = vcmp.eq.s32.totalorder %v10432_v16, %v10457_v40  ;;  %v6356_v15 = vsel %vm6086_vm10, %v10459_v20, 0.0 }
 0x360   : > { %v5024_v22 = vadd.f32 %v4768_v5, %v4230_v53  ;;  %v6360_v25 = vsel %vm6090_vm11, %v10459_v20, 0.0  ;;  %vm810_vm12 = vcmp.eq.s32.totalorder %v512_v7, %v10331_v0  ;;  %vm814_vm13 = vcmp.eq.s32.totalorder %v516_v32, %v10331_v0 }
 0x361   : > { %v5818_v26 = vadd.f32 %v5562_v60, %v5020_v38  ;;  %v1080_v49 = vsel %vm810_vm12, %v10351_v36, 0.0  ;;  %v1084_v62 = vsel %vm814_vm13, %v10351_v36, 0.0  ;;  %vm1360_vm14 = vcmp.eq.s32.totalorder %v512_v7, %v10333_v55 }
 0x362   : > { %v5822_v13 = vadd.f32 %v5566_v41, %v5024_v22  ;;  %vm1364_vm15 = vcmp.eq.s32.totalorder %v516_v32, %v10333_v55  ;;  %v1630_v16 = vsel %vm1360_vm14, %v10353_v56, 0.0  ;;  %vm2170_vm0 = vcmp.eq.s32.totalorder %v512_v7, %v10339_v23  ;;  %v10539_v41 = vld [vmem:[#allocation2 + $0x7d0] sm:$0xff] }
 0x363   : > { %v6612_v8 = vadd.f32 %v6356_v15, %v5818_v26  ;;  %v1634_v12 = vsel %vm1364_vm15, %v10353_v56, 0.0  ;;  %v1886_v24 = vadd.f32 %v1630_v16, %v1080_v49  ;;  %vm2174_vm1 = vcmp.eq.s32.totalorder %v516_v32, %v10339_v23 }
 0x364   : > { %v6616_v9 = vadd.f32 %v6360_v25, %v5822_v13  ;;  %v1890_v6 = vadd.f32 %v1634_v12, %v1084_v62  ;;  %v2440_v63 = vsel %vm2170_vm0, %v10359_v11, 0.0  ;;  %v2444_v45 = vsel %vm2174_vm1, %v10359_v11, 0.0  ;;  %v580_v25 = vld [vmem:[#allocation2 + $0x7f0] sm:$0xff] }
 0x365   : > { %v2696_v44 = vadd.f32 %v2440_v63, %v1886_v24  ;;  %vm2964_vm2 = vcmp.eq.s32.totalorder %v512_v7, %v10341_v30  ;;  %vm2968_vm3 = vcmp.eq.s32.totalorder %v516_v32, %v10341_v30  ;;  %vm3764_vm4 = vcmp.eq.s32.totalorder %v512_v7, %v10387_v51 }
 0x366   : > { %v6827_v54 = vpack.c.bf16 %v6616_v9, %v6612_v8  ;;  %v2700_v28 = vadd.f32 %v2444_v45, %v1890_v6  ;;  %v3234_v43 = vsel %vm2964_vm2, %v10365_v1, 0.0  ;;  %v3238_v42 = vsel %vm2968_vm3, %v10365_v1, 0.0 }
 0x367   : > { %v3490_v17 = vadd.f32 %v3234_v43, %v2696_v44  ;;  %vm3768_vm5 = vcmp.eq.s32.totalorder %v516_v32, %v10387_v51  ;;  %v4034_v5 = vsel %vm3764_vm4, %v10415_v2, 0.0  ;;  %vm4558_vm6 = vcmp.eq.s32.totalorder %v512_v7, %v10404_v59 }
 0x368   : > { %7010 = vmatpush.bf16.msra.mxu1 %v6827_v54  ;;  %v3494_v53 = vadd.f32 %v3238_v42, %v2700_v28  ;;  %v4038_v60 = vsel %vm3768_vm5, %v10415_v2, 0.0  ;;  %vm4562_vm7 = vcmp.eq.s32.totalorder %v516_v32, %v10404_v59  ;;  %v4828_v38 = vsel %vm4558_vm6, %v10417_v18, 0.0 }
 0x369   : > { %v4290_v15 = vadd.f32 %v4034_v5, %v3490_v17  ;;  %v4832_v22 = vsel %vm4562_vm7, %v10417_v18, 0.0  ;;  %vm5356_vm8 = vcmp.eq.s32.totalorder %v512_v7, %v10409_v35  ;;  %vm5360_vm9 = vcmp.eq.s32.totalorder %v516_v32, %v10409_v35 }
 0x36a   : > { %v4294_v26 = vadd.f32 %v4038_v60, %v3494_v53  ;;  %v5626_v49 = vsel %vm5356_vm8, %v10455_v46, 0.0  ;;  %v5630_v62 = vsel %vm5360_vm9, %v10455_v46, 0.0  ;;  %vm6150_vm10 = vcmp.eq.s32.totalorder %v512_v7, %v10457_v40 }
 0x36b   : > { %v5084_v13 = vadd.f32 %v4828_v38, %v4290_v15  ;;  %vm6154_vm11 = vcmp.eq.s32.totalorder %v516_v32, %v10457_v40  ;;  %v6420_v16 = vsel %vm6150_vm10, %v10459_v20, 0.0  ;;  %vm874_vm12 = vcmp.eq.s32.totalorder %v10539_v41, %v10331_v0 }
 0x36c   : > { %v5088_v8 = vadd.f32 %v4832_v22, %v4294_v26  ;;  %v6424_v12 = vsel %vm6154_vm11, %v10459_v20, 0.0  ;;  %vm878_vm13 = vcmp.eq.s32.totalorder %v580_v25, %v10331_v0  ;;  %v1144_v24 = vsel %vm874_vm12, %v10351_v36, 0.0 }
 0x36d   : > { %v5882_v9 = vadd.f32 %v5626_v49, %v5084_v13  ;;  %v1148_v6 = vsel %vm878_vm13, %v10351_v36, 0.0  ;;  %vm1424_vm14 = vcmp.eq.s32.totalorder %v10539_v41, %v10333_v55  ;;  %vm1428_vm15 = vcmp.eq.s32.totalorder %v580_v25, %v10333_v55 }
 0x36e   : > { %v5886_v7 = vadd.f32 %v5630_v62, %v5088_v8  ;;  %v1694_v32 = vsel %vm1424_vm14, %v10353_v56, 0.0  ;;  %v1698_v63 = vsel %vm1428_vm15, %v10353_v56, 0.0  ;;  %vm2234_vm0 = vcmp.eq.s32.totalorder %v10539_v41, %v10339_v23 }
 0x36f   : > { %v6676_v45 = vadd.f32 %v6420_v16, %v5882_v9  ;;  %v1950_v44 = vadd.f32 %v1694_v32, %v1144_v24  ;;  %v1954_v54 = vadd.f32 %v1698_v63, %v1148_v6  ;;  %vm2238_vm1 = vcmp.eq.s32.totalorder %v580_v25, %v10339_v23  ;;  %v380_v24 = vld [vmem:[#allocation2 + $0x1b0] sm:$0xff] }
 0x370   : > { %v6680_v28 = vadd.f32 %v6424_v12, %v5886_v7  ;;  %v2504_v43 = vsel %vm2234_vm0, %v10359_v11, 0.0  ;;  %v2508_v42 = vsel %vm2238_vm1, %v10359_v11, 0.0  ;;  %vm3028_vm2 = vcmp.eq.s32.totalorder %v10539_v41, %v10341_v30  ;;  %v376_v12 = vld [vmem:[#allocation2 + $0x190] sm:$0xff] }
 0x371   : > { %v2760_v17 = vadd.f32 %v2504_v43, %v1950_v44  ;;  %v2764_v5 = vadd.f32 %v2508_v42, %v1954_v54  ;;  %vm3032_vm3 = vcmp.eq.s32.totalorder %v580_v25, %v10341_v30  ;;  %v3298_v53 = vsel %vm3028_vm2, %v10365_v1, 0.0 }
 0x372   : > { %v6859_v60 = vpack.c.bf16 %v6680_v28, %v6676_v45  ;;  %v3302_v38 = vsel %vm3032_vm3, %v10365_v1, 0.0  ;;  %vm3828_vm4 = vcmp.eq.s32.totalorder %v10539_v41, %v10387_v51  ;;  %vm3832_vm5 = vcmp.eq.s32.totalorder %v580_v25, %v10387_v51 }
 0x373   : > { %v3554_v15 = vadd.f32 %v3298_v53, %v2760_v17  ;;  %v3558_v22 = vadd.f32 %v3302_v38, %v2764_v5  ;;  %v4098_v26 = vsel %vm3828_vm4, %v10415_v2, 0.0  ;;  %v4102_v49 = vsel %vm3832_vm5, %v10415_v2, 0.0 }
 0x374   : > { %7023 = vmatpush.bf16.msra.mxu2 %v6859_v60  ;;  %vm4622_vm6 = vcmp.eq.s32.totalorder %v10539_v41, %v10404_v59  ;;  %vm4626_vm7 = vcmp.eq.s32.totalorder %v580_v25, %v10404_v59  ;;  %vm5420_vm8 = vcmp.eq.s32.totalorder %v10539_v41, %v10409_v35  ;;  %vm5424_vm9 = vcmp.eq.s32.totalorder %v580_v25, %v10409_v35 }
 0x375   : > { %v4354_v62 = vadd.f32 %v4098_v26, %v3554_v15  ;;  %v4358_v13 = vadd.f32 %v4102_v49, %v3558_v22  ;;  %v4892_v16 = vsel %vm4622_vm6, %v10417_v18, 0.0  ;;  %v4896_v8 = vsel %vm4626_vm7, %v10417_v18, 0.0 }
 0x376   : > { %v5690_v9 = vsel %vm5420_vm8, %v10455_v46, 0.0  ;;  %v5694_v6 = vsel %vm5424_vm9, %v10455_v46, 0.0  ;;  %vm6214_vm10 = vcmp.eq.s32.totalorder %v10539_v41, %v10457_v40  ;;  %vm6218_vm11 = vcmp.eq.s32.totalorder %v580_v25, %v10457_v40 }
 0x377   : > { %v5148_v7 = vadd.f32 %v4892_v16, %v4354_v62  ;;  %v5152_v32 = vadd.f32 %v4896_v8, %v4358_v13  ;;  %v6484_v63 = vsel %vm6214_vm10, %v10459_v20, 0.0  ;;  %v6488_v45 = vsel %vm6218_vm11, %v10459_v20, 0.0 }
 0x378   : > { %vm674_vm12 = vcmp.eq.s32.totalorder %v376_v12, %v10331_v0  ;;  %vm678_vm13 = vcmp.eq.s32.totalorder %v380_v24, %v10331_v0  ;;  %vm1224_vm14 = vcmp.eq.s32.totalorder %v376_v12, %v10333_v55  ;;  %vm1228_vm15 = vcmp.eq.s32.totalorder %v380_v24, %v10333_v55 }
 0x379   : > { %v5946_v44 = vadd.f32 %v5690_v9, %v5148_v7  ;;  %v5950_v54 = vadd.f32 %v5694_v6, %v5152_v32  ;;  %v944_v41 = vsel %vm674_vm12, %v10351_v36, 0.0  ;;  %v948_v25 = vsel %vm678_vm13, %v10351_v36, 0.0  ;;  %v10611_v6 = vld [vmem:[#allocation2 + $0x390] sm:$0xff] }
 0x37a   : > { %v1494_v28 = vsel %vm1224_vm14, %v10353_v56, 0.0  ;;  %v1498_v43 = vsel %vm1228_vm15, %v10353_v56, 0.0  ;;  %vm2034_vm0 = vcmp.eq.s32.totalorder %v376_v12, %v10339_v23  ;;  %vm2038_vm1 = vcmp.eq.s32.totalorder %v380_v24, %v10339_v23 }
 0x37b   : > { %v6740_v42 = vadd.f32 %v6484_v63, %v5946_v44  ;;  %v6744_v17 = vadd.f32 %v6488_v45, %v5950_v54  ;;  %v1750_v5 = vadd.f32 %v1494_v28, %v944_v41  ;;  %v1754_v53 = vadd.f32 %v1498_v43, %v948_v25  ;;  %v444_v54 = vld [vmem:[#allocation2 + $0x3b0] sm:$0xff] }
 0x37c   : > { %v2304_v60 = vsel %vm2034_vm0, %v10359_v11, 0.0  ;;  %v2308_v38 = vsel %vm2038_vm1, %v10359_v11, 0.0  ;;  %vm2828_vm2 = vcmp.eq.s32.totalorder %v376_v12, %v10341_v30  ;;  %vm2832_vm3 = vcmp.eq.s32.totalorder %v380_v24, %v10341_v30 }
 0x37d   : > { %v6891_v15 = vpack.c.bf16 %v6744_v17, %v6740_v42  ;;  %v2560_v22 = vadd.f32 %v2304_v60, %v1750_v5  ;;  %v2564_v26 = vadd.f32 %v2308_v38, %v1754_v53  ;;  %v3098_v49 = vsel %vm2828_vm2, %v10365_v1, 0.0 }
 0x37e   : > { %v3102_v62 = vsel %vm2832_vm3, %v10365_v1, 0.0  ;;  %vm3628_vm4 = vcmp.eq.s32.totalorder %v376_v12, %v10387_v51  ;;  %vm3632_vm5 = vcmp.eq.s32.totalorder %v380_v24, %v10387_v51  ;;  %vm4422_vm6 = vcmp.eq.s32.totalorder %v376_v12, %v10404_v59 }
 0x37f   : > { %7036 = vmatpush.bf16.msra.mxu3 %v6891_v15  ;;  %v3354_v13 = vadd.f32 %v3098_v49, %v2560_v22  ;;  %v3358_v16 = vadd.f32 %v3102_v62, %v2564_v26  ;;  %v3898_v8 = vsel %vm3628_vm4, %v10415_v2, 0.0  ;;  %v3902_v9 = vsel %vm3632_vm5, %v10415_v2, 0.0 }
 0x380   : > { %vm4426_vm7 = vcmp.eq.s32.totalorder %v380_v24, %v10404_v59  ;;  %v4692_v7 = vsel %vm4422_vm6, %v10417_v18, 0.0  ;;  %vm5220_vm8 = vcmp.eq.s32.totalorder %v376_v12, %v10409_v35  ;;  %vm5224_vm9 = vcmp.eq.s32.totalorder %v380_v24, %v10409_v35 }
 0x381   : > { %v4154_v32 = vadd.f32 %v3898_v8, %v3354_v13  ;;  %v4158_v63 = vadd.f32 %v3902_v9, %v3358_v16  ;;  %v4696_v45 = vsel %vm4426_vm7, %v10417_v18, 0.0  ;;  %v5490_v44 = vsel %vm5220_vm8, %v10455_v46, 0.0 }
 0x382   : > { %v5494_v41 = vsel %vm5224_vm9, %v10455_v46, 0.0  ;;  %vm6014_vm10 = vcmp.eq.s32.totalorder %v376_v12, %v10457_v40  ;;  %vm6018_vm11 = vcmp.eq.s32.totalorder %v380_v24, %v10457_v40  ;;  %vm738_vm12 = vcmp.eq.s32.totalorder %v10611_v6, %v10331_v0 }
 0x383   : > { %v4948_v25 = vadd.f32 %v4692_v7, %v4154_v32  ;;  %v4952_v28 = vadd.f32 %v4696_v45, %v4158_v63  ;;  %v6284_v43 = vsel %vm6014_vm10, %v10459_v20, 0.0  ;;  %v6288_v42 = vsel %vm6018_vm11, %v10459_v20, 0.0 }
 0x384   : > { %vm742_vm13 = vcmp.eq.s32.totalorder %v444_v54, %v10331_v0  ;;  %v1008_v17 = vsel %vm738_vm12, %v10351_v36, 0.0  ;;  %vm1288_vm14 = vcmp.eq.s32.totalorder %v10611_v6, %v10333_v55  ;;  %vm1292_vm15 = vcmp.eq.s32.totalorder %v444_v54, %v10333_v55 }
 0x385   : > { %v5746_v12 = vadd.f32 %v5490_v44, %v4948_v25  ;;  %v5750_v24 = vadd.f32 %v5494_v41, %v4952_v28  ;;  %v1012_v5 = vsel %vm742_vm13, %v10351_v36, 0.0  ;;  %v1558_v53 = vsel %vm1288_vm14, %v10353_v56, 0.0 }
 0x386   : > { %v1562_v60 = vsel %vm1292_vm15, %v10353_v56, 0.0  ;;  %v1814_v38 = vadd.f32 %v1558_v53, %v1008_v17  ;;  %vm2098_vm0 = vcmp.eq.s32.totalorder %v10611_v6, %v10339_v23  ;;  %vm2102_vm1 = vcmp.eq.s32.totalorder %v444_v54, %v10339_v23 }
 0x387   : > { %v6540_v15 = vadd.f32 %v6284_v43, %v5746_v12  ;;  %v6544_v22 = vadd.f32 %v6288_v42, %v5750_v24  ;;  %v1818_v26 = vadd.f32 %v1562_v60, %v1012_v5  ;;  %v2368_v49 = vsel %vm2098_vm0, %v10359_v11, 0.0  ;;  %v504_v43 = vld [vmem:[#allocation2 + $0x590] sm:$0xff] }
 0x388   : > { %v2372_v62 = vsel %vm2102_vm1, %v10359_v11, 0.0  ;;  %v2624_v13 = vadd.f32 %v2368_v49, %v1814_v38  ;;  %vm2892_vm2 = vcmp.eq.s32.totalorder %v10611_v6, %v10341_v30  ;;  %vm2896_vm3 = vcmp.eq.s32.totalorder %v444_v54, %v10341_v30  ;;  %v508_v42 = vld [vmem:[#allocation2 + $0x5b0] sm:$0xff] }
 0x389   : > { %v6791_v16 = vpack.c.bf16 %v6544_v22, %v6540_v15  ;;  %v2628_v8 = vadd.f32 %v2372_v62, %v1818_v26  ;;  %v3162_v9 = vsel %vm2892_vm2, %v10365_v1, 0.0  ;;  %v3166_v7 = vsel %vm2896_vm3, %v10365_v1, 0.0 }
 0x38a   : > { %v3418_v32 = vadd.f32 %v3162_v9, %v2624_v13  ;;  %vm3692_vm4 = vcmp.eq.s32.totalorder %v10611_v6, %v10387_v51  ;;  %vm3696_vm5 = vcmp.eq.s32.totalorder %v444_v54, %v10387_v51  ;;  %vm4486_vm6 = vcmp.eq.s32.totalorder %v10611_v6, %v10404_v59 }
 0x38b   : > { %6998 = vmatpush.bf16.msra.mxu0 %v6791_v16  ;;  %v3422_v63 = vadd.f32 %v3166_v7, %v2628_v8  ;;  %v3962_v45 = vsel %vm3692_vm4, %v10415_v2, 0.0  ;;  %v3966_v44 = vsel %vm3696_vm5, %v10415_v2, 0.0  ;;  %vm4490_vm7 = vcmp.eq.s32.totalorder %v444_v54, %v10404_v59 }
 0x38c   : > { %v4218_v41 = vadd.f32 %v3962_v45, %v3418_v32  ;;  %v4756_v25 = vsel %vm4486_vm6, %v10417_v18, 0.0  ;;  %v4760_v28 = vsel %vm4490_vm7, %v10417_v18, 0.0  ;;  %vm5284_vm8 = vcmp.eq.s32.totalorder %v10611_v6, %v10409_v35 }
 0x38d   : > { %v4222_v17 = vadd.f32 %v3966_v44, %v3422_v63  ;;  %vm5288_vm9 = vcmp.eq.s32.totalorder %v444_v54, %v10409_v35  ;;  %v5554_v12 = vsel %vm5284_vm8, %v10455_v46, 0.0  ;;  %vm6078_vm10 = vcmp.eq.s32.totalorder %v10611_v6, %v10457_v40 }
 0x38e   : > { %v5012_v24 = vadd.f32 %v4756_v25, %v4218_v41  ;;  %v5558_v5 = vsel %vm5288_vm9, %v10455_v46, 0.0  ;;  %vm6082_vm11 = vcmp.eq.s32.totalorder %v444_v54, %v10457_v40  ;;  %v6348_v53 = vsel %vm6078_vm10, %v10459_v20, 0.0 }
 0x38f   : > { %v5016_v60 = vadd.f32 %v4760_v28, %v4222_v17  ;;  %v6352_v38 = vsel %vm6082_vm11, %v10459_v20, 0.0  ;;  %vm802_vm12 = vcmp.eq.s32.totalorder %v504_v43, %v10331_v0  ;;  %vm806_vm13 = vcmp.eq.s32.totalorder %v508_v42, %v10331_v0 }
 0x390   : > { %v5810_v15 = vadd.f32 %v5554_v12, %v5012_v24  ;;  %v1072_v22 = vsel %vm802_vm12, %v10351_v36, 0.0  ;;  %v1076_v26 = vsel %vm806_vm13, %v10351_v36, 0.0  ;;  %vm1352_vm14 = vcmp.eq.s32.totalorder %v504_v43, %v10333_v55 }
 0x391   : > { %v5814_v6 = vadd.f32 %v5558_v5, %v5016_v60  ;;  %vm1356_vm15 = vcmp.eq.s32.totalorder %v508_v42, %v10333_v55  ;;  %v1622_v54 = vsel %vm1352_vm14, %v10353_v56, 0.0  ;;  %vm2162_vm0 = vcmp.eq.s32.totalorder %v504_v43, %v10339_v23  ;;  %v10687_v5 = vld [vmem:[#allocation2 + $0x790] sm:$0xff] }
 0x392   : > { %v6604_v49 = vadd.f32 %v6348_v53, %v5810_v15  ;;  %v1626_v62 = vsel %vm1356_vm15, %v10353_v56, 0.0  ;;  %v1878_v13 = vadd.f32 %v1622_v54, %v1072_v22  ;;  %vm2166_vm1 = vcmp.eq.s32.totalorder %v508_v42, %v10339_v23 }
 0x393   : > { %v6608_v16 = vadd.f32 %v6352_v38, %v5814_v6  ;;  %v1882_v8 = vadd.f32 %v1626_v62, %v1076_v26  ;;  %v2432_v9 = vsel %vm2162_vm0, %v10359_v11, 0.0  ;;  %v2436_v7 = vsel %vm2166_vm1, %v10359_v11, 0.0  ;;  %v572_v38 = vld [vmem:[#allocation2 + $0x7b0] sm:$0xff] }
 0x394   : > { %v2688_v32 = vadd.f32 %v2432_v9, %v1878_v13  ;;  %vm2956_vm2 = vcmp.eq.s32.totalorder %v504_v43, %v10341_v30  ;;  %vm2960_vm3 = vcmp.eq.s32.totalorder %v508_v42, %v10341_v30  ;;  %vm3756_vm4 = vcmp.eq.s32.totalorder %v504_v43, %v10387_v51 }
 0x395   : > { %v6823_v63 = vpack.c.bf16 %v6608_v16, %v6604_v49  ;;  %v2692_v45 = vadd.f32 %v2436_v7, %v1882_v8  ;;  %v3226_v44 = vsel %vm2956_vm2, %v10365_v1, 0.0  ;;  %v3230_v41 = vsel %vm2960_vm3, %v10365_v1, 0.0 }
 0x396   : > { %v3482_v25 = vadd.f32 %v3226_v44, %v2688_v32  ;;  %vm3760_vm5 = vcmp.eq.s32.totalorder %v508_v42, %v10387_v51  ;;  %v4026_v28 = vsel %vm3756_vm4, %v10415_v2, 0.0  ;;  %vm4550_vm6 = vcmp.eq.s32.totalorder %v504_v43, %v10404_v59 }
 0x397   : > { %7011 = vmatpush.bf16.msra.mxu1 %v6823_v63  ;;  %v3486_v17 = vadd.f32 %v3230_v41, %v2692_v45  ;;  %v4030_v12 = vsel %vm3760_vm5, %v10415_v2, 0.0  ;;  %vm4554_vm7 = vcmp.eq.s32.totalorder %v508_v42, %v10404_v59  ;;  %v4820_v24 = vsel %vm4550_vm6, %v10417_v18, 0.0 }
 0x398   : > { %v4282_v53 = vadd.f32 %v4026_v28, %v3482_v25  ;;  %v4824_v60 = vsel %vm4554_vm7, %v10417_v18, 0.0  ;;  %vm5348_vm8 = vcmp.eq.s32.totalorder %v504_v43, %v10409_v35  ;;  %vm5352_vm9 = vcmp.eq.s32.totalorder %v508_v42, %v10409_v35 }
 0x399   : > { %v4286_v15 = vadd.f32 %v4030_v12, %v3486_v17  ;;  %v5618_v22 = vsel %vm5348_vm8, %v10455_v46, 0.0  ;;  %v5622_v26 = vsel %vm5352_vm9, %v10455_v46, 0.0  ;;  %vm6142_vm10 = vcmp.eq.s32.totalorder %v504_v43, %v10457_v40 }
 0x39a   : > { %v5076_v6 = vadd.f32 %v4820_v24, %v4282_v53  ;;  %vm6146_vm11 = vcmp.eq.s32.totalorder %v508_v42, %v10457_v40  ;;  %v6412_v54 = vsel %vm6142_vm10, %v10459_v20, 0.0  ;;  %vm866_vm12 = vcmp.eq.s32.totalorder %v10687_v5, %v10331_v0 }
 0x39b   : > { %v5080_v49 = vadd.f32 %v4824_v60, %v4286_v15  ;;  %v6416_v62 = vsel %vm6146_vm11, %v10459_v20, 0.0  ;;  %vm870_vm13 = vcmp.eq.s32.totalorder %v572_v38, %v10331_v0  ;;  %v1136_v13 = vsel %vm866_vm12, %v10351_v36, 0.0 }
 0x39c   : > { %v5874_v16 = vadd.f32 %v5618_v22, %v5076_v6  ;;  %v1140_v8 = vsel %vm870_vm13, %v10351_v36, 0.0  ;;  %vm1416_vm14 = vcmp.eq.s32.totalorder %v10687_v5, %v10333_v55  ;;  %vm1420_vm15 = vcmp.eq.s32.totalorder %v572_v38, %v10333_v55 }
 0x39d   : > { %v5878_v43 = vadd.f32 %v5622_v26, %v5080_v49  ;;  %v1686_v42 = vsel %vm1416_vm14, %v10353_v56, 0.0  ;;  %v1690_v9 = vsel %vm1420_vm15, %v10353_v56, 0.0  ;;  %vm2226_vm0 = vcmp.eq.s32.totalorder %v10687_v5, %v10339_v23 }
 0x39e   : > { %v6668_v7 = vadd.f32 %v6412_v54, %v5874_v16  ;;  %v1942_v32 = vadd.f32 %v1686_v42, %v1136_v13  ;;  %v1946_v63 = vadd.f32 %v1690_v9, %v1140_v8  ;;  %vm2230_vm1 = vcmp.eq.s32.totalorder %v572_v38, %v10339_v23  ;;  %v372_v13 = vld [vmem:[#allocation2 + $0x170] sm:$0xff] }
 0x39f   : > { %v6672_v45 = vadd.f32 %v6416_v62, %v5878_v43  ;;  %v2496_v44 = vsel %vm2226_vm0, %v10359_v11, 0.0  ;;  %v2500_v41 = vsel %vm2230_vm1, %v10359_v11, 0.0  ;;  %vm3020_vm2 = vcmp.eq.s32.totalorder %v10687_v5, %v10341_v30  ;;  %v368_v62 = vld [vmem:[#allocation2 + $0x150] sm:$0xff] }
 0x3a0   : > { %v2752_v25 = vadd.f32 %v2496_v44, %v1942_v32  ;;  %v2756_v28 = vadd.f32 %v2500_v41, %v1946_v63  ;;  %vm3024_vm3 = vcmp.eq.s32.totalorder %v572_v38, %v10341_v30  ;;  %v3290_v17 = vsel %vm3020_vm2, %v10365_v1, 0.0 }
 0x3a1   : > { %v6855_v12 = vpack.c.bf16 %v6672_v45, %v6668_v7  ;;  %v3294_v24 = vsel %vm3024_vm3, %v10365_v1, 0.0  ;;  %vm3820_vm4 = vcmp.eq.s32.totalorder %v10687_v5, %v10387_v51  ;;  %vm3824_vm5 = vcmp.eq.s32.totalorder %v572_v38, %v10387_v51 }
 0x3a2   : > { %v3546_v53 = vadd.f32 %v3290_v17, %v2752_v25  ;;  %v3550_v60 = vadd.f32 %v3294_v24, %v2756_v28  ;;  %v4090_v15 = vsel %vm3820_vm4, %v10415_v2, 0.0  ;;  %v4094_v22 = vsel %vm3824_vm5, %v10415_v2, 0.0 }
 0x3a3   : > { %7024 = vmatpush.bf16.msra.mxu2 %v6855_v12  ;;  %vm4614_vm6 = vcmp.eq.s32.totalorder %v10687_v5, %v10404_v59  ;;  %vm4618_vm7 = vcmp.eq.s32.totalorder %v572_v38, %v10404_v59  ;;  %vm5412_vm8 = vcmp.eq.s32.totalorder %v10687_v5, %v10409_v35  ;;  %vm5416_vm9 = vcmp.eq.s32.totalorder %v572_v38, %v10409_v35 }
 0x3a4   : > { %v4346_v26 = vadd.f32 %v4090_v15, %v3546_v53  ;;  %v4350_v6 = vadd.f32 %v4094_v22, %v3550_v60  ;;  %v4884_v54 = vsel %vm4614_vm6, %v10417_v18, 0.0  ;;  %v4888_v49 = vsel %vm4618_vm7, %v10417_v18, 0.0 }
 0x3a5   : > { %v5682_v16 = vsel %vm5412_vm8, %v10455_v46, 0.0  ;;  %v5686_v8 = vsel %vm5416_vm9, %v10455_v46, 0.0  ;;  %vm6206_vm10 = vcmp.eq.s32.totalorder %v10687_v5, %v10457_v40  ;;  %vm6210_vm11 = vcmp.eq.s32.totalorder %v572_v38, %v10457_v40 }
 0x3a6   : > { %v5140_v43 = vadd.f32 %v4884_v54, %v4346_v26  ;;  %v5144_v42 = vadd.f32 %v4888_v49, %v4350_v6  ;;  %v6476_v9 = vsel %vm6206_vm10, %v10459_v20, 0.0  ;;  %v6480_v7 = vsel %vm6210_vm11, %v10459_v20, 0.0 }
 0x3a7   : > { %vm666_vm12 = vcmp.eq.s32.totalorder %v368_v62, %v10331_v0  ;;  %vm670_vm13 = vcmp.eq.s32.totalorder %v372_v13, %v10331_v0  ;;  %vm1216_vm14 = vcmp.eq.s32.totalorder %v368_v62, %v10333_v55  ;;  %vm1220_vm15 = vcmp.eq.s32.totalorder %v372_v13, %v10333_v55 }
 0x3a8   : > { %v5938_v32 = vadd.f32 %v5682_v16, %v5140_v43  ;;  %v5942_v63 = vadd.f32 %v5686_v8, %v5144_v42  ;;  %v936_v5 = vsel %vm666_vm12, %v10351_v36, 0.0  ;;  %v940_v38 = vsel %vm670_vm13, %v10351_v36, 0.0  ;;  %v10759_v8 = vld [vmem:[#allocation2 + $0x350] sm:$0xff] }
 0x3a9   : > { %v1486_v45 = vsel %vm1216_vm14, %v10353_v56, 0.0  ;;  %v1490_v44 = vsel %vm1220_vm15, %v10353_v56, 0.0  ;;  %vm2026_vm0 = vcmp.eq.s32.totalorder %v368_v62, %v10339_v23  ;;  %vm2030_vm1 = vcmp.eq.s32.totalorder %v372_v13, %v10339_v23 }
 0x3aa   : > { %v6732_v41 = vadd.f32 %v6476_v9, %v5938_v32  ;;  %v6736_v25 = vadd.f32 %v6480_v7, %v5942_v63  ;;  %v1742_v28 = vadd.f32 %v1486_v45, %v936_v5  ;;  %v1746_v17 = vadd.f32 %v1490_v44, %v940_v38  ;;  %v436_v63 = vld [vmem:[#allocation2 + $0x370] sm:$0xff] }
 0x3ab   : > { %v2296_v12 = vsel %vm2026_vm0, %v10359_v11, 0.0  ;;  %v2300_v24 = vsel %vm2030_vm1, %v10359_v11, 0.0  ;;  %vm2820_vm2 = vcmp.eq.s32.totalorder %v368_v62, %v10341_v30  ;;  %vm2824_vm3 = vcmp.eq.s32.totalorder %v372_v13, %v10341_v30 }
 0x3ac   : > { %v6887_v53 = vpack.c.bf16 %v6736_v25, %v6732_v41  ;;  %v2552_v60 = vadd.f32 %v2296_v12, %v1742_v28  ;;  %v2556_v15 = vadd.f32 %v2300_v24, %v1746_v17  ;;  %v3090_v22 = vsel %vm2820_vm2, %v10365_v1, 0.0 }
 0x3ad   : > { %v3094_v26 = vsel %vm2824_vm3, %v10365_v1, 0.0  ;;  %vm3620_vm4 = vcmp.eq.s32.totalorder %v368_v62, %v10387_v51  ;;  %vm3624_vm5 = vcmp.eq.s32.totalorder %v372_v13, %v10387_v51  ;;  %vm4414_vm6 = vcmp.eq.s32.totalorder %v368_v62, %v10404_v59 }
 0x3ae   : > { %7037 = vmatpush.bf16.msra.mxu3 %v6887_v53  ;;  %v3346_v6 = vadd.f32 %v3090_v22, %v2552_v60  ;;  %v3350_v54 = vadd.f32 %v3094_v26, %v2556_v15  ;;  %v3890_v49 = vsel %vm3620_vm4, %v10415_v2, 0.0  ;;  %v3894_v16 = vsel %vm3624_vm5, %v10415_v2, 0.0 }
 0x3af   : > { %vm4418_vm7 = vcmp.eq.s32.totalorder %v372_v13, %v10404_v59  ;;  %v4684_v43 = vsel %vm4414_vm6, %v10417_v18, 0.0  ;;  %vm5212_vm8 = vcmp.eq.s32.totalorder %v368_v62, %v10409_v35  ;;  %vm5216_vm9 = vcmp.eq.s32.totalorder %v372_v13, %v10409_v35 }
 0x3b0   : > { %v4146_v42 = vadd.f32 %v3890_v49, %v3346_v6  ;;  %v4150_v9 = vadd.f32 %v3894_v16, %v3350_v54  ;;  %v4688_v7 = vsel %vm4418_vm7, %v10417_v18, 0.0  ;;  %v5482_v32 = vsel %vm5212_vm8, %v10455_v46, 0.0 }
 0x3b1   : > { %v5486_v5 = vsel %vm5216_vm9, %v10455_v46, 0.0  ;;  %vm6006_vm10 = vcmp.eq.s32.totalorder %v368_v62, %v10457_v40  ;;  %vm6010_vm11 = vcmp.eq.s32.totalorder %v372_v13, %v10457_v40  ;;  %vm730_vm12 = vcmp.eq.s32.totalorder %v10759_v8, %v10331_v0 }
 0x3b2   : > { %v4940_v38 = vadd.f32 %v4684_v43, %v4146_v42  ;;  %v4944_v45 = vadd.f32 %v4688_v7, %v4150_v9  ;;  %v6276_v44 = vsel %vm6006_vm10, %v10459_v20, 0.0  ;;  %v6280_v41 = vsel %vm6010_vm11, %v10459_v20, 0.0 }
 0x3b3   : > { %vm734_vm13 = vcmp.eq.s32.totalorder %v436_v63, %v10331_v0  ;;  %v1000_v25 = vsel %vm730_vm12, %v10351_v36, 0.0  ;;  %vm1280_vm14 = vcmp.eq.s32.totalorder %v10759_v8, %v10333_v55  ;;  %vm1284_vm15 = vcmp.eq.s32.totalorder %v436_v63, %v10333_v55 }
 0x3b4   : > { %v5738_v62 = vadd.f32 %v5482_v32, %v4940_v38  ;;  %v5742_v13 = vadd.f32 %v5486_v5, %v4944_v45  ;;  %v1004_v28 = vsel %vm734_vm13, %v10351_v36, 0.0  ;;  %v1550_v17 = vsel %vm1280_vm14, %v10353_v56, 0.0 }
 0x3b5   : > { %v1554_v12 = vsel %vm1284_vm15, %v10353_v56, 0.0  ;;  %v1806_v24 = vadd.f32 %v1550_v17, %v1000_v25  ;;  %vm2090_vm0 = vcmp.eq.s32.totalorder %v10759_v8, %v10339_v23  ;;  %vm2094_vm1 = vcmp.eq.s32.totalorder %v436_v63, %v10339_v23 }
 0x3b6   : > { %v6532_v53 = vadd.f32 %v6276_v44, %v5738_v62  ;;  %v6536_v60 = vadd.f32 %v6280_v41, %v5742_v13  ;;  %v1810_v15 = vadd.f32 %v1554_v12, %v1004_v28  ;;  %v2360_v22 = vsel %vm2090_vm0, %v10359_v11, 0.0  ;;  %v496_v44 = vld [vmem:[#allocation2 + $0x550] sm:$0xff] }
 0x3b7   : > { %v2364_v26 = vsel %vm2094_vm1, %v10359_v11, 0.0  ;;  %v2616_v6 = vadd.f32 %v2360_v22, %v1806_v24  ;;  %vm2884_vm2 = vcmp.eq.s32.totalorder %v10759_v8, %v10341_v30  ;;  %vm2888_vm3 = vcmp.eq.s32.totalorder %v436_v63, %v10341_v30  ;;  %v500_v41 = vld [vmem:[#allocation2 + $0x570] sm:$0xff] }
 0x3b8   : > { %v6787_v54 = vpack.c.bf16 %v6536_v60, %v6532_v53  ;;  %v2620_v49 = vadd.f32 %v2364_v26, %v1810_v15  ;;  %v3154_v16 = vsel %vm2884_vm2, %v10365_v1, 0.0  ;;  %v3158_v43 = vsel %vm2888_vm3, %v10365_v1, 0.0 }
 0x3b9   : > { %v3410_v42 = vadd.f32 %v3154_v16, %v2616_v6  ;;  %vm3684_vm4 = vcmp.eq.s32.totalorder %v10759_v8, %v10387_v51  ;;  %vm3688_vm5 = vcmp.eq.s32.totalorder %v436_v63, %v10387_v51  ;;  %vm4478_vm6 = vcmp.eq.s32.totalorder %v10759_v8, %v10404_v59 }
 0x3ba   : > { %6999 = vmatpush.bf16.msra.mxu0 %v6787_v54  ;;  %v3414_v9 = vadd.f32 %v3158_v43, %v2620_v49  ;;  %v3954_v7 = vsel %vm3684_vm4, %v10415_v2, 0.0  ;;  %v3958_v32 = vsel %vm3688_vm5, %v10415_v2, 0.0  ;;  %vm4482_vm7 = vcmp.eq.s32.totalorder %v436_v63, %v10404_v59 }
 0x3bb   : > { %v4210_v5 = vadd.f32 %v3954_v7, %v3410_v42  ;;  %v4748_v38 = vsel %vm4478_vm6, %v10417_v18, 0.0  ;;  %v4752_v45 = vsel %vm4482_vm7, %v10417_v18, 0.0  ;;  %vm5276_vm8 = vcmp.eq.s32.totalorder %v10759_v8, %v10409_v35 }
 0x3bc   : > { %v4214_v25 = vadd.f32 %v3958_v32, %v3414_v9  ;;  %vm5280_vm9 = vcmp.eq.s32.totalorder %v436_v63, %v10409_v35  ;;  %v5546_v62 = vsel %vm5276_vm8, %v10455_v46, 0.0  ;;  %vm6070_vm10 = vcmp.eq.s32.totalorder %v10759_v8, %v10457_v40 }
 0x3bd   : > { %v5004_v13 = vadd.f32 %v4748_v38, %v4210_v5  ;;  %v5550_v28 = vsel %vm5280_vm9, %v10455_v46, 0.0  ;;  %vm6074_vm11 = vcmp.eq.s32.totalorder %v436_v63, %v10457_v40  ;;  %v6340_v17 = vsel %vm6070_vm10, %v10459_v20, 0.0 }
 0x3be   : > { %v5008_v12 = vadd.f32 %v4752_v45, %v4214_v25  ;;  %v6344_v24 = vsel %vm6074_vm11, %v10459_v20, 0.0  ;;  %vm794_vm12 = vcmp.eq.s32.totalorder %v496_v44, %v10331_v0  ;;  %vm798_vm13 = vcmp.eq.s32.totalorder %v500_v41, %v10331_v0 }
 0x3bf   : > { %v5802_v53 = vadd.f32 %v5546_v62, %v5004_v13  ;;  %v1064_v60 = vsel %vm794_vm12, %v10351_v36, 0.0  ;;  %v1068_v15 = vsel %vm798_vm13, %v10351_v36, 0.0  ;;  %vm1344_vm14 = vcmp.eq.s32.totalorder %v496_v44, %v10333_v55 }
 0x3c0   : > { %v5806_v8 = vadd.f32 %v5550_v28, %v5008_v12  ;;  %vm1348_vm15 = vcmp.eq.s32.totalorder %v500_v41, %v10333_v55  ;;  %v1614_v63 = vsel %vm1344_vm14, %v10353_v56, 0.0  ;;  %vm2154_vm0 = vcmp.eq.s32.totalorder %v496_v44, %v10339_v23  ;;  %v10835_v28 = vld [vmem:[#allocation2 + $0x750] sm:$0xff] }
 0x3c1   : > { %v6596_v22 = vadd.f32 %v6340_v17, %v5802_v53  ;;  %v1618_v26 = vsel %vm1348_vm15, %v10353_v56, 0.0  ;;  %v1870_v6 = vadd.f32 %v1614_v63, %v1064_v60  ;;  %vm2158_vm1 = vcmp.eq.s32.totalorder %v500_v41, %v10339_v23 }
 0x3c2   : > { %v6600_v54 = vadd.f32 %v6344_v24, %v5806_v8  ;;  %v1874_v49 = vadd.f32 %v1618_v26, %v1068_v15  ;;  %v2424_v16 = vsel %vm2154_vm0, %v10359_v11, 0.0  ;;  %v2428_v43 = vsel %vm2158_vm1, %v10359_v11, 0.0  ;;  %v564_v24 = vld [vmem:[#allocation2 + $0x770] sm:$0xff] }
 0x3c3   : > { %v2680_v42 = vadd.f32 %v2424_v16, %v1870_v6  ;;  %vm2948_vm2 = vcmp.eq.s32.totalorder %v496_v44, %v10341_v30  ;;  %vm2952_vm3 = vcmp.eq.s32.totalorder %v500_v41, %v10341_v30  ;;  %vm3748_vm4 = vcmp.eq.s32.totalorder %v496_v44, %v10387_v51 }
 0x3c4   : > { %v6819_v9 = vpack.c.bf16 %v6600_v54, %v6596_v22  ;;  %v2684_v7 = vadd.f32 %v2428_v43, %v1874_v49  ;;  %v3218_v32 = vsel %vm2948_vm2, %v10365_v1, 0.0  ;;  %v3222_v5 = vsel %vm2952_vm3, %v10365_v1, 0.0 }
 0x3c5   : > { %v3474_v38 = vadd.f32 %v3218_v32, %v2680_v42  ;;  %vm3752_vm5 = vcmp.eq.s32.totalorder %v500_v41, %v10387_v51  ;;  %v4018_v45 = vsel %vm3748_vm4, %v10415_v2, 0.0  ;;  %vm4542_vm6 = vcmp.eq.s32.totalorder %v496_v44, %v10404_v59 }
 0x3c6   : > { %7012 = vmatpush.bf16.msra.mxu1 %v6819_v9  ;;  %v3478_v25 = vadd.f32 %v3222_v5, %v2684_v7  ;;  %v4022_v62 = vsel %vm3752_vm5, %v10415_v2, 0.0  ;;  %vm4546_vm7 = vcmp.eq.s32.totalorder %v500_v41, %v10404_v59  ;;  %v4812_v13 = vsel %vm4542_vm6, %v10417_v18, 0.0 }
 0x3c7   : > { %v4274_v17 = vadd.f32 %v4018_v45, %v3474_v38  ;;  %v4816_v12 = vsel %vm4546_vm7, %v10417_v18, 0.0  ;;  %vm5340_vm8 = vcmp.eq.s32.totalorder %v496_v44, %v10409_v35  ;;  %vm5344_vm9 = vcmp.eq.s32.totalorder %v500_v41, %v10409_v35 }
 0x3c8   : > { %v4278_v53 = vadd.f32 %v4022_v62, %v3478_v25  ;;  %v5610_v60 = vsel %vm5340_vm8, %v10455_v46, 0.0  ;;  %v5614_v15 = vsel %vm5344_vm9, %v10455_v46, 0.0  ;;  %vm6134_vm10 = vcmp.eq.s32.totalorder %v496_v44, %v10457_v40 }
 0x3c9   : > { %v5068_v8 = vadd.f32 %v4812_v13, %v4274_v17  ;;  %vm6138_vm11 = vcmp.eq.s32.totalorder %v500_v41, %v10457_v40  ;;  %v6404_v63 = vsel %vm6134_vm10, %v10459_v20, 0.0  ;;  %vm858_vm12 = vcmp.eq.s32.totalorder %v10835_v28, %v10331_v0 }
 0x3ca   : > { %v5072_v22 = vadd.f32 %v4816_v12, %v4278_v53  ;;  %v6408_v26 = vsel %vm6138_vm11, %v10459_v20, 0.0  ;;  %vm862_vm13 = vcmp.eq.s32.totalorder %v564_v24, %v10331_v0  ;;  %v1128_v6 = vsel %vm858_vm12, %v10351_v36, 0.0 }
 0x3cb   : > { %v5866_v54 = vadd.f32 %v5610_v60, %v5068_v8  ;;  %v1132_v49 = vsel %vm862_vm13, %v10351_v36, 0.0  ;;  %vm1408_vm14 = vcmp.eq.s32.totalorder %v10835_v28, %v10333_v55  ;;  %vm1412_vm15 = vcmp.eq.s32.totalorder %v564_v24, %v10333_v55 }
 0x3cc   : > { %v5870_v44 = vadd.f32 %v5614_v15, %v5072_v22  ;;  %v1678_v41 = vsel %vm1408_vm14, %v10353_v56, 0.0  ;;  %v1682_v16 = vsel %vm1412_vm15, %v10353_v56, 0.0  ;;  %vm2218_vm0 = vcmp.eq.s32.totalorder %v10835_v28, %v10339_v23 }
 0x3cd   : > { %v6660_v43 = vadd.f32 %v6404_v63, %v5866_v54  ;;  %v1934_v42 = vadd.f32 %v1678_v41, %v1128_v6  ;;  %v1938_v9 = vadd.f32 %v1682_v16, %v1132_v49  ;;  %vm2222_vm1 = vcmp.eq.s32.totalorder %v564_v24, %v10339_v23  ;;  %v364_v6 = vld [vmem:[#allocation2 + $0x130] sm:$0xff] }
 0x3ce   : > { %v6664_v7 = vadd.f32 %v6408_v26, %v5870_v44  ;;  %v2488_v32 = vsel %vm2218_vm0, %v10359_v11, 0.0  ;;  %v2492_v5 = vsel %vm2222_vm1, %v10359_v11, 0.0  ;;  %vm3012_vm2 = vcmp.eq.s32.totalorder %v10835_v28, %v10341_v30  ;;  %v360_v26 = vld [vmem:[#allocation2 + $0x110] sm:$0xff] }
 0x3cf   : > { %v2744_v38 = vadd.f32 %v2488_v32, %v1934_v42  ;;  %v2748_v45 = vadd.f32 %v2492_v5, %v1938_v9  ;;  %vm3016_vm3 = vcmp.eq.s32.totalorder %v564_v24, %v10341_v30  ;;  %v3282_v25 = vsel %vm3012_vm2, %v10365_v1, 0.0 }
 0x3d0   : > { %v6851_v62 = vpack.c.bf16 %v6664_v7, %v6660_v43  ;;  %v3286_v13 = vsel %vm3016_vm3, %v10365_v1, 0.0  ;;  %vm3812_vm4 = vcmp.eq.s32.totalorder %v10835_v28, %v10387_v51  ;;  %vm3816_vm5 = vcmp.eq.s32.totalorder %v564_v24, %v10387_v51 }
 0x3d1   : > { %v3538_v17 = vadd.f32 %v3282_v25, %v2744_v38  ;;  %v3542_v12 = vadd.f32 %v3286_v13, %v2748_v45  ;;  %v4082_v53 = vsel %vm3812_vm4, %v10415_v2, 0.0  ;;  %v4086_v60 = vsel %vm3816_vm5, %v10415_v2, 0.0 }
 0x3d2   : > { %7025 = vmatpush.bf16.msra.mxu2 %v6851_v62  ;;  %vm4606_vm6 = vcmp.eq.s32.totalorder %v10835_v28, %v10404_v59  ;;  %vm4610_vm7 = vcmp.eq.s32.totalorder %v564_v24, %v10404_v59  ;;  %vm5404_vm8 = vcmp.eq.s32.totalorder %v10835_v28, %v10409_v35  ;;  %vm5408_vm9 = vcmp.eq.s32.totalorder %v564_v24, %v10409_v35 }
 0x3d3   : > { %v4338_v15 = vadd.f32 %v4082_v53, %v3538_v17  ;;  %v4342_v8 = vadd.f32 %v4086_v60, %v3542_v12  ;;  %v4876_v63 = vsel %vm4606_vm6, %v10417_v18, 0.0  ;;  %v4880_v22 = vsel %vm4610_vm7, %v10417_v18, 0.0 }
 0x3d4   : > { %v5674_v54 = vsel %vm5404_vm8, %v10455_v46, 0.0  ;;  %v5678_v49 = vsel %vm5408_vm9, %v10455_v46, 0.0  ;;  %vm6198_vm10 = vcmp.eq.s32.totalorder %v10835_v28, %v10457_v40  ;;  %vm6202_vm11 = vcmp.eq.s32.totalorder %v564_v24, %v10457_v40 }
 0x3d5   : > { %v5132_v44 = vadd.f32 %v4876_v63, %v4338_v15  ;;  %v5136_v41 = vadd.f32 %v4880_v22, %v4342_v8  ;;  %v6468_v16 = vsel %vm6198_vm10, %v10459_v20, 0.0  ;;  %v6472_v43 = vsel %vm6202_vm11, %v10459_v20, 0.0 }
 0x3d6   : > { %vm658_vm12 = vcmp.eq.s32.totalorder %v360_v26, %v10331_v0  ;;  %vm662_vm13 = vcmp.eq.s32.totalorder %v364_v6, %v10331_v0  ;;  %vm1208_vm14 = vcmp.eq.s32.totalorder %v360_v26, %v10333_v55  ;;  %vm1212_vm15 = vcmp.eq.s32.totalorder %v364_v6, %v10333_v55 }
 0x3d7   : > { %v5930_v42 = vadd.f32 %v5674_v54, %v5132_v44  ;;  %v5934_v9 = vadd.f32 %v5678_v49, %v5136_v41  ;;  %v928_v28 = vsel %vm658_vm12, %v10351_v36, 0.0  ;;  %v932_v24 = vsel %vm662_vm13, %v10351_v36, 0.0  ;;  %v10907_v49 = vld [vmem:[#allocation2 + $0x310] sm:$0xff] }
 0x3d8   : > { %v1478_v7 = vsel %vm1208_vm14, %v10353_v56, 0.0  ;;  %v1482_v32 = vsel %vm1212_vm15, %v10353_v56, 0.0  ;;  %vm2018_vm0 = vcmp.eq.s32.totalorder %v360_v26, %v10339_v23  ;;  %vm2022_vm1 = vcmp.eq.s32.totalorder %v364_v6, %v10339_v23 }
 0x3d9   : > { %v6724_v5 = vadd.f32 %v6468_v16, %v5930_v42  ;;  %v6728_v38 = vadd.f32 %v6472_v43, %v5934_v9  ;;  %v1734_v45 = vadd.f32 %v1478_v7, %v928_v28  ;;  %v1738_v25 = vadd.f32 %v1482_v32, %v932_v24  ;;  %v428_v9 = vld [vmem:[#allocation2 + $0x330] sm:$0xff] }
 0x3da   : > { %v2288_v62 = vsel %vm2018_vm0, %v10359_v11, 0.0  ;;  %v2292_v13 = vsel %vm2022_vm1, %v10359_v11, 0.0  ;;  %vm2812_vm2 = vcmp.eq.s32.totalorder %v360_v26, %v10341_v30  ;;  %vm2816_vm3 = vcmp.eq.s32.totalorder %v364_v6, %v10341_v30 }
 0x3db   : > { %v6883_v17 = vpack.c.bf16 %v6728_v38, %v6724_v5  ;;  %v2544_v12 = vadd.f32 %v2288_v62, %v1734_v45  ;;  %v2548_v53 = vadd.f32 %v2292_v13, %v1738_v25  ;;  %v3082_v60 = vsel %vm2812_vm2, %v10365_v1, 0.0 }
 0x3dc   : > { %v3086_v15 = vsel %vm2816_vm3, %v10365_v1, 0.0  ;;  %vm3612_vm4 = vcmp.eq.s32.totalorder %v360_v26, %v10387_v51  ;;  %vm3616_vm5 = vcmp.eq.s32.totalorder %v364_v6, %v10387_v51  ;;  %vm4406_vm6 = vcmp.eq.s32.totalorder %v360_v26, %v10404_v59 }
 0x3dd   : > { %7038 = vmatpush.bf16.msra.mxu3 %v6883_v17  ;;  %v3338_v8 = vadd.f32 %v3082_v60, %v2544_v12  ;;  %v3342_v63 = vadd.f32 %v3086_v15, %v2548_v53  ;;  %v3882_v22 = vsel %vm3612_vm4, %v10415_v2, 0.0  ;;  %v3886_v54 = vsel %vm3616_vm5, %v10415_v2, 0.0 }
 0x3de   : > { %vm4410_vm7 = vcmp.eq.s32.totalorder %v364_v6, %v10404_v59  ;;  %v4676_v44 = vsel %vm4406_vm6, %v10417_v18, 0.0  ;;  %vm5204_vm8 = vcmp.eq.s32.totalorder %v360_v26, %v10409_v35  ;;  %vm5208_vm9 = vcmp.eq.s32.totalorder %v364_v6, %v10409_v35 }
 0x3df   : > { %v4138_v41 = vadd.f32 %v3882_v22, %v3338_v8  ;;  %v4142_v16 = vadd.f32 %v3886_v54, %v3342_v63  ;;  %v4680_v43 = vsel %vm4410_vm7, %v10417_v18, 0.0  ;;  %v5474_v42 = vsel %vm5204_vm8, %v10455_v46, 0.0 }
 0x3e0   : > { %v5478_v28 = vsel %vm5208_vm9, %v10455_v46, 0.0  ;;  %vm5998_vm10 = vcmp.eq.s32.totalorder %v360_v26, %v10457_v40  ;;  %vm6002_vm11 = vcmp.eq.s32.totalorder %v364_v6, %v10457_v40  ;;  %vm722_vm12 = vcmp.eq.s32.totalorder %v10907_v49, %v10331_v0 }
 0x3e1   : > { %v4932_v24 = vadd.f32 %v4676_v44, %v4138_v41  ;;  %v4936_v7 = vadd.f32 %v4680_v43, %v4142_v16  ;;  %v6268_v32 = vsel %vm5998_vm10, %v10459_v20, 0.0  ;;  %v6272_v5 = vsel %vm6002_vm11, %v10459_v20, 0.0 }
 0x3e2   : > { %vm726_vm13 = vcmp.eq.s32.totalorder %v428_v9, %v10331_v0  ;;  %v992_v38 = vsel %vm722_vm12, %v10351_v36, 0.0  ;;  %vm1272_vm14 = vcmp.eq.s32.totalorder %v10907_v49, %v10333_v55  ;;  %vm1276_vm15 = vcmp.eq.s32.totalorder %v428_v9, %v10333_v55 }
 0x3e3   : > { %v5730_v26 = vadd.f32 %v5474_v42, %v4932_v24  ;;  %v5734_v6 = vadd.f32 %v5478_v28, %v4936_v7  ;;  %v996_v45 = vsel %vm726_vm13, %v10351_v36, 0.0  ;;  %v1542_v25 = vsel %vm1272_vm14, %v10353_v56, 0.0 }
 0x3e4   : > { %v1546_v62 = vsel %vm1276_vm15, %v10353_v56, 0.0  ;;  %v1798_v13 = vadd.f32 %v1542_v25, %v992_v38  ;;  %vm2082_vm0 = vcmp.eq.s32.totalorder %v10907_v49, %v10339_v23  ;;  %vm2086_vm1 = vcmp.eq.s32.totalorder %v428_v9, %v10339_v23 }
 0x3e5   : > { %v6524_v17 = vadd.f32 %v6268_v32, %v5730_v26  ;;  %v6528_v12 = vadd.f32 %v6272_v5, %v5734_v6  ;;  %v1802_v53 = vadd.f32 %v1546_v62, %v996_v45  ;;  %v2352_v60 = vsel %vm2082_vm0, %v10359_v11, 0.0  ;;  %v488_v32 = vld [vmem:[#allocation2 + $0x510] sm:$0xff] }
 0x3e6   : > { %v2356_v15 = vsel %vm2086_vm1, %v10359_v11, 0.0  ;;  %v2608_v8 = vadd.f32 %v2352_v60, %v1798_v13  ;;  %vm2876_vm2 = vcmp.eq.s32.totalorder %v10907_v49, %v10341_v30  ;;  %vm2880_vm3 = vcmp.eq.s32.totalorder %v428_v9, %v10341_v30  ;;  %v492_v5 = vld [vmem:[#allocation2 + $0x530] sm:$0xff] }
 0x3e7   : > { %v6783_v63 = vpack.c.bf16 %v6528_v12, %v6524_v17  ;;  %v2612_v22 = vadd.f32 %v2356_v15, %v1802_v53  ;;  %v3146_v54 = vsel %vm2876_vm2, %v10365_v1, 0.0  ;;  %v3150_v44 = vsel %vm2880_vm3, %v10365_v1, 0.0 }
 0x3e8   : > { %v3402_v41 = vadd.f32 %v3146_v54, %v2608_v8  ;;  %vm3676_vm4 = vcmp.eq.s32.totalorder %v10907_v49, %v10387_v51  ;;  %vm3680_vm5 = vcmp.eq.s32.totalorder %v428_v9, %v10387_v51  ;;  %vm4470_vm6 = vcmp.eq.s32.totalorder %v10907_v49, %v10404_v59 }
 0x3e9   : > { %7000 = vmatpush.bf16.msra.mxu0 %v6783_v63  ;;  %v3406_v16 = vadd.f32 %v3150_v44, %v2612_v22  ;;  %v3946_v43 = vsel %vm3676_vm4, %v10415_v2, 0.0  ;;  %v3950_v42 = vsel %vm3680_vm5, %v10415_v2, 0.0  ;;  %vm4474_vm7 = vcmp.eq.s32.totalorder %v428_v9, %v10404_v59 }
 0x3ea   : > { %v4202_v28 = vadd.f32 %v3946_v43, %v3402_v41  ;;  %v4740_v24 = vsel %vm4470_vm6, %v10417_v18, 0.0  ;;  %v4744_v7 = vsel %vm4474_vm7, %v10417_v18, 0.0  ;;  %vm5268_vm8 = vcmp.eq.s32.totalorder %v10907_v49, %v10409_v35 }
 0x3eb   : > { %v4206_v38 = vadd.f32 %v3950_v42, %v3406_v16  ;;  %vm5272_vm9 = vcmp.eq.s32.totalorder %v428_v9, %v10409_v35  ;;  %v5538_v26 = vsel %vm5268_vm8, %v10455_v46, 0.0  ;;  %vm6062_vm10 = vcmp.eq.s32.totalorder %v10907_v49, %v10457_v40 }
 0x3ec   : > { %v4996_v6 = vadd.f32 %v4740_v24, %v4202_v28  ;;  %v5542_v45 = vsel %vm5272_vm9, %v10455_v46, 0.0  ;;  %vm6066_vm11 = vcmp.eq.s32.totalorder %v428_v9, %v10457_v40  ;;  %v6332_v25 = vsel %vm6062_vm10, %v10459_v20, 0.0 }
 0x3ed   : > { %v5000_v62 = vadd.f32 %v4744_v7, %v4206_v38  ;;  %v6336_v13 = vsel %vm6066_vm11, %v10459_v20, 0.0  ;;  %vm786_vm12 = vcmp.eq.s32.totalorder %v488_v32, %v10331_v0  ;;  %vm790_vm13 = vcmp.eq.s32.totalorder %v492_v5, %v10331_v0 }
 0x3ee   : > { %v5794_v17 = vadd.f32 %v5538_v26, %v4996_v6  ;;  %v1056_v12 = vsel %vm786_vm12, %v10351_v36, 0.0  ;;  %v1060_v53 = vsel %vm790_vm13, %v10351_v36, 0.0  ;;  %vm1336_vm14 = vcmp.eq.s32.totalorder %v488_v32, %v10333_v55 }
 0x3ef   : > { %v5798_v49 = vadd.f32 %v5542_v45, %v5000_v62  ;;  %vm1340_vm15 = vcmp.eq.s32.totalorder %v492_v5, %v10333_v55  ;;  %v1606_v9 = vsel %vm1336_vm14, %v10353_v56, 0.0  ;;  %vm2146_vm0 = vcmp.eq.s32.totalorder %v488_v32, %v10339_v23  ;;  %v10983_v45 = vld [vmem:[#allocation2 + $0x710] sm:$0xff] }
 0x3f0   : > { %v6588_v60 = vadd.f32 %v6332_v25, %v5794_v17  ;;  %v1610_v15 = vsel %vm1340_vm15, %v10353_v56, 0.0  ;;  %v1862_v8 = vadd.f32 %v1606_v9, %v1056_v12  ;;  %vm2150_vm1 = vcmp.eq.s32.totalorder %v492_v5, %v10339_v23 }
 0x3f1   : > { %v6592_v63 = vadd.f32 %v6336_v13, %v5798_v49  ;;  %v1866_v22 = vadd.f32 %v1610_v15, %v1060_v53  ;;  %v2416_v54 = vsel %vm2146_vm0, %v10359_v11, 0.0  ;;  %v2420_v44 = vsel %vm2150_vm1, %v10359_v11, 0.0  ;;  %v556_v13 = vld [vmem:[#allocation2 + $0x730] sm:$0xff] }
 0x3f2   : > { %v2672_v41 = vadd.f32 %v2416_v54, %v1862_v8  ;;  %vm2940_vm2 = vcmp.eq.s32.totalorder %v488_v32, %v10341_v30  ;;  %vm2944_vm3 = vcmp.eq.s32.totalorder %v492_v5, %v10341_v30  ;;  %vm3740_vm4 = vcmp.eq.s32.totalorder %v488_v32, %v10387_v51 }
 0x3f3   : > { %v6815_v16 = vpack.c.bf16 %v6592_v63, %v6588_v60  ;;  %v2676_v43 = vadd.f32 %v2420_v44, %v1866_v22  ;;  %v3210_v42 = vsel %vm2940_vm2, %v10365_v1, 0.0  ;;  %v3214_v28 = vsel %vm2944_vm3, %v10365_v1, 0.0 }
 0x3f4   : > { %v3466_v24 = vadd.f32 %v3210_v42, %v2672_v41  ;;  %vm3744_vm5 = vcmp.eq.s32.totalorder %v492_v5, %v10387_v51  ;;  %v4010_v7 = vsel %vm3740_vm4, %v10415_v2, 0.0  ;;  %vm4534_vm6 = vcmp.eq.s32.totalorder %v488_v32, %v10404_v59 }
 0x3f5   : > { %7013 = vmatpush.bf16.msra.mxu1 %v6815_v16  ;;  %v3470_v38 = vadd.f32 %v3214_v28, %v2676_v43  ;;  %v4014_v26 = vsel %vm3744_vm5, %v10415_v2, 0.0  ;;  %vm4538_vm7 = vcmp.eq.s32.totalorder %v492_v5, %v10404_v59  ;;  %v4804_v6 = vsel %vm4534_vm6, %v10417_v18, 0.0 }
 0x3f6   : > { %v4266_v25 = vadd.f32 %v4010_v7, %v3466_v24  ;;  %v4808_v62 = vsel %vm4538_vm7, %v10417_v18, 0.0  ;;  %vm5332_vm8 = vcmp.eq.s32.totalorder %v488_v32, %v10409_v35  ;;  %vm5336_vm9 = vcmp.eq.s32.totalorder %v492_v5, %v10409_v35 }
 0x3f7   : > { %v4270_v17 = vadd.f32 %v4014_v26, %v3470_v38  ;;  %v5602_v12 = vsel %vm5332_vm8, %v10455_v46, 0.0  ;;  %v5606_v53 = vsel %vm5336_vm9, %v10455_v46, 0.0  ;;  %vm6126_vm10 = vcmp.eq.s32.totalorder %v488_v32, %v10457_v40 }
 0x3f8   : > { %v5060_v49 = vadd.f32 %v4804_v6, %v4266_v25  ;;  %vm6130_vm11 = vcmp.eq.s32.totalorder %v492_v5, %v10457_v40  ;;  %v6396_v9 = vsel %vm6126_vm10, %v10459_v20, 0.0  ;;  %vm850_vm12 = vcmp.eq.s32.totalorder %v10983_v45, %v10331_v0 }
 0x3f9   : > { %v5064_v60 = vadd.f32 %v4808_v62, %v4270_v17  ;;  %v6400_v15 = vsel %vm6130_vm11, %v10459_v20, 0.0  ;;  %vm854_vm13 = vcmp.eq.s32.totalorder %v556_v13, %v10331_v0  ;;  %v1120_v8 = vsel %vm850_vm12, %v10351_v36, 0.0 }
 0x3fa   : > { %v5858_v63 = vadd.f32 %v5602_v12, %v5060_v49  ;;  %v1124_v22 = vsel %vm854_vm13, %v10351_v36, 0.0  ;;  %vm1400_vm14 = vcmp.eq.s32.totalorder %v10983_v45, %v10333_v55  ;;  %vm1404_vm15 = vcmp.eq.s32.totalorder %v556_v13, %v10333_v55 }
 0x3fb   : > { %v5862_v32 = vadd.f32 %v5606_v53, %v5064_v60  ;;  %v1670_v5 = vsel %vm1400_vm14, %v10353_v56, 0.0  ;;  %v1674_v54 = vsel %vm1404_vm15, %v10353_v56, 0.0  ;;  %vm2210_vm0 = vcmp.eq.s32.totalorder %v10983_v45, %v10339_v23 }
 0x3fc   : > { %v6652_v44 = vadd.f32 %v6396_v9, %v5858_v63  ;;  %v1926_v41 = vadd.f32 %v1670_v5, %v1120_v8  ;;  %v1930_v16 = vadd.f32 %v1674_v54, %v1124_v22  ;;  %vm2214_vm1 = vcmp.eq.s32.totalorder %v556_v13, %v10339_v23  ;;  %v356_v8 = vld [vmem:[#allocation2 + $0xf0] sm:$0xff] }
 0x3fd   : > { %v6656_v43 = vadd.f32 %v6400_v15, %v5862_v32  ;;  %v2480_v42 = vsel %vm2210_vm0, %v10359_v11, 0.0  ;;  %v2484_v28 = vsel %vm2214_vm1, %v10359_v11, 0.0  ;;  %vm3004_vm2 = vcmp.eq.s32.totalorder %v10983_v45, %v10341_v30  ;;  %v352_v15 = vld [vmem:[#allocation2 + $0xd0] sm:$0xff] }
 0x3fe   : > { %v2736_v24 = vadd.f32 %v2480_v42, %v1926_v41  ;;  %v2740_v7 = vadd.f32 %v2484_v28, %v1930_v16  ;;  %vm3008_vm3 = vcmp.eq.s32.totalorder %v556_v13, %v10341_v30  ;;  %v3274_v38 = vsel %vm3004_vm2, %v10365_v1, 0.0 }
 0x3ff   : > { %v6847_v26 = vpack.c.bf16 %v6656_v43, %v6652_v44  ;;  %v3278_v6 = vsel %vm3008_vm3, %v10365_v1, 0.0  ;;  %vm3804_vm4 = vcmp.eq.s32.totalorder %v10983_v45, %v10387_v51  ;;  %vm3808_vm5 = vcmp.eq.s32.totalorder %v556_v13, %v10387_v51 }
 0x400   : > { %v3530_v25 = vadd.f32 %v3274_v38, %v2736_v24  ;;  %v3534_v62 = vadd.f32 %v3278_v6, %v2740_v7  ;;  %v4074_v17 = vsel %vm3804_vm4, %v10415_v2, 0.0  ;;  %v4078_v12 = vsel %vm3808_vm5, %v10415_v2, 0.0 }
 0x401   : > { %7026 = vmatpush.bf16.msra.mxu2 %v6847_v26  ;;  %vm4598_vm6 = vcmp.eq.s32.totalorder %v10983_v45, %v10404_v59  ;;  %vm4602_vm7 = vcmp.eq.s32.totalorder %v556_v13, %v10404_v59  ;;  %vm5396_vm8 = vcmp.eq.s32.totalorder %v10983_v45, %v10409_v35  ;;  %vm5400_vm9 = vcmp.eq.s32.totalorder %v556_v13, %v10409_v35 }
 0x402   : > { %v4330_v53 = vadd.f32 %v4074_v17, %v3530_v25  ;;  %v4334_v49 = vadd.f32 %v4078_v12, %v3534_v62  ;;  %v4868_v9 = vsel %vm4598_vm6, %v10417_v18, 0.0  ;;  %v4872_v60 = vsel %vm4602_vm7, %v10417_v18, 0.0 }
 0x403   : > { %v5666_v63 = vsel %vm5396_vm8, %v10455_v46, 0.0  ;;  %v5670_v22 = vsel %vm5400_vm9, %v10455_v46, 0.0  ;;  %vm6190_vm10 = vcmp.eq.s32.totalorder %v10983_v45, %v10457_v40  ;;  %vm6194_vm11 = vcmp.eq.s32.totalorder %v556_v13, %v10457_v40 }
 0x404   : > { %v5124_v32 = vadd.f32 %v4868_v9, %v4330_v53  ;;  %v5128_v5 = vadd.f32 %v4872_v60, %v4334_v49  ;;  %v6460_v54 = vsel %vm6190_vm10, %v10459_v20, 0.0  ;;  %v6464_v44 = vsel %vm6194_vm11, %v10459_v20, 0.0 }
 0x405   : > { %vm650_vm12 = vcmp.eq.s32.totalorder %v352_v15, %v10331_v0  ;;  %vm654_vm13 = vcmp.eq.s32.totalorder %v356_v8, %v10331_v0  ;;  %vm1200_vm14 = vcmp.eq.s32.totalorder %v352_v15, %v10333_v55  ;;  %vm1204_vm15 = vcmp.eq.s32.totalorder %v356_v8, %v10333_v55 }
 0x406   : > { %v5922_v41 = vadd.f32 %v5666_v63, %v5124_v32  ;;  %v5926_v16 = vadd.f32 %v5670_v22, %v5128_v5  ;;  %v920_v45 = vsel %vm650_vm12, %v10351_v36, 0.0  ;;  %v924_v13 = vsel %vm654_vm13, %v10351_v36, 0.0  ;;  %v11055_v22 = vld [vmem:[#allocation2 + $0x2d0] sm:$0xff] }
 0x407   : > { %v1470_v43 = vsel %vm1200_vm14, %v10353_v56, 0.0  ;;  %v1474_v42 = vsel %vm1204_vm15, %v10353_v56, 0.0  ;;  %vm2010_vm0 = vcmp.eq.s32.totalorder %v352_v15, %v10339_v23  ;;  %vm2014_vm1 = vcmp.eq.s32.totalorder %v356_v8, %v10339_v23 }
 0x408   : > { %v6716_v28 = vadd.f32 %v6460_v54, %v5922_v41  ;;  %v6720_v24 = vadd.f32 %v6464_v44, %v5926_v16  ;;  %v1726_v7 = vadd.f32 %v1470_v43, %v920_v45  ;;  %v1730_v38 = vadd.f32 %v1474_v42, %v924_v13  ;;  %v420_v16 = vld [vmem:[#allocation2 + $0x2f0] sm:$0xff] }
 0x409   : > { %v2280_v26 = vsel %vm2010_vm0, %v10359_v11, 0.0  ;;  %v2284_v6 = vsel %vm2014_vm1, %v10359_v11, 0.0  ;;  %vm2804_vm2 = vcmp.eq.s32.totalorder %v352_v15, %v10341_v30  ;;  %vm2808_vm3 = vcmp.eq.s32.totalorder %v356_v8, %v10341_v30 }
 0x40a   : > { %v6879_v25 = vpack.c.bf16 %v6720_v24, %v6716_v28  ;;  %v2536_v62 = vadd.f32 %v2280_v26, %v1726_v7  ;;  %v2540_v17 = vadd.f32 %v2284_v6, %v1730_v38  ;;  %v3074_v12 = vsel %vm2804_vm2, %v10365_v1, 0.0 }
 0x40b   : > { %v3078_v53 = vsel %vm2808_vm3, %v10365_v1, 0.0  ;;  %vm3604_vm4 = vcmp.eq.s32.totalorder %v352_v15, %v10387_v51  ;;  %vm3608_vm5 = vcmp.eq.s32.totalorder %v356_v8, %v10387_v51  ;;  %vm4398_vm6 = vcmp.eq.s32.totalorder %v352_v15, %v10404_v59 }
 0x40c   : > { %7039 = vmatpush.bf16.msra.mxu3 %v6879_v25  ;;  %v3330_v49 = vadd.f32 %v3074_v12, %v2536_v62  ;;  %v3334_v9 = vadd.f32 %v3078_v53, %v2540_v17  ;;  %v3874_v60 = vsel %vm3604_vm4, %v10415_v2, 0.0  ;;  %v3878_v63 = vsel %vm3608_vm5, %v10415_v2, 0.0 }
 0x40d   : > { %vm4402_vm7 = vcmp.eq.s32.totalorder %v356_v8, %v10404_v59  ;;  %v4668_v32 = vsel %vm4398_vm6, %v10417_v18, 0.0  ;;  %vm5196_vm8 = vcmp.eq.s32.totalorder %v352_v15, %v10409_v35  ;;  %vm5200_vm9 = vcmp.eq.s32.totalorder %v356_v8, %v10409_v35 }
 0x40e   : > { %v4130_v5 = vadd.f32 %v3874_v60, %v3330_v49  ;;  %v4134_v54 = vadd.f32 %v3878_v63, %v3334_v9  ;;  %v4672_v44 = vsel %vm4402_vm7, %v10417_v18, 0.0  ;;  %v5466_v41 = vsel %vm5196_vm8, %v10455_v46, 0.0 }
 0x40f   : > { %v5470_v45 = vsel %vm5200_vm9, %v10455_v46, 0.0  ;;  %vm5990_vm10 = vcmp.eq.s32.totalorder %v352_v15, %v10457_v40  ;;  %vm5994_vm11 = vcmp.eq.s32.totalorder %v356_v8, %v10457_v40  ;;  %vm714_vm12 = vcmp.eq.s32.totalorder %v11055_v22, %v10331_v0 }
 0x410   : > { %v4924_v13 = vadd.f32 %v4668_v32, %v4130_v5  ;;  %v4928_v43 = vadd.f32 %v4672_v44, %v4134_v54  ;;  %v6260_v42 = vsel %vm5990_vm10, %v10459_v20, 0.0  ;;  %v6264_v28 = vsel %vm5994_vm11, %v10459_v20, 0.0 }
 0x411   : > { %vm718_vm13 = vcmp.eq.s32.totalorder %v420_v16, %v10331_v0  ;;  %v984_v24 = vsel %vm714_vm12, %v10351_v36, 0.0  ;;  %vm1264_vm14 = vcmp.eq.s32.totalorder %v11055_v22, %v10333_v55  ;;  %vm1268_vm15 = vcmp.eq.s32.totalorder %v420_v16, %v10333_v55 }
 0x412   : > { %v5722_v15 = vadd.f32 %v5466_v41, %v4924_v13  ;;  %v5726_v8 = vadd.f32 %v5470_v45, %v4928_v43  ;;  %v988_v7 = vsel %vm718_vm13, %v10351_v36, 0.0  ;;  %v1534_v38 = vsel %vm1264_vm14, %v10353_v56, 0.0 }
 0x413   : > { %v1538_v26 = vsel %vm1268_vm15, %v10353_v56, 0.0  ;;  %v1790_v6 = vadd.f32 %v1534_v38, %v984_v24  ;;  %vm2074_vm0 = vcmp.eq.s32.totalorder %v11055_v22, %v10339_v23  ;;  %vm2078_vm1 = vcmp.eq.s32.totalorder %v420_v16, %v10339_v23 }
 0x414   : > { %v6516_v25 = vadd.f32 %v6260_v42, %v5722_v15  ;;  %v6520_v62 = vadd.f32 %v6264_v28, %v5726_v8  ;;  %v1794_v17 = vadd.f32 %v1538_v26, %v988_v7  ;;  %v2344_v12 = vsel %vm2074_vm0, %v10359_v11, 0.0  ;;  %v480_v42 = vld [vmem:[#allocation2 + $0x4d0] sm:$0xff] }
 0x415   : > { %v2348_v53 = vsel %vm2078_vm1, %v10359_v11, 0.0  ;;  %v2600_v49 = vadd.f32 %v2344_v12, %v1790_v6  ;;  %vm2868_vm2 = vcmp.eq.s32.totalorder %v11055_v22, %v10341_v30  ;;  %vm2872_vm3 = vcmp.eq.s32.totalorder %v420_v16, %v10341_v30  ;;  %v484_v28 = vld [vmem:[#allocation2 + $0x4f0] sm:$0xff] }
 0x416   : > { %v6779_v9 = vpack.c.bf16 %v6520_v62, %v6516_v25  ;;  %v2604_v60 = vadd.f32 %v2348_v53, %v1794_v17  ;;  %v3138_v63 = vsel %vm2868_vm2, %v10365_v1, 0.0  ;;  %v3142_v32 = vsel %vm2872_vm3, %v10365_v1, 0.0 }
 0x417   : > { %v3394_v5 = vadd.f32 %v3138_v63, %v2600_v49  ;;  %vm3668_vm4 = vcmp.eq.s32.totalorder %v11055_v22, %v10387_v51  ;;  %vm3672_vm5 = vcmp.eq.s32.totalorder %v420_v16, %v10387_v51  ;;  %vm4462_vm6 = vcmp.eq.s32.totalorder %v11055_v22, %v10404_v59 }
 0x418   : > { %7001 = vmatpush.bf16.msra.mxu0 %v6779_v9  ;;  %v3398_v54 = vadd.f32 %v3142_v32, %v2604_v60  ;;  %v3938_v44 = vsel %vm3668_vm4, %v10415_v2, 0.0  ;;  %v3942_v41 = vsel %vm3672_vm5, %v10415_v2, 0.0  ;;  %vm4466_vm7 = vcmp.eq.s32.totalorder %v420_v16, %v10404_v59 }
 0x419   : > { %v4194_v45 = vadd.f32 %v3938_v44, %v3394_v5  ;;  %v4732_v13 = vsel %vm4462_vm6, %v10417_v18, 0.0  ;;  %v4736_v43 = vsel %vm4466_vm7, %v10417_v18, 0.0  ;;  %vm5260_vm8 = vcmp.eq.s32.totalorder %v11055_v22, %v10409_v35 }
 0x41a   : > { %v4198_v24 = vadd.f32 %v3942_v41, %v3398_v54  ;;  %vm5264_vm9 = vcmp.eq.s32.totalorder %v420_v16, %v10409_v35  ;;  %v5530_v15 = vsel %vm5260_vm8, %v10455_v46, 0.0  ;;  %vm6054_vm10 = vcmp.eq.s32.totalorder %v11055_v22, %v10457_v40 }
 0x41b   : > { %v4988_v8 = vadd.f32 %v4732_v13, %v4194_v45  ;;  %v5534_v7 = vsel %vm5264_vm9, %v10455_v46, 0.0  ;;  %vm6058_vm11 = vcmp.eq.s32.totalorder %v420_v16, %v10457_v40  ;;  %v6324_v38 = vsel %vm6054_vm10, %v10459_v20, 0.0 }
 0x41c   : > { %v4992_v26 = vadd.f32 %v4736_v43, %v4198_v24  ;;  %v6328_v6 = vsel %vm6058_vm11, %v10459_v20, 0.0  ;;  %vm778_vm12 = vcmp.eq.s32.totalorder %v480_v42, %v10331_v0  ;;  %vm782_vm13 = vcmp.eq.s32.totalorder %v484_v28, %v10331_v0 }
 0x41d   : > { %v5786_v25 = vadd.f32 %v5530_v15, %v4988_v8  ;;  %v1048_v62 = vsel %vm778_vm12, %v10351_v36, 0.0  ;;  %v1052_v17 = vsel %vm782_vm13, %v10351_v36, 0.0  ;;  %vm1328_vm14 = vcmp.eq.s32.totalorder %v480_v42, %v10333_v55 }
 0x41e   : > { %v5790_v22 = vadd.f32 %v5534_v7, %v4992_v26  ;;  %vm1332_vm15 = vcmp.eq.s32.totalorder %v484_v28, %v10333_v55  ;;  %v1598_v16 = vsel %vm1328_vm14, %v10353_v56, 0.0  ;;  %vm2138_vm0 = vcmp.eq.s32.totalorder %v480_v42, %v10339_v23  ;;  %v11131_v7 = vld [vmem:[#allocation2 + $0x6d0] sm:$0xff] }
 0x41f   : > { %v6580_v12 = vadd.f32 %v6324_v38, %v5786_v25  ;;  %v1602_v53 = vsel %vm1332_vm15, %v10353_v56, 0.0  ;;  %v1854_v49 = vadd.f32 %v1598_v16, %v1048_v62  ;;  %vm2142_vm1 = vcmp.eq.s32.totalorder %v484_v28, %v10339_v23 }
 0x420   : > { %v6584_v9 = vadd.f32 %v6328_v6, %v5790_v22  ;;  %v1858_v60 = vadd.f32 %v1602_v53, %v1052_v17  ;;  %v2408_v63 = vsel %vm2138_vm0, %v10359_v11, 0.0  ;;  %v2412_v32 = vsel %vm2142_vm1, %v10359_v11, 0.0  ;;  %v548_v6 = vld [vmem:[#allocation2 + $0x6f0] sm:$0xff] }
 0x421   : > { %v2664_v5 = vadd.f32 %v2408_v63, %v1854_v49  ;;  %vm2932_vm2 = vcmp.eq.s32.totalorder %v480_v42, %v10341_v30  ;;  %vm2936_vm3 = vcmp.eq.s32.totalorder %v484_v28, %v10341_v30  ;;  %vm3732_vm4 = vcmp.eq.s32.totalorder %v480_v42, %v10387_v51 }
 0x422   : > { %v6811_v54 = vpack.c.bf16 %v6584_v9, %v6580_v12  ;;  %v2668_v44 = vadd.f32 %v2412_v32, %v1858_v60  ;;  %v3202_v41 = vsel %vm2932_vm2, %v10365_v1, 0.0  ;;  %v3206_v45 = vsel %vm2936_vm3, %v10365_v1, 0.0 }
 0x423   : > { %v3458_v13 = vadd.f32 %v3202_v41, %v2664_v5  ;;  %vm3736_vm5 = vcmp.eq.s32.totalorder %v484_v28, %v10387_v51  ;;  %v4002_v43 = vsel %vm3732_vm4, %v10415_v2, 0.0  ;;  %vm4526_vm6 = vcmp.eq.s32.totalorder %v480_v42, %v10404_v59 }
 0x424   : > { %7014 = vmatpush.bf16.msra.mxu1 %v6811_v54  ;;  %v3462_v24 = vadd.f32 %v3206_v45, %v2668_v44  ;;  %v4006_v15 = vsel %vm3736_vm5, %v10415_v2, 0.0  ;;  %vm4530_vm7 = vcmp.eq.s32.totalorder %v484_v28, %v10404_v59  ;;  %v4796_v8 = vsel %vm4526_vm6, %v10417_v18, 0.0 }
 0x425   : > { %v4258_v38 = vadd.f32 %v4002_v43, %v3458_v13  ;;  %v4800_v26 = vsel %vm4530_vm7, %v10417_v18, 0.0  ;;  %vm5324_vm8 = vcmp.eq.s32.totalorder %v480_v42, %v10409_v35  ;;  %vm5328_vm9 = vcmp.eq.s32.totalorder %v484_v28, %v10409_v35 }
 0x426   : > { %v4262_v25 = vadd.f32 %v4006_v15, %v3462_v24  ;;  %v5594_v62 = vsel %vm5324_vm8, %v10455_v46, 0.0  ;;  %v5598_v17 = vsel %vm5328_vm9, %v10455_v46, 0.0  ;;  %vm6118_vm10 = vcmp.eq.s32.totalorder %v480_v42, %v10457_v40 }
 0x427   : > { %v5052_v22 = vadd.f32 %v4796_v8, %v4258_v38  ;;  %vm6122_vm11 = vcmp.eq.s32.totalorder %v484_v28, %v10457_v40  ;;  %v6388_v16 = vsel %vm6118_vm10, %v10459_v20, 0.0  ;;  %vm842_vm12 = vcmp.eq.s32.totalorder %v11131_v7, %v10331_v0 }
 0x428   : > { %v5056_v12 = vadd.f32 %v4800_v26, %v4262_v25  ;;  %v6392_v53 = vsel %vm6122_vm11, %v10459_v20, 0.0  ;;  %vm846_vm13 = vcmp.eq.s32.totalorder %v548_v6, %v10331_v0  ;;  %v1112_v49 = vsel %vm842_vm12, %v10351_v36, 0.0 }
 0x429   : > { %v5850_v9 = vadd.f32 %v5594_v62, %v5052_v22  ;;  %v1116_v60 = vsel %vm846_vm13, %v10351_v36, 0.0  ;;  %vm1392_vm14 = vcmp.eq.s32.totalorder %v11131_v7, %v10333_v55  ;;  %vm1396_vm15 = vcmp.eq.s32.totalorder %v548_v6, %v10333_v55 }
 0x42a   : > { %v5854_v42 = vadd.f32 %v5598_v17, %v5056_v12  ;;  %v1662_v28 = vsel %vm1392_vm14, %v10353_v56, 0.0  ;;  %v1666_v63 = vsel %vm1396_vm15, %v10353_v56, 0.0  ;;  %vm2202_vm0 = vcmp.eq.s32.totalorder %v11131_v7, %v10339_v23 }
 0x42b   : > { %v6644_v32 = vadd.f32 %v6388_v16, %v5850_v9  ;;  %v1918_v5 = vadd.f32 %v1662_v28, %v1112_v49  ;;  %v1922_v54 = vadd.f32 %v1666_v63, %v1116_v60  ;;  %vm2206_vm1 = vcmp.eq.s32.totalorder %v548_v6, %v10339_v23  ;;  %v348_v49 = vld [vmem:[#allocation2 + $0xb0] sm:$0xff] }
 0x42c   : > { %v6648_v44 = vadd.f32 %v6392_v53, %v5854_v42  ;;  %v2472_v41 = vsel %vm2202_vm0, %v10359_v11, 0.0  ;;  %v2476_v45 = vsel %vm2206_vm1, %v10359_v11, 0.0  ;;  %vm2996_vm2 = vcmp.eq.s32.totalorder %v11131_v7, %v10341_v30  ;;  %v344_v53 = vld [vmem:[#allocation2 + $0x90] sm:$0xff] }
 0x42d   : > { %v2728_v13 = vadd.f32 %v2472_v41, %v1918_v5  ;;  %v2732_v43 = vadd.f32 %v2476_v45, %v1922_v54  ;;  %vm3000_vm3 = vcmp.eq.s32.totalorder %v548_v6, %v10341_v30  ;;  %v3266_v24 = vsel %vm2996_vm2, %v10365_v1, 0.0 }
 0x42e   : > { %v6843_v15 = vpack.c.bf16 %v6648_v44, %v6644_v32  ;;  %v3270_v8 = vsel %vm3000_vm3, %v10365_v1, 0.0  ;;  %vm3796_vm4 = vcmp.eq.s32.totalorder %v11131_v7, %v10387_v51  ;;  %vm3800_vm5 = vcmp.eq.s32.totalorder %v548_v6, %v10387_v51 }
 0x42f   : > { %v3522_v38 = vadd.f32 %v3266_v24, %v2728_v13  ;;  %v3526_v26 = vadd.f32 %v3270_v8, %v2732_v43  ;;  %v4066_v25 = vsel %vm3796_vm4, %v10415_v2, 0.0  ;;  %v4070_v62 = vsel %vm3800_vm5, %v10415_v2, 0.0 }
 0x430   : > { %7027 = vmatpush.bf16.msra.mxu2 %v6843_v15  ;;  %vm4590_vm6 = vcmp.eq.s32.totalorder %v11131_v7, %v10404_v59  ;;  %vm4594_vm7 = vcmp.eq.s32.totalorder %v548_v6, %v10404_v59  ;;  %vm5388_vm8 = vcmp.eq.s32.totalorder %v11131_v7, %v10409_v35  ;;  %vm5392_vm9 = vcmp.eq.s32.totalorder %v548_v6, %v10409_v35 }
 0x431   : > { %v4322_v17 = vadd.f32 %v4066_v25, %v3522_v38  ;;  %v4326_v22 = vadd.f32 %v4070_v62, %v3526_v26  ;;  %v4860_v16 = vsel %vm4590_vm6, %v10417_v18, 0.0  ;;  %v4864_v12 = vsel %vm4594_vm7, %v10417_v18, 0.0 }
 0x432   : > { %v5658_v9 = vsel %vm5388_vm8, %v10455_v46, 0.0  ;;  %v5662_v60 = vsel %vm5392_vm9, %v10455_v46, 0.0  ;;  %vm6182_vm10 = vcmp.eq.s32.totalorder %v11131_v7, %v10457_v40  ;;  %vm6186_vm11 = vcmp.eq.s32.totalorder %v548_v6, %v10457_v40 }
 0x433   : > { %v5116_v42 = vadd.f32 %v4860_v16, %v4322_v17  ;;  %v5120_v28 = vadd.f32 %v4864_v12, %v4326_v22  ;;  %v6452_v63 = vsel %vm6182_vm10, %v10459_v20, 0.0  ;;  %v6456_v32 = vsel %vm6186_vm11, %v10459_v20, 0.0 }
 0x434   : > { %vm642_vm12 = vcmp.eq.s32.totalorder %v344_v53, %v10331_v0  ;;  %vm646_vm13 = vcmp.eq.s32.totalorder %v348_v49, %v10331_v0  ;;  %vm1192_vm14 = vcmp.eq.s32.totalorder %v344_v53, %v10333_v55  ;;  %vm1196_vm15 = vcmp.eq.s32.totalorder %v348_v49, %v10333_v55 }
 0x435   : > { %v5914_v5 = vadd.f32 %v5658_v9, %v5116_v42  ;;  %v5918_v54 = vadd.f32 %v5662_v60, %v5120_v28  ;;  %v912_v7 = vsel %vm642_vm12, %v10351_v36, 0.0  ;;  %v916_v6 = vsel %vm646_vm13, %v10351_v36, 0.0  ;;  %v11203_v60 = vld [vmem:[#allocation2 + $0x290] sm:$0xff] }
 0x436   : > { %v1462_v44 = vsel %vm1192_vm14, %v10353_v56, 0.0  ;;  %v1466_v41 = vsel %vm1196_vm15, %v10353_v56, 0.0  ;;  %vm2002_vm0 = vcmp.eq.s32.totalorder %v344_v53, %v10339_v23  ;;  %vm2006_vm1 = vcmp.eq.s32.totalorder %v348_v49, %v10339_v23 }
 0x437   : > { %v6708_v45 = vadd.f32 %v6452_v63, %v5914_v5  ;;  %v6712_v13 = vadd.f32 %v6456_v32, %v5918_v54  ;;  %v1718_v43 = vadd.f32 %v1462_v44, %v912_v7  ;;  %v1722_v24 = vadd.f32 %v1466_v41, %v916_v6  ;;  %v412_v54 = vld [vmem:[#allocation2 + $0x2b0] sm:$0xff] }
 0x438   : > { %v2272_v15 = vsel %vm2002_vm0, %v10359_v11, 0.0  ;;  %v2276_v8 = vsel %vm2006_vm1, %v10359_v11, 0.0  ;;  %vm2796_vm2 = vcmp.eq.s32.totalorder %v344_v53, %v10341_v30  ;;  %vm2800_vm3 = vcmp.eq.s32.totalorder %v348_v49, %v10341_v30 }
 0x439   : > { %v6875_v38 = vpack.c.bf16 %v6712_v13, %v6708_v45  ;;  %v2528_v26 = vadd.f32 %v2272_v15, %v1718_v43  ;;  %v2532_v25 = vadd.f32 %v2276_v8, %v1722_v24  ;;  %v3066_v62 = vsel %vm2796_vm2, %v10365_v1, 0.0 }
 0x43a   : > { %v3070_v17 = vsel %vm2800_vm3, %v10365_v1, 0.0  ;;  %vm3596_vm4 = vcmp.eq.s32.totalorder %v344_v53, %v10387_v51  ;;  %vm3600_vm5 = vcmp.eq.s32.totalorder %v348_v49, %v10387_v51  ;;  %vm4390_vm6 = vcmp.eq.s32.totalorder %v344_v53, %v10404_v59 }
 0x43b   : > { %7040 = vmatpush.bf16.msra.mxu3 %v6875_v38  ;;  %v3322_v22 = vadd.f32 %v3066_v62, %v2528_v26  ;;  %v3326_v16 = vadd.f32 %v3070_v17, %v2532_v25  ;;  %v3866_v12 = vsel %vm3596_vm4, %v10415_v2, 0.0  ;;  %v3870_v9 = vsel %vm3600_vm5, %v10415_v2, 0.0 }
 0x43c   : > { %vm4394_vm7 = vcmp.eq.s32.totalorder %v348_v49, %v10404_v59  ;;  %v4660_v42 = vsel %vm4390_vm6, %v10417_v18, 0.0  ;;  %vm5188_vm8 = vcmp.eq.s32.totalorder %v344_v53, %v10409_v35  ;;  %vm5192_vm9 = vcmp.eq.s32.totalorder %v348_v49, %v10409_v35 }
 0x43d   : > { %v4122_v28 = vadd.f32 %v3866_v12, %v3322_v22  ;;  %v4126_v63 = vadd.f32 %v3870_v9, %v3326_v16  ;;  %v4664_v32 = vsel %vm4394_vm7, %v10417_v18, 0.0  ;;  %v5458_v5 = vsel %vm5188_vm8, %v10455_v46, 0.0 }
 0x43e   : > { %v5462_v7 = vsel %vm5192_vm9, %v10455_v46, 0.0  ;;  %vm5982_vm10 = vcmp.eq.s32.totalorder %v344_v53, %v10457_v40  ;;  %vm5986_vm11 = vcmp.eq.s32.totalorder %v348_v49, %v10457_v40  ;;  %vm706_vm12 = vcmp.eq.s32.totalorder %v11203_v60, %v10331_v0 }
 0x43f   : > { %v4916_v6 = vadd.f32 %v4660_v42, %v4122_v28  ;;  %v4920_v44 = vadd.f32 %v4664_v32, %v4126_v63  ;;  %v6252_v41 = vsel %vm5982_vm10, %v10459_v20, 0.0  ;;  %v6256_v45 = vsel %vm5986_vm11, %v10459_v20, 0.0 }
 0x440   : > { %vm710_vm13 = vcmp.eq.s32.totalorder %v412_v54, %v10331_v0  ;;  %v976_v13 = vsel %vm706_vm12, %v10351_v36, 0.0  ;;  %vm1256_vm14 = vcmp.eq.s32.totalorder %v11203_v60, %v10333_v55  ;;  %vm1260_vm15 = vcmp.eq.s32.totalorder %v412_v54, %v10333_v55 }
 0x441   : > { %v5714_v53 = vadd.f32 %v5458_v5, %v4916_v6  ;;  %v5718_v49 = vadd.f32 %v5462_v7, %v4920_v44  ;;  %v980_v43 = vsel %vm710_vm13, %v10351_v36, 0.0  ;;  %v1526_v24 = vsel %vm1256_vm14, %v10353_v56, 0.0 }
 0x442   : > { %v1530_v15 = vsel %vm1260_vm15, %v10353_v56, 0.0  ;;  %v1782_v8 = vadd.f32 %v1526_v24, %v976_v13  ;;  %vm2066_vm0 = vcmp.eq.s32.totalorder %v11203_v60, %v10339_v23  ;;  %vm2070_vm1 = vcmp.eq.s32.totalorder %v412_v54, %v10339_v23 }
 0x443   : > { %v6508_v38 = vadd.f32 %v6252_v41, %v5714_v53  ;;  %v6512_v26 = vadd.f32 %v6256_v45, %v5718_v49  ;;  %v1786_v25 = vadd.f32 %v1530_v15, %v980_v43  ;;  %v2336_v62 = vsel %vm2066_vm0, %v10359_v11, 0.0  ;;  %v472_v41 = vld [vmem:[#allocation2 + $0x490] sm:$0xff] }
 0x444   : > { %v2340_v17 = vsel %vm2070_vm1, %v10359_v11, 0.0  ;;  %v2592_v22 = vadd.f32 %v2336_v62, %v1782_v8  ;;  %vm2860_vm2 = vcmp.eq.s32.totalorder %v11203_v60, %v10341_v30  ;;  %vm2864_vm3 = vcmp.eq.s32.totalorder %v412_v54, %v10341_v30  ;;  %v476_v45 = vld [vmem:[#allocation2 + $0x4b0] sm:$0xff] }
 0x445   : > { %v6775_v16 = vpack.c.bf16 %v6512_v26, %v6508_v38  ;;  %v2596_v12 = vadd.f32 %v2340_v17, %v1786_v25  ;;  %v3130_v9 = vsel %vm2860_vm2, %v10365_v1, 0.0  ;;  %v3134_v42 = vsel %vm2864_vm3, %v10365_v1, 0.0 }
 0x446   : > { %v3386_v28 = vadd.f32 %v3130_v9, %v2592_v22  ;;  %vm3660_vm4 = vcmp.eq.s32.totalorder %v11203_v60, %v10387_v51  ;;  %vm3664_vm5 = vcmp.eq.s32.totalorder %v412_v54, %v10387_v51  ;;  %vm4454_vm6 = vcmp.eq.s32.totalorder %v11203_v60, %v10404_v59 }
 0x447   : > { %7002 = vmatpush.bf16.msra.mxu0 %v6775_v16  ;;  %v3390_v63 = vadd.f32 %v3134_v42, %v2596_v12  ;;  %v3930_v32 = vsel %vm3660_vm4, %v10415_v2, 0.0  ;;  %v3934_v5 = vsel %vm3664_vm5, %v10415_v2, 0.0  ;;  %vm4458_vm7 = vcmp.eq.s32.totalorder %v412_v54, %v10404_v59 }
 0x448   : > { %v4186_v7 = vadd.f32 %v3930_v32, %v3386_v28  ;;  %v4724_v6 = vsel %vm4454_vm6, %v10417_v18, 0.0  ;;  %v4728_v44 = vsel %vm4458_vm7, %v10417_v18, 0.0  ;;  %vm5252_vm8 = vcmp.eq.s32.totalorder %v11203_v60, %v10409_v35 }
 0x449   : > { %v4190_v13 = vadd.f32 %v3934_v5, %v3390_v63  ;;  %vm5256_vm9 = vcmp.eq.s32.totalorder %v412_v54, %v10409_v35  ;;  %v5522_v53 = vsel %vm5252_vm8, %v10455_v46, 0.0  ;;  %vm6046_vm10 = vcmp.eq.s32.totalorder %v11203_v60, %v10457_v40 }
 0x44a   : > { %v4980_v49 = vadd.f32 %v4724_v6, %v4186_v7  ;;  %v5526_v43 = vsel %vm5256_vm9, %v10455_v46, 0.0  ;;  %vm6050_vm11 = vcmp.eq.s32.totalorder %v412_v54, %v10457_v40  ;;  %v6316_v24 = vsel %vm6046_vm10, %v10459_v20, 0.0 }
 0x44b   : > { %v4984_v15 = vadd.f32 %v4728_v44, %v4190_v13  ;;  %v6320_v8 = vsel %vm6050_vm11, %v10459_v20, 0.0  ;;  %vm770_vm12 = vcmp.eq.s32.totalorder %v472_v41, %v10331_v0  ;;  %vm774_vm13 = vcmp.eq.s32.totalorder %v476_v45, %v10331_v0 }
 0x44c   : > { %v5778_v38 = vadd.f32 %v5522_v53, %v4980_v49  ;;  %v1040_v26 = vsel %vm770_vm12, %v10351_v36, 0.0  ;;  %v1044_v25 = vsel %vm774_vm13, %v10351_v36, 0.0  ;;  %vm1320_vm14 = vcmp.eq.s32.totalorder %v472_v41, %v10333_v55 }
 0x44d   : > { %v5782_v60 = vadd.f32 %v5526_v43, %v4984_v15  ;;  %vm1324_vm15 = vcmp.eq.s32.totalorder %v476_v45, %v10333_v55  ;;  %v1590_v54 = vsel %vm1320_vm14, %v10353_v56, 0.0  ;;  %vm2130_vm0 = vcmp.eq.s32.totalorder %v472_v41, %v10339_v23  ;;  %v11279_v43 = vld [vmem:[#allocation2 + $0x690] sm:$0xff] }
 0x44e   : > { %v6572_v62 = vadd.f32 %v6316_v24, %v5778_v38  ;;  %v1594_v17 = vsel %vm1324_vm15, %v10353_v56, 0.0  ;;  %v1846_v22 = vadd.f32 %v1590_v54, %v1040_v26  ;;  %vm2134_vm1 = vcmp.eq.s32.totalorder %v476_v45, %v10339_v23 }
 0x44f   : > { %v6576_v16 = vadd.f32 %v6320_v8, %v5782_v60  ;;  %v1850_v12 = vadd.f32 %v1594_v17, %v1044_v25  ;;  %v2400_v9 = vsel %vm2130_vm0, %v10359_v11, 0.0  ;;  %v2404_v42 = vsel %vm2134_vm1, %v10359_v11, 0.0  ;;  %v540_v8 = vld [vmem:[#allocation2 + $0x6b0] sm:$0xff] }
 0x450   : > { %v2656_v28 = vadd.f32 %v2400_v9, %v1846_v22  ;;  %vm2924_vm2 = vcmp.eq.s32.totalorder %v472_v41, %v10341_v30  ;;  %vm2928_vm3 = vcmp.eq.s32.totalorder %v476_v45, %v10341_v30  ;;  %vm3724_vm4 = vcmp.eq.s32.totalorder %v472_v41, %v10387_v51 }
 0x451   : > { %v6807_v63 = vpack.c.bf16 %v6576_v16, %v6572_v62  ;;  %v2660_v32 = vadd.f32 %v2404_v42, %v1850_v12  ;;  %v3194_v5 = vsel %vm2924_vm2, %v10365_v1, 0.0  ;;  %v3198_v7 = vsel %vm2928_vm3, %v10365_v1, 0.0 }
 0x452   : > { %v3450_v6 = vadd.f32 %v3194_v5, %v2656_v28  ;;  %vm3728_vm5 = vcmp.eq.s32.totalorder %v476_v45, %v10387_v51  ;;  %v3994_v44 = vsel %vm3724_vm4, %v10415_v2, 0.0  ;;  %vm4518_vm6 = vcmp.eq.s32.totalorder %v472_v41, %v10404_v59 }
 0x453   : > { %7015 = vmatpush.bf16.msra.mxu1 %v6807_v63  ;;  %v3454_v13 = vadd.f32 %v3198_v7, %v2660_v32  ;;  %v3998_v53 = vsel %vm3728_vm5, %v10415_v2, 0.0  ;;  %vm4522_vm7 = vcmp.eq.s32.totalorder %v476_v45, %v10404_v59  ;;  %v4788_v49 = vsel %vm4518_vm6, %v10417_v18, 0.0 }
 0x454   : > { %v4250_v24 = vadd.f32 %v3994_v44, %v3450_v6  ;;  %v4792_v15 = vsel %vm4522_vm7, %v10417_v18, 0.0  ;;  %vm5316_vm8 = vcmp.eq.s32.totalorder %v472_v41, %v10409_v35  ;;  %vm5320_vm9 = vcmp.eq.s32.totalorder %v476_v45, %v10409_v35 }
 0x455   : > { %v4254_v38 = vadd.f32 %v3998_v53, %v3454_v13  ;;  %v5586_v26 = vsel %vm5316_vm8, %v10455_v46, 0.0  ;;  %v5590_v25 = vsel %vm5320_vm9, %v10455_v46, 0.0  ;;  %vm6110_vm10 = vcmp.eq.s32.totalorder %v472_v41, %v10457_v40 }
 0x456   : > { %v5044_v60 = vadd.f32 %v4788_v49, %v4250_v24  ;;  %vm6114_vm11 = vcmp.eq.s32.totalorder %v476_v45, %v10457_v40  ;;  %v6380_v54 = vsel %vm6110_vm10, %v10459_v20, 0.0  ;;  %vm834_vm12 = vcmp.eq.s32.totalorder %v11279_v43, %v10331_v0 }
 0x457   : > { %v5048_v62 = vadd.f32 %v4792_v15, %v4254_v38  ;;  %v6384_v17 = vsel %vm6114_vm11, %v10459_v20, 0.0  ;;  %vm838_vm13 = vcmp.eq.s32.totalorder %v540_v8, %v10331_v0  ;;  %v1104_v22 = vsel %vm834_vm12, %v10351_v36, 0.0 }
 0x458   : > { %v5842_v16 = vadd.f32 %v5586_v26, %v5044_v60  ;;  %v1108_v12 = vsel %vm838_vm13, %v10351_v36, 0.0  ;;  %vm1384_vm14 = vcmp.eq.s32.totalorder %v11279_v43, %v10333_v55  ;;  %vm1388_vm15 = vcmp.eq.s32.totalorder %v540_v8, %v10333_v55 }
 0x459   : > { %v5846_v41 = vadd.f32 %v5590_v25, %v5048_v62  ;;  %v1654_v45 = vsel %vm1384_vm14, %v10353_v56, 0.0  ;;  %v1658_v9 = vsel %vm1388_vm15, %v10353_v56, 0.0  ;;  %vm2194_vm0 = vcmp.eq.s32.totalorder %v11279_v43, %v10339_v23 }
 0x45a   : > { %v6636_v42 = vadd.f32 %v6380_v54, %v5842_v16  ;;  %v1910_v28 = vadd.f32 %v1654_v45, %v1104_v22  ;;  %v1914_v63 = vadd.f32 %v1658_v9, %v1108_v12  ;;  %vm2198_vm1 = vcmp.eq.s32.totalorder %v540_v8, %v10339_v23  ;;  %v340_v22 = vld [vmem:[#allocation2 + $0x70] sm:$0xff] }
 0x45b   : > { %v6640_v32 = vadd.f32 %v6384_v17, %v5846_v41  ;;  %v2464_v5 = vsel %vm2194_vm0, %v10359_v11, 0.0  ;;  %v2468_v7 = vsel %vm2198_vm1, %v10359_v11, 0.0  ;;  %vm2988_vm2 = vcmp.eq.s32.totalorder %v11279_v43, %v10341_v30  ;;  %v336_v17 = vld [vmem:[#allocation2 + $0x50] sm:$0xff] }
 0x45c   : > { %v2720_v6 = vadd.f32 %v2464_v5, %v1910_v28  ;;  %v2724_v44 = vadd.f32 %v2468_v7, %v1914_v63  ;;  %vm2992_vm3 = vcmp.eq.s32.totalorder %v540_v8, %v10341_v30  ;;  %v3258_v13 = vsel %vm2988_vm2, %v10365_v1, 0.0 }
 0x45d   : > { %v6839_v53 = vpack.c.bf16 %v6640_v32, %v6636_v42  ;;  %v3262_v49 = vsel %vm2992_vm3, %v10365_v1, 0.0  ;;  %vm3788_vm4 = vcmp.eq.s32.totalorder %v11279_v43, %v10387_v51  ;;  %vm3792_vm5 = vcmp.eq.s32.totalorder %v540_v8, %v10387_v51 }
 0x45e   : > { %v3514_v24 = vadd.f32 %v3258_v13, %v2720_v6  ;;  %v3518_v15 = vadd.f32 %v3262_v49, %v2724_v44  ;;  %v4058_v38 = vsel %vm3788_vm4, %v10415_v2, 0.0  ;;  %v4062_v26 = vsel %vm3792_vm5, %v10415_v2, 0.0 }
 0x45f   : > { %7028 = vmatpush.bf16.msra.mxu2 %v6839_v53  ;;  %vm4582_vm6 = vcmp.eq.s32.totalorder %v11279_v43, %v10404_v59  ;;  %vm4586_vm7 = vcmp.eq.s32.totalorder %v540_v8, %v10404_v59  ;;  %vm5380_vm8 = vcmp.eq.s32.totalorder %v11279_v43, %v10409_v35  ;;  %vm5384_vm9 = vcmp.eq.s32.totalorder %v540_v8, %v10409_v35 }
 0x460   : > { %v4314_v25 = vadd.f32 %v4058_v38, %v3514_v24  ;;  %v4318_v60 = vadd.f32 %v4062_v26, %v3518_v15  ;;  %v4852_v54 = vsel %vm4582_vm6, %v10417_v18, 0.0  ;;  %v4856_v62 = vsel %vm4586_vm7, %v10417_v18, 0.0 }
 0x461   : > { %v5650_v16 = vsel %vm5380_vm8, %v10455_v46, 0.0  ;;  %v5654_v12 = vsel %vm5384_vm9, %v10455_v46, 0.0  ;;  %vm6174_vm10 = vcmp.eq.s32.totalorder %v11279_v43, %v10457_v40  ;;  %vm6178_vm11 = vcmp.eq.s32.totalorder %v540_v8, %v10457_v40 }
 0x462   : > { %v5108_v41 = vadd.f32 %v4852_v54, %v4314_v25  ;;  %v5112_v45 = vadd.f32 %v4856_v62, %v4318_v60  ;;  %v6444_v9 = vsel %vm6174_vm10, %v10459_v20, 0.0  ;;  %v6448_v42 = vsel %vm6178_vm11, %v10459_v20, 0.0 }
 0x463   : > { %vm634_vm12 = vcmp.eq.s32.totalorder %v336_v17, %v10331_v0  ;;  %vm638_vm13 = vcmp.eq.s32.totalorder %v340_v22, %v10331_v0  ;;  %vm1184_vm14 = vcmp.eq.s32.totalorder %v336_v17, %v10333_v55  ;;  %vm1188_vm15 = vcmp.eq.s32.totalorder %v340_v22, %v10333_v55 }
 0x464   : > { %v5906_v28 = vadd.f32 %v5650_v16, %v5108_v41  ;;  %v5910_v63 = vadd.f32 %v5654_v12, %v5112_v45  ;;  %v904_v43 = vsel %vm634_vm12, %v10351_v36, 0.0  ;;  %v908_v8 = vsel %vm638_vm13, %v10351_v36, 0.0  ;;  %v11351_v12 = vld [vmem:[#allocation2 + $0x250] sm:$0xff] }
 0x465   : > { %v1454_v32 = vsel %vm1184_vm14, %v10353_v56, 0.0  ;;  %v1458_v5 = vsel %vm1188_vm15, %v10353_v56, 0.0  ;;  %vm1994_vm0 = vcmp.eq.s32.totalorder %v336_v17, %v10339_v23  ;;  %vm1998_vm1 = vcmp.eq.s32.totalorder %v340_v22, %v10339_v23 }
 0x466   : > { %v6700_v7 = vadd.f32 %v6444_v9, %v5906_v28  ;;  %v6704_v6 = vadd.f32 %v6448_v42, %v5910_v63  ;;  %v1710_v44 = vadd.f32 %v1454_v32, %v904_v43  ;;  %v1714_v13 = vadd.f32 %v1458_v5, %v908_v8  ;;  %v404_v63 = vld [vmem:[#allocation2 + $0x270] sm:$0xff] }
 0x467   : > { %v2264_v53 = vsel %vm1994_vm0, %v10359_v11, 0.0  ;;  %v2268_v49 = vsel %vm1998_vm1, %v10359_v11, 0.0  ;;  %vm2788_vm2 = vcmp.eq.s32.totalorder %v336_v17, %v10341_v30  ;;  %vm2792_vm3 = vcmp.eq.s32.totalorder %v340_v22, %v10341_v30 }
 0x468   : > { %v6871_v24 = vpack.c.bf16 %v6704_v6, %v6700_v7  ;;  %v2520_v15 = vadd.f32 %v2264_v53, %v1710_v44  ;;  %v2524_v38 = vadd.f32 %v2268_v49, %v1714_v13  ;;  %v3058_v26 = vsel %vm2788_vm2, %v10365_v1, 0.0 }
 0x469   : > { %v3062_v25 = vsel %vm2792_vm3, %v10365_v1, 0.0  ;;  %vm3588_vm4 = vcmp.eq.s32.totalorder %v336_v17, %v10387_v51  ;;  %vm3592_vm5 = vcmp.eq.s32.totalorder %v340_v22, %v10387_v51  ;;  %vm4382_vm6 = vcmp.eq.s32.totalorder %v336_v17, %v10404_v59 }
 0x46a   : > { %7041 = vmatpush.bf16.msra.mxu3 %v6871_v24  ;;  %v3314_v60 = vadd.f32 %v3058_v26, %v2520_v15  ;;  %v3318_v54 = vadd.f32 %v3062_v25, %v2524_v38  ;;  %v3858_v62 = vsel %vm3588_vm4, %v10415_v2, 0.0  ;;  %v3862_v16 = vsel %vm3592_vm5, %v10415_v2, 0.0 }
 0x46b   : > { %vm4386_vm7 = vcmp.eq.s32.totalorder %v340_v22, %v10404_v59  ;;  %v4652_v41 = vsel %vm4382_vm6, %v10417_v18, 0.0  ;;  %vm5180_vm8 = vcmp.eq.s32.totalorder %v336_v17, %v10409_v35  ;;  %vm5184_vm9 = vcmp.eq.s32.totalorder %v340_v22, %v10409_v35 }
 0x46c   : > { %v4114_v45 = vadd.f32 %v3858_v62, %v3314_v60  ;;  %v4118_v9 = vadd.f32 %v3862_v16, %v3318_v54  ;;  %v4656_v42 = vsel %vm4386_vm7, %v10417_v18, 0.0  ;;  %v5450_v28 = vsel %vm5180_vm8, %v10455_v46, 0.0 }
 0x46d   : > { %v5454_v43 = vsel %vm5184_vm9, %v10455_v46, 0.0  ;;  %vm5974_vm10 = vcmp.eq.s32.totalorder %v336_v17, %v10457_v40  ;;  %vm5978_vm11 = vcmp.eq.s32.totalorder %v340_v22, %v10457_v40  ;;  %vm698_vm12 = vcmp.eq.s32.totalorder %v11351_v12, %v10331_v0 }
 0x46e   : > { %v4908_v8 = vadd.f32 %v4652_v41, %v4114_v45  ;;  %v4912_v32 = vadd.f32 %v4656_v42, %v4118_v9  ;;  %v6244_v5 = vsel %vm5974_vm10, %v10459_v20, 0.0  ;;  %v6248_v7 = vsel %vm5978_vm11, %v10459_v20, 0.0 }
 0x46f   : > { %vm702_vm13 = vcmp.eq.s32.totalorder %v404_v63, %v10331_v0  ;;  %v968_v6 = vsel %vm698_vm12, %v10351_v36, 0.0  ;;  %vm1248_vm14 = vcmp.eq.s32.totalorder %v11351_v12, %v10333_v55  ;;  %vm1252_vm15 = vcmp.eq.s32.totalorder %v404_v63, %v10333_v55 }
 0x470   : > { %v5706_v17 = vadd.f32 %v5450_v28, %v4908_v8  ;;  %v5710_v22 = vadd.f32 %v5454_v43, %v4912_v32  ;;  %v972_v44 = vsel %vm702_vm13, %v10351_v36, 0.0  ;;  %v1518_v13 = vsel %vm1248_vm14, %v10353_v56, 0.0 }
 0x471   : > { %v1522_v53 = vsel %vm1252_vm15, %v10353_v56, 0.0  ;;  %v1774_v49 = vadd.f32 %v1518_v13, %v968_v6  ;;  %vm2058_vm0 = vcmp.eq.s32.totalorder %v11351_v12, %v10339_v23  ;;  %vm2062_vm1 = vcmp.eq.s32.totalorder %v404_v63, %v10339_v23 }
 0x472   : > { %v6500_v24 = vadd.f32 %v6244_v5, %v5706_v17  ;;  %v6504_v15 = vadd.f32 %v6248_v7, %v5710_v22  ;;  %v1778_v38 = vadd.f32 %v1522_v53, %v972_v44  ;;  %v2328_v26 = vsel %vm2058_vm0, %v10359_v11, 0.0  ;;  %v464_v5 = vld [vmem:[#allocation2 + $0x450] sm:$0xff] }
 0x473   : > { %v2332_v25 = vsel %vm2062_vm1, %v10359_v11, 0.0  ;;  %v2584_v60 = vadd.f32 %v2328_v26, %v1774_v49  ;;  %vm2852_vm2 = vcmp.eq.s32.totalorder %v11351_v12, %v10341_v30  ;;  %vm2856_vm3 = vcmp.eq.s32.totalorder %v404_v63, %v10341_v30  ;;  %v468_v7 = vld [vmem:[#allocation2 + $0x470] sm:$0xff] }
 0x474   : > { %v6771_v54 = vpack.c.bf16 %v6504_v15, %v6500_v24  ;;  %v2588_v62 = vadd.f32 %v2332_v25, %v1778_v38  ;;  %v3122_v16 = vsel %vm2852_vm2, %v10365_v1, 0.0  ;;  %v3126_v41 = vsel %vm2856_vm3, %v10365_v1, 0.0 }
 0x475   : > { %v3378_v45 = vadd.f32 %v3122_v16, %v2584_v60  ;;  %vm3652_vm4 = vcmp.eq.s32.totalorder %v11351_v12, %v10387_v51  ;;  %vm3656_vm5 = vcmp.eq.s32.totalorder %v404_v63, %v10387_v51  ;;  %vm4446_vm6 = vcmp.eq.s32.totalorder %v11351_v12, %v10404_v59 }
 0x476   : > { %7003 = vmatpush.bf16.msra.mxu0 %v6771_v54  ;;  %v3382_v9 = vadd.f32 %v3126_v41, %v2588_v62  ;;  %v3922_v42 = vsel %vm3652_vm4, %v10415_v2, 0.0  ;;  %v3926_v28 = vsel %vm3656_vm5, %v10415_v2, 0.0  ;;  %vm4450_vm7 = vcmp.eq.s32.totalorder %v404_v63, %v10404_v59 }
 0x477   : > { %v4178_v43 = vadd.f32 %v3922_v42, %v3378_v45  ;;  %v4716_v8 = vsel %vm4446_vm6, %v10417_v18, 0.0  ;;  %v4720_v32 = vsel %vm4450_vm7, %v10417_v18, 0.0  ;;  %vm5244_vm8 = vcmp.eq.s32.totalorder %v11351_v12, %v10409_v35 }
 0x478   : > { %v4182_v6 = vadd.f32 %v3926_v28, %v3382_v9  ;;  %vm5248_vm9 = vcmp.eq.s32.totalorder %v404_v63, %v10409_v35  ;;  %v5514_v17 = vsel %vm5244_vm8, %v10455_v46, 0.0  ;;  %vm6038_vm10 = vcmp.eq.s32.totalorder %v11351_v12, %v10457_v40 }
 0x479   : > { %v4972_v22 = vadd.f32 %v4716_v8, %v4178_v43  ;;  %v5518_v44 = vsel %vm5248_vm9, %v10455_v46, 0.0  ;;  %vm6042_vm11 = vcmp.eq.s32.totalorder %v404_v63, %v10457_v40  ;;  %v6308_v13 = vsel %vm6038_vm10, %v10459_v20, 0.0 }
 0x47a   : > { %v4976_v53 = vadd.f32 %v4720_v32, %v4182_v6  ;;  %v6312_v49 = vsel %vm6042_vm11, %v10459_v20, 0.0  ;;  %vm762_vm12 = vcmp.eq.s32.totalorder %v464_v5, %v10331_v0  ;;  %vm766_vm13 = vcmp.eq.s32.totalorder %v468_v7, %v10331_v0 }
 0x47b   : > { %v5770_v24 = vadd.f32 %v5514_v17, %v4972_v22  ;;  %v1032_v15 = vsel %vm762_vm12, %v10351_v36, 0.0  ;;  %v1036_v38 = vsel %vm766_vm13, %v10351_v36, 0.0  ;;  %vm1312_vm14 = vcmp.eq.s32.totalorder %v464_v5, %v10333_v55 }
 0x47c   : > { %v5774_v12 = vadd.f32 %v5518_v44, %v4976_v53  ;;  %vm1316_vm15 = vcmp.eq.s32.totalorder %v468_v7, %v10333_v55  ;;  %v1582_v63 = vsel %vm1312_vm14, %v10353_v56, 0.0  ;;  %vm2122_vm0 = vcmp.eq.s32.totalorder %v464_v5, %v10339_v23  ;;  %v11427_v44 = vld [vmem:[#allocation2 + $0x650] sm:$0xff] }
 0x47d   : > { %v6564_v26 = vadd.f32 %v6308_v13, %v5770_v24  ;;  %v1586_v25 = vsel %vm1316_vm15, %v10353_v56, 0.0  ;;  %v1838_v60 = vadd.f32 %v1582_v63, %v1032_v15  ;;  %vm2126_vm1 = vcmp.eq.s32.totalorder %v468_v7, %v10339_v23 }
 0x47e   : > { %v6568_v54 = vadd.f32 %v6312_v49, %v5774_v12  ;;  %v1842_v62 = vadd.f32 %v1586_v25, %v1036_v38  ;;  %v2392_v16 = vsel %vm2122_vm0, %v10359_v11, 0.0  ;;  %v2396_v41 = vsel %vm2126_vm1, %v10359_v11, 0.0  ;;  %v532_v49 = vld [vmem:[#allocation2 + $0x670] sm:$0xff] }
 0x47f   : > { %v2648_v45 = vadd.f32 %v2392_v16, %v1838_v60  ;;  %vm2916_vm2 = vcmp.eq.s32.totalorder %v464_v5, %v10341_v30  ;;  %vm2920_vm3 = vcmp.eq.s32.totalorder %v468_v7, %v10341_v30  ;;  %vm3716_vm4 = vcmp.eq.s32.totalorder %v464_v5, %v10387_v51 }
 0x480   : > { %v6803_v9 = vpack.c.bf16 %v6568_v54, %v6564_v26  ;;  %v2652_v42 = vadd.f32 %v2396_v41, %v1842_v62  ;;  %v3186_v28 = vsel %vm2916_vm2, %v10365_v1, 0.0  ;;  %v3190_v43 = vsel %vm2920_vm3, %v10365_v1, 0.0 }
 0x481   : > { %v3442_v8 = vadd.f32 %v3186_v28, %v2648_v45  ;;  %vm3720_vm5 = vcmp.eq.s32.totalorder %v468_v7, %v10387_v51  ;;  %v3986_v32 = vsel %vm3716_vm4, %v10415_v2, 0.0  ;;  %vm4510_vm6 = vcmp.eq.s32.totalorder %v464_v5, %v10404_v59 }
 0x482   : > { %7016 = vmatpush.bf16.msra.mxu1 %v6803_v9  ;;  %v3446_v6 = vadd.f32 %v3190_v43, %v2652_v42  ;;  %v3990_v17 = vsel %vm3720_vm5, %v10415_v2, 0.0  ;;  %vm4514_vm7 = vcmp.eq.s32.totalorder %v468_v7, %v10404_v59  ;;  %v4780_v22 = vsel %vm4510_vm6, %v10417_v18, 0.0 }
 0x483   : > { %v4242_v13 = vadd.f32 %v3986_v32, %v3442_v8  ;;  %v4784_v53 = vsel %vm4514_vm7, %v10417_v18, 0.0  ;;  %vm5308_vm8 = vcmp.eq.s32.totalorder %v464_v5, %v10409_v35  ;;  %vm5312_vm9 = vcmp.eq.s32.totalorder %v468_v7, %v10409_v35 }
 0x484   : > { %v4246_v24 = vadd.f32 %v3990_v17, %v3446_v6  ;;  %v5578_v15 = vsel %vm5308_vm8, %v10455_v46, 0.0  ;;  %v5582_v38 = vsel %vm5312_vm9, %v10455_v46, 0.0  ;;  %vm6102_vm10 = vcmp.eq.s32.totalorder %v464_v5, %v10457_v40 }
 0x485   : > { %v5036_v12 = vadd.f32 %v4780_v22, %v4242_v13  ;;  %vm6106_vm11 = vcmp.eq.s32.totalorder %v468_v7, %v10457_v40  ;;  %v6372_v63 = vsel %vm6102_vm10, %v10459_v20, 0.0  ;;  %vm826_vm12 = vcmp.eq.s32.totalorder %v11427_v44, %v10331_v0 }
 0x486   : > { %v5040_v26 = vadd.f32 %v4784_v53, %v4246_v24  ;;  %v6376_v25 = vsel %vm6106_vm11, %v10459_v20, 0.0  ;;  %vm830_vm13 = vcmp.eq.s32.totalorder %v532_v49, %v10331_v0  ;;  %v1096_v60 = vsel %vm826_vm12, %v10351_v36, 0.0 }
 0x487   : > { %v5834_v54 = vadd.f32 %v5578_v15, %v5036_v12  ;;  %v1100_v62 = vsel %vm830_vm13, %v10351_v36, 0.0  ;;  %vm1376_vm14 = vcmp.eq.s32.totalorder %v11427_v44, %v10333_v55  ;;  %vm1380_vm15 = vcmp.eq.s32.totalorder %v532_v49, %v10333_v55 }
 0x488   : > { %v5838_v5 = vadd.f32 %v5582_v38, %v5040_v26  ;;  %v1646_v7 = vsel %vm1376_vm14, %v10353_v56, 0.0  ;;  %v1650_v16 = vsel %vm1380_vm15, %v10353_v56, 0.0  ;;  %vm2186_vm0 = vcmp.eq.s32.totalorder %v11427_v44, %v10339_v23 }
 0x489   : > { %v6628_v41 = vadd.f32 %v6372_v63, %v5834_v54  ;;  %v1902_v45 = vadd.f32 %v1646_v7, %v1096_v60  ;;  %v1906_v9 = vadd.f32 %v1650_v16, %v1100_v62  ;;  %vm2190_vm1 = vcmp.eq.s32.totalorder %v532_v49, %v10339_v23  ;;  %v332_v60 = vld [vmem:[#allocation2 + $0x30] sm:$0xff] }
 0x48a   : > { %v6632_v42 = vadd.f32 %v6376_v25, %v5838_v5  ;;  %v2456_v28 = vsel %vm2186_vm0, %v10359_v11, 0.0  ;;  %v2460_v43 = vsel %vm2190_vm1, %v10359_v11, 0.0  ;;  %vm2980_vm2 = vcmp.eq.s32.totalorder %v11427_v44, %v10341_v30  ;;  %v328_v25 = vld [vmem:[#allocation2 + $0x10] sm:$0xff] }
 0x48b   : > { %v2712_v8 = vadd.f32 %v2456_v28, %v1902_v45  ;;  %v2716_v32 = vadd.f32 %v2460_v43, %v1906_v9  ;;  %vm2984_vm3 = vcmp.eq.s32.totalorder %v532_v49, %v10341_v30  ;;  %v3250_v6 = vsel %vm2980_vm2, %v10365_v1, 0.0 }
 0x48c   : > { %v6835_v17 = vpack.c.bf16 %v6632_v42, %v6628_v41  ;;  %v3254_v22 = vsel %vm2984_vm3, %v10365_v1, 0.0  ;;  %vm3780_vm4 = vcmp.eq.s32.totalorder %v11427_v44, %v10387_v51  ;;  %vm3784_vm5 = vcmp.eq.s32.totalorder %v532_v49, %v10387_v51 }
 0x48d   : > { %v3506_v13 = vadd.f32 %v3250_v6, %v2712_v8  ;;  %v3510_v53 = vadd.f32 %v3254_v22, %v2716_v32  ;;  %v4050_v24 = vsel %vm3780_vm4, %v10415_v2, 0.0  ;;  %v4054_v15 = vsel %vm3784_vm5, %v10415_v2, 0.0 }
 0x48e   : > { %7029 = vmatpush.bf16.msra.mxu2 %v6835_v17  ;;  %vm4574_vm6 = vcmp.eq.s32.totalorder %v11427_v44, %v10404_v59  ;;  %vm4578_vm7 = vcmp.eq.s32.totalorder %v532_v49, %v10404_v59  ;;  %vm5372_vm8 = vcmp.eq.s32.totalorder %v11427_v44, %v10409_v35  ;;  %vm5376_vm9 = vcmp.eq.s32.totalorder %v532_v49, %v10409_v35 }
 0x48f   : > { %v4306_v38 = vadd.f32 %v4050_v24, %v3506_v13  ;;  %v4310_v12 = vadd.f32 %v4054_v15, %v3510_v53  ;;  %v4844_v63 = vsel %vm4574_vm6, %v10417_v18, 0.0  ;;  %v4848_v26 = vsel %vm4578_vm7, %v10417_v18, 0.0 }
 0x490   : > { %v5642_v54 = vsel %vm5372_vm8, %v10455_v46, 0.0  ;;  %v5646_v62 = vsel %vm5376_vm9, %v10455_v46, 0.0  ;;  %vm6166_vm10 = vcmp.eq.s32.totalorder %v11427_v44, %v10457_v40  ;;  %vm6170_vm11 = vcmp.eq.s32.totalorder %v532_v49, %v10457_v40 }
 0x491   : > { %v5100_v5 = vadd.f32 %v4844_v63, %v4306_v38  ;;  %v5104_v7 = vadd.f32 %v4848_v26, %v4310_v12  ;;  %v6436_v16 = vsel %vm6166_vm10, %v10459_v20, 0.0  ;;  %v6440_v41 = vsel %vm6170_vm11, %v10459_v20, 0.0 }
 0x492   : > { %vm626_vm12 = vcmp.eq.s32.totalorder %v328_v25, %v10331_v0  ;;  %vm630_vm13 = vcmp.eq.s32.totalorder %v332_v60, %v10331_v0  ;;  %vm1176_vm14 = vcmp.eq.s32.totalorder %v328_v25, %v10333_v55  ;;  %vm1180_vm15 = vcmp.eq.s32.totalorder %v332_v60, %v10333_v55 }
 0x493   : > { %v5898_v45 = vadd.f32 %v5642_v54, %v5100_v5  ;;  %v5902_v9 = vadd.f32 %v5646_v62, %v5104_v7  ;;  %v896_v44 = vsel %vm626_vm12, %v10351_v36, 0.0  ;;  %v900_v49 = vsel %vm630_vm13, %v10351_v36, 0.0  ;;  %v11499_v62 = vld [vmem:[#allocation2 + $0x210] sm:$0xff] }
 0x494   : > { %v1446_v42 = vsel %vm1176_vm14, %v10353_v56, 0.0  ;;  %v1450_v28 = vsel %vm1180_vm15, %v10353_v56, 0.0  ;;  %vm1986_vm0 = vcmp.eq.s32.totalorder %v328_v25, %v10339_v23  ;;  %vm1990_vm1 = vcmp.eq.s32.totalorder %v332_v60, %v10339_v23 }
 0x495   : > { %v6692_v43 = vadd.f32 %v6436_v16, %v5898_v45  ;;  %v6696_v8 = vadd.f32 %v6440_v41, %v5902_v9  ;;  %v1702_v32 = vadd.f32 %v1446_v42, %v896_v44  ;;  %v1706_v6 = vadd.f32 %v1450_v28, %v900_v49  ;;  %v396_v9 = vld [vmem:[#allocation2 + $0x230] sm:$0xff] }
 0x496   : > { %v2256_v17 = vsel %vm1986_vm0, %v10359_v11, 0.0  ;;  %v2260_v22 = vsel %vm1990_vm1, %v10359_v11, 0.0  ;;  %vm2780_vm2 = vcmp.eq.s32.totalorder %v328_v25, %v10341_v30  ;;  %vm2784_vm3 = vcmp.eq.s32.totalorder %v332_v60, %v10341_v30 }
 0x497   : > { %v6867_v13 = vpack.c.bf16 %v6696_v8, %v6692_v43  ;;  %v2512_v53 = vadd.f32 %v2256_v17, %v1702_v32  ;;  %v2516_v24 = vadd.f32 %v2260_v22, %v1706_v6  ;;  %v3050_v15 = vsel %vm2780_vm2, %v10365_v1, 0.0 }
 0x498   : > { %v3054_v38 = vsel %vm2784_vm3, %v10365_v1, 0.0  ;;  %vm3580_vm4 = vcmp.eq.s32.totalorder %v328_v25, %v10387_v51  ;;  %vm3584_vm5 = vcmp.eq.s32.totalorder %v332_v60, %v10387_v51  ;;  %vm4374_vm6 = vcmp.eq.s32.totalorder %v328_v25, %v10404_v59 }
 0x499   : > { %7042 = vmatpush.bf16.msra.mxu3 %v6867_v13  ;;  %v3306_v12 = vadd.f32 %v3050_v15, %v2512_v53  ;;  %v3310_v63 = vadd.f32 %v3054_v38, %v2516_v24  ;;  %v3850_v26 = vsel %vm3580_vm4, %v10415_v2, 0.0  ;;  %v3854_v54 = vsel %vm3584_vm5, %v10415_v2, 0.0 }
 0x49a   : > { %vm4378_vm7 = vcmp.eq.s32.totalorder %v332_v60, %v10404_v59  ;;  %v4644_v5 = vsel %vm4374_vm6, %v10417_v18, 0.0  ;;  %vm5172_vm8 = vcmp.eq.s32.totalorder %v328_v25, %v10409_v35  ;;  %vm5176_vm9 = vcmp.eq.s32.totalorder %v332_v60, %v10409_v35 }
 0x49b   : > { %v4106_v7 = vadd.f32 %v3850_v26, %v3306_v12  ;;  %v4110_v16 = vadd.f32 %v3854_v54, %v3310_v63  ;;  %v4648_v41 = vsel %vm4378_vm7, %v10417_v18, 0.0  ;;  %v5442_v45 = vsel %vm5172_vm8, %v10455_v46, 0.0 }
 0x49c   : > { %v5446_v44 = vsel %vm5176_vm9, %v10455_v46, 0.0  ;;  %vm5966_vm10 = vcmp.eq.s32.totalorder %v328_v25, %v10457_v40  ;;  %vm5970_vm11 = vcmp.eq.s32.totalorder %v332_v60, %v10457_v40  ;;  %vm690_vm12 = vcmp.eq.s32.totalorder %v11499_v62, %v10331_v0 }
 0x49d   : > { %v4900_v49 = vadd.f32 %v4644_v5, %v4106_v7  ;;  %v4904_v42 = vadd.f32 %v4648_v41, %v4110_v16  ;;  %v6236_v28 = vsel %vm5966_vm10, %v10459_v20, 0.0  ;;  %v6240_v43 = vsel %vm5970_vm11, %v10459_v20, 0.0 }
 0x49e   : > { %vm694_vm13 = vcmp.eq.s32.totalorder %v396_v9, %v10331_v0  ;;  %v960_v8 = vsel %vm690_vm12, %v10351_v36, 0.0  ;;  %vm1240_vm14 = vcmp.eq.s32.totalorder %v11499_v62, %v10333_v55  ;;  %vm1244_vm15 = vcmp.eq.s32.totalorder %v396_v9, %v10333_v55 }
 0x49f   : > { %v5698_v25 = vadd.f32 %v5442_v45, %v4900_v49  ;;  %v5702_v60 = vadd.f32 %v5446_v44, %v4904_v42  ;;  %v964_v32 = vsel %vm694_vm13, %v10351_v36, 0.0  ;;  %v1510_v6 = vsel %vm1240_vm14, %v10353_v56, 0.0 }
 0x4a0   : > { %v1514_v17 = vsel %vm1244_vm15, %v10353_v56, 0.0  ;;  %v1766_v22 = vadd.f32 %v1510_v6, %v960_v8  ;;  %vm2050_vm0 = vcmp.eq.s32.totalorder %v11499_v62, %v10339_v23  ;;  %vm2054_vm1 = vcmp.eq.s32.totalorder %v396_v9, %v10339_v23 }
 0x4a1   : > { %v6492_v13 = vadd.f32 %v6236_v28, %v5698_v25  ;;  %v6496_v53 = vadd.f32 %v6240_v43, %v5702_v60  ;;  %v1770_v24 = vadd.f32 %v1514_v17, %v964_v32  ;;  %v2320_v15 = vsel %vm2050_vm0, %v10359_v11, 0.0  ;;  %v456_v28 = vld [vmem:[#allocation2 + $0x410] sm:$0xff] }
 0x4a2   : > { %v2324_v38 = vsel %vm2054_vm1, %v10359_v11, 0.0  ;;  %v2576_v12 = vadd.f32 %v2320_v15, %v1766_v22  ;;  %vm2844_vm2 = vcmp.eq.s32.totalorder %v11499_v62, %v10341_v30  ;;  %vm2848_vm3 = vcmp.eq.s32.totalorder %v396_v9, %v10341_v30  ;;  %v11544_v43 = vld [vmem:[#allocation2 + $0x430] sm:$0xff] }
 0x4a3   : > { %v6767_v63 = vpack.c.bf16 %v6496_v53, %v6492_v13  ;;  %v2580_v26 = vadd.f32 %v2324_v38, %v1770_v24  ;;  %v3114_v54 = vsel %vm2844_vm2, %v10365_v1, 0.0  ;;  %v3118_v5 = vsel %vm2848_vm3, %v10365_v1, 0.0 }
 0x4a4   : > { %v3370_v7 = vadd.f32 %v3114_v54, %v2576_v12  ;;  %vm3644_vm4 = vcmp.eq.s32.totalorder %v11499_v62, %v10387_v51  ;;  %vm3648_vm5 = vcmp.eq.s32.totalorder %v396_v9, %v10387_v51  ;;  %vm4438_vm6 = vcmp.eq.s32.totalorder %v11499_v62, %v10404_v59 }
 0x4a5   : > { %7004 = vmatpush.bf16.msra.mxu0 %v6767_v63  ;;  %v3374_v16 = vadd.f32 %v3118_v5, %v2580_v26  ;;  %v3914_v41 = vsel %vm3644_vm4, %v10415_v2, 0.0  ;;  %v3918_v45 = vsel %vm3648_vm5, %v10415_v2, 0.0  ;;  %vm4442_vm7 = vcmp.eq.s32.totalorder %v396_v9, %v10404_v59 }
 0x4a6   : > { %v4170_v44 = vadd.f32 %v3914_v41, %v3370_v7  ;;  %v4708_v49 = vsel %vm4438_vm6, %v10417_v18, 0.0  ;;  %v4712_v42 = vsel %vm4442_vm7, %v10417_v18, 0.0  ;;  %vm5236_vm8 = vcmp.eq.s32.totalorder %v11499_v62, %v10409_v35 }
 0x4a7   : > { %v4174_v8 = vadd.f32 %v3918_v45, %v3374_v16  ;;  %vm5240_vm9 = vcmp.eq.s32.totalorder %v396_v9, %v10409_v35  ;;  %v5506_v25 = vsel %vm5236_vm8, %v10455_v46, 0.0  ;;  %vm6030_vm10 = vcmp.eq.s32.totalorder %v11499_v62, %v10457_v40 }
 0x4a8   : > { %v4964_v60 = vadd.f32 %v4708_v49, %v4170_v44  ;;  %v5510_v32 = vsel %vm5240_vm9, %v10455_v46, 0.0  ;;  %vm6034_vm11 = vcmp.eq.s32.totalorder %v396_v9, %v10457_v40  ;;  %v6300_v6 = vsel %vm6030_vm10, %v10459_v20, 0.0  ;;  %7005 = vmatmul.bf16.vlgmr.msra.gmra.mxu0 %v9789_v39 }
 0x4a9   : > { %v4968_v17 = vadd.f32 %v4712_v42, %v4174_v8  ;;  %v6304_v22 = vsel %vm6034_vm11, %v10459_v20, 0.0  ;;  %vm754_vm12 = vcmp.eq.s32.totalorder %v456_v28, %v10331_v0  ;;  %vm758_vm13 = vcmp.eq.s32.totalorder %v11544_v43, %v10331_v0 }
 0x4aa   : > { %v5762_v13 = vadd.f32 %v5506_v25, %v4964_v60  ;;  %v1024_v62 = vsel %vm754_vm12, %v10351_v36, 0.0  ;;  %v1028_v53 = vsel %vm758_vm13, %v10351_v36, 0.0  ;;  %vm1304_vm14 = vcmp.eq.s32.totalorder %v456_v28, %v10333_v55 }
 0x4ab   : > { %v5766_v9 = vadd.f32 %v5510_v32, %v4968_v17  ;;  %vm1308_vm15 = vcmp.eq.s32.totalorder %v11544_v43, %v10333_v55  ;;  %v1574_v24 = vsel %vm1304_vm14, %v10353_v56, 0.0  ;;  %vm2114_vm0 = vcmp.eq.s32.totalorder %v456_v28, %v10339_v23  ;;  %v11584_v32 = vld [vmem:[#allocation2 + $0x610] sm:$0xff] }
 0x4ac   : > { %v6556_v15 = vadd.f32 %v6300_v6, %v5762_v13  ;;  %v1578_v38 = vsel %vm1308_vm15, %v10353_v56, 0.0  ;;  %v1830_v12 = vadd.f32 %v1574_v24, %v1024_v62  ;;  %vm2118_vm1 = vcmp.eq.s32.totalorder %v11544_v43, %v10339_v23 }
 0x4ad   : > { %v6560_v63 = vadd.f32 %v6304_v22, %v5766_v9  ;;  %v1834_v26 = vadd.f32 %v1578_v38, %v1028_v53  ;;  %v2384_v54 = vsel %vm2114_vm0, %v10359_v11, 0.0  ;;  %v2388_v5 = vsel %vm2118_vm1, %v10359_v11, 0.0  ;;  %v524_v22 = vld [vmem:[#allocation2 + $0x630] sm:$0xff] }
 0x4ae   : > { %v2640_v7 = vadd.f32 %v2384_v54, %v1830_v12  ;;  %vm2908_vm2 = vcmp.eq.s32.totalorder %v456_v28, %v10341_v30  ;;  %vm2912_vm3 = vcmp.eq.s32.totalorder %v11544_v43, %v10341_v30  ;;  %vm3708_vm4 = vcmp.eq.s32.totalorder %v456_v28, %v10387_v51 }
 0x4af   : > { %v6799_v16 = vpack.c.bf16 %v6560_v63, %v6556_v15  ;;  %v2644_v41 = vadd.f32 %v2388_v5, %v1834_v26  ;;  %v3178_v45 = vsel %vm2908_vm2, %v10365_v1, 0.0  ;;  %v3182_v44 = vsel %vm2912_vm3, %v10365_v1, 0.0 }
 0x4b0   : > { %v3434_v49 = vadd.f32 %v3178_v45, %v2640_v7  ;;  %vm3712_vm5 = vcmp.eq.s32.totalorder %v11544_v43, %v10387_v51  ;;  %v3978_v42 = vsel %vm3708_vm4, %v10415_v2, 0.0  ;;  %vm4502_vm6 = vcmp.eq.s32.totalorder %v456_v28, %v10404_v59 }
 0x4b1   : > { %7017 = vmatpush.bf16.msra.mxu1 %v6799_v16  ;;  %v3438_v8 = vadd.f32 %v3182_v44, %v2644_v41  ;;  %v3982_v25 = vsel %vm3712_vm5, %v10415_v2, 0.0  ;;  %vm4506_vm7 = vcmp.eq.s32.totalorder %v11544_v43, %v10404_v59  ;;  %v4772_v60 = vsel %vm4502_vm6, %v10417_v18, 0.0 }
 0x4b2   : > { %v4234_v6 = vadd.f32 %v3978_v42, %v3434_v49  ;;  %v4776_v17 = vsel %vm4506_vm7, %v10417_v18, 0.0  ;;  %vm5300_vm8 = vcmp.eq.s32.totalorder %v456_v28, %v10409_v35  ;;  %vm5304_vm9 = vcmp.eq.s32.totalorder %v11544_v43, %v10409_v35 }
 0x4b3   : > { %v4238_v13 = vadd.f32 %v3982_v25, %v3438_v8  ;;  %v5570_v62 = vsel %vm5300_vm8, %v10455_v46, 0.0  ;;  %v5574_v53 = vsel %vm5304_vm9, %v10455_v46, 0.0  ;;  %vm6094_vm10 = vcmp.eq.s32.totalorder %v456_v28, %v10457_v40 }
 0x4b4   : > { %v5028_v9 = vadd.f32 %v4772_v60, %v4234_v6  ;;  %vm6098_vm11 = vcmp.eq.s32.totalorder %v11544_v43, %v10457_v40  ;;  %v6364_v24 = vsel %vm6094_vm10, %v10459_v20, 0.0  ;;  %vm818_vm12 = vcmp.eq.s32.totalorder %v11584_v32, %v10331_v0  ;;  %7018 = vmatmul.bf16.vlgmr.msra.gmra.mxu1 %v9791_v33 }
 0x4b5   : > { %v5032_v15 = vadd.f32 %v4776_v17, %v4238_v13  ;;  %v6368_v38 = vsel %vm6098_vm11, %v10459_v20, 0.0  ;;  %vm822_vm13 = vcmp.eq.s32.totalorder %v524_v22, %v10331_v0  ;;  %v1088_v12 = vsel %vm818_vm12, %v10351_v36, 0.0 }
 0x4b6   : > { %v5826_v63 = vadd.f32 %v5570_v62, %v5028_v9  ;;  %v1092_v28 = vsel %vm822_vm13, %v10351_v36, 0.0  ;;  %vm1368_vm14 = vcmp.eq.s32.totalorder %v11584_v32, %v10333_v55  ;;  %vm1372_vm15 = vcmp.eq.s32.totalorder %v524_v22, %v10333_v55  ;;  %v11643_v9 = vld [vmem:[#allocation2 + $0x1d8] sm:$0xff] }
 0x4b7   : > { %v5830_v43 = vadd.f32 %v5574_v53, %v5032_v15  ;;  %v1638_v26 = vsel %vm1368_vm14, %v10353_v56, 0.0  ;;  %v1642_v54 = vsel %vm1372_vm15, %v10353_v56, 0.0  ;;  %vm2178_vm0 = vcmp.eq.s32.totalorder %v11584_v32, %v10339_v23 }
 0x4b8   : > { %v6620_v5 = vadd.f32 %v6364_v24, %v5826_v63  ;;  %v1894_v0 = vadd.f32 %v1638_v26, %v1088_v12  ;;  %v1898_v7 = vadd.f32 %v1642_v54, %v1092_v28  ;;  %vm2182_vm1 = vcmp.eq.s32.totalorder %v524_v22, %v10339_v23 }
 0x4b9   : > { %v6624_v16 = vadd.f32 %v6368_v38, %v5830_v43  ;;  %v2448_v36 = vsel %vm2178_vm0, %v10359_v11, 0.0  ;;  %v2452_v41 = vsel %vm2182_vm1, %v10359_v11, 0.0  ;;  %vm2972_vm2 = vcmp.eq.s32.totalorder %v11584_v32, %v10341_v30 }
 0x4ba   : > { %v2704_v55 = vadd.f32 %v2448_v36, %v1894_v0  ;;  %v2708_v45 = vadd.f32 %v2452_v41, %v1898_v7  ;;  %vm2976_vm3 = vcmp.eq.s32.totalorder %v524_v22, %v10341_v30  ;;  %v3242_v56 = vsel %vm2972_vm2, %v10365_v1, 0.0 }
 0x4bb   : > { %v6831_v44 = vpack.c.bf16 %v6624_v16, %v6620_v5  ;;  %v3246_v49 = vsel %vm2976_vm3, %v10365_v1, 0.0  ;;  %vm3772_vm4 = vcmp.eq.s32.totalorder %v11584_v32, %v10387_v51  ;;  %vm3776_vm5 = vcmp.eq.s32.totalorder %v524_v22, %v10387_v51 }
 0x4bc   : > { %v3498_v23 = vadd.f32 %v3242_v56, %v2704_v55  ;;  %v3502_v42 = vadd.f32 %v3246_v49, %v2708_v45  ;;  %v4042_v11 = vsel %vm3772_vm4, %v10415_v2, 0.0  ;;  %v4046_v8 = vsel %vm3776_vm5, %v10415_v2, 0.0 }
 0x4bd   : > { %7030 = vmatpush.bf16.msra.mxu2 %v6831_v44  ;;  %vm4566_vm6 = vcmp.eq.s32.totalorder %v11584_v32, %v10404_v59  ;;  %vm4570_vm7 = vcmp.eq.s32.totalorder %v524_v22, %v10404_v59  ;;  %vm5364_vm8 = vcmp.eq.s32.totalorder %v11584_v32, %v10409_v35  ;;  %vm5368_vm9 = vcmp.eq.s32.totalorder %v524_v22, %v10409_v35 }
 0x4be   : > { %v4298_v30 = vadd.f32 %v4042_v11, %v3498_v23  ;;  %v4302_v1 = vadd.f32 %v4046_v8, %v3502_v42  ;;  %v4836_v51 = vsel %vm4566_vm6, %v10417_v18, 0.0  ;;  %v4840_v25 = vsel %vm4570_vm7, %v10417_v18, 0.0 }
 0x4bf   : > { %v5634_v60 = vsel %vm5364_vm8, %v10455_v46, 0.0  ;;  %v5638_v2 = vsel %vm5368_vm9, %v10455_v46, 0.0  ;;  %vm6158_vm10 = vcmp.eq.s32.totalorder %v11584_v32, %v10457_v40  ;;  %vm6162_vm11 = vcmp.eq.s32.totalorder %v524_v22, %v10457_v40  ;;  %v11645_v40 = vld [vmem:[#allocation2 + $0x1f8] sm:$0xff] }
 0x4c0   : > { %v5092_v59 = vadd.f32 %v4836_v51, %v4298_v30  ;;  %v5096_v6 = vadd.f32 %v4840_v25, %v4302_v1  ;;  %v6428_v17 = vsel %vm6158_vm10, %v10459_v20, 0.0  ;;  %v6432_v35 = vsel %vm6162_vm11, %v10459_v20, 0.0  ;;  %7031 = vmatmul.bf16.vlgmr.msra.gmra.mxu2 %v9619_v4  ;;  %v11718_v25 = vld [vmem:[#allocation2 + $0x3d8] sm:$0xff] }
 0x4c1   : > { %v619_v13 = vperm.slane %v10293_v57, 4  ;;  %v885_v18 = vperm.slane %v10324_v48, 4  ;;  %v1169_v62 = vperm.slane %v10296_v27, 4  ;;  %v1435_v46 = vperm.slane %v10327_v3, 4 }
 0x4c2   : > { %v5890_v53 = vadd.f32 %v5634_v60, %v5092_v59  ;;  %v5894_v32 = vadd.f32 %v5638_v2, %v5096_v6  ;;  %v1979_v22 = vperm.slane %v10302_v21, 4  ;;  %v2245_v20 = vperm.slane %v10314_v31, 4 }
 0x4c3   : > { %v11649_v24 = vperm.slane %v619_v13, 0  ;;  %v11651_v15 = vperm.slane %v885_v18, 0  ;;  %v11653_v57 = vperm.slane %v1169_v62, 0  ;;  %v11655_v48 = vperm.slane %v1435_v46, 0 }
 0x4c4   : > { %v6684_v27 = vadd.f32 %v6428_v17, %v5890_v53  ;;  %v6688_v3 = vadd.f32 %v6432_v35, %v5894_v32  ;;  %v11657_v38 = vperm.slane %v1979_v22, 0  ;;  %v11659_v12 = vperm.slane %v2245_v20, 0  ;;  %v11722_v17 = vld [vmem:[#allocation2 + $0x3f8] sm:$0xff] }
 0x4c5   : > { %vm683_vm12 = vcmp.eq.s32.totalorder %v11643_v9, %v11649_v24  ;;  %vm687_vm13 = vcmp.eq.s32.totalorder %v11645_v40, %v11649_v24  ;;  %vm1233_vm14 = vcmp.eq.s32.totalorder %v11643_v9, %v11653_v57  ;;  %vm1237_vm15 = vcmp.eq.s32.totalorder %v11645_v40, %v11653_v57 }
 0x4c6   : > { %v6863_v21 = vpack.c.bf16 %v6688_v3, %v6684_v27  ;;  %v953_v31 = vsel %vm683_vm12, %v11651_v15, 0.0  ;;  %v957_v63 = vsel %vm687_vm13, %v11651_v15, 0.0  ;;  %v1503_v28 = vsel %vm1233_vm14, %v11655_v48, 0.0 }
 0x4c7   : > { %v1507_v43 = vsel %vm1237_vm15, %v11655_v48, 0.0  ;;  %v1759_v26 = vadd.f32 %v1503_v28, %v953_v31  ;;  %vm2043_vm0 = vcmp.eq.s32.totalorder %v11643_v9, %v11657_v38  ;;  %vm2047_vm1 = vcmp.eq.s32.totalorder %v11645_v40, %v11657_v38 }
 0x4c8   : > { %7043 = vmatpush.bf16.msra.mxu3 %v6863_v21  ;;  %v1763_v54 = vadd.f32 %v1507_v43, %v957_v63  ;;  %v2313_v5 = vsel %vm2043_vm0, %v11659_v12, 0.0  ;;  %v2317_v0 = vsel %vm2047_vm1, %v11659_v12, 0.0  ;;  %v2773_v7 = vperm.slane %v10305_v50, 4 }
 0x4c9   : > { %v2569_v16 = vadd.f32 %v2313_v5, %v1759_v26  ;;  %v3039_v36 = vperm.slane %v10317_v19, 4  ;;  %v3573_v41 = vperm.slane %v10308_v34, 4  ;;  %v3839_v55 = vperm.slane %v10385_v52, 4 }
 0x4ca   : > { %v2573_v45 = vadd.f32 %v2317_v0, %v1763_v54  ;;  %v11683_v56 = vperm.slane %v2773_v7, 0  ;;  %v4367_v44 = vperm.slane %v10378_v10, 4  ;;  %v4633_v49 = vperm.slane %v10390_v47, 4 }
 0x4cb   : > { %v11687_v23 = vperm.slane %v3039_v36, 0  ;;  %v11689_v42 = vperm.slane %v3573_v41, 0  ;;  %v11691_v11 = vperm.slane %v3839_v55, 0  ;;  %v5165_v50 = vperm.slane %v10382_v14, 4  ;;  %7044 = vmatmul.bf16.vlgmr.msra.gmra.mxu3 %v9787_v29 }
 0x4cc   : > { %vm2837_vm2 = vcmp.eq.s32.totalorder %v11643_v9, %v11683_v56  ;;  %vm2841_vm3 = vcmp.eq.s32.totalorder %v11645_v40, %v11683_v56  ;;  %v11699_v34 = vperm.slane %v4367_v44, 0  ;;  %v11701_v19 = vperm.slane %v4633_v49, 0  ;;  %v11778_v49 = vld [vmem:[#allocation2 + $0x5d8] sm:$0xff] }
 0x4cd   : > { %v3107_v10 = vsel %vm2837_vm2, %v11687_v23, 0.0  ;;  %v3111_v52 = vsel %vm2841_vm3, %v11687_v23, 0.0  ;;  %vm3637_vm4 = vcmp.eq.s32.totalorder %v11643_v9, %v11689_v42  ;;  %vm3641_vm5 = vcmp.eq.s32.totalorder %v11645_v40, %v11689_v42 }
 0x4ce   : > { %v3363_v14 = vadd.f32 %v3107_v10, %v2569_v16  ;;  %v3367_v47 = vadd.f32 %v3111_v52, %v2573_v45  ;;  %v3907_v8 = vsel %vm3637_vm4, %v11691_v11, 0.0  ;;  %v3911_v30 = vsel %vm3641_vm5, %v11691_v11, 0.0 }
 0x4cf   : > { %vm4431_vm6 = vcmp.eq.s32.totalorder %v11643_v9, %v11699_v34  ;;  %vm4435_vm7 = vcmp.eq.s32.totalorder %v11645_v40, %v11699_v34  ;;  %v11715_v1 = vperm.slane %v5165_v50, 0  ;;  %v5431_v51 = vperm.slane %v10407_v61, 4  ;;  %v11780_v50 = vld [vmem:[#allocation2 + $0x5f8] sm:$0xff] }
 0x4d0   : > { %v4163_v60 = vadd.f32 %v3907_v8, %v3363_v14  ;;  %v4167_v2 = vadd.f32 %v3911_v30, %v3367_v47  ;;  %v4701_v59 = vsel %vm4431_vm6, %v11701_v19, 0.0  ;;  %v4705_v6 = vsel %vm4435_vm7, %v11701_v19, 0.0 }
 0x4d1   : > { %vm5229_vm8 = vcmp.eq.s32.totalorder %v11643_v9, %v11715_v1  ;;  %vm5233_vm9 = vcmp.eq.s32.totalorder %v11645_v40, %v11715_v1  ;;  %v11728_v35 = vperm.slane %v5431_v51, 0  ;;  %v5959_v61 = vperm.slane %v10413_v37, 4 }
 0x4d2   : > { %v4957_v13 = vadd.f32 %v4701_v59, %v4163_v60  ;;  %v4961_v18 = vadd.f32 %v4705_v6, %v4167_v2  ;;  %v6225_v62 = vperm.slane %v10420_v58, 4  ;;  %vm747_vm10 = vcmp.eq.s32.totalorder %v11718_v25, %v11649_v24 }
 0x4d3   : > { %v5499_v46 = vsel %vm5229_vm8, %v11728_v35, 0.0  ;;  %v5503_v53 = vsel %vm5233_vm9, %v11728_v35, 0.0  ;;  %v11736_v32 = vperm.slane %v5959_v61, 0  ;;  %vm751_vm11 = vcmp.eq.s32.totalorder %v11722_v17, %v11649_v24 }
 0x4d4   : > { %v5755_v22 = vadd.f32 %v5499_v46, %v4957_v13  ;;  %v5759_v20 = vadd.f32 %v5503_v53, %v4961_v18  ;;  %v11740_v27 = vperm.slane %v6225_v62, 0  ;;  %v1017_v37 = vsel %vm747_vm10, %v11651_v15, 0.0 }
 0x4d5   : > { %vm6023_vm12 = vcmp.eq.s32.totalorder %v11643_v9, %v11736_v32  ;;  %vm6027_vm13 = vcmp.eq.s32.totalorder %v11645_v40, %v11736_v32  ;;  %v1021_v58 = vsel %vm751_vm11, %v11651_v15, 0.0  ;;  %vm1297_vm14 = vcmp.eq.s32.totalorder %v11718_v25, %v11653_v57 }
 0x4d6   : > { %v6293_v3 = vsel %vm6023_vm12, %v11740_v27, 0.0  ;;  %v6297_v21 = vsel %vm6027_vm13, %v11740_v27, 0.0  ;;  %vm1301_vm15 = vcmp.eq.s32.totalorder %v11722_v17, %v11653_v57  ;;  %v1567_v31 = vsel %vm1297_vm14, %v11655_v48, 0.0 }
 0x4d7   : > { %v6549_v63 = vadd.f32 %v6293_v3, %v5755_v22  ;;  %v6553_v28 = vadd.f32 %v6297_v21, %v5759_v20  ;;  %v1571_v9 = vsel %vm1301_vm15, %v11655_v48, 0.0  ;;  %v1823_v43 = vadd.f32 %v1567_v31, %v1017_v37 }
 0x4d8   : > { %v1827_v40 = vadd.f32 %v1571_v9, %v1021_v58  ;;  %vm2107_vm0 = vcmp.eq.s32.totalorder %v11718_v25, %v11657_v38  ;;  %vm2111_vm1 = vcmp.eq.s32.totalorder %v11722_v17, %v11657_v38  ;;  %vm2901_vm2 = vcmp.eq.s32.totalorder %v11718_v25, %v11683_v56 }
 0x4d9   : > { %v6796_v26 = vpack.c.bf16 %v6553_v28, %v6549_v63  ;;  %v2377_v54 = vsel %vm2107_vm0, %v11659_v12, 0.0  ;;  %v2381_v5 = vsel %vm2111_vm1, %v11659_v12, 0.0  ;;  %vm2905_vm3 = vcmp.eq.s32.totalorder %v11722_v17, %v11683_v56 }
 0x4da   : > { %v2633_v0 = vadd.f32 %v2377_v54, %v1823_v43  ;;  %v2637_v7 = vadd.f32 %v2381_v5, %v1827_v40  ;;  %v3171_v16 = vsel %vm2901_vm2, %v11687_v23, 0.0  ;;  %v3175_v36 = vsel %vm2905_vm3, %v11687_v23, 0.0 }
 0x4db   : > { %7049 = vmatpush.bf16.msrb.mxu0 %v6796_v26  ;;  %vm3701_vm4 = vcmp.eq.s32.totalorder %v11718_v25, %v11689_v42  ;;  %vm3705_vm5 = vcmp.eq.s32.totalorder %v11722_v17, %v11689_v42  ;;  %vm4495_vm6 = vcmp.eq.s32.totalorder %v11718_v25, %v11699_v34  ;;  %vm4499_vm7 = vcmp.eq.s32.totalorder %v11722_v17, %v11699_v34 }
 0x4dc   : > { %v3427_v41 = vadd.f32 %v3171_v16, %v2633_v0  ;;  %v3431_v55 = vadd.f32 %v3175_v36, %v2637_v7  ;;  %v3971_v45 = vsel %vm3701_vm4, %v11691_v11, 0.0  ;;  %v3975_v44 = vsel %vm3705_vm5, %v11691_v11, 0.0  ;;  %v577_v7 = vld [vmem:[#allocation2 + $0x7d8] sm:$0xff] }
 0x4dd   : > { %v4765_v10 = vsel %vm4495_vm6, %v11701_v19, 0.0  ;;  %v4769_v52 = vsel %vm4499_vm7, %v11701_v19, 0.0  ;;  %vm5293_vm8 = vcmp.eq.s32.totalorder %v11718_v25, %v11715_v1  ;;  %vm5297_vm9 = vcmp.eq.s32.totalorder %v11722_v17, %v11715_v1  ;;  %v581_v16 = vld [vmem:[#allocation2 + $0x7f8] sm:$0xff] }
 0x4de   : > { %v4227_v14 = vadd.f32 %v3971_v45, %v3427_v41  ;;  %v4231_v47 = vadd.f32 %v3975_v44, %v3431_v55  ;;  %v5563_v8 = vsel %vm5293_vm8, %v11728_v35, 0.0  ;;  %v5567_v30 = vsel %vm5297_vm9, %v11728_v35, 0.0 }
 0x4df   : > { %vm6087_vm10 = vcmp.eq.s32.totalorder %v11718_v25, %v11736_v32  ;;  %vm6091_vm11 = vcmp.eq.s32.totalorder %v11722_v17, %v11736_v32  ;;  %vm811_vm12 = vcmp.eq.s32.totalorder %v11778_v49, %v11649_v24  ;;  %vm815_vm13 = vcmp.eq.s32.totalorder %v11780_v50, %v11649_v24 }
 0x4e0   : > { %v5021_v51 = vadd.f32 %v4765_v10, %v4227_v14  ;;  %v5025_v60 = vadd.f32 %v4769_v52, %v4231_v47  ;;  %v6357_v2 = vsel %vm6087_vm10, %v11740_v27, 0.0  ;;  %v6361_v59 = vsel %vm6091_vm11, %v11740_v27, 0.0 }
 0x4e1   : > { %v1081_v6 = vsel %vm811_vm12, %v11651_v15, 0.0  ;;  %v1085_v61 = vsel %vm815_vm13, %v11651_v15, 0.0  ;;  %vm1361_vm14 = vcmp.eq.s32.totalorder %v11778_v49, %v11653_v57  ;;  %vm1365_vm15 = vcmp.eq.s32.totalorder %v11780_v50, %v11653_v57 }
 0x4e2   : > { %v5819_v25 = vadd.f32 %v5563_v8, %v5021_v51  ;;  %v5823_v17 = vadd.f32 %v5567_v30, %v5025_v60  ;;  %v1631_v13 = vsel %vm1361_vm14, %v11655_v48, 0.0  ;;  %v1635_v18 = vsel %vm1365_vm15, %v11655_v48, 0.0 }
 0x4e3   : > { %v1887_v62 = vadd.f32 %v1631_v13, %v1081_v6  ;;  %v1891_v46 = vadd.f32 %v1635_v18, %v1085_v61  ;;  %vm2171_vm0 = vcmp.eq.s32.totalorder %v11778_v49, %v11657_v38  ;;  %vm2175_vm1 = vcmp.eq.s32.totalorder %v11780_v50, %v11657_v38 }
 0x4e4   : > { %v6613_v53 = vadd.f32 %v6357_v2, %v5819_v25  ;;  %v6617_v22 = vadd.f32 %v6361_v59, %v5823_v17  ;;  %v2441_v20 = vsel %vm2171_vm0, %v11659_v12, 0.0  ;;  %v2445_v37 = vsel %vm2175_vm1, %v11659_v12, 0.0 }
 0x4e5   : > { %v2697_v58 = vadd.f32 %v2441_v20, %v1887_v62  ;;  %v2701_v3 = vadd.f32 %v2445_v37, %v1891_v46  ;;  %vm2965_vm2 = vcmp.eq.s32.totalorder %v11778_v49, %v11683_v56  ;;  %vm2969_vm3 = vcmp.eq.s32.totalorder %v11780_v50, %v11683_v56  ;;  %v11868_v37 = vld [vmem:[#allocation2 + $0x198] sm:$0xff] }
 0x4e6   : > { %v6828_v21 = vpack.c.bf16 %v6617_v22, %v6613_v53  ;;  %v3235_v31 = vsel %vm2965_vm2, %v11687_v23, 0.0  ;;  %v3239_v63 = vsel %vm2969_vm3, %v11687_v23, 0.0  ;;  %vm3765_vm4 = vcmp.eq.s32.totalorder %v11778_v49, %v11689_v42 }
 0x4e7   : > { %v3491_v28 = vadd.f32 %v3235_v31, %v2697_v58  ;;  %v3495_v9 = vadd.f32 %v3239_v63, %v2701_v3  ;;  %vm3769_vm5 = vcmp.eq.s32.totalorder %v11780_v50, %v11689_v42  ;;  %v4035_v43 = vsel %vm3765_vm4, %v11691_v11, 0.0  ;;  %v381_v31 = vld [vmem:[#allocation2 + $0x1b8] sm:$0xff] }
 0x4e8   : > { %7062 = vmatpush.bf16.msrb.mxu1 %v6828_v21  ;;  %v4039_v40 = vsel %vm3769_vm5, %v11691_v11, 0.0  ;;  %vm4559_vm6 = vcmp.eq.s32.totalorder %v11778_v49, %v11699_v34  ;;  %vm4563_vm7 = vcmp.eq.s32.totalorder %v11780_v50, %v11699_v34  ;;  %vm5357_vm8 = vcmp.eq.s32.totalorder %v11778_v49, %v11715_v1 }
 0x4e9   : > { %v4291_v26 = vadd.f32 %v4035_v43, %v3491_v28  ;;  %v4295_v54 = vadd.f32 %v4039_v40, %v3495_v9  ;;  %v4829_v5 = vsel %vm4559_vm6, %v11701_v19, 0.0  ;;  %v4833_v0 = vsel %vm4563_vm7, %v11701_v19, 0.0 }
 0x4ea   : > { %vm5361_vm9 = vcmp.eq.s32.totalorder %v11780_v50, %v11715_v1  ;;  %v5627_v36 = vsel %vm5357_vm8, %v11728_v35, 0.0  ;;  %vm6151_vm10 = vcmp.eq.s32.totalorder %v11778_v49, %v11736_v32  ;;  %vm6155_vm11 = vcmp.eq.s32.totalorder %v11780_v50, %v11736_v32 }
 0x4eb   : > { %v5085_v41 = vadd.f32 %v4829_v5, %v4291_v26  ;;  %v5089_v55 = vadd.f32 %v4833_v0, %v4295_v54  ;;  %v5631_v45 = vsel %vm5361_vm9, %v11728_v35, 0.0  ;;  %v6421_v44 = vsel %vm6151_vm10, %v11740_v27, 0.0 }
 0x4ec   : > { %v6425_v10 = vsel %vm6155_vm11, %v11740_v27, 0.0  ;;  %vm875_vm12 = vcmp.eq.s32.totalorder %v577_v7, %v11649_v24  ;;  %vm879_vm13 = vcmp.eq.s32.totalorder %v581_v16, %v11649_v24  ;;  %vm1425_vm14 = vcmp.eq.s32.totalorder %v577_v7, %v11653_v57 }
 0x4ed   : > { %v5883_v52 = vadd.f32 %v5627_v36, %v5085_v41  ;;  %v5887_v14 = vadd.f32 %v5631_v45, %v5089_v55  ;;  %v1145_v49 = vsel %vm875_vm12, %v11651_v15, 0.0  ;;  %v1149_v50 = vsel %vm879_vm13, %v11651_v15, 0.0 }
 0x4ee   : > { %vm1429_vm15 = vcmp.eq.s32.totalorder %v581_v16, %v11653_v57  ;;  %v1695_v47 = vsel %vm1425_vm14, %v11655_v48, 0.0  ;;  %vm2235_vm0 = vcmp.eq.s32.totalorder %v577_v7, %v11657_v38  ;;  %vm2239_vm1 = vcmp.eq.s32.totalorder %v581_v16, %v11657_v38 }
 0x4ef   : > { %v6677_v8 = vadd.f32 %v6421_v44, %v5883_v52  ;;  %v6681_v30 = vadd.f32 %v6425_v10, %v5887_v14  ;;  %v1699_v51 = vsel %vm1429_vm15, %v11655_v48, 0.0  ;;  %v1951_v60 = vadd.f32 %v1695_v47, %v1145_v49 }
 0x4f0   : > { %v1955_v2 = vadd.f32 %v1699_v51, %v1149_v50  ;;  %v2505_v59 = vsel %vm2235_vm0, %v11659_v12, 0.0  ;;  %v2509_v6 = vsel %vm2239_vm1, %v11659_v12, 0.0  ;;  %vm3029_vm2 = vcmp.eq.s32.totalorder %v577_v7, %v11683_v56 }
 0x4f1   : > { %v6860_v61 = vpack.c.bf16 %v6681_v30, %v6677_v8  ;;  %v2761_v25 = vadd.f32 %v2505_v59, %v1951_v60  ;;  %vm3033_vm3 = vcmp.eq.s32.totalorder %v581_v16, %v11683_v56  ;;  %v3299_v17 = vsel %vm3029_vm2, %v11687_v23, 0.0 }
 0x4f2   : > { %v2765_v13 = vadd.f32 %v2509_v6, %v1955_v2  ;;  %v3303_v18 = vsel %vm3033_vm3, %v11687_v23, 0.0  ;;  %vm3829_vm4 = vcmp.eq.s32.totalorder %v577_v7, %v11689_v42  ;;  %vm3833_vm5 = vcmp.eq.s32.totalorder %v581_v16, %v11689_v42 }
 0x4f3   : > { %7075 = vmatpush.bf16.msrb.mxu2 %v6860_v61  ;;  %v3555_v62 = vadd.f32 %v3299_v17, %v2761_v25  ;;  %v4099_v46 = vsel %vm3829_vm4, %v11691_v11, 0.0  ;;  %v4103_v53 = vsel %vm3833_vm5, %v11691_v11, 0.0  ;;  %vm4623_vm6 = vcmp.eq.s32.totalorder %v577_v7, %v11699_v34  ;;  %v441_v61 = vld [vmem:[#allocation2 + $0x398] sm:$0xff] }
 0x4f4   : > { %v3559_v22 = vadd.f32 %v3303_v18, %v2765_v13  ;;  %vm4627_vm7 = vcmp.eq.s32.totalorder %v581_v16, %v11699_v34  ;;  %v4893_v20 = vsel %vm4623_vm6, %v11701_v19, 0.0  ;;  %vm5421_vm8 = vcmp.eq.s32.totalorder %v577_v7, %v11715_v1  ;;  %v445_v18 = vld [vmem:[#allocation2 + $0x3b8] sm:$0xff] }
 0x4f5   : > { %v4355_v58 = vadd.f32 %v4099_v46, %v3555_v62  ;;  %v4897_v3 = vsel %vm4627_vm7, %v11701_v19, 0.0  ;;  %vm5425_vm9 = vcmp.eq.s32.totalorder %v581_v16, %v11715_v1  ;;  %v5691_v21 = vsel %vm5421_vm8, %v11728_v35, 0.0 }
 0x4f6   : > { %v4359_v63 = vadd.f32 %v4103_v53, %v3559_v22  ;;  %v5695_v28 = vsel %vm5425_vm9, %v11728_v35, 0.0  ;;  %vm6215_vm10 = vcmp.eq.s32.totalorder %v577_v7, %v11736_v32  ;;  %vm6219_vm11 = vcmp.eq.s32.totalorder %v581_v16, %v11736_v32 }
 0x4f7   : > { %v5149_v9 = vadd.f32 %v4893_v20, %v4355_v58  ;;  %v6485_v43 = vsel %vm6215_vm10, %v11740_v27, 0.0  ;;  %v6489_v40 = vsel %vm6219_vm11, %v11740_v27, 0.0  ;;  %vm675_vm12 = vcmp.eq.s32.totalorder %v11868_v37, %v11649_v24 }
 0x4f8   : > { %v5153_v26 = vadd.f32 %v4897_v3, %v4359_v63  ;;  %vm679_vm13 = vcmp.eq.s32.totalorder %v381_v31, %v11649_v24  ;;  %v945_v54 = vsel %vm675_vm12, %v11651_v15, 0.0  ;;  %vm1225_vm14 = vcmp.eq.s32.totalorder %v11868_v37, %v11653_v57 }
 0x4f9   : > { %v5947_v5 = vadd.f32 %v5691_v21, %v5149_v9  ;;  %v949_v0 = vsel %vm679_vm13, %v11651_v15, 0.0  ;;  %vm1229_vm15 = vcmp.eq.s32.totalorder %v381_v31, %v11653_v57  ;;  %v1495_v7 = vsel %vm1225_vm14, %v11655_v48, 0.0 }
 0x4fa   : > { %v5951_v16 = vadd.f32 %v5695_v28, %v5153_v26  ;;  %v1499_v36 = vsel %vm1229_vm15, %v11655_v48, 0.0  ;;  %v1751_v41 = vadd.f32 %v1495_v7, %v945_v54  ;;  %vm2035_vm0 = vcmp.eq.s32.totalorder %v11868_v37, %v11657_v38 }
 0x4fb   : > { %v6741_v55 = vadd.f32 %v6485_v43, %v5947_v5  ;;  %v1755_v45 = vadd.f32 %v1499_v36, %v949_v0  ;;  %vm2039_vm1 = vcmp.eq.s32.totalorder %v381_v31, %v11657_v38  ;;  %v2305_v44 = vsel %vm2035_vm0, %v11659_v12, 0.0 }
 0x4fc   : > { %v6745_v10 = vadd.f32 %v6489_v40, %v5951_v16  ;;  %v2309_v52 = vsel %vm2039_vm1, %v11659_v12, 0.0  ;;  %v2561_v14 = vadd.f32 %v2305_v44, %v1751_v41  ;;  %vm2829_vm2 = vcmp.eq.s32.totalorder %v11868_v37, %v11683_v56 }
 0x4fd   : > { %v2565_v49 = vadd.f32 %v2309_v52, %v1755_v45  ;;  %vm2833_vm3 = vcmp.eq.s32.totalorder %v381_v31, %v11683_v56  ;;  %v3099_v50 = vsel %vm2829_vm2, %v11687_v23, 0.0  ;;  %vm3629_vm4 = vcmp.eq.s32.totalorder %v11868_v37, %v11689_v42 }
 0x4fe   : > { %v6892_v47 = vpack.c.bf16 %v6745_v10, %v6741_v55  ;;  %v3103_v8 = vsel %vm2833_vm3, %v11687_v23, 0.0  ;;  %v3355_v30 = vadd.f32 %v3099_v50, %v2561_v14  ;;  %vm3633_vm5 = vcmp.eq.s32.totalorder %v381_v31, %v11689_v42  ;;  %v509_v50 = vld [vmem:[#allocation2 + $0x5b8] sm:$0xff] }
 0x4ff   : > { %v3359_v51 = vadd.f32 %v3103_v8, %v2565_v49  ;;  %v3899_v60 = vsel %vm3629_vm4, %v11691_v11, 0.0  ;;  %v3903_v2 = vsel %vm3633_vm5, %v11691_v11, 0.0  ;;  %vm4423_vm6 = vcmp.eq.s32.totalorder %v11868_v37, %v11699_v34  ;;  %v505_v49 = vld [vmem:[#allocation2 + $0x598] sm:$0xff] }
 0x500   : > { %7088 = vmatpush.bf16.msrb.mxu3 %v6892_v47  ;;  %v4155_v59 = vadd.f32 %v3899_v60, %v3355_v30  ;;  %vm4427_vm7 = vcmp.eq.s32.totalorder %v381_v31, %v11699_v34  ;;  %v4693_v6 = vsel %vm4423_vm6, %v11701_v19, 0.0  ;;  %vm5221_vm8 = vcmp.eq.s32.totalorder %v11868_v37, %v11715_v1 }
 0x501   : > { %v4159_v25 = vadd.f32 %v3903_v2, %v3359_v51  ;;  %v4697_v17 = vsel %vm4427_vm7, %v11701_v19, 0.0  ;;  %vm5225_vm9 = vcmp.eq.s32.totalorder %v381_v31, %v11715_v1  ;;  %v5491_v13 = vsel %vm5221_vm8, %v11728_v35, 0.0 }
 0x502   : > { %v4949_v62 = vadd.f32 %v4693_v6, %v4155_v59  ;;  %v5495_v46 = vsel %vm5225_vm9, %v11728_v35, 0.0  ;;  %vm6015_vm10 = vcmp.eq.s32.totalorder %v11868_v37, %v11736_v32  ;;  %vm6019_vm11 = vcmp.eq.s32.totalorder %v381_v31, %v11736_v32 }
 0x503   : > { %v4953_v53 = vadd.f32 %v4697_v17, %v4159_v25  ;;  %v6285_v22 = vsel %vm6015_vm10, %v11740_v27, 0.0  ;;  %v6289_v20 = vsel %vm6019_vm11, %v11740_v27, 0.0  ;;  %vm739_vm12 = vcmp.eq.s32.totalorder %v441_v61, %v11649_v24 }
 0x504   : > { %v5747_v58 = vadd.f32 %v5491_v13, %v4949_v62  ;;  %vm743_vm13 = vcmp.eq.s32.totalorder %v445_v18, %v11649_v24  ;;  %v1009_v3 = vsel %vm739_vm12, %v11651_v15, 0.0  ;;  %vm1289_vm14 = vcmp.eq.s32.totalorder %v441_v61, %v11653_v57 }
 0x505   : > { %v5751_v21 = vadd.f32 %v5495_v46, %v4953_v53  ;;  %v1013_v63 = vsel %vm743_vm13, %v11651_v15, 0.0  ;;  %vm1293_vm15 = vcmp.eq.s32.totalorder %v445_v18, %v11653_v57  ;;  %v1559_v37 = vsel %vm1289_vm14, %v11655_v48, 0.0 }
 0x506   : > { %v6541_v31 = vadd.f32 %v6285_v22, %v5747_v58  ;;  %v1563_v28 = vsel %vm1293_vm15, %v11655_v48, 0.0  ;;  %v1815_v9 = vadd.f32 %v1559_v37, %v1009_v3  ;;  %vm2099_vm0 = vcmp.eq.s32.totalorder %v441_v61, %v11657_v38 }
 0x507   : > { %v6545_v43 = vadd.f32 %v6289_v20, %v5751_v21  ;;  %v1819_v40 = vadd.f32 %v1563_v28, %v1013_v63  ;;  %vm2103_vm1 = vcmp.eq.s32.totalorder %v445_v18, %v11657_v38  ;;  %v2369_v26 = vsel %vm2099_vm0, %v11659_v12, 0.0 }
 0x508   : > { %v2373_v54 = vsel %vm2103_vm1, %v11659_v12, 0.0  ;;  %v2625_v5 = vadd.f32 %v2369_v26, %v1815_v9  ;;  %vm2893_vm2 = vcmp.eq.s32.totalorder %v441_v61, %v11683_v56  ;;  %vm2897_vm3 = vcmp.eq.s32.totalorder %v445_v18, %v11683_v56 }
 0x509   : > { %v6792_v0 = vpack.c.bf16 %v6545_v43, %v6541_v31  ;;  %v2629_v7 = vadd.f32 %v2373_v54, %v1819_v40  ;;  %v3163_v16 = vsel %vm2893_vm2, %v11687_v23, 0.0  ;;  %v3167_v36 = vsel %vm2897_vm3, %v11687_v23, 0.0  ;;  %v11973_v54 = vld [vmem:[#allocation2 + $0x798] sm:$0xff] }
 0x50a   : > { %v3419_v41 = vadd.f32 %v3163_v16, %v2625_v5  ;;  %vm3693_vm4 = vcmp.eq.s32.totalorder %v441_v61, %v11689_v42  ;;  %vm3697_vm5 = vcmp.eq.s32.totalorder %v445_v18, %v11689_v42  ;;  %vm4487_vm6 = vcmp.eq.s32.totalorder %v441_v61, %v11699_v34 }
 0x50b   : > { %7050 = vmatpush.bf16.msrb.mxu0 %v6792_v0  ;;  %v3423_v55 = vadd.f32 %v3167_v36, %v2629_v7  ;;  %v3963_v45 = vsel %vm3693_vm4, %v11691_v11, 0.0  ;;  %v3967_v44 = vsel %vm3697_vm5, %v11691_v11, 0.0  ;;  %vm4491_vm7 = vcmp.eq.s32.totalorder %v445_v18, %v11699_v34  ;;  %v573_v7 = vld [vmem:[#allocation2 + $0x7b8] sm:$0xff] }
 0x50c   : > { %v4219_v10 = vadd.f32 %v3963_v45, %v3419_v41  ;;  %v4757_v52 = vsel %vm4487_vm6, %v11701_v19, 0.0  ;;  %v4761_v14 = vsel %vm4491_vm7, %v11701_v19, 0.0  ;;  %vm5285_vm8 = vcmp.eq.s32.totalorder %v441_v61, %v11715_v1 }
 0x50d   : > { %v4223_v47 = vadd.f32 %v3967_v44, %v3423_v55  ;;  %vm5289_vm9 = vcmp.eq.s32.totalorder %v445_v18, %v11715_v1  ;;  %v5555_v8 = vsel %vm5285_vm8, %v11728_v35, 0.0  ;;  %vm6079_vm10 = vcmp.eq.s32.totalorder %v441_v61, %v11736_v32 }
 0x50e   : > { %v5013_v30 = vadd.f32 %v4757_v52, %v4219_v10  ;;  %v5559_v51 = vsel %vm5289_vm9, %v11728_v35, 0.0  ;;  %vm6083_vm11 = vcmp.eq.s32.totalorder %v445_v18, %v11736_v32  ;;  %v6349_v60 = vsel %vm6079_vm10, %v11740_v27, 0.0 }
 0x50f   : > { %v5017_v2 = vadd.f32 %v4761_v14, %v4223_v47  ;;  %v6353_v59 = vsel %vm6083_vm11, %v11740_v27, 0.0  ;;  %vm803_vm12 = vcmp.eq.s32.totalorder %v505_v49, %v11649_v24  ;;  %vm807_vm13 = vcmp.eq.s32.totalorder %v509_v50, %v11649_v24 }
 0x510   : > { %v5811_v6 = vadd.f32 %v5555_v8, %v5013_v30  ;;  %v1073_v25 = vsel %vm803_vm12, %v11651_v15, 0.0  ;;  %v1077_v17 = vsel %vm807_vm13, %v11651_v15, 0.0  ;;  %vm1353_vm14 = vcmp.eq.s32.totalorder %v505_v49, %v11653_v57 }
 0x511   : > { %v5815_v61 = vadd.f32 %v5559_v51, %v5017_v2  ;;  %vm1357_vm15 = vcmp.eq.s32.totalorder %v509_v50, %v11653_v57  ;;  %v1623_v13 = vsel %vm1353_vm14, %v11655_v48, 0.0  ;;  %vm2163_vm0 = vcmp.eq.s32.totalorder %v505_v49, %v11657_v38 }
 0x512   : > { %v6605_v18 = vadd.f32 %v6349_v60, %v5811_v6  ;;  %v1627_v62 = vsel %vm1357_vm15, %v11655_v48, 0.0  ;;  %v1879_v46 = vadd.f32 %v1623_v13, %v1073_v25  ;;  %vm2167_vm1 = vcmp.eq.s32.totalorder %v509_v50, %v11657_v38 }
 0x513   : > { %v6609_v53 = vadd.f32 %v6353_v59, %v5815_v61  ;;  %v1883_v22 = vadd.f32 %v1627_v62, %v1077_v17  ;;  %v2433_v20 = vsel %vm2163_vm0, %v11659_v12, 0.0  ;;  %v2437_v58 = vsel %vm2167_vm1, %v11659_v12, 0.0 }
 0x514   : > { %v2689_v3 = vadd.f32 %v2433_v20, %v1879_v46  ;;  %vm2957_vm2 = vcmp.eq.s32.totalorder %v505_v49, %v11683_v56  ;;  %vm2961_vm3 = vcmp.eq.s32.totalorder %v509_v50, %v11683_v56  ;;  %vm3757_vm4 = vcmp.eq.s32.totalorder %v505_v49, %v11689_v42 }
 0x515   : > { %v6824_v21 = vpack.c.bf16 %v6609_v53, %v6605_v18  ;;  %v2693_v63 = vadd.f32 %v2437_v58, %v1883_v22  ;;  %v3227_v37 = vsel %vm2957_vm2, %v11687_v23, 0.0  ;;  %v3231_v31 = vsel %vm2961_vm3, %v11687_v23, 0.0 }
 0x516   : > { %v3483_v28 = vadd.f32 %v3227_v37, %v2689_v3  ;;  %vm3761_vm5 = vcmp.eq.s32.totalorder %v509_v50, %v11689_v42  ;;  %v4027_v9 = vsel %vm3757_vm4, %v11691_v11, 0.0  ;;  %vm4551_vm6 = vcmp.eq.s32.totalorder %v505_v49, %v11699_v34  ;;  %v373_v37 = vld [vmem:[#allocation2 + $0x178] sm:$0xff] }
 0x517   : > { %7063 = vmatpush.bf16.msrb.mxu1 %v6824_v21  ;;  %v3487_v43 = vadd.f32 %v3231_v31, %v2693_v63  ;;  %v4031_v40 = vsel %vm3761_vm5, %v11691_v11, 0.0  ;;  %vm4555_vm7 = vcmp.eq.s32.totalorder %v509_v50, %v11699_v34  ;;  %v4821_v26 = vsel %vm4551_vm6, %v11701_v19, 0.0  ;;  %v369_v63 = vld [vmem:[#allocation2 + $0x158] sm:$0xff] }
 0x518   : > { %v4283_v5 = vadd.f32 %v4027_v9, %v3483_v28  ;;  %v4825_v0 = vsel %vm4555_vm7, %v11701_v19, 0.0  ;;  %vm5349_vm8 = vcmp.eq.s32.totalorder %v505_v49, %v11715_v1  ;;  %vm5353_vm9 = vcmp.eq.s32.totalorder %v509_v50, %v11715_v1 }
 0x519   : > { %v4287_v16 = vadd.f32 %v4031_v40, %v3487_v43  ;;  %v5619_v36 = vsel %vm5349_vm8, %v11728_v35, 0.0  ;;  %v5623_v41 = vsel %vm5353_vm9, %v11728_v35, 0.0  ;;  %vm6143_vm10 = vcmp.eq.s32.totalorder %v505_v49, %v11736_v32 }
 0x51a   : > { %v5077_v55 = vadd.f32 %v4821_v26, %v4283_v5  ;;  %vm6147_vm11 = vcmp.eq.s32.totalorder %v509_v50, %v11736_v32  ;;  %v6413_v45 = vsel %vm6143_vm10, %v11740_v27, 0.0  ;;  %vm867_vm12 = vcmp.eq.s32.totalorder %v11973_v54, %v11649_v24 }
 0x51b   : > { %v5081_v44 = vadd.f32 %v4825_v0, %v4287_v16  ;;  %v6417_v10 = vsel %vm6147_vm11, %v11740_v27, 0.0  ;;  %vm871_vm13 = vcmp.eq.s32.totalorder %v573_v7, %v11649_v24  ;;  %v1137_v52 = vsel %vm867_vm12, %v11651_v15, 0.0 }
 0x51c   : > { %v5875_v14 = vadd.f32 %v5619_v36, %v5077_v55  ;;  %v1141_v47 = vsel %vm871_vm13, %v11651_v15, 0.0  ;;  %vm1417_vm14 = vcmp.eq.s32.totalorder %v11973_v54, %v11653_v57  ;;  %vm1421_vm15 = vcmp.eq.s32.totalorder %v573_v7, %v11653_v57 }
 0x51d   : > { %v5879_v49 = vadd.f32 %v5623_v41, %v5081_v44  ;;  %v1687_v50 = vsel %vm1417_vm14, %v11655_v48, 0.0  ;;  %v1691_v8 = vsel %vm1421_vm15, %v11655_v48, 0.0  ;;  %vm2227_vm0 = vcmp.eq.s32.totalorder %v11973_v54, %v11657_v38 }
 0x51e   : > { %v6669_v30 = vadd.f32 %v6413_v45, %v5875_v14  ;;  %v1943_v51 = vadd.f32 %v1687_v50, %v1137_v52  ;;  %v1947_v60 = vadd.f32 %v1691_v8, %v1141_v47  ;;  %vm2231_vm1 = vcmp.eq.s32.totalorder %v573_v7, %v11657_v38 }
 0x51f   : > { %v6673_v2 = vadd.f32 %v6417_v10, %v5879_v49  ;;  %v2497_v59 = vsel %vm2227_vm0, %v11659_v12, 0.0  ;;  %v2501_v6 = vsel %vm2231_vm1, %v11659_v12, 0.0  ;;  %vm3021_vm2 = vcmp.eq.s32.totalorder %v11973_v54, %v11683_v56 }
 0x520   : > { %v2753_v25 = vadd.f32 %v2497_v59, %v1943_v51  ;;  %v2757_v17 = vadd.f32 %v2501_v6, %v1947_v60  ;;  %vm3025_vm3 = vcmp.eq.s32.totalorder %v573_v7, %v11683_v56  ;;  %v3291_v61 = vsel %vm3021_vm2, %v11687_v23, 0.0  ;;  %v12045_v59 = vld [vmem:[#allocation2 + $0x358] sm:$0xff] }
 0x521   : > { %v6856_v13 = vpack.c.bf16 %v6673_v2, %v6669_v30  ;;  %v3295_v18 = vsel %vm3025_vm3, %v11687_v23, 0.0  ;;  %vm3821_vm4 = vcmp.eq.s32.totalorder %v11973_v54, %v11689_v42  ;;  %vm3825_vm5 = vcmp.eq.s32.totalorder %v573_v7, %v11689_v42 }
 0x522   : > { %v3547_v62 = vadd.f32 %v3291_v61, %v2753_v25  ;;  %v3551_v46 = vadd.f32 %v3295_v18, %v2757_v17  ;;  %v4091_v53 = vsel %vm3821_vm4, %v11691_v11, 0.0  ;;  %v4095_v22 = vsel %vm3825_vm5, %v11691_v11, 0.0  ;;  %v437_v18 = vld [vmem:[#allocation2 + $0x378] sm:$0xff] }
 0x523   : > { %7076 = vmatpush.bf16.msrb.mxu2 %v6856_v13  ;;  %vm4615_vm6 = vcmp.eq.s32.totalorder %v11973_v54, %v11699_v34  ;;  %vm4619_vm7 = vcmp.eq.s32.totalorder %v573_v7, %v11699_v34  ;;  %vm5413_vm8 = vcmp.eq.s32.totalorder %v11973_v54, %v11715_v1  ;;  %vm5417_vm9 = vcmp.eq.s32.totalorder %v573_v7, %v11715_v1 }
 0x524   : > { %v4347_v20 = vadd.f32 %v4091_v53, %v3547_v62  ;;  %v4351_v58 = vadd.f32 %v4095_v22, %v3551_v46  ;;  %v4885_v3 = vsel %vm4615_vm6, %v11701_v19, 0.0  ;;  %v4889_v21 = vsel %vm4619_vm7, %v11701_v19, 0.0 }
 0x525   : > { %v5683_v31 = vsel %vm5413_vm8, %v11728_v35, 0.0  ;;  %v5687_v28 = vsel %vm5417_vm9, %v11728_v35, 0.0  ;;  %vm6207_vm10 = vcmp.eq.s32.totalorder %v11973_v54, %v11736_v32  ;;  %vm6211_vm11 = vcmp.eq.s32.totalorder %v573_v7, %v11736_v32 }
 0x526   : > { %v5141_v9 = vadd.f32 %v4885_v3, %v4347_v20  ;;  %v5145_v43 = vadd.f32 %v4889_v21, %v4351_v58  ;;  %v6477_v40 = vsel %vm6207_vm10, %v11740_v27, 0.0  ;;  %v6481_v26 = vsel %vm6211_vm11, %v11740_v27, 0.0 }
 0x527   : > { %vm667_vm12 = vcmp.eq.s32.totalorder %v369_v63, %v11649_v24  ;;  %vm671_vm13 = vcmp.eq.s32.totalorder %v373_v37, %v11649_v24  ;;  %vm1217_vm14 = vcmp.eq.s32.totalorder %v369_v63, %v11653_v57  ;;  %vm1221_vm15 = vcmp.eq.s32.totalorder %v373_v37, %v11653_v57 }
 0x528   : > { %v5939_v5 = vadd.f32 %v5683_v31, %v5141_v9  ;;  %v5943_v0 = vadd.f32 %v5687_v28, %v5145_v43  ;;  %v937_v54 = vsel %vm667_vm12, %v11651_v15, 0.0  ;;  %v941_v7 = vsel %vm671_vm13, %v11651_v15, 0.0 }
 0x529   : > { %v1487_v16 = vsel %vm1217_vm14, %v11655_v48, 0.0  ;;  %v1491_v36 = vsel %vm1221_vm15, %v11655_v48, 0.0  ;;  %vm2027_vm0 = vcmp.eq.s32.totalorder %v369_v63, %v11657_v38  ;;  %vm2031_vm1 = vcmp.eq.s32.totalorder %v373_v37, %v11657_v38 }
 0x52a   : > { %v6733_v41 = vadd.f32 %v6477_v40, %v5939_v5  ;;  %v6737_v55 = vadd.f32 %v6481_v26, %v5943_v0  ;;  %v1743_v45 = vadd.f32 %v1487_v16, %v937_v54  ;;  %v1747_v44 = vadd.f32 %v1491_v36, %v941_v7 }
 0x52b   : > { %v2297_v10 = vsel %vm2027_vm0, %v11659_v12, 0.0  ;;  %v2301_v52 = vsel %vm2031_vm1, %v11659_v12, 0.0  ;;  %vm2821_vm2 = vcmp.eq.s32.totalorder %v369_v63, %v11683_v56  ;;  %vm2825_vm3 = vcmp.eq.s32.totalorder %v373_v37, %v11683_v56 }
 0x52c   : > { %v6888_v14 = vpack.c.bf16 %v6737_v55, %v6733_v41  ;;  %v2553_v47 = vadd.f32 %v2297_v10, %v1743_v45  ;;  %v2557_v49 = vadd.f32 %v2301_v52, %v1747_v44  ;;  %v3091_v50 = vsel %vm2821_vm2, %v11687_v23, 0.0 }
 0x52d   : > { %v3095_v8 = vsel %vm2825_vm3, %v11687_v23, 0.0  ;;  %vm3621_vm4 = vcmp.eq.s32.totalorder %v369_v63, %v11689_v42  ;;  %vm3625_vm5 = vcmp.eq.s32.totalorder %v373_v37, %v11689_v42  ;;  %vm4415_vm6 = vcmp.eq.s32.totalorder %v369_v63, %v11699_v34 }
 0x52e   : > { %7089 = vmatpush.bf16.msrb.mxu3 %v6888_v14  ;;  %v3347_v30 = vadd.f32 %v3091_v50, %v2553_v47  ;;  %v3351_v51 = vadd.f32 %v3095_v8, %v2557_v49  ;;  %v3891_v60 = vsel %vm3621_vm4, %v11691_v11, 0.0  ;;  %v3895_v2 = vsel %vm3625_vm5, %v11691_v11, 0.0  ;;  %v497_v47 = vld [vmem:[#allocation2 + $0x558] sm:$0xff] }
 0x52f   : > { %vm4419_vm7 = vcmp.eq.s32.totalorder %v373_v37, %v11699_v34  ;;  %v4685_v6 = vsel %vm4415_vm6, %v11701_v19, 0.0  ;;  %vm5213_vm8 = vcmp.eq.s32.totalorder %v369_v63, %v11715_v1  ;;  %vm5217_vm9 = vcmp.eq.s32.totalorder %v373_v37, %v11715_v1  ;;  %v501_v49 = vld [vmem:[#allocation2 + $0x578] sm:$0xff] }
 0x530   : > { %v4147_v25 = vadd.f32 %v3891_v60, %v3347_v30  ;;  %v4151_v17 = vadd.f32 %v3895_v2, %v3351_v51  ;;  %v4689_v61 = vsel %vm4419_vm7, %v11701_v19, 0.0  ;;  %v5483_v13 = vsel %vm5213_vm8, %v11728_v35, 0.0 }
 0x531   : > { %v5487_v62 = vsel %vm5217_vm9, %v11728_v35, 0.0  ;;  %vm6007_vm10 = vcmp.eq.s32.totalorder %v369_v63, %v11736_v32  ;;  %vm6011_vm11 = vcmp.eq.s32.totalorder %v373_v37, %v11736_v32  ;;  %vm731_vm12 = vcmp.eq.s32.totalorder %v12045_v59, %v11649_v24 }
 0x532   : > { %v4941_v46 = vadd.f32 %v4685_v6, %v4147_v25  ;;  %v4945_v53 = vadd.f32 %v4689_v61, %v4151_v17  ;;  %v6277_v22 = vsel %vm6007_vm10, %v11740_v27, 0.0  ;;  %v6281_v20 = vsel %vm6011_vm11, %v11740_v27, 0.0 }
 0x533   : > { %vm735_vm13 = vcmp.eq.s32.totalorder %v437_v18, %v11649_v24  ;;  %v1001_v58 = vsel %vm731_vm12, %v11651_v15, 0.0  ;;  %vm1281_vm14 = vcmp.eq.s32.totalorder %v12045_v59, %v11653_v57  ;;  %vm1285_vm15 = vcmp.eq.s32.totalorder %v437_v18, %v11653_v57 }
 0x534   : > { %v5739_v3 = vadd.f32 %v5483_v13, %v4941_v46  ;;  %v5743_v21 = vadd.f32 %v5487_v62, %v4945_v53  ;;  %v1005_v63 = vsel %vm735_vm13, %v11651_v15, 0.0  ;;  %v1551_v37 = vsel %vm1281_vm14, %v11655_v48, 0.0 }
 0x535   : > { %v1555_v31 = vsel %vm1285_vm15, %v11655_v48, 0.0  ;;  %v1807_v28 = vadd.f32 %v1551_v37, %v1001_v58  ;;  %vm2091_vm0 = vcmp.eq.s32.totalorder %v12045_v59, %v11657_v38  ;;  %vm2095_vm1 = vcmp.eq.s32.totalorder %v437_v18, %v11657_v38 }
 0x536   : > { %v6533_v9 = vadd.f32 %v6277_v22, %v5739_v3  ;;  %v6537_v43 = vadd.f32 %v6281_v20, %v5743_v21  ;;  %v1811_v40 = vadd.f32 %v1555_v31, %v1005_v63  ;;  %v2361_v26 = vsel %vm2091_vm0, %v11659_v12, 0.0 }
 0x537   : > { %v2365_v5 = vsel %vm2095_vm1, %v11659_v12, 0.0  ;;  %v2617_v0 = vadd.f32 %v2361_v26, %v1807_v28  ;;  %vm2885_vm2 = vcmp.eq.s32.totalorder %v12045_v59, %v11683_v56  ;;  %vm2889_vm3 = vcmp.eq.s32.totalorder %v437_v18, %v11683_v56 }
 0x538   : > { %v6788_v54 = vpack.c.bf16 %v6537_v43, %v6533_v9  ;;  %v2621_v7 = vadd.f32 %v2365_v5, %v1811_v40  ;;  %v3155_v16 = vsel %vm2885_vm2, %v11687_v23, 0.0  ;;  %v3159_v36 = vsel %vm2889_vm3, %v11687_v23, 0.0  ;;  %v12121_v5 = vld [vmem:[#allocation2 + $0x758] sm:$0xff] }
 0x539   : > { %v3411_v41 = vadd.f32 %v3155_v16, %v2617_v0  ;;  %vm3685_vm4 = vcmp.eq.s32.totalorder %v12045_v59, %v11689_v42  ;;  %vm3689_vm5 = vcmp.eq.s32.totalorder %v437_v18, %v11689_v42  ;;  %vm4479_vm6 = vcmp.eq.s32.totalorder %v12045_v59, %v11699_v34 }
 0x53a   : > { %7051 = vmatpush.bf16.msrb.mxu0 %v6788_v54  ;;  %v3415_v55 = vadd.f32 %v3159_v36, %v2621_v7  ;;  %v3955_v45 = vsel %vm3685_vm4, %v11691_v11, 0.0  ;;  %v3959_v44 = vsel %vm3689_vm5, %v11691_v11, 0.0  ;;  %vm4483_vm7 = vcmp.eq.s32.totalorder %v437_v18, %v11699_v34  ;;  %v565_v7 = vld [vmem:[#allocation2 + $0x778] sm:$0xff] }
 0x53b   : > { %v4211_v10 = vadd.f32 %v3955_v45, %v3411_v41  ;;  %v4749_v52 = vsel %vm4479_vm6, %v11701_v19, 0.0  ;;  %v4753_v14 = vsel %vm4483_vm7, %v11701_v19, 0.0  ;;  %vm5277_vm8 = vcmp.eq.s32.totalorder %v12045_v59, %v11715_v1 }
 0x53c   : > { %v4215_v50 = vadd.f32 %v3959_v44, %v3415_v55  ;;  %vm5281_vm9 = vcmp.eq.s32.totalorder %v437_v18, %v11715_v1  ;;  %v5547_v8 = vsel %vm5277_vm8, %v11728_v35, 0.0  ;;  %vm6071_vm10 = vcmp.eq.s32.totalorder %v12045_v59, %v11736_v32 }
 0x53d   : > { %v5005_v30 = vadd.f32 %v4749_v52, %v4211_v10  ;;  %v5551_v51 = vsel %vm5281_vm9, %v11728_v35, 0.0  ;;  %vm6075_vm11 = vcmp.eq.s32.totalorder %v437_v18, %v11736_v32  ;;  %v6341_v60 = vsel %vm6071_vm10, %v11740_v27, 0.0 }
 0x53e   : > { %v5009_v2 = vadd.f32 %v4753_v14, %v4215_v50  ;;  %v6345_v6 = vsel %vm6075_vm11, %v11740_v27, 0.0  ;;  %vm795_vm12 = vcmp.eq.s32.totalorder %v497_v47, %v11649_v24  ;;  %vm799_vm13 = vcmp.eq.s32.totalorder %v501_v49, %v11649_v24 }
 0x53f   : > { %v5803_v25 = vadd.f32 %v5547_v8, %v5005_v30  ;;  %v1065_v17 = vsel %vm795_vm12, %v11651_v15, 0.0  ;;  %v1069_v61 = vsel %vm799_vm13, %v11651_v15, 0.0  ;;  %vm1345_vm14 = vcmp.eq.s32.totalorder %v497_v47, %v11653_v57 }
 0x540   : > { %v5807_v59 = vadd.f32 %v5551_v51, %v5009_v2  ;;  %vm1349_vm15 = vcmp.eq.s32.totalorder %v501_v49, %v11653_v57  ;;  %v1615_v13 = vsel %vm1345_vm14, %v11655_v48, 0.0  ;;  %vm2155_vm0 = vcmp.eq.s32.totalorder %v497_v47, %v11657_v38 }
 0x541   : > { %v6597_v18 = vadd.f32 %v6341_v60, %v5803_v25  ;;  %v1619_v62 = vsel %vm1349_vm15, %v11655_v48, 0.0  ;;  %v1871_v46 = vadd.f32 %v1615_v13, %v1065_v17  ;;  %vm2159_vm1 = vcmp.eq.s32.totalorder %v501_v49, %v11657_v38 }
 0x542   : > { %v6601_v53 = vadd.f32 %v6345_v6, %v5807_v59  ;;  %v1875_v22 = vadd.f32 %v1619_v62, %v1069_v61  ;;  %v2425_v20 = vsel %vm2155_vm0, %v11659_v12, 0.0  ;;  %v2429_v58 = vsel %vm2159_vm1, %v11659_v12, 0.0 }
 0x543   : > { %v2681_v3 = vadd.f32 %v2425_v20, %v1871_v46  ;;  %vm2949_vm2 = vcmp.eq.s32.totalorder %v497_v47, %v11683_v56  ;;  %vm2953_vm3 = vcmp.eq.s32.totalorder %v501_v49, %v11683_v56  ;;  %vm3749_vm4 = vcmp.eq.s32.totalorder %v497_v47, %v11689_v42 }
 0x544   : > { %v6820_v21 = vpack.c.bf16 %v6601_v53, %v6597_v18  ;;  %v2685_v63 = vadd.f32 %v2429_v58, %v1875_v22  ;;  %v3219_v37 = vsel %vm2949_vm2, %v11687_v23, 0.0  ;;  %v3223_v31 = vsel %vm2953_vm3, %v11687_v23, 0.0 }
 0x545   : > { %v3475_v28 = vadd.f32 %v3219_v37, %v2681_v3  ;;  %vm3753_vm5 = vcmp.eq.s32.totalorder %v501_v49, %v11689_v42  ;;  %v4019_v9 = vsel %vm3749_vm4, %v11691_v11, 0.0  ;;  %vm4543_vm6 = vcmp.eq.s32.totalorder %v497_v47, %v11699_v34  ;;  %v365_v37 = vld [vmem:[#allocation2 + $0x138] sm:$0xff] }
 0x546   : > { %7064 = vmatpush.bf16.msrb.mxu1 %v6820_v21  ;;  %v3479_v43 = vadd.f32 %v3223_v31, %v2685_v63  ;;  %v4023_v40 = vsel %vm3753_vm5, %v11691_v11, 0.0  ;;  %vm4547_vm7 = vcmp.eq.s32.totalorder %v501_v49, %v11699_v34  ;;  %v4813_v26 = vsel %vm4543_vm6, %v11701_v19, 0.0  ;;  %v361_v63 = vld [vmem:[#allocation2 + $0x118] sm:$0xff] }
 0x547   : > { %v4275_v0 = vadd.f32 %v4019_v9, %v3475_v28  ;;  %v4817_v54 = vsel %vm4547_vm7, %v11701_v19, 0.0  ;;  %vm5341_vm8 = vcmp.eq.s32.totalorder %v497_v47, %v11715_v1  ;;  %vm5345_vm9 = vcmp.eq.s32.totalorder %v501_v49, %v11715_v1 }
 0x548   : > { %v4279_v16 = vadd.f32 %v4023_v40, %v3479_v43  ;;  %v5611_v36 = vsel %vm5341_vm8, %v11728_v35, 0.0  ;;  %v5615_v41 = vsel %vm5345_vm9, %v11728_v35, 0.0  ;;  %vm6135_vm10 = vcmp.eq.s32.totalorder %v497_v47, %v11736_v32 }
 0x549   : > { %v5069_v55 = vadd.f32 %v4813_v26, %v4275_v0  ;;  %vm6139_vm11 = vcmp.eq.s32.totalorder %v501_v49, %v11736_v32  ;;  %v6405_v45 = vsel %vm6135_vm10, %v11740_v27, 0.0  ;;  %vm859_vm12 = vcmp.eq.s32.totalorder %v12121_v5, %v11649_v24 }
 0x54a   : > { %v5073_v44 = vadd.f32 %v4817_v54, %v4279_v16  ;;  %v6409_v10 = vsel %vm6139_vm11, %v11740_v27, 0.0  ;;  %vm863_vm13 = vcmp.eq.s32.totalorder %v565_v7, %v11649_v24  ;;  %v1129_v52 = vsel %vm859_vm12, %v11651_v15, 0.0 }
 0x54b   : > { %v5867_v14 = vadd.f32 %v5611_v36, %v5069_v55  ;;  %v1133_v50 = vsel %vm863_vm13, %v11651_v15, 0.0  ;;  %vm1409_vm14 = vcmp.eq.s32.totalorder %v12121_v5, %v11653_v57  ;;  %vm1413_vm15 = vcmp.eq.s32.totalorder %v565_v7, %v11653_v57 }
 0x54c   : > { %v5871_v47 = vadd.f32 %v5615_v41, %v5073_v44  ;;  %v1679_v49 = vsel %vm1409_vm14, %v11655_v48, 0.0  ;;  %v1683_v8 = vsel %vm1413_vm15, %v11655_v48, 0.0  ;;  %vm2219_vm0 = vcmp.eq.s32.totalorder %v12121_v5, %v11657_v38 }
 0x54d   : > { %v6661_v30 = vadd.f32 %v6405_v45, %v5867_v14  ;;  %v1935_v51 = vadd.f32 %v1679_v49, %v1129_v52  ;;  %v1939_v60 = vadd.f32 %v1683_v8, %v1133_v50  ;;  %vm2223_vm1 = vcmp.eq.s32.totalorder %v565_v7, %v11657_v38 }
 0x54e   : > { %v6665_v2 = vadd.f32 %v6409_v10, %v5871_v47  ;;  %v2489_v6 = vsel %vm2219_vm0, %v11659_v12, 0.0  ;;  %v2493_v25 = vsel %vm2223_vm1, %v11659_v12, 0.0  ;;  %vm3013_vm2 = vcmp.eq.s32.totalorder %v12121_v5, %v11683_v56 }
 0x54f   : > { %v2745_v17 = vadd.f32 %v2489_v6, %v1935_v51  ;;  %v2749_v61 = vadd.f32 %v2493_v25, %v1939_v60  ;;  %vm3017_vm3 = vcmp.eq.s32.totalorder %v565_v7, %v11683_v56  ;;  %v3283_v59 = vsel %vm3013_vm2, %v11687_v23, 0.0  ;;  %v12193_v6 = vld [vmem:[#allocation2 + $0x318] sm:$0xff] }
 0x550   : > { %v6852_v13 = vpack.c.bf16 %v6665_v2, %v6661_v30  ;;  %v3287_v18 = vsel %vm3017_vm3, %v11687_v23, 0.0  ;;  %vm3813_vm4 = vcmp.eq.s32.totalorder %v12121_v5, %v11689_v42  ;;  %vm3817_vm5 = vcmp.eq.s32.totalorder %v565_v7, %v11689_v42 }
 0x551   : > { %v3539_v62 = vadd.f32 %v3283_v59, %v2745_v17  ;;  %v3543_v46 = vadd.f32 %v3287_v18, %v2749_v61  ;;  %v4083_v53 = vsel %vm3813_vm4, %v11691_v11, 0.0  ;;  %v4087_v22 = vsel %vm3817_vm5, %v11691_v11, 0.0  ;;  %v429_v18 = vld [vmem:[#allocation2 + $0x338] sm:$0xff] }
 0x552   : > { %7077 = vmatpush.bf16.msrb.mxu2 %v6852_v13  ;;  %vm4607_vm6 = vcmp.eq.s32.totalorder %v12121_v5, %v11699_v34  ;;  %vm4611_vm7 = vcmp.eq.s32.totalorder %v565_v7, %v11699_v34  ;;  %vm5405_vm8 = vcmp.eq.s32.totalorder %v12121_v5, %v11715_v1  ;;  %vm5409_vm9 = vcmp.eq.s32.totalorder %v565_v7, %v11715_v1 }
 0x553   : > { %v4339_v20 = vadd.f32 %v4083_v53, %v3539_v62  ;;  %v4343_v58 = vadd.f32 %v4087_v22, %v3543_v46  ;;  %v4877_v3 = vsel %vm4607_vm6, %v11701_v19, 0.0  ;;  %v4881_v21 = vsel %vm4611_vm7, %v11701_v19, 0.0 }
 0x554   : > { %v5675_v31 = vsel %vm5405_vm8, %v11728_v35, 0.0  ;;  %v5679_v28 = vsel %vm5409_vm9, %v11728_v35, 0.0  ;;  %vm6199_vm10 = vcmp.eq.s32.totalorder %v12121_v5, %v11736_v32  ;;  %vm6203_vm11 = vcmp.eq.s32.totalorder %v565_v7, %v11736_v32 }
 0x555   : > { %v5133_v9 = vadd.f32 %v4877_v3, %v4339_v20  ;;  %v5137_v43 = vadd.f32 %v4881_v21, %v4343_v58  ;;  %v6469_v40 = vsel %vm6199_vm10, %v11740_v27, 0.0  ;;  %v6473_v26 = vsel %vm6203_vm11, %v11740_v27, 0.0 }
 0x556   : > { %vm659_vm12 = vcmp.eq.s32.totalorder %v361_v63, %v11649_v24  ;;  %vm663_vm13 = vcmp.eq.s32.totalorder %v365_v37, %v11649_v24  ;;  %vm1209_vm14 = vcmp.eq.s32.totalorder %v361_v63, %v11653_v57  ;;  %vm1213_vm15 = vcmp.eq.s32.totalorder %v365_v37, %v11653_v57 }
 0x557   : > { %v5931_v0 = vadd.f32 %v5675_v31, %v5133_v9  ;;  %v5935_v54 = vadd.f32 %v5679_v28, %v5137_v43  ;;  %v929_v5 = vsel %vm659_vm12, %v11651_v15, 0.0  ;;  %v933_v7 = vsel %vm663_vm13, %v11651_v15, 0.0 }
 0x558   : > { %v1479_v16 = vsel %vm1209_vm14, %v11655_v48, 0.0  ;;  %v1483_v36 = vsel %vm1213_vm15, %v11655_v48, 0.0  ;;  %vm2019_vm0 = vcmp.eq.s32.totalorder %v361_v63, %v11657_v38  ;;  %vm2023_vm1 = vcmp.eq.s32.totalorder %v365_v37, %v11657_v38 }
 0x559   : > { %v6725_v41 = vadd.f32 %v6469_v40, %v5931_v0  ;;  %v6729_v55 = vadd.f32 %v6473_v26, %v5935_v54  ;;  %v1735_v45 = vadd.f32 %v1479_v16, %v929_v5  ;;  %v1739_v44 = vadd.f32 %v1483_v36, %v933_v7 }
 0x55a   : > { %v2289_v10 = vsel %vm2019_vm0, %v11659_v12, 0.0  ;;  %v2293_v52 = vsel %vm2023_vm1, %v11659_v12, 0.0  ;;  %vm2813_vm2 = vcmp.eq.s32.totalorder %v361_v63, %v11683_v56  ;;  %vm2817_vm3 = vcmp.eq.s32.totalorder %v365_v37, %v11683_v56 }
 0x55b   : > { %v6884_v14 = vpack.c.bf16 %v6729_v55, %v6725_v41  ;;  %v2545_v50 = vadd.f32 %v2289_v10, %v1735_v45  ;;  %v2549_v47 = vadd.f32 %v2293_v52, %v1739_v44  ;;  %v3083_v49 = vsel %vm2813_vm2, %v11687_v23, 0.0 }
 0x55c   : > { %v3087_v8 = vsel %vm2817_vm3, %v11687_v23, 0.0  ;;  %vm3613_vm4 = vcmp.eq.s32.totalorder %v361_v63, %v11689_v42  ;;  %vm3617_vm5 = vcmp.eq.s32.totalorder %v365_v37, %v11689_v42  ;;  %vm4407_vm6 = vcmp.eq.s32.totalorder %v361_v63, %v11699_v34 }
 0x55d   : > { %7090 = vmatpush.bf16.msrb.mxu3 %v6884_v14  ;;  %v3339_v30 = vadd.f32 %v3083_v49, %v2545_v50  ;;  %v3343_v51 = vadd.f32 %v3087_v8, %v2549_v47  ;;  %v3883_v60 = vsel %vm3613_vm4, %v11691_v11, 0.0  ;;  %v3887_v2 = vsel %vm3617_vm5, %v11691_v11, 0.0  ;;  %v489_v50 = vld [vmem:[#allocation2 + $0x518] sm:$0xff] }
 0x55e   : > { %vm4411_vm7 = vcmp.eq.s32.totalorder %v365_v37, %v11699_v34  ;;  %v4677_v25 = vsel %vm4407_vm6, %v11701_v19, 0.0  ;;  %vm5205_vm8 = vcmp.eq.s32.totalorder %v361_v63, %v11715_v1  ;;  %vm5209_vm9 = vcmp.eq.s32.totalorder %v365_v37, %v11715_v1  ;;  %v493_v47 = vld [vmem:[#allocation2 + $0x538] sm:$0xff] }
 0x55f   : > { %v4139_v17 = vadd.f32 %v3883_v60, %v3339_v30  ;;  %v4143_v61 = vadd.f32 %v3887_v2, %v3343_v51  ;;  %v4681_v59 = vsel %vm4411_vm7, %v11701_v19, 0.0  ;;  %v5475_v13 = vsel %vm5205_vm8, %v11728_v35, 0.0 }
 0x560   : > { %v5479_v62 = vsel %vm5209_vm9, %v11728_v35, 0.0  ;;  %vm5999_vm10 = vcmp.eq.s32.totalorder %v361_v63, %v11736_v32  ;;  %vm6003_vm11 = vcmp.eq.s32.totalorder %v365_v37, %v11736_v32  ;;  %vm723_vm12 = vcmp.eq.s32.totalorder %v12193_v6, %v11649_v24 }
 0x561   : > { %v4933_v46 = vadd.f32 %v4677_v25, %v4139_v17  ;;  %v4937_v53 = vadd.f32 %v4681_v59, %v4143_v61  ;;  %v6269_v22 = vsel %vm5999_vm10, %v11740_v27, 0.0  ;;  %v6273_v20 = vsel %vm6003_vm11, %v11740_v27, 0.0 }
 0x562   : > { %vm727_vm13 = vcmp.eq.s32.totalorder %v429_v18, %v11649_v24  ;;  %v993_v58 = vsel %vm723_vm12, %v11651_v15, 0.0  ;;  %vm1273_vm14 = vcmp.eq.s32.totalorder %v12193_v6, %v11653_v57  ;;  %vm1277_vm15 = vcmp.eq.s32.totalorder %v429_v18, %v11653_v57 }
 0x563   : > { %v5731_v3 = vadd.f32 %v5475_v13, %v4933_v46  ;;  %v5735_v21 = vadd.f32 %v5479_v62, %v4937_v53  ;;  %v997_v63 = vsel %vm727_vm13, %v11651_v15, 0.0  ;;  %v1543_v37 = vsel %vm1273_vm14, %v11655_v48, 0.0 }
 0x564   : > { %v1547_v31 = vsel %vm1277_vm15, %v11655_v48, 0.0  ;;  %v1799_v28 = vadd.f32 %v1543_v37, %v993_v58  ;;  %vm2083_vm0 = vcmp.eq.s32.totalorder %v12193_v6, %v11657_v38  ;;  %vm2087_vm1 = vcmp.eq.s32.totalorder %v429_v18, %v11657_v38 }
 0x565   : > { %v6525_v9 = vadd.f32 %v6269_v22, %v5731_v3  ;;  %v6529_v43 = vadd.f32 %v6273_v20, %v5735_v21  ;;  %v1803_v40 = vadd.f32 %v1547_v31, %v997_v63  ;;  %v2353_v26 = vsel %vm2083_vm0, %v11659_v12, 0.0 }
 0x566   : > { %v2357_v0 = vsel %vm2087_vm1, %v11659_v12, 0.0  ;;  %v2609_v54 = vadd.f32 %v2353_v26, %v1799_v28  ;;  %vm2877_vm2 = vcmp.eq.s32.totalorder %v12193_v6, %v11683_v56  ;;  %vm2881_vm3 = vcmp.eq.s32.totalorder %v429_v18, %v11683_v56 }
 0x567   : > { %v6784_v5 = vpack.c.bf16 %v6529_v43, %v6525_v9  ;;  %v2613_v7 = vadd.f32 %v2357_v0, %v1803_v40  ;;  %v3147_v16 = vsel %vm2877_vm2, %v11687_v23, 0.0  ;;  %v3151_v36 = vsel %vm2881_vm3, %v11687_v23, 0.0  ;;  %v12269_v0 = vld [vmem:[#allocation2 + $0x718] sm:$0xff] }
 0x568   : > { %v3403_v41 = vadd.f32 %v3147_v16, %v2609_v54  ;;  %vm3677_vm4 = vcmp.eq.s32.totalorder %v12193_v6, %v11689_v42  ;;  %vm3681_vm5 = vcmp.eq.s32.totalorder %v429_v18, %v11689_v42  ;;  %vm4471_vm6 = vcmp.eq.s32.totalorder %v12193_v6, %v11699_v34 }
 0x569   : > { %7052 = vmatpush.bf16.msrb.mxu0 %v6784_v5  ;;  %v3407_v55 = vadd.f32 %v3151_v36, %v2613_v7  ;;  %v3947_v45 = vsel %vm3677_vm4, %v11691_v11, 0.0  ;;  %v3951_v44 = vsel %vm3681_vm5, %v11691_v11, 0.0  ;;  %vm4475_vm7 = vcmp.eq.s32.totalorder %v429_v18, %v11699_v34  ;;  %v557_v7 = vld [vmem:[#allocation2 + $0x738] sm:$0xff] }
 0x56a   : > { %v4203_v10 = vadd.f32 %v3947_v45, %v3403_v41  ;;  %v4741_v52 = vsel %vm4471_vm6, %v11701_v19, 0.0  ;;  %v4745_v14 = vsel %vm4475_vm7, %v11701_v19, 0.0  ;;  %vm5269_vm8 = vcmp.eq.s32.totalorder %v12193_v6, %v11715_v1 }
 0x56b   : > { %v4207_v49 = vadd.f32 %v3951_v44, %v3407_v55  ;;  %vm5273_vm9 = vcmp.eq.s32.totalorder %v429_v18, %v11715_v1  ;;  %v5539_v8 = vsel %vm5269_vm8, %v11728_v35, 0.0  ;;  %vm6063_vm10 = vcmp.eq.s32.totalorder %v12193_v6, %v11736_v32 }
 0x56c   : > { %v4997_v30 = vadd.f32 %v4741_v52, %v4203_v10  ;;  %v5543_v51 = vsel %vm5273_vm9, %v11728_v35, 0.0  ;;  %vm6067_vm11 = vcmp.eq.s32.totalorder %v429_v18, %v11736_v32  ;;  %v6333_v60 = vsel %vm6063_vm10, %v11740_v27, 0.0 }
 0x56d   : > { %v5001_v2 = vadd.f32 %v4745_v14, %v4207_v49  ;;  %v6337_v25 = vsel %vm6067_vm11, %v11740_v27, 0.0  ;;  %vm787_vm12 = vcmp.eq.s32.totalorder %v489_v50, %v11649_v24  ;;  %vm791_vm13 = vcmp.eq.s32.totalorder %v493_v47, %v11649_v24 }
 0x56e   : > { %v5795_v17 = vadd.f32 %v5539_v8, %v4997_v30  ;;  %v1057_v61 = vsel %vm787_vm12, %v11651_v15, 0.0  ;;  %v1061_v59 = vsel %vm791_vm13, %v11651_v15, 0.0  ;;  %vm1337_vm14 = vcmp.eq.s32.totalorder %v489_v50, %v11653_v57 }
 0x56f   : > { %v5799_v6 = vadd.f32 %v5543_v51, %v5001_v2  ;;  %vm1341_vm15 = vcmp.eq.s32.totalorder %v493_v47, %v11653_v57  ;;  %v1607_v13 = vsel %vm1337_vm14, %v11655_v48, 0.0  ;;  %vm2147_vm0 = vcmp.eq.s32.totalorder %v489_v50, %v11657_v38 }
 0x570   : > { %v6589_v18 = vadd.f32 %v6333_v60, %v5795_v17  ;;  %v1611_v62 = vsel %vm1341_vm15, %v11655_v48, 0.0  ;;  %v1863_v46 = vadd.f32 %v1607_v13, %v1057_v61  ;;  %vm2151_vm1 = vcmp.eq.s32.totalorder %v493_v47, %v11657_v38 }
 0x571   : > { %v6593_v53 = vadd.f32 %v6337_v25, %v5799_v6  ;;  %v1867_v22 = vadd.f32 %v1611_v62, %v1061_v59  ;;  %v2417_v20 = vsel %vm2147_vm0, %v11659_v12, 0.0  ;;  %v2421_v58 = vsel %vm2151_vm1, %v11659_v12, 0.0 }
 0x572   : > { %v2673_v3 = vadd.f32 %v2417_v20, %v1863_v46  ;;  %vm2941_vm2 = vcmp.eq.s32.totalorder %v489_v50, %v11683_v56  ;;  %vm2945_vm3 = vcmp.eq.s32.totalorder %v493_v47, %v11683_v56  ;;  %vm3741_vm4 = vcmp.eq.s32.totalorder %v489_v50, %v11689_v42 }
 0x573   : > { %v6816_v21 = vpack.c.bf16 %v6593_v53, %v6589_v18  ;;  %v2677_v63 = vadd.f32 %v2421_v58, %v1867_v22  ;;  %v3211_v37 = vsel %vm2941_vm2, %v11687_v23, 0.0  ;;  %v3215_v31 = vsel %vm2945_vm3, %v11687_v23, 0.0 }
 0x574   : > { %v3467_v28 = vadd.f32 %v3211_v37, %v2673_v3  ;;  %vm3745_vm5 = vcmp.eq.s32.totalorder %v493_v47, %v11689_v42  ;;  %v4011_v9 = vsel %vm3741_vm4, %v11691_v11, 0.0  ;;  %vm4535_vm6 = vcmp.eq.s32.totalorder %v489_v50, %v11699_v34  ;;  %v357_v37 = vld [vmem:[#allocation2 + $0xf8] sm:$0xff] }
 0x575   : > { %7065 = vmatpush.bf16.msrb.mxu1 %v6816_v21  ;;  %v3471_v43 = vadd.f32 %v3215_v31, %v2677_v63  ;;  %v4015_v40 = vsel %vm3745_vm5, %v11691_v11, 0.0  ;;  %vm4539_vm7 = vcmp.eq.s32.totalorder %v493_v47, %v11699_v34  ;;  %v4805_v26 = vsel %vm4535_vm6, %v11701_v19, 0.0  ;;  %v353_v63 = vld [vmem:[#allocation2 + $0xd8] sm:$0xff] }
 0x576   : > { %v4267_v54 = vadd.f32 %v4011_v9, %v3467_v28  ;;  %v4809_v5 = vsel %vm4539_vm7, %v11701_v19, 0.0  ;;  %vm5333_vm8 = vcmp.eq.s32.totalorder %v489_v50, %v11715_v1  ;;  %vm5337_vm9 = vcmp.eq.s32.totalorder %v493_v47, %v11715_v1 }
 0x577   : > { %v4271_v16 = vadd.f32 %v4015_v40, %v3471_v43  ;;  %v5603_v36 = vsel %vm5333_vm8, %v11728_v35, 0.0  ;;  %v5607_v41 = vsel %vm5337_vm9, %v11728_v35, 0.0  ;;  %vm6127_vm10 = vcmp.eq.s32.totalorder %v489_v50, %v11736_v32 }
 0x578   : > { %v5061_v55 = vadd.f32 %v4805_v26, %v4267_v54  ;;  %vm6131_vm11 = vcmp.eq.s32.totalorder %v493_v47, %v11736_v32  ;;  %v6397_v45 = vsel %vm6127_vm10, %v11740_v27, 0.0  ;;  %vm851_vm12 = vcmp.eq.s32.totalorder %v12269_v0, %v11649_v24 }
 0x579   : > { %v5065_v44 = vadd.f32 %v4809_v5, %v4271_v16  ;;  %v6401_v10 = vsel %vm6131_vm11, %v11740_v27, 0.0  ;;  %vm855_vm13 = vcmp.eq.s32.totalorder %v557_v7, %v11649_v24  ;;  %v1121_v52 = vsel %vm851_vm12, %v11651_v15, 0.0 }
 0x57a   : > { %v5859_v14 = vadd.f32 %v5603_v36, %v5061_v55  ;;  %v1125_v49 = vsel %vm855_vm13, %v11651_v15, 0.0  ;;  %vm1401_vm14 = vcmp.eq.s32.totalorder %v12269_v0, %v11653_v57  ;;  %vm1405_vm15 = vcmp.eq.s32.totalorder %v557_v7, %v11653_v57 }
 0x57b   : > { %v5863_v50 = vadd.f32 %v5607_v41, %v5065_v44  ;;  %v1671_v47 = vsel %vm1401_vm14, %v11655_v48, 0.0  ;;  %v1675_v8 = vsel %vm1405_vm15, %v11655_v48, 0.0  ;;  %vm2211_vm0 = vcmp.eq.s32.totalorder %v12269_v0, %v11657_v38 }
 0x57c   : > { %v6653_v30 = vadd.f32 %v6397_v45, %v5859_v14  ;;  %v1927_v51 = vadd.f32 %v1671_v47, %v1121_v52  ;;  %v1931_v60 = vadd.f32 %v1675_v8, %v1125_v49  ;;  %vm2215_vm1 = vcmp.eq.s32.totalorder %v557_v7, %v11657_v38 }
 0x57d   : > { %v6657_v2 = vadd.f32 %v6401_v10, %v5863_v50  ;;  %v2481_v25 = vsel %vm2211_vm0, %v11659_v12, 0.0  ;;  %v2485_v17 = vsel %vm2215_vm1, %v11659_v12, 0.0  ;;  %vm3005_vm2 = vcmp.eq.s32.totalorder %v12269_v0, %v11683_v56 }
 0x57e   : > { %v2737_v61 = vadd.f32 %v2481_v25, %v1927_v51  ;;  %v2741_v59 = vadd.f32 %v2485_v17, %v1931_v60  ;;  %vm3009_vm3 = vcmp.eq.s32.totalorder %v557_v7, %v11683_v56  ;;  %v3275_v6 = vsel %vm3005_vm2, %v11687_v23, 0.0  ;;  %v12341_v25 = vld [vmem:[#allocation2 + $0x2d8] sm:$0xff] }
 0x57f   : > { %v6848_v13 = vpack.c.bf16 %v6657_v2, %v6653_v30  ;;  %v3279_v18 = vsel %vm3009_vm3, %v11687_v23, 0.0  ;;  %vm3805_vm4 = vcmp.eq.s32.totalorder %v12269_v0, %v11689_v42  ;;  %vm3809_vm5 = vcmp.eq.s32.totalorder %v557_v7, %v11689_v42 }
 0x580   : > { %v3531_v62 = vadd.f32 %v3275_v6, %v2737_v61  ;;  %v3535_v46 = vadd.f32 %v3279_v18, %v2741_v59  ;;  %v4075_v53 = vsel %vm3805_vm4, %v11691_v11, 0.0  ;;  %v4079_v22 = vsel %vm3809_vm5, %v11691_v11, 0.0  ;;  %v421_v18 = vld [vmem:[#allocation2 + $0x2f8] sm:$0xff] }
 0x581   : > { %7078 = vmatpush.bf16.msrb.mxu2 %v6848_v13  ;;  %vm4599_vm6 = vcmp.eq.s32.totalorder %v12269_v0, %v11699_v34  ;;  %vm4603_vm7 = vcmp.eq.s32.totalorder %v557_v7, %v11699_v34  ;;  %vm5397_vm8 = vcmp.eq.s32.totalorder %v12269_v0, %v11715_v1  ;;  %vm5401_vm9 = vcmp.eq.s32.totalorder %v557_v7, %v11715_v1 }
 0x582   : > { %v4331_v20 = vadd.f32 %v4075_v53, %v3531_v62  ;;  %v4335_v58 = vadd.f32 %v4079_v22, %v3535_v46  ;;  %v4869_v3 = vsel %vm4599_vm6, %v11701_v19, 0.0  ;;  %v4873_v21 = vsel %vm4603_vm7, %v11701_v19, 0.0 }
 0x583   : > { %v5667_v31 = vsel %vm5397_vm8, %v11728_v35, 0.0  ;;  %v5671_v28 = vsel %vm5401_vm9, %v11728_v35, 0.0  ;;  %vm6191_vm10 = vcmp.eq.s32.totalorder %v12269_v0, %v11736_v32  ;;  %vm6195_vm11 = vcmp.eq.s32.totalorder %v557_v7, %v11736_v32 }
 0x584   : > { %v5125_v9 = vadd.f32 %v4869_v3, %v4331_v20  ;;  %v5129_v43 = vadd.f32 %v4873_v21, %v4335_v58  ;;  %v6461_v40 = vsel %vm6191_vm10, %v11740_v27, 0.0  ;;  %v6465_v26 = vsel %vm6195_vm11, %v11740_v27, 0.0 }
 0x585   : > { %vm651_vm12 = vcmp.eq.s32.totalorder %v353_v63, %v11649_v24  ;;  %vm655_vm13 = vcmp.eq.s32.totalorder %v357_v37, %v11649_v24  ;;  %vm1201_vm14 = vcmp.eq.s32.totalorder %v353_v63, %v11653_v57  ;;  %vm1205_vm15 = vcmp.eq.s32.totalorder %v357_v37, %v11653_v57 }
 0x586   : > { %v5923_v54 = vadd.f32 %v5667_v31, %v5125_v9  ;;  %v5927_v5 = vadd.f32 %v5671_v28, %v5129_v43  ;;  %v921_v0 = vsel %vm651_vm12, %v11651_v15, 0.0  ;;  %v925_v7 = vsel %vm655_vm13, %v11651_v15, 0.0 }
 0x587   : > { %v1471_v16 = vsel %vm1201_vm14, %v11655_v48, 0.0  ;;  %v1475_v36 = vsel %vm1205_vm15, %v11655_v48, 0.0  ;;  %vm2011_vm0 = vcmp.eq.s32.totalorder %v353_v63, %v11657_v38  ;;  %vm2015_vm1 = vcmp.eq.s32.totalorder %v357_v37, %v11657_v38 }
 0x588   : > { %v6717_v41 = vadd.f32 %v6461_v40, %v5923_v54  ;;  %v6721_v55 = vadd.f32 %v6465_v26, %v5927_v5  ;;  %v1727_v45 = vadd.f32 %v1471_v16, %v921_v0  ;;  %v1731_v44 = vadd.f32 %v1475_v36, %v925_v7 }
 0x589   : > { %v2281_v10 = vsel %vm2011_vm0, %v11659_v12, 0.0  ;;  %v2285_v52 = vsel %vm2015_vm1, %v11659_v12, 0.0  ;;  %vm2805_vm2 = vcmp.eq.s32.totalorder %v353_v63, %v11683_v56  ;;  %vm2809_vm3 = vcmp.eq.s32.totalorder %v357_v37, %v11683_v56 }
 0x58a   : > { %v6880_v14 = vpack.c.bf16 %v6721_v55, %v6717_v41  ;;  %v2537_v49 = vadd.f32 %v2281_v10, %v1727_v45  ;;  %v2541_v50 = vadd.f32 %v2285_v52, %v1731_v44  ;;  %v3075_v47 = vsel %vm2805_vm2, %v11687_v23, 0.0 }
 0x58b   : > { %v3079_v8 = vsel %vm2809_vm3, %v11687_v23, 0.0  ;;  %vm3605_vm4 = vcmp.eq.s32.totalorder %v353_v63, %v11689_v42  ;;  %vm3609_vm5 = vcmp.eq.s32.totalorder %v357_v37, %v11689_v42  ;;  %vm4399_vm6 = vcmp.eq.s32.totalorder %v353_v63, %v11699_v34 }
 0x58c   : > { %7091 = vmatpush.bf16.msrb.mxu3 %v6880_v14  ;;  %v3331_v30 = vadd.f32 %v3075_v47, %v2537_v49  ;;  %v3335_v51 = vadd.f32 %v3079_v8, %v2541_v50  ;;  %v3875_v60 = vsel %vm3605_vm4, %v11691_v11, 0.0  ;;  %v3879_v2 = vsel %vm3609_vm5, %v11691_v11, 0.0  ;;  %v481_v49 = vld [vmem:[#allocation2 + $0x4d8] sm:$0xff] }
 0x58d   : > { %vm4403_vm7 = vcmp.eq.s32.totalorder %v357_v37, %v11699_v34  ;;  %v4669_v17 = vsel %vm4399_vm6, %v11701_v19, 0.0  ;;  %vm5197_vm8 = vcmp.eq.s32.totalorder %v353_v63, %v11715_v1  ;;  %vm5201_vm9 = vcmp.eq.s32.totalorder %v357_v37, %v11715_v1  ;;  %v485_v50 = vld [vmem:[#allocation2 + $0x4f8] sm:$0xff] }
 0x58e   : > { %v4131_v61 = vadd.f32 %v3875_v60, %v3331_v30  ;;  %v4135_v59 = vadd.f32 %v3879_v2, %v3335_v51  ;;  %v4673_v6 = vsel %vm4403_vm7, %v11701_v19, 0.0  ;;  %v5467_v13 = vsel %vm5197_vm8, %v11728_v35, 0.0 }
 0x58f   : > { %v5471_v62 = vsel %vm5201_vm9, %v11728_v35, 0.0  ;;  %vm5991_vm10 = vcmp.eq.s32.totalorder %v353_v63, %v11736_v32  ;;  %vm5995_vm11 = vcmp.eq.s32.totalorder %v357_v37, %v11736_v32  ;;  %vm715_vm12 = vcmp.eq.s32.totalorder %v12341_v25, %v11649_v24 }
 0x590   : > { %v4925_v46 = vadd.f32 %v4669_v17, %v4131_v61  ;;  %v4929_v53 = vadd.f32 %v4673_v6, %v4135_v59  ;;  %v6261_v22 = vsel %vm5991_vm10, %v11740_v27, 0.0  ;;  %v6265_v20 = vsel %vm5995_vm11, %v11740_v27, 0.0 }
 0x591   : > { %vm719_vm13 = vcmp.eq.s32.totalorder %v421_v18, %v11649_v24  ;;  %v985_v58 = vsel %vm715_vm12, %v11651_v15, 0.0  ;;  %vm1265_vm14 = vcmp.eq.s32.totalorder %v12341_v25, %v11653_v57  ;;  %vm1269_vm15 = vcmp.eq.s32.totalorder %v421_v18, %v11653_v57 }
 0x592   : > { %v5723_v3 = vadd.f32 %v5467_v13, %v4925_v46  ;;  %v5727_v21 = vadd.f32 %v5471_v62, %v4929_v53  ;;  %v989_v63 = vsel %vm719_vm13, %v11651_v15, 0.0  ;;  %v1535_v37 = vsel %vm1265_vm14, %v11655_v48, 0.0 }
 0x593   : > { %v1539_v31 = vsel %vm1269_vm15, %v11655_v48, 0.0  ;;  %v1791_v28 = vadd.f32 %v1535_v37, %v985_v58  ;;  %vm2075_vm0 = vcmp.eq.s32.totalorder %v12341_v25, %v11657_v38  ;;  %vm2079_vm1 = vcmp.eq.s32.totalorder %v421_v18, %v11657_v38 }
 0x594   : > { %v6517_v9 = vadd.f32 %v6261_v22, %v5723_v3  ;;  %v6521_v43 = vadd.f32 %v6265_v20, %v5727_v21  ;;  %v1795_v40 = vadd.f32 %v1539_v31, %v989_v63  ;;  %v2345_v26 = vsel %vm2075_vm0, %v11659_v12, 0.0 }
 0x595   : > { %v2349_v54 = vsel %vm2079_vm1, %v11659_v12, 0.0  ;;  %v2601_v5 = vadd.f32 %v2345_v26, %v1791_v28  ;;  %vm2869_vm2 = vcmp.eq.s32.totalorder %v12341_v25, %v11683_v56  ;;  %vm2873_vm3 = vcmp.eq.s32.totalorder %v421_v18, %v11683_v56 }
 0x596   : > { %v6780_v0 = vpack.c.bf16 %v6521_v43, %v6517_v9  ;;  %v2605_v7 = vadd.f32 %v2349_v54, %v1795_v40  ;;  %v3139_v16 = vsel %vm2869_vm2, %v11687_v23, 0.0  ;;  %v3143_v36 = vsel %vm2873_vm3, %v11687_v23, 0.0  ;;  %v12417_v54 = vld [vmem:[#allocation2 + $0x6d8] sm:$0xff] }
 0x597   : > { %v3395_v41 = vadd.f32 %v3139_v16, %v2601_v5  ;;  %vm3669_vm4 = vcmp.eq.s32.totalorder %v12341_v25, %v11689_v42  ;;  %vm3673_vm5 = vcmp.eq.s32.totalorder %v421_v18, %v11689_v42  ;;  %vm4463_vm6 = vcmp.eq.s32.totalorder %v12341_v25, %v11699_v34 }
 0x598   : > { %7053 = vmatpush.bf16.msrb.mxu0 %v6780_v0  ;;  %v3399_v55 = vadd.f32 %v3143_v36, %v2605_v7  ;;  %v3939_v45 = vsel %vm3669_vm4, %v11691_v11, 0.0  ;;  %v3943_v44 = vsel %vm3673_vm5, %v11691_v11, 0.0  ;;  %vm4467_vm7 = vcmp.eq.s32.totalorder %v421_v18, %v11699_v34  ;;  %v549_v7 = vld [vmem:[#allocation2 + $0x6f8] sm:$0xff] }
 0x599   : > { %v4195_v10 = vadd.f32 %v3939_v45, %v3395_v41  ;;  %v4733_v52 = vsel %vm4463_vm6, %v11701_v19, 0.0  ;;  %v4737_v14 = vsel %vm4467_vm7, %v11701_v19, 0.0  ;;  %vm5261_vm8 = vcmp.eq.s32.totalorder %v12341_v25, %v11715_v1 }
 0x59a   : > { %v4199_v47 = vadd.f32 %v3943_v44, %v3399_v55  ;;  %vm5265_vm9 = vcmp.eq.s32.totalorder %v421_v18, %v11715_v1  ;;  %v5531_v8 = vsel %vm5261_vm8, %v11728_v35, 0.0  ;;  %vm6055_vm10 = vcmp.eq.s32.totalorder %v12341_v25, %v11736_v32 }
 0x59b   : > { %v4989_v30 = vadd.f32 %v4733_v52, %v4195_v10  ;;  %v5535_v51 = vsel %vm5265_vm9, %v11728_v35, 0.0  ;;  %vm6059_vm11 = vcmp.eq.s32.totalorder %v421_v18, %v11736_v32  ;;  %v6325_v60 = vsel %vm6055_vm10, %v11740_v27, 0.0 }
 0x59c   : > { %v4993_v2 = vadd.f32 %v4737_v14, %v4199_v47  ;;  %v6329_v17 = vsel %vm6059_vm11, %v11740_v27, 0.0  ;;  %vm779_vm12 = vcmp.eq.s32.totalorder %v481_v49, %v11649_v24  ;;  %vm783_vm13 = vcmp.eq.s32.totalorder %v485_v50, %v11649_v24 }
 0x59d   : > { %v5787_v61 = vadd.f32 %v5531_v8, %v4989_v30  ;;  %v1049_v59 = vsel %vm779_vm12, %v11651_v15, 0.0  ;;  %v1053_v6 = vsel %vm783_vm13, %v11651_v15, 0.0  ;;  %vm1329_vm14 = vcmp.eq.s32.totalorder %v481_v49, %v11653_v57 }
 0x59e   : > { %v5791_v25 = vadd.f32 %v5535_v51, %v4993_v2  ;;  %vm1333_vm15 = vcmp.eq.s32.totalorder %v485_v50, %v11653_v57  ;;  %v1599_v13 = vsel %vm1329_vm14, %v11655_v48, 0.0  ;;  %vm2139_vm0 = vcmp.eq.s32.totalorder %v481_v49, %v11657_v38 }
 0x59f   : > { %v6581_v18 = vadd.f32 %v6325_v60, %v5787_v61  ;;  %v1603_v62 = vsel %vm1333_vm15, %v11655_v48, 0.0  ;;  %v1855_v46 = vadd.f32 %v1599_v13, %v1049_v59  ;;  %vm2143_vm1 = vcmp.eq.s32.totalorder %v485_v50, %v11657_v38 }
 0x5a0   : > { %v6585_v53 = vadd.f32 %v6329_v17, %v5791_v25  ;;  %v1859_v22 = vadd.f32 %v1603_v62, %v1053_v6  ;;  %v2409_v20 = vsel %vm2139_vm0, %v11659_v12, 0.0  ;;  %v2413_v58 = vsel %vm2143_vm1, %v11659_v12, 0.0 }
 0x5a1   : > { %v2665_v3 = vadd.f32 %v2409_v20, %v1855_v46  ;;  %vm2933_vm2 = vcmp.eq.s32.totalorder %v481_v49, %v11683_v56  ;;  %vm2937_vm3 = vcmp.eq.s32.totalorder %v485_v50, %v11683_v56  ;;  %vm3733_vm4 = vcmp.eq.s32.totalorder %v481_v49, %v11689_v42 }
 0x5a2   : > { %v6812_v21 = vpack.c.bf16 %v6585_v53, %v6581_v18  ;;  %v2669_v63 = vadd.f32 %v2413_v58, %v1859_v22  ;;  %v3203_v37 = vsel %vm2933_vm2, %v11687_v23, 0.0  ;;  %v3207_v31 = vsel %vm2937_vm3, %v11687_v23, 0.0 }
 0x5a3   : > { %v3459_v28 = vadd.f32 %v3203_v37, %v2665_v3  ;;  %vm3737_vm5 = vcmp.eq.s32.totalorder %v485_v50, %v11689_v42  ;;  %v4003_v9 = vsel %vm3733_vm4, %v11691_v11, 0.0  ;;  %vm4527_vm6 = vcmp.eq.s32.totalorder %v481_v49, %v11699_v34  ;;  %v349_v37 = vld [vmem:[#allocation2 + $0xb8] sm:$0xff] }
 0x5a4   : > { %7066 = vmatpush.bf16.msrb.mxu1 %v6812_v21  ;;  %v3463_v43 = vadd.f32 %v3207_v31, %v2669_v63  ;;  %v4007_v40 = vsel %vm3737_vm5, %v11691_v11, 0.0  ;;  %vm4531_vm7 = vcmp.eq.s32.totalorder %v485_v50, %v11699_v34  ;;  %v4797_v26 = vsel %vm4527_vm6, %v11701_v19, 0.0  ;;  %v345_v63 = vld [vmem:[#allocation2 + $0x98] sm:$0xff] }
 0x5a5   : > { %v4259_v5 = vadd.f32 %v4003_v9, %v3459_v28  ;;  %v4801_v0 = vsel %vm4531_vm7, %v11701_v19, 0.0  ;;  %vm5325_vm8 = vcmp.eq.s32.totalorder %v481_v49, %v11715_v1  ;;  %vm5329_vm9 = vcmp.eq.s32.totalorder %v485_v50, %v11715_v1 }
 0x5a6   : > { %v4263_v16 = vadd.f32 %v4007_v40, %v3463_v43  ;;  %v5595_v36 = vsel %vm5325_vm8, %v11728_v35, 0.0  ;;  %v5599_v41 = vsel %vm5329_vm9, %v11728_v35, 0.0  ;;  %vm6119_vm10 = vcmp.eq.s32.totalorder %v481_v49, %v11736_v32 }
 0x5a7   : > { %v5053_v55 = vadd.f32 %v4797_v26, %v4259_v5  ;;  %vm6123_vm11 = vcmp.eq.s32.totalorder %v485_v50, %v11736_v32  ;;  %v6389_v45 = vsel %vm6119_vm10, %v11740_v27, 0.0  ;;  %vm843_vm12 = vcmp.eq.s32.totalorder %v12417_v54, %v11649_v24 }
 0x5a8   : > { %v5057_v44 = vadd.f32 %v4801_v0, %v4263_v16  ;;  %v6393_v10 = vsel %vm6123_vm11, %v11740_v27, 0.0  ;;  %vm847_vm13 = vcmp.eq.s32.totalorder %v549_v7, %v11649_v24  ;;  %v1113_v52 = vsel %vm843_vm12, %v11651_v15, 0.0 }
 0x5a9   : > { %v5851_v14 = vadd.f32 %v5595_v36, %v5053_v55  ;;  %v1117_v47 = vsel %vm847_vm13, %v11651_v15, 0.0  ;;  %vm1393_vm14 = vcmp.eq.s32.totalorder %v12417_v54, %v11653_v57  ;;  %vm1397_vm15 = vcmp.eq.s32.totalorder %v549_v7, %v11653_v57 }
 0x5aa   : > { %v5855_v49 = vadd.f32 %v5599_v41, %v5057_v44  ;;  %v1663_v50 = vsel %vm1393_vm14, %v11655_v48, 0.0  ;;  %v1667_v8 = vsel %vm1397_vm15, %v11655_v48, 0.0  ;;  %vm2203_vm0 = vcmp.eq.s32.totalorder %v12417_v54, %v11657_v38 }
 0x5ab   : > { %v6645_v30 = vadd.f32 %v6389_v45, %v5851_v14  ;;  %v1919_v51 = vadd.f32 %v1663_v50, %v1113_v52  ;;  %v1923_v60 = vadd.f32 %v1667_v8, %v1117_v47  ;;  %vm2207_vm1 = vcmp.eq.s32.totalorder %v549_v7, %v11657_v38 }
 0x5ac   : > { %v6649_v2 = vadd.f32 %v6393_v10, %v5855_v49  ;;  %v2473_v17 = vsel %vm2203_vm0, %v11659_v12, 0.0  ;;  %v2477_v61 = vsel %vm2207_vm1, %v11659_v12, 0.0  ;;  %vm2997_vm2 = vcmp.eq.s32.totalorder %v12417_v54, %v11683_v56 }
 0x5ad   : > { %v2729_v59 = vadd.f32 %v2473_v17, %v1919_v51  ;;  %v2733_v6 = vadd.f32 %v2477_v61, %v1923_v60  ;;  %vm3001_vm3 = vcmp.eq.s32.totalorder %v549_v7, %v11683_v56  ;;  %v3267_v25 = vsel %vm2997_vm2, %v11687_v23, 0.0  ;;  %v12489_v17 = vld [vmem:[#allocation2 + $0x298] sm:$0xff] }
 0x5ae   : > { %v6844_v13 = vpack.c.bf16 %v6649_v2, %v6645_v30  ;;  %v3271_v18 = vsel %vm3001_vm3, %v11687_v23, 0.0  ;;  %vm3797_vm4 = vcmp.eq.s32.totalorder %v12417_v54, %v11689_v42  ;;  %vm3801_vm5 = vcmp.eq.s32.totalorder %v549_v7, %v11689_v42 }
 0x5af   : > { %v3523_v62 = vadd.f32 %v3267_v25, %v2729_v59  ;;  %v3527_v46 = vadd.f32 %v3271_v18, %v2733_v6  ;;  %v4067_v53 = vsel %vm3797_vm4, %v11691_v11, 0.0  ;;  %v4071_v22 = vsel %vm3801_vm5, %v11691_v11, 0.0  ;;  %v413_v18 = vld [vmem:[#allocation2 + $0x2b8] sm:$0xff] }
 0x5b0   : > { %7079 = vmatpush.bf16.msrb.mxu2 %v6844_v13  ;;  %vm4591_vm6 = vcmp.eq.s32.totalorder %v12417_v54, %v11699_v34  ;;  %vm4595_vm7 = vcmp.eq.s32.totalorder %v549_v7, %v11699_v34  ;;  %vm5389_vm8 = vcmp.eq.s32.totalorder %v12417_v54, %v11715_v1  ;;  %vm5393_vm9 = vcmp.eq.s32.totalorder %v549_v7, %v11715_v1 }
 0x5b1   : > { %v4323_v20 = vadd.f32 %v4067_v53, %v3523_v62  ;;  %v4327_v58 = vadd.f32 %v4071_v22, %v3527_v46  ;;  %v4861_v3 = vsel %vm4591_vm6, %v11701_v19, 0.0  ;;  %v4865_v21 = vsel %vm4595_vm7, %v11701_v19, 0.0 }
 0x5b2   : > { %v5659_v31 = vsel %vm5389_vm8, %v11728_v35, 0.0  ;;  %v5663_v28 = vsel %vm5393_vm9, %v11728_v35, 0.0  ;;  %vm6183_vm10 = vcmp.eq.s32.totalorder %v12417_v54, %v11736_v32  ;;  %vm6187_vm11 = vcmp.eq.s32.totalorder %v549_v7, %v11736_v32 }
 0x5b3   : > { %v5117_v9 = vadd.f32 %v4861_v3, %v4323_v20  ;;  %v5121_v43 = vadd.f32 %v4865_v21, %v4327_v58  ;;  %v6453_v40 = vsel %vm6183_vm10, %v11740_v27, 0.0  ;;  %v6457_v26 = vsel %vm6187_vm11, %v11740_v27, 0.0 }
 0x5b4   : > { %vm643_vm12 = vcmp.eq.s32.totalorder %v345_v63, %v11649_v24  ;;  %vm647_vm13 = vcmp.eq.s32.totalorder %v349_v37, %v11649_v24  ;;  %vm1193_vm14 = vcmp.eq.s32.totalorder %v345_v63, %v11653_v57  ;;  %vm1197_vm15 = vcmp.eq.s32.totalorder %v349_v37, %v11653_v57 }
 0x5b5   : > { %v5915_v5 = vadd.f32 %v5659_v31, %v5117_v9  ;;  %v5919_v0 = vadd.f32 %v5663_v28, %v5121_v43  ;;  %v913_v54 = vsel %vm643_vm12, %v11651_v15, 0.0  ;;  %v917_v7 = vsel %vm647_vm13, %v11651_v15, 0.0 }
 0x5b6   : > { %v1463_v16 = vsel %vm1193_vm14, %v11655_v48, 0.0  ;;  %v1467_v36 = vsel %vm1197_vm15, %v11655_v48, 0.0  ;;  %vm2003_vm0 = vcmp.eq.s32.totalorder %v345_v63, %v11657_v38  ;;  %vm2007_vm1 = vcmp.eq.s32.totalorder %v349_v37, %v11657_v38 }
 0x5b7   : > { %v6709_v41 = vadd.f32 %v6453_v40, %v5915_v5  ;;  %v6713_v55 = vadd.f32 %v6457_v26, %v5919_v0  ;;  %v1719_v45 = vadd.f32 %v1463_v16, %v913_v54  ;;  %v1723_v44 = vadd.f32 %v1467_v36, %v917_v7 }
 0x5b8   : > { %v2273_v10 = vsel %vm2003_vm0, %v11659_v12, 0.0  ;;  %v2277_v52 = vsel %vm2007_vm1, %v11659_v12, 0.0  ;;  %vm2797_vm2 = vcmp.eq.s32.totalorder %v345_v63, %v11683_v56  ;;  %vm2801_vm3 = vcmp.eq.s32.totalorder %v349_v37, %v11683_v56 }
 0x5b9   : > { %v6876_v14 = vpack.c.bf16 %v6713_v55, %v6709_v41  ;;  %v2529_v47 = vadd.f32 %v2273_v10, %v1719_v45  ;;  %v2533_v49 = vadd.f32 %v2277_v52, %v1723_v44  ;;  %v3067_v50 = vsel %vm2797_vm2, %v11687_v23, 0.0 }
 0x5ba   : > { %v3071_v8 = vsel %vm2801_vm3, %v11687_v23, 0.0  ;;  %vm3597_vm4 = vcmp.eq.s32.totalorder %v345_v63, %v11689_v42  ;;  %vm3601_vm5 = vcmp.eq.s32.totalorder %v349_v37, %v11689_v42  ;;  %vm4391_vm6 = vcmp.eq.s32.totalorder %v345_v63, %v11699_v34 }
 0x5bb   : > { %7092 = vmatpush.bf16.msrb.mxu3 %v6876_v14  ;;  %v3323_v30 = vadd.f32 %v3067_v50, %v2529_v47  ;;  %v3327_v51 = vadd.f32 %v3071_v8, %v2533_v49  ;;  %v3867_v60 = vsel %vm3597_vm4, %v11691_v11, 0.0  ;;  %v3871_v2 = vsel %vm3601_vm5, %v11691_v11, 0.0  ;;  %v473_v47 = vld [vmem:[#allocation2 + $0x498] sm:$0xff] }
 0x5bc   : > { %vm4395_vm7 = vcmp.eq.s32.totalorder %v349_v37, %v11699_v34  ;;  %v4661_v61 = vsel %vm4391_vm6, %v11701_v19, 0.0  ;;  %vm5189_vm8 = vcmp.eq.s32.totalorder %v345_v63, %v11715_v1  ;;  %vm5193_vm9 = vcmp.eq.s32.totalorder %v349_v37, %v11715_v1  ;;  %v477_v49 = vld [vmem:[#allocation2 + $0x4b8] sm:$0xff] }
 0x5bd   : > { %v4123_v59 = vadd.f32 %v3867_v60, %v3323_v30  ;;  %v4127_v6 = vadd.f32 %v3871_v2, %v3327_v51  ;;  %v4665_v25 = vsel %vm4395_vm7, %v11701_v19, 0.0  ;;  %v5459_v13 = vsel %vm5189_vm8, %v11728_v35, 0.0 }
 0x5be   : > { %v5463_v62 = vsel %vm5193_vm9, %v11728_v35, 0.0  ;;  %vm5983_vm10 = vcmp.eq.s32.totalorder %v345_v63, %v11736_v32  ;;  %vm5987_vm11 = vcmp.eq.s32.totalorder %v349_v37, %v11736_v32  ;;  %vm707_vm12 = vcmp.eq.s32.totalorder %v12489_v17, %v11649_v24 }
 0x5bf   : > { %v4917_v46 = vadd.f32 %v4661_v61, %v4123_v59  ;;  %v4921_v53 = vadd.f32 %v4665_v25, %v4127_v6  ;;  %v6253_v22 = vsel %vm5983_vm10, %v11740_v27, 0.0  ;;  %v6257_v20 = vsel %vm5987_vm11, %v11740_v27, 0.0 }
 0x5c0   : > { %vm711_vm13 = vcmp.eq.s32.totalorder %v413_v18, %v11649_v24  ;;  %v977_v58 = vsel %vm707_vm12, %v11651_v15, 0.0  ;;  %vm1257_vm14 = vcmp.eq.s32.totalorder %v12489_v17, %v11653_v57  ;;  %vm1261_vm15 = vcmp.eq.s32.totalorder %v413_v18, %v11653_v57 }
 0x5c1   : > { %v5715_v3 = vadd.f32 %v5459_v13, %v4917_v46  ;;  %v5719_v21 = vadd.f32 %v5463_v62, %v4921_v53  ;;  %v981_v63 = vsel %vm711_vm13, %v11651_v15, 0.0  ;;  %v1527_v37 = vsel %vm1257_vm14, %v11655_v48, 0.0 }
 0x5c2   : > { %v1531_v31 = vsel %vm1261_vm15, %v11655_v48, 0.0  ;;  %v1783_v28 = vadd.f32 %v1527_v37, %v977_v58  ;;  %vm2067_vm0 = vcmp.eq.s32.totalorder %v12489_v17, %v11657_v38  ;;  %vm2071_vm1 = vcmp.eq.s32.totalorder %v413_v18, %v11657_v38 }
 0x5c3   : > { %v6509_v9 = vadd.f32 %v6253_v22, %v5715_v3  ;;  %v6513_v43 = vadd.f32 %v6257_v20, %v5719_v21  ;;  %v1787_v40 = vadd.f32 %v1531_v31, %v981_v63  ;;  %v2337_v26 = vsel %vm2067_vm0, %v11659_v12, 0.0 }
 0x5c4   : > { %v2341_v5 = vsel %vm2071_vm1, %v11659_v12, 0.0  ;;  %v2593_v0 = vadd.f32 %v2337_v26, %v1783_v28  ;;  %vm2861_vm2 = vcmp.eq.s32.totalorder %v12489_v17, %v11683_v56  ;;  %vm2865_vm3 = vcmp.eq.s32.totalorder %v413_v18, %v11683_v56 }
 0x5c5   : > { %v6776_v54 = vpack.c.bf16 %v6513_v43, %v6509_v9  ;;  %v2597_v7 = vadd.f32 %v2341_v5, %v1787_v40  ;;  %v3131_v16 = vsel %vm2861_vm2, %v11687_v23, 0.0  ;;  %v3135_v36 = vsel %vm2865_vm3, %v11687_v23, 0.0  ;;  %v12565_v5 = vld [vmem:[#allocation2 + $0x698] sm:$0xff] }
 0x5c6   : > { %v3387_v41 = vadd.f32 %v3131_v16, %v2593_v0  ;;  %vm3661_vm4 = vcmp.eq.s32.totalorder %v12489_v17, %v11689_v42  ;;  %vm3665_vm5 = vcmp.eq.s32.totalorder %v413_v18, %v11689_v42  ;;  %vm4455_vm6 = vcmp.eq.s32.totalorder %v12489_v17, %v11699_v34 }
 0x5c7   : > { %7054 = vmatpush.bf16.msrb.mxu0 %v6776_v54  ;;  %v3391_v55 = vadd.f32 %v3135_v36, %v2597_v7  ;;  %v3931_v45 = vsel %vm3661_vm4, %v11691_v11, 0.0  ;;  %v3935_v44 = vsel %vm3665_vm5, %v11691_v11, 0.0  ;;  %vm4459_vm7 = vcmp.eq.s32.totalorder %v413_v18, %v11699_v34  ;;  %v541_v7 = vld [vmem:[#allocation2 + $0x6b8] sm:$0xff] }
 0x5c8   : > { %v4187_v10 = vadd.f32 %v3931_v45, %v3387_v41  ;;  %v4725_v52 = vsel %vm4455_vm6, %v11701_v19, 0.0  ;;  %v4729_v14 = vsel %vm4459_vm7, %v11701_v19, 0.0  ;;  %vm5253_vm8 = vcmp.eq.s32.totalorder %v12489_v17, %v11715_v1 }
 0x5c9   : > { %v4191_v50 = vadd.f32 %v3935_v44, %v3391_v55  ;;  %vm5257_vm9 = vcmp.eq.s32.totalorder %v413_v18, %v11715_v1  ;;  %v5523_v8 = vsel %vm5253_vm8, %v11728_v35, 0.0  ;;  %vm6047_vm10 = vcmp.eq.s32.totalorder %v12489_v17, %v11736_v32 }
 0x5ca   : > { %v4981_v30 = vadd.f32 %v4725_v52, %v4187_v10  ;;  %v5527_v51 = vsel %vm5257_vm9, %v11728_v35, 0.0  ;;  %vm6051_vm11 = vcmp.eq.s32.totalorder %v413_v18, %v11736_v32  ;;  %v6317_v60 = vsel %vm6047_vm10, %v11740_v27, 0.0 }
 0x5cb   : > { %v4985_v2 = vadd.f32 %v4729_v14, %v4191_v50  ;;  %v6321_v61 = vsel %vm6051_vm11, %v11740_v27, 0.0  ;;  %vm771_vm12 = vcmp.eq.s32.totalorder %v473_v47, %v11649_v24  ;;  %vm775_vm13 = vcmp.eq.s32.totalorder %v477_v49, %v11649_v24 }
 0x5cc   : > { %v5779_v59 = vadd.f32 %v5523_v8, %v4981_v30  ;;  %v1041_v6 = vsel %vm771_vm12, %v11651_v15, 0.0  ;;  %v1045_v25 = vsel %vm775_vm13, %v11651_v15, 0.0  ;;  %vm1321_vm14 = vcmp.eq.s32.totalorder %v473_v47, %v11653_v57 }
 0x5cd   : > { %v5783_v17 = vadd.f32 %v5527_v51, %v4985_v2  ;;  %vm1325_vm15 = vcmp.eq.s32.totalorder %v477_v49, %v11653_v57  ;;  %v1591_v13 = vsel %vm1321_vm14, %v11655_v48, 0.0  ;;  %vm2131_vm0 = vcmp.eq.s32.totalorder %v473_v47, %v11657_v38 }
 0x5ce   : > { %v6573_v18 = vadd.f32 %v6317_v60, %v5779_v59  ;;  %v1595_v62 = vsel %vm1325_vm15, %v11655_v48, 0.0  ;;  %v1847_v46 = vadd.f32 %v1591_v13, %v1041_v6  ;;  %vm2135_vm1 = vcmp.eq.s32.totalorder %v477_v49, %v11657_v38 }
 0x5cf   : > { %v6577_v53 = vadd.f32 %v6321_v61, %v5783_v17  ;;  %v1851_v22 = vadd.f32 %v1595_v62, %v1045_v25  ;;  %v2401_v20 = vsel %vm2131_vm0, %v11659_v12, 0.0  ;;  %v2405_v58 = vsel %vm2135_vm1, %v11659_v12, 0.0 }
 0x5d0   : > { %v2657_v3 = vadd.f32 %v2401_v20, %v1847_v46  ;;  %vm2925_vm2 = vcmp.eq.s32.totalorder %v473_v47, %v11683_v56  ;;  %vm2929_vm3 = vcmp.eq.s32.totalorder %v477_v49, %v11683_v56  ;;  %vm3725_vm4 = vcmp.eq.s32.totalorder %v473_v47, %v11689_v42 }
 0x5d1   : > { %v6808_v21 = vpack.c.bf16 %v6577_v53, %v6573_v18  ;;  %v2661_v63 = vadd.f32 %v2405_v58, %v1851_v22  ;;  %v3195_v37 = vsel %vm2925_vm2, %v11687_v23, 0.0  ;;  %v3199_v31 = vsel %vm2929_vm3, %v11687_v23, 0.0 }
 0x5d2   : > { %v3451_v28 = vadd.f32 %v3195_v37, %v2657_v3  ;;  %vm3729_vm5 = vcmp.eq.s32.totalorder %v477_v49, %v11689_v42  ;;  %v3995_v9 = vsel %vm3725_vm4, %v11691_v11, 0.0  ;;  %vm4519_vm6 = vcmp.eq.s32.totalorder %v473_v47, %v11699_v34  ;;  %v341_v37 = vld [vmem:[#allocation2 + $0x78] sm:$0xff] }
 0x5d3   : > { %7067 = vmatpush.bf16.msrb.mxu1 %v6808_v21  ;;  %v3455_v43 = vadd.f32 %v3199_v31, %v2661_v63  ;;  %v3999_v40 = vsel %vm3729_vm5, %v11691_v11, 0.0  ;;  %vm4523_vm7 = vcmp.eq.s32.totalorder %v477_v49, %v11699_v34  ;;  %v4789_v26 = vsel %vm4519_vm6, %v11701_v19, 0.0  ;;  %v337_v63 = vld [vmem:[#allocation2 + $0x58] sm:$0xff] }
 0x5d4   : > { %v4251_v0 = vadd.f32 %v3995_v9, %v3451_v28  ;;  %v4793_v54 = vsel %vm4523_vm7, %v11701_v19, 0.0  ;;  %vm5317_vm8 = vcmp.eq.s32.totalorder %v473_v47, %v11715_v1  ;;  %vm5321_vm9 = vcmp.eq.s32.totalorder %v477_v49, %v11715_v1 }
 0x5d5   : > { %v4255_v16 = vadd.f32 %v3999_v40, %v3455_v43  ;;  %v5587_v36 = vsel %vm5317_vm8, %v11728_v35, 0.0  ;;  %v5591_v41 = vsel %vm5321_vm9, %v11728_v35, 0.0  ;;  %vm6111_vm10 = vcmp.eq.s32.totalorder %v473_v47, %v11736_v32 }
 0x5d6   : > { %v5045_v55 = vadd.f32 %v4789_v26, %v4251_v0  ;;  %vm6115_vm11 = vcmp.eq.s32.totalorder %v477_v49, %v11736_v32  ;;  %v6381_v45 = vsel %vm6111_vm10, %v11740_v27, 0.0  ;;  %vm835_vm12 = vcmp.eq.s32.totalorder %v12565_v5, %v11649_v24 }
 0x5d7   : > { %v5049_v44 = vadd.f32 %v4793_v54, %v4255_v16  ;;  %v6385_v10 = vsel %vm6115_vm11, %v11740_v27, 0.0  ;;  %vm839_vm13 = vcmp.eq.s32.totalorder %v541_v7, %v11649_v24  ;;  %v1105_v52 = vsel %vm835_vm12, %v11651_v15, 0.0 }
 0x5d8   : > { %v5843_v14 = vadd.f32 %v5587_v36, %v5045_v55  ;;  %v1109_v50 = vsel %vm839_vm13, %v11651_v15, 0.0  ;;  %vm1385_vm14 = vcmp.eq.s32.totalorder %v12565_v5, %v11653_v57  ;;  %vm1389_vm15 = vcmp.eq.s32.totalorder %v541_v7, %v11653_v57 }
 0x5d9   : > { %v5847_v47 = vadd.f32 %v5591_v41, %v5049_v44  ;;  %v1655_v49 = vsel %vm1385_vm14, %v11655_v48, 0.0  ;;  %v1659_v8 = vsel %vm1389_vm15, %v11655_v48, 0.0  ;;  %vm2195_vm0 = vcmp.eq.s32.totalorder %v12565_v5, %v11657_v38 }
 0x5da   : > { %v6637_v30 = vadd.f32 %v6381_v45, %v5843_v14  ;;  %v1911_v51 = vadd.f32 %v1655_v49, %v1105_v52  ;;  %v1915_v60 = vadd.f32 %v1659_v8, %v1109_v50  ;;  %vm2199_vm1 = vcmp.eq.s32.totalorder %v541_v7, %v11657_v38 }
 0x5db   : > { %v6641_v2 = vadd.f32 %v6385_v10, %v5847_v47  ;;  %v2465_v61 = vsel %vm2195_vm0, %v11659_v12, 0.0  ;;  %v2469_v59 = vsel %vm2199_vm1, %v11659_v12, 0.0  ;;  %vm2989_vm2 = vcmp.eq.s32.totalorder %v12565_v5, %v11683_v56 }
 0x5dc   : > { %v2721_v6 = vadd.f32 %v2465_v61, %v1911_v51  ;;  %v2725_v25 = vadd.f32 %v2469_v59, %v1915_v60  ;;  %vm2993_vm3 = vcmp.eq.s32.totalorder %v541_v7, %v11683_v56  ;;  %v3259_v17 = vsel %vm2989_vm2, %v11687_v23, 0.0  ;;  %v12637_v61 = vld [vmem:[#allocation2 + $0x258] sm:$0xff] }
 0x5dd   : > { %v6840_v13 = vpack.c.bf16 %v6641_v2, %v6637_v30  ;;  %v3263_v18 = vsel %vm2993_vm3, %v11687_v23, 0.0  ;;  %vm3789_vm4 = vcmp.eq.s32.totalorder %v12565_v5, %v11689_v42  ;;  %vm3793_vm5 = vcmp.eq.s32.totalorder %v541_v7, %v11689_v42 }
 0x5de   : > { %v3515_v62 = vadd.f32 %v3259_v17, %v2721_v6  ;;  %v3519_v46 = vadd.f32 %v3263_v18, %v2725_v25  ;;  %v4059_v53 = vsel %vm3789_vm4, %v11691_v11, 0.0  ;;  %v4063_v22 = vsel %vm3793_vm5, %v11691_v11, 0.0  ;;  %v405_v18 = vld [vmem:[#allocation2 + $0x278] sm:$0xff] }
 0x5df   : > { %7080 = vmatpush.bf16.msrb.mxu2 %v6840_v13  ;;  %vm4583_vm6 = vcmp.eq.s32.totalorder %v12565_v5, %v11699_v34  ;;  %vm4587_vm7 = vcmp.eq.s32.totalorder %v541_v7, %v11699_v34  ;;  %vm5381_vm8 = vcmp.eq.s32.totalorder %v12565_v5, %v11715_v1  ;;  %vm5385_vm9 = vcmp.eq.s32.totalorder %v541_v7, %v11715_v1 }
 0x5e0   : > { %v4315_v20 = vadd.f32 %v4059_v53, %v3515_v62  ;;  %v4319_v58 = vadd.f32 %v4063_v22, %v3519_v46  ;;  %v4853_v3 = vsel %vm4583_vm6, %v11701_v19, 0.0  ;;  %v4857_v21 = vsel %vm4587_vm7, %v11701_v19, 0.0 }
 0x5e1   : > { %v5651_v31 = vsel %vm5381_vm8, %v11728_v35, 0.0  ;;  %v5655_v28 = vsel %vm5385_vm9, %v11728_v35, 0.0  ;;  %vm6175_vm10 = vcmp.eq.s32.totalorder %v12565_v5, %v11736_v32  ;;  %vm6179_vm11 = vcmp.eq.s32.totalorder %v541_v7, %v11736_v32 }
 0x5e2   : > { %v5109_v9 = vadd.f32 %v4853_v3, %v4315_v20  ;;  %v5113_v43 = vadd.f32 %v4857_v21, %v4319_v58  ;;  %v6445_v40 = vsel %vm6175_vm10, %v11740_v27, 0.0  ;;  %v6449_v26 = vsel %vm6179_vm11, %v11740_v27, 0.0 }
 0x5e3   : > { %vm635_vm12 = vcmp.eq.s32.totalorder %v337_v63, %v11649_v24  ;;  %vm639_vm13 = vcmp.eq.s32.totalorder %v341_v37, %v11649_v24  ;;  %vm1185_vm14 = vcmp.eq.s32.totalorder %v337_v63, %v11653_v57  ;;  %vm1189_vm15 = vcmp.eq.s32.totalorder %v341_v37, %v11653_v57 }
 0x5e4   : > { %v5907_v0 = vadd.f32 %v5651_v31, %v5109_v9  ;;  %v5911_v54 = vadd.f32 %v5655_v28, %v5113_v43  ;;  %v905_v5 = vsel %vm635_vm12, %v11651_v15, 0.0  ;;  %v909_v7 = vsel %vm639_vm13, %v11651_v15, 0.0 }
 0x5e5   : > { %v1455_v16 = vsel %vm1185_vm14, %v11655_v48, 0.0  ;;  %v1459_v36 = vsel %vm1189_vm15, %v11655_v48, 0.0  ;;  %vm1995_vm0 = vcmp.eq.s32.totalorder %v337_v63, %v11657_v38  ;;  %vm1999_vm1 = vcmp.eq.s32.totalorder %v341_v37, %v11657_v38 }
 0x5e6   : > { %v6701_v41 = vadd.f32 %v6445_v40, %v5907_v0  ;;  %v6705_v55 = vadd.f32 %v6449_v26, %v5911_v54  ;;  %v1711_v45 = vadd.f32 %v1455_v16, %v905_v5  ;;  %v1715_v44 = vadd.f32 %v1459_v36, %v909_v7 }
 0x5e7   : > { %v2265_v10 = vsel %vm1995_vm0, %v11659_v12, 0.0  ;;  %v2269_v52 = vsel %vm1999_vm1, %v11659_v12, 0.0  ;;  %vm2789_vm2 = vcmp.eq.s32.totalorder %v337_v63, %v11683_v56  ;;  %vm2793_vm3 = vcmp.eq.s32.totalorder %v341_v37, %v11683_v56 }
 0x5e8   : > { %v6872_v14 = vpack.c.bf16 %v6705_v55, %v6701_v41  ;;  %v2521_v50 = vadd.f32 %v2265_v10, %v1711_v45  ;;  %v2525_v47 = vadd.f32 %v2269_v52, %v1715_v44  ;;  %v3059_v49 = vsel %vm2789_vm2, %v11687_v23, 0.0 }
 0x5e9   : > { %v3063_v8 = vsel %vm2793_vm3, %v11687_v23, 0.0  ;;  %vm3589_vm4 = vcmp.eq.s32.totalorder %v337_v63, %v11689_v42  ;;  %vm3593_vm5 = vcmp.eq.s32.totalorder %v341_v37, %v11689_v42  ;;  %vm4383_vm6 = vcmp.eq.s32.totalorder %v337_v63, %v11699_v34 }
 0x5ea   : > { %7093 = vmatpush.bf16.msrb.mxu3 %v6872_v14  ;;  %v3315_v30 = vadd.f32 %v3059_v49, %v2521_v50  ;;  %v3319_v51 = vadd.f32 %v3063_v8, %v2525_v47  ;;  %v3859_v60 = vsel %vm3589_vm4, %v11691_v11, 0.0  ;;  %v3863_v2 = vsel %vm3593_vm5, %v11691_v11, 0.0  ;;  %v465_v50 = vld [vmem:[#allocation2 + $0x458] sm:$0xff] }
 0x5eb   : > { %vm4387_vm7 = vcmp.eq.s32.totalorder %v341_v37, %v11699_v34  ;;  %v4653_v59 = vsel %vm4383_vm6, %v11701_v19, 0.0  ;;  %vm5181_vm8 = vcmp.eq.s32.totalorder %v337_v63, %v11715_v1  ;;  %vm5185_vm9 = vcmp.eq.s32.totalorder %v341_v37, %v11715_v1  ;;  %v469_v47 = vld [vmem:[#allocation2 + $0x478] sm:$0xff] }
 0x5ec   : > { %v4115_v6 = vadd.f32 %v3859_v60, %v3315_v30  ;;  %v4119_v25 = vadd.f32 %v3863_v2, %v3319_v51  ;;  %v4657_v17 = vsel %vm4387_vm7, %v11701_v19, 0.0  ;;  %v5451_v13 = vsel %vm5181_vm8, %v11728_v35, 0.0 }
 0x5ed   : > { %v5455_v62 = vsel %vm5185_vm9, %v11728_v35, 0.0  ;;  %vm5975_vm10 = vcmp.eq.s32.totalorder %v337_v63, %v11736_v32  ;;  %vm5979_vm11 = vcmp.eq.s32.totalorder %v341_v37, %v11736_v32  ;;  %vm699_vm12 = vcmp.eq.s32.totalorder %v12637_v61, %v11649_v24 }
 0x5ee   : > { %v4909_v46 = vadd.f32 %v4653_v59, %v4115_v6  ;;  %v4913_v53 = vadd.f32 %v4657_v17, %v4119_v25  ;;  %v6245_v22 = vsel %vm5975_vm10, %v11740_v27, 0.0  ;;  %v6249_v20 = vsel %vm5979_vm11, %v11740_v27, 0.0 }
 0x5ef   : > { %vm703_vm13 = vcmp.eq.s32.totalorder %v405_v18, %v11649_v24  ;;  %v969_v58 = vsel %vm699_vm12, %v11651_v15, 0.0  ;;  %vm1249_vm14 = vcmp.eq.s32.totalorder %v12637_v61, %v11653_v57  ;;  %vm1253_vm15 = vcmp.eq.s32.totalorder %v405_v18, %v11653_v57 }
 0x5f0   : > { %v5707_v3 = vadd.f32 %v5451_v13, %v4909_v46  ;;  %v5711_v21 = vadd.f32 %v5455_v62, %v4913_v53  ;;  %v973_v63 = vsel %vm703_vm13, %v11651_v15, 0.0  ;;  %v1519_v37 = vsel %vm1249_vm14, %v11655_v48, 0.0 }
 0x5f1   : > { %v1523_v31 = vsel %vm1253_vm15, %v11655_v48, 0.0  ;;  %v1775_v28 = vadd.f32 %v1519_v37, %v969_v58  ;;  %vm2059_vm0 = vcmp.eq.s32.totalorder %v12637_v61, %v11657_v38  ;;  %vm2063_vm1 = vcmp.eq.s32.totalorder %v405_v18, %v11657_v38 }
 0x5f2   : > { %v6501_v9 = vadd.f32 %v6245_v22, %v5707_v3  ;;  %v6505_v43 = vadd.f32 %v6249_v20, %v5711_v21  ;;  %v1779_v40 = vadd.f32 %v1523_v31, %v973_v63  ;;  %v2329_v26 = vsel %vm2059_vm0, %v11659_v12, 0.0 }
 0x5f3   : > { %v2333_v0 = vsel %vm2063_vm1, %v11659_v12, 0.0  ;;  %v2585_v54 = vadd.f32 %v2329_v26, %v1775_v28  ;;  %vm2853_vm2 = vcmp.eq.s32.totalorder %v12637_v61, %v11683_v56  ;;  %vm2857_vm3 = vcmp.eq.s32.totalorder %v405_v18, %v11683_v56 }
 0x5f4   : > { %v6772_v5 = vpack.c.bf16 %v6505_v43, %v6501_v9  ;;  %v2589_v7 = vadd.f32 %v2333_v0, %v1779_v40  ;;  %v3123_v16 = vsel %vm2853_vm2, %v11687_v23, 0.0  ;;  %v3127_v36 = vsel %vm2857_vm3, %v11687_v23, 0.0  ;;  %v12713_v0 = vld [vmem:[#allocation2 + $0x658] sm:$0xff] }
 0x5f5   : > { %v3379_v41 = vadd.f32 %v3123_v16, %v2585_v54  ;;  %vm3653_vm4 = vcmp.eq.s32.totalorder %v12637_v61, %v11689_v42  ;;  %vm3657_vm5 = vcmp.eq.s32.totalorder %v405_v18, %v11689_v42  ;;  %vm4447_vm6 = vcmp.eq.s32.totalorder %v12637_v61, %v11699_v34 }
 0x5f6   : > { %7055 = vmatpush.bf16.msrb.mxu0 %v6772_v5  ;;  %v3383_v55 = vadd.f32 %v3127_v36, %v2589_v7  ;;  %v3923_v45 = vsel %vm3653_vm4, %v11691_v11, 0.0  ;;  %v3927_v44 = vsel %vm3657_vm5, %v11691_v11, 0.0  ;;  %vm4451_vm7 = vcmp.eq.s32.totalorder %v405_v18, %v11699_v34  ;;  %v533_v7 = vld [vmem:[#allocation2 + $0x678] sm:$0xff] }
 0x5f7   : > { %v4179_v10 = vadd.f32 %v3923_v45, %v3379_v41  ;;  %v4717_v52 = vsel %vm4447_vm6, %v11701_v19, 0.0  ;;  %v4721_v14 = vsel %vm4451_vm7, %v11701_v19, 0.0  ;;  %vm5245_vm8 = vcmp.eq.s32.totalorder %v12637_v61, %v11715_v1 }
 0x5f8   : > { %v4183_v49 = vadd.f32 %v3927_v44, %v3383_v55  ;;  %vm5249_vm9 = vcmp.eq.s32.totalorder %v405_v18, %v11715_v1  ;;  %v5515_v8 = vsel %vm5245_vm8, %v11728_v35, 0.0  ;;  %vm6039_vm10 = vcmp.eq.s32.totalorder %v12637_v61, %v11736_v32 }
 0x5f9   : > { %v4973_v30 = vadd.f32 %v4717_v52, %v4179_v10  ;;  %v5519_v51 = vsel %vm5249_vm9, %v11728_v35, 0.0  ;;  %vm6043_vm11 = vcmp.eq.s32.totalorder %v405_v18, %v11736_v32  ;;  %v6309_v60 = vsel %vm6039_vm10, %v11740_v27, 0.0 }
 0x5fa   : > { %v4977_v2 = vadd.f32 %v4721_v14, %v4183_v49  ;;  %v6313_v59 = vsel %vm6043_vm11, %v11740_v27, 0.0  ;;  %vm763_vm12 = vcmp.eq.s32.totalorder %v465_v50, %v11649_v24  ;;  %vm767_vm13 = vcmp.eq.s32.totalorder %v469_v47, %v11649_v24 }
 0x5fb   : > { %v5771_v6 = vadd.f32 %v5515_v8, %v4973_v30  ;;  %v1033_v25 = vsel %vm763_vm12, %v11651_v15, 0.0  ;;  %v1037_v17 = vsel %vm767_vm13, %v11651_v15, 0.0  ;;  %vm1313_vm14 = vcmp.eq.s32.totalorder %v465_v50, %v11653_v57 }
 0x5fc   : > { %v5775_v61 = vadd.f32 %v5519_v51, %v4977_v2  ;;  %vm1317_vm15 = vcmp.eq.s32.totalorder %v469_v47, %v11653_v57  ;;  %v1583_v13 = vsel %vm1313_vm14, %v11655_v48, 0.0  ;;  %vm2123_vm0 = vcmp.eq.s32.totalorder %v465_v50, %v11657_v38 }
 0x5fd   : > { %v6565_v18 = vadd.f32 %v6309_v60, %v5771_v6  ;;  %v1587_v62 = vsel %vm1317_vm15, %v11655_v48, 0.0  ;;  %v1839_v46 = vadd.f32 %v1583_v13, %v1033_v25  ;;  %vm2127_vm1 = vcmp.eq.s32.totalorder %v469_v47, %v11657_v38 }
 0x5fe   : > { %v6569_v53 = vadd.f32 %v6313_v59, %v5775_v61  ;;  %v1843_v22 = vadd.f32 %v1587_v62, %v1037_v17  ;;  %v2393_v20 = vsel %vm2123_vm0, %v11659_v12, 0.0  ;;  %v2397_v58 = vsel %vm2127_vm1, %v11659_v12, 0.0 }
 0x5ff   : > { %v2649_v3 = vadd.f32 %v2393_v20, %v1839_v46  ;;  %vm2917_vm2 = vcmp.eq.s32.totalorder %v465_v50, %v11683_v56  ;;  %vm2921_vm3 = vcmp.eq.s32.totalorder %v469_v47, %v11683_v56  ;;  %vm3717_vm4 = vcmp.eq.s32.totalorder %v465_v50, %v11689_v42 }
 0x600   : > { %v6804_v21 = vpack.c.bf16 %v6569_v53, %v6565_v18  ;;  %v2653_v63 = vadd.f32 %v2397_v58, %v1843_v22  ;;  %v3187_v37 = vsel %vm2917_vm2, %v11687_v23, 0.0  ;;  %v3191_v31 = vsel %vm2921_vm3, %v11687_v23, 0.0 }
 0x601   : > { %v3443_v28 = vadd.f32 %v3187_v37, %v2649_v3  ;;  %vm3721_vm5 = vcmp.eq.s32.totalorder %v469_v47, %v11689_v42  ;;  %v3987_v9 = vsel %vm3717_vm4, %v11691_v11, 0.0  ;;  %vm4511_vm6 = vcmp.eq.s32.totalorder %v465_v50, %v11699_v34  ;;  %v333_v37 = vld [vmem:[#allocation2 + $0x38] sm:$0xff] }
 0x602   : > { %7068 = vmatpush.bf16.msrb.mxu1 %v6804_v21  ;;  %v3447_v43 = vadd.f32 %v3191_v31, %v2653_v63  ;;  %v3991_v40 = vsel %vm3721_vm5, %v11691_v11, 0.0  ;;  %vm4515_vm7 = vcmp.eq.s32.totalorder %v469_v47, %v11699_v34  ;;  %v4781_v26 = vsel %vm4511_vm6, %v11701_v19, 0.0  ;;  %v329_v63 = vld [vmem:[#allocation2 + $0x18] sm:$0xff] }
 0x603   : > { %v4243_v54 = vadd.f32 %v3987_v9, %v3443_v28  ;;  %v4785_v5 = vsel %vm4515_vm7, %v11701_v19, 0.0  ;;  %vm5309_vm8 = vcmp.eq.s32.totalorder %v465_v50, %v11715_v1  ;;  %vm5313_vm9 = vcmp.eq.s32.totalorder %v469_v47, %v11715_v1 }
 0x604   : > { %v4247_v16 = vadd.f32 %v3991_v40, %v3447_v43  ;;  %v5579_v36 = vsel %vm5309_vm8, %v11728_v35, 0.0  ;;  %v5583_v41 = vsel %vm5313_vm9, %v11728_v35, 0.0  ;;  %vm6103_vm10 = vcmp.eq.s32.totalorder %v465_v50, %v11736_v32 }
 0x605   : > { %v5037_v55 = vadd.f32 %v4781_v26, %v4243_v54  ;;  %vm6107_vm11 = vcmp.eq.s32.totalorder %v469_v47, %v11736_v32  ;;  %v6373_v45 = vsel %vm6103_vm10, %v11740_v27, 0.0  ;;  %vm827_vm12 = vcmp.eq.s32.totalorder %v12713_v0, %v11649_v24 }
 0x606   : > { %v5041_v44 = vadd.f32 %v4785_v5, %v4247_v16  ;;  %v6377_v10 = vsel %vm6107_vm11, %v11740_v27, 0.0  ;;  %vm831_vm13 = vcmp.eq.s32.totalorder %v533_v7, %v11649_v24  ;;  %v1097_v52 = vsel %vm827_vm12, %v11651_v15, 0.0 }
 0x607   : > { %v5835_v14 = vadd.f32 %v5579_v36, %v5037_v55  ;;  %v1101_v49 = vsel %vm831_vm13, %v11651_v15, 0.0  ;;  %vm1377_vm14 = vcmp.eq.s32.totalorder %v12713_v0, %v11653_v57  ;;  %vm1381_vm15 = vcmp.eq.s32.totalorder %v533_v7, %v11653_v57 }
 0x608   : > { %v5839_v50 = vadd.f32 %v5583_v41, %v5041_v44  ;;  %v1647_v47 = vsel %vm1377_vm14, %v11655_v48, 0.0  ;;  %v1651_v8 = vsel %vm1381_vm15, %v11655_v48, 0.0  ;;  %vm2187_vm0 = vcmp.eq.s32.totalorder %v12713_v0, %v11657_v38 }
 0x609   : > { %v6629_v30 = vadd.f32 %v6373_v45, %v5835_v14  ;;  %v1903_v51 = vadd.f32 %v1647_v47, %v1097_v52  ;;  %v1907_v60 = vadd.f32 %v1651_v8, %v1101_v49  ;;  %vm2191_vm1 = vcmp.eq.s32.totalorder %v533_v7, %v11657_v38 }
 0x60a   : > { %v6633_v2 = vadd.f32 %v6377_v10, %v5839_v50  ;;  %v2457_v59 = vsel %vm2187_vm0, %v11659_v12, 0.0  ;;  %v2461_v6 = vsel %vm2191_vm1, %v11659_v12, 0.0  ;;  %vm2981_vm2 = vcmp.eq.s32.totalorder %v12713_v0, %v11683_v56 }
 0x60b   : > { %v2713_v25 = vadd.f32 %v2457_v59, %v1903_v51  ;;  %v2717_v17 = vadd.f32 %v2461_v6, %v1907_v60  ;;  %vm2985_vm3 = vcmp.eq.s32.totalorder %v533_v7, %v11683_v56  ;;  %v3251_v61 = vsel %vm2981_vm2, %v11687_v23, 0.0  ;;  %v12785_v59 = vld [vmem:[#allocation2 + $0x218] sm:$0xff] }
 0x60c   : > { %v6836_v13 = vpack.c.bf16 %v6633_v2, %v6629_v30  ;;  %v3255_v18 = vsel %vm2985_vm3, %v11687_v23, 0.0  ;;  %vm3781_vm4 = vcmp.eq.s32.totalorder %v12713_v0, %v11689_v42  ;;  %vm3785_vm5 = vcmp.eq.s32.totalorder %v533_v7, %v11689_v42 }
 0x60d   : > { %v3507_v62 = vadd.f32 %v3251_v61, %v2713_v25  ;;  %v3511_v46 = vadd.f32 %v3255_v18, %v2717_v17  ;;  %v4051_v53 = vsel %vm3781_vm4, %v11691_v11, 0.0  ;;  %v4055_v22 = vsel %vm3785_vm5, %v11691_v11, 0.0  ;;  %v397_v18 = vld [vmem:[#allocation2 + $0x238] sm:$0xff] }
 0x60e   : > { %7081 = vmatpush.bf16.msrb.mxu2 %v6836_v13  ;;  %vm4575_vm6 = vcmp.eq.s32.totalorder %v12713_v0, %v11699_v34  ;;  %vm4579_vm7 = vcmp.eq.s32.totalorder %v533_v7, %v11699_v34  ;;  %vm5373_vm8 = vcmp.eq.s32.totalorder %v12713_v0, %v11715_v1  ;;  %vm5377_vm9 = vcmp.eq.s32.totalorder %v533_v7, %v11715_v1 }
 0x60f   : > { %v4307_v20 = vadd.f32 %v4051_v53, %v3507_v62  ;;  %v4311_v58 = vadd.f32 %v4055_v22, %v3511_v46  ;;  %v4845_v3 = vsel %vm4575_vm6, %v11701_v19, 0.0  ;;  %v4849_v21 = vsel %vm4579_vm7, %v11701_v19, 0.0 }
 0x610   : > { %v5643_v31 = vsel %vm5373_vm8, %v11728_v35, 0.0  ;;  %v5647_v28 = vsel %vm5377_vm9, %v11728_v35, 0.0  ;;  %vm6167_vm10 = vcmp.eq.s32.totalorder %v12713_v0, %v11736_v32  ;;  %vm6171_vm11 = vcmp.eq.s32.totalorder %v533_v7, %v11736_v32 }
 0x611   : > { %v5101_v9 = vadd.f32 %v4845_v3, %v4307_v20  ;;  %v5105_v43 = vadd.f32 %v4849_v21, %v4311_v58  ;;  %v6437_v40 = vsel %vm6167_vm10, %v11740_v27, 0.0  ;;  %v6441_v26 = vsel %vm6171_vm11, %v11740_v27, 0.0 }
 0x612   : > { %vm627_vm12 = vcmp.eq.s32.totalorder %v329_v63, %v11649_v24  ;;  %vm631_vm13 = vcmp.eq.s32.totalorder %v333_v37, %v11649_v24  ;;  %vm1177_vm14 = vcmp.eq.s32.totalorder %v329_v63, %v11653_v57  ;;  %vm1181_vm15 = vcmp.eq.s32.totalorder %v333_v37, %v11653_v57 }
 0x613   : > { %v5899_v54 = vadd.f32 %v5643_v31, %v5101_v9  ;;  %v5903_v5 = vadd.f32 %v5647_v28, %v5105_v43  ;;  %v897_v0 = vsel %vm627_vm12, %v11651_v15, 0.0  ;;  %v901_v7 = vsel %vm631_vm13, %v11651_v15, 0.0 }
 0x614   : > { %v1447_v16 = vsel %vm1177_vm14, %v11655_v48, 0.0  ;;  %v1451_v36 = vsel %vm1181_vm15, %v11655_v48, 0.0  ;;  %vm1987_vm0 = vcmp.eq.s32.totalorder %v329_v63, %v11657_v38  ;;  %vm1991_vm1 = vcmp.eq.s32.totalorder %v333_v37, %v11657_v38 }
 0x615   : > { %v6693_v41 = vadd.f32 %v6437_v40, %v5899_v54  ;;  %v6697_v55 = vadd.f32 %v6441_v26, %v5903_v5  ;;  %v1703_v45 = vadd.f32 %v1447_v16, %v897_v0  ;;  %v1707_v44 = vadd.f32 %v1451_v36, %v901_v7 }
 0x616   : > { %v2257_v10 = vsel %vm1987_vm0, %v11659_v12, 0.0  ;;  %v2261_v52 = vsel %vm1991_vm1, %v11659_v12, 0.0  ;;  %vm2781_vm2 = vcmp.eq.s32.totalorder %v329_v63, %v11683_v56  ;;  %vm2785_vm3 = vcmp.eq.s32.totalorder %v333_v37, %v11683_v56 }
 0x617   : > { %v6868_v14 = vpack.c.bf16 %v6697_v55, %v6693_v41  ;;  %v2513_v49 = vadd.f32 %v2257_v10, %v1703_v45  ;;  %v2517_v50 = vadd.f32 %v2261_v52, %v1707_v44  ;;  %v3051_v47 = vsel %vm2781_vm2, %v11687_v23, 0.0 }
 0x618   : > { %v3055_v8 = vsel %vm2785_vm3, %v11687_v23, 0.0  ;;  %vm3581_vm4 = vcmp.eq.s32.totalorder %v329_v63, %v11689_v42  ;;  %vm3585_vm5 = vcmp.eq.s32.totalorder %v333_v37, %v11689_v42  ;;  %vm4375_vm6 = vcmp.eq.s32.totalorder %v329_v63, %v11699_v34 }
 0x619   : > { %7094 = vmatpush.bf16.msrb.mxu3 %v6868_v14  ;;  %v3307_v30 = vadd.f32 %v3051_v47, %v2513_v49  ;;  %v3311_v51 = vadd.f32 %v3055_v8, %v2517_v50  ;;  %v3851_v60 = vsel %vm3581_vm4, %v11691_v11, 0.0  ;;  %v3855_v2 = vsel %vm3585_vm5, %v11691_v11, 0.0  ;;  %v12830_v49 = vld [vmem:[#allocation2 + $0x418] sm:$0xff] }
 0x61a   : > { %vm4379_vm7 = vcmp.eq.s32.totalorder %v333_v37, %v11699_v34  ;;  %v4645_v6 = vsel %vm4375_vm6, %v11701_v19, 0.0  ;;  %vm5173_vm8 = vcmp.eq.s32.totalorder %v329_v63, %v11715_v1  ;;  %vm5177_vm9 = vcmp.eq.s32.totalorder %v333_v37, %v11715_v1  ;;  %v12832_v50 = vld [vmem:[#allocation2 + $0x438] sm:$0xff] }
 0x61b   : > { %v4107_v25 = vadd.f32 %v3851_v60, %v3307_v30  ;;  %v4111_v17 = vadd.f32 %v3855_v2, %v3311_v51  ;;  %v4649_v61 = vsel %vm4379_vm7, %v11701_v19, 0.0  ;;  %v5443_v13 = vsel %vm5173_vm8, %v11728_v35, 0.0 }
 0x61c   : > { %v5447_v62 = vsel %vm5177_vm9, %v11728_v35, 0.0  ;;  %vm5967_vm10 = vcmp.eq.s32.totalorder %v329_v63, %v11736_v32  ;;  %vm5971_vm11 = vcmp.eq.s32.totalorder %v333_v37, %v11736_v32  ;;  %vm691_vm12 = vcmp.eq.s32.totalorder %v12785_v59, %v11649_v24 }
 0x61d   : > { %v4901_v46 = vadd.f32 %v4645_v6, %v4107_v25  ;;  %v4905_v53 = vadd.f32 %v4649_v61, %v4111_v17  ;;  %v6237_v22 = vsel %vm5967_vm10, %v11740_v27, 0.0  ;;  %v6241_v20 = vsel %vm5971_vm11, %v11740_v27, 0.0 }
 0x61e   : > { %vm695_vm13 = vcmp.eq.s32.totalorder %v397_v18, %v11649_v24  ;;  %v961_v58 = vsel %vm691_vm12, %v11651_v15, 0.0  ;;  %vm1241_vm14 = vcmp.eq.s32.totalorder %v12785_v59, %v11653_v57  ;;  %vm1245_vm15 = vcmp.eq.s32.totalorder %v397_v18, %v11653_v57 }
 0x61f   : > { %v5699_v3 = vadd.f32 %v5443_v13, %v4901_v46  ;;  %v5703_v21 = vadd.f32 %v5447_v62, %v4905_v53  ;;  %v965_v63 = vsel %vm695_vm13, %v11651_v15, 0.0  ;;  %v1511_v37 = vsel %vm1241_vm14, %v11655_v48, 0.0  ;;  %v12856_v13 = vpop.f32.mrf.mxu0 }
 0x620   : > { %v1515_v31 = vsel %vm1245_vm15, %v11655_v48, 0.0  ;;  %v1767_v28 = vadd.f32 %v1511_v37, %v961_v58  ;;  %vm2051_vm0 = vcmp.eq.s32.totalorder %v12785_v59, %v11657_v38  ;;  %vm2055_vm1 = vcmp.eq.s32.totalorder %v397_v18, %v11657_v38 }
 0x621   : > { %v6493_v9 = vadd.f32 %v6237_v22, %v5699_v3  ;;  %v6497_v43 = vadd.f32 %v6241_v20, %v5703_v21  ;;  %v1771_v40 = vadd.f32 %v1515_v31, %v965_v63  ;;  %v2321_v26 = vsel %vm2051_vm0, %v11659_v12, 0.0  ;;  %v12863_v22 = vpop.f32.mrf.mxu2  ;;  %v12865_v20 = vpop.f32.mrf.mxu3 }
 0x622   : > { %v2325_v54 = vsel %vm2055_vm1, %v11659_v12, 0.0  ;;  %v2577_v5 = vadd.f32 %v2321_v26, %v1767_v28  ;;  %vm2845_vm2 = vcmp.eq.s32.totalorder %v12785_v59, %v11683_v56  ;;  %vm2849_vm3 = vcmp.eq.s32.totalorder %v397_v18, %v11683_v56 }
 0x623   : > { %v6768_v0 = vpack.c.bf16 %v6497_v43, %v6493_v9  ;;  %v2581_v7 = vadd.f32 %v2325_v54, %v1771_v40  ;;  %v3115_v16 = vsel %vm2845_vm2, %v11687_v23, 0.0  ;;  %v3119_v36 = vsel %vm2849_vm3, %v11687_v23, 0.0 }
 0x624   : > { %v3371_v41 = vadd.f32 %v3115_v16, %v2577_v5  ;;  %vm3645_vm4 = vcmp.eq.s32.totalorder %v12785_v59, %v11689_v42  ;;  %vm3649_vm5 = vcmp.eq.s32.totalorder %v397_v18, %v11689_v42  ;;  %vm4439_vm6 = vcmp.eq.s32.totalorder %v12785_v59, %v11699_v34 }
 0x625   : > { %7056 = vmatpush.bf16.msrb.mxu0 %v6768_v0  ;;  %v3375_v55 = vadd.f32 %v3119_v36, %v2581_v7  ;;  %v3915_v45 = vsel %vm3645_vm4, %v11691_v11, 0.0  ;;  %v3919_v44 = vsel %vm3649_vm5, %v11691_v11, 0.0  ;;  %vm4443_vm7 = vcmp.eq.s32.totalorder %v397_v18, %v11699_v34  ;;  %v12886_v7 = vld [vmem:[#allocation2 + $0x618] sm:$0xff] }
 0x626   : > { %v4171_v10 = vadd.f32 %v3915_v45, %v3371_v41  ;;  %v4709_v52 = vsel %vm4439_vm6, %v11701_v19, 0.0  ;;  %v4713_v14 = vsel %vm4443_vm7, %v11701_v19, 0.0  ;;  %vm5237_vm8 = vcmp.eq.s32.totalorder %v12785_v59, %v11715_v1  ;;  %v12893_v41 = vld [vmem:[#allocation2 + $0x638] sm:$0xff] }
 0x627   : > { %v4175_v47 = vadd.f32 %v3919_v44, %v3375_v55  ;;  %vm5241_vm9 = vcmp.eq.s32.totalorder %v397_v18, %v11715_v1  ;;  %v5507_v8 = vsel %vm5237_vm8, %v11728_v35, 0.0  ;;  %vm6031_vm10 = vcmp.eq.s32.totalorder %v12785_v59, %v11736_v32 }
 0x628   : > { %v4965_v30 = vadd.f32 %v4709_v52, %v4171_v10  ;;  %v5511_v51 = vsel %vm5241_vm9, %v11728_v35, 0.0  ;;  %vm6035_vm11 = vcmp.eq.s32.totalorder %v397_v18, %v11736_v32  ;;  %v6301_v60 = vsel %vm6031_vm10, %v11740_v27, 0.0  ;;  %7057 = vmatmul.bf16.vlgmr.msrb.gmra.mxu0 %v9789_v39  ;;  %v12858_v18 = vpop.f32.mrf.mxu1  ;;  %v6904_v10 = vpop.f32.mrf.mxu0 }
 0x629   : > { %v4969_v2 = vadd.f32 %v4713_v14, %v4175_v47  ;;  %v6305_v6 = vsel %vm6035_vm11, %v11740_v27, 0.0  ;;  %vm755_vm12 = vcmp.eq.s32.totalorder %v12830_v49, %v11649_v24  ;;  %vm759_vm13 = vcmp.eq.s32.totalorder %v12832_v50, %v11649_v24 }
 0x62a   : > { %v5763_v25 = vadd.f32 %v5507_v8, %v4965_v30  ;;  %v1025_v59 = vsel %vm755_vm12, %v11651_v15, 0.0  ;;  %v1029_v17 = vsel %vm759_vm13, %v11651_v15, 0.0  ;;  %vm1305_vm14 = vcmp.eq.s32.totalorder %v12830_v49, %v11653_v57  ;;  %v6930_v8 = vpop.f32.mrf.mxu2  ;;  %v6943_v30 = vpop.f32.mrf.mxu3 }
 0x62b   : > { %v5767_v61 = vadd.f32 %v5511_v51, %v4969_v2  ;;  %vm1309_vm15 = vcmp.eq.s32.totalorder %v12832_v50, %v11653_v57  ;;  %v1575_v39 = vsel %vm1305_vm14, %v11655_v48, 0.0  ;;  %vm2115_vm0 = vcmp.eq.s32.totalorder %v12830_v49, %v11657_v38 }
 0x62c   : > { %v6557_v62 = vadd.f32 %v6301_v60, %v5763_v25  ;;  %v1579_v46 = vsel %vm1309_vm15, %v11655_v48, 0.0  ;;  %v1831_v53 = vadd.f32 %v1575_v39, %v1025_v59  ;;  %vm2119_vm1 = vcmp.eq.s32.totalorder %v12832_v50, %v11657_v38 }
 0x62d   : > { %v6561_v58 = vadd.f32 %v6305_v6, %v5767_v61  ;;  %v1835_v3 = vadd.f32 %v1579_v46, %v1029_v17  ;;  %v2385_v21 = vsel %vm2115_vm0, %v11659_v12, 0.0  ;;  %v2389_v63 = vsel %vm2119_vm1, %v11659_v12, 0.0 }
 0x62e   : > { %v2641_v37 = vadd.f32 %v2385_v21, %v1831_v53  ;;  %vm2909_vm2 = vcmp.eq.s32.totalorder %v12830_v49, %v11683_v56  ;;  %vm2913_vm3 = vcmp.eq.s32.totalorder %v12832_v50, %v11683_v56  ;;  %vm3709_vm4 = vcmp.eq.s32.totalorder %v12830_v49, %v11689_v42 }
 0x62f   : > { %v6800_v31 = vpack.c.bf16 %v6561_v58, %v6557_v62  ;;  %v2645_v28 = vadd.f32 %v2389_v63, %v1835_v3  ;;  %v3179_v9 = vsel %vm2909_vm2, %v11687_v23, 0.0  ;;  %v3183_v43 = vsel %vm2913_vm3, %v11687_v23, 0.0 }
 0x630   : > { %v3435_v40 = vadd.f32 %v3179_v9, %v2641_v37  ;;  %vm3713_vm5 = vcmp.eq.s32.totalorder %v12832_v50, %v11689_v42  ;;  %v3979_v26 = vsel %vm3709_vm4, %v11691_v11, 0.0  ;;  %vm4503_vm6 = vcmp.eq.s32.totalorder %v12830_v49, %v11699_v34  ;;  %v6917_v52 = vpop.f32.mrf.mxu1 }
 0x631   : > { %7069 = vmatpush.bf16.msrb.mxu1 %v6800_v31  ;;  %v3439_v54 = vadd.f32 %v3183_v43, %v2645_v28  ;;  %v3983_v5 = vsel %vm3713_vm5, %v11691_v11, 0.0  ;;  %vm4507_vm7 = vcmp.eq.s32.totalorder %v12832_v50, %v11699_v34  ;;  %v4773_v0 = vsel %vm4503_vm6, %v11701_v19, 0.0 }
 0x632   : > { %v4235_v16 = vadd.f32 %v3979_v26, %v3435_v40  ;;  %v4777_v36 = vsel %vm4507_vm7, %v11701_v19, 0.0  ;;  %vm5301_vm8 = vcmp.eq.s32.totalorder %v12830_v49, %v11715_v1  ;;  %vm5305_vm9 = vcmp.eq.s32.totalorder %v12832_v50, %v11715_v1  ;;  %v6993_v37 = vpop.f32.mrf.mxu3 }
 0x633   : > { %v4239_v55 = vadd.f32 %v3983_v5, %v3439_v54  ;;  %v5571_v45 = vsel %vm5301_vm8, %v11728_v35, 0.0  ;;  %v5575_v44 = vsel %vm5305_vm9, %v11728_v35, 0.0  ;;  %vm6095_vm10 = vcmp.eq.s32.totalorder %v12830_v49, %v11736_v32 }
 0x634   : > { %v5029_v14 = vadd.f32 %v4773_v0, %v4235_v16  ;;  %vm6099_vm11 = vcmp.eq.s32.totalorder %v12832_v50, %v11736_v32  ;;  %v6365_v47 = vsel %vm6095_vm10, %v11740_v27, 0.0  ;;  %vm819_vm12 = vcmp.eq.s32.totalorder %v12886_v7, %v11649_v24  ;;  %7070 = vmatmul.bf16.vlgmr.msrb.gmra.mxu1 %v9791_v33 }
 0x635   : > { %v5033_v51 = vadd.f32 %v4777_v36, %v4239_v55  ;;  %v6369_v60 = vsel %vm6099_vm11, %v11740_v27, 0.0  ;;  %vm823_vm13 = vcmp.eq.s32.totalorder %v12893_v41, %v11649_v24  ;;  %v1089_v49 = vsel %vm819_vm12, %v11651_v15, 0.0 }
 0x636   : > { %v5827_v2 = vadd.f32 %v5571_v45, %v5029_v14  ;;  %v1093_v50 = vsel %vm823_vm13, %v11651_v15, 0.0  ;;  %vm1369_vm14 = vcmp.eq.s32.totalorder %v12886_v7, %v11653_v57  ;;  %vm1373_vm15 = vcmp.eq.s32.totalorder %v12893_v41, %v11653_v57 }
 0x637   : > { %v5831_v33 = vadd.f32 %v5575_v44, %v5033_v51  ;;  %v1639_v6 = vsel %vm1369_vm14, %v11655_v48, 0.0  ;;  %v1643_v25 = vsel %vm1373_vm15, %v11655_v48, 0.0  ;;  %vm2179_vm0 = vcmp.eq.s32.totalorder %v12886_v7, %v11657_v38 }
 0x638   : > { %v6621_v24 = vadd.f32 %v6365_v47, %v5827_v2  ;;  %v1895_v59 = vadd.f32 %v1639_v6, %v1089_v49  ;;  %v1899_v17 = vadd.f32 %v1643_v25, %v1093_v50  ;;  %vm2183_vm1 = vcmp.eq.s32.totalorder %v12893_v41, %v11657_v38  ;;  %v6954_v38 = vpop.f32.mrf.mxu0 }
 0x639   : > { %v6625_v15 = vadd.f32 %v6369_v60, %v5831_v33  ;;  %v2449_v61 = vsel %vm2179_vm0, %v11659_v12, 0.0  ;;  %v2453_v39 = vsel %vm2183_vm1, %v11659_v12, 0.0  ;;  %vm2973_vm2 = vcmp.eq.s32.totalorder %v12886_v7, %v11683_v56  ;;  %v6967_v12 = vpop.f32.mrf.mxu1 }
 0x63a   : > { %v2705_v57 = vadd.f32 %v2449_v61, %v1895_v59  ;;  %v2709_v62 = vadd.f32 %v2453_v39, %v1899_v17  ;;  %vm2977_vm3 = vcmp.eq.s32.totalorder %v12893_v41, %v11683_v56  ;;  %v3243_v48 = vsel %vm2973_vm2, %v11687_v23, 0.0  ;;  %v6980_v56 = vpop.f32.mrf.mxu2 }
 0x63b   : > { %v6832_v46 = vpack.c.bf16 %v6625_v15, %v6621_v24  ;;  %v3247_v53 = vsel %vm2977_vm3, %v11687_v23, 0.0  ;;  %vm3773_vm4 = vcmp.eq.s32.totalorder %v12886_v7, %v11689_v42  ;;  %vm3777_vm5 = vcmp.eq.s32.totalorder %v12893_v41, %v11689_v42 }
 0x63c   : > { %v3499_v58 = vadd.f32 %v3243_v48, %v2705_v57  ;;  %v3503_v3 = vadd.f32 %v3247_v53, %v2709_v62  ;;  %v4043_v21 = vsel %vm3773_vm4, %v11691_v11, 0.0  ;;  %v4047_v63 = vsel %vm3777_vm5, %v11691_v11, 0.0 }
 0x63d   : > { %7082 = vmatpush.bf16.msrb.mxu2 %v6832_v46  ;;  %vm4567_vm6 = vcmp.eq.s32.totalorder %v12886_v7, %v11699_v34  ;;  %vm4571_vm7 = vcmp.eq.s32.totalorder %v12893_v41, %v11699_v34  ;;  %vm5365_vm8 = vcmp.eq.s32.totalorder %v12886_v7, %v11715_v1  ;;  %vm5369_vm9 = vcmp.eq.s32.totalorder %v12893_v41, %v11715_v1 }
 0x63e   : > { %v4299_v23 = vadd.f32 %v4043_v21, %v3499_v58  ;;  %v4303_v42 = vadd.f32 %v4047_v63, %v3503_v3  ;;  %v4837_v11 = vsel %vm4567_vm6, %v11701_v19, 0.0  ;;  %v4841_v31 = vsel %vm4571_vm7, %v11701_v19, 0.0 }
 0x63f   : > { %v5635_v28 = vsel %vm5365_vm8, %v11728_v35, 0.0  ;;  %v5639_v9 = vsel %vm5369_vm9, %v11728_v35, 0.0  ;;  %vm6159_vm10 = vcmp.eq.s32.totalorder %v12886_v7, %v11736_v32  ;;  %vm6163_vm11 = vcmp.eq.s32.totalorder %v12893_v41, %v11736_v32  ;;  %v6995_v41 = vpop.f32.mrf.mxu3 }
 0x640   : > { %v5093_v34 = vadd.f32 %v4837_v11, %v4299_v23  ;;  %v5097_v1 = vadd.f32 %v4841_v31, %v4303_v42  ;;  %7083 = vmatmul.bf16.vlgmr.msrb.gmra.mxu2 %v9619_v4  ;;  %v6429_v43 = vsel %vm6159_vm10, %v11740_v27, 0.0  ;;  %v6433_v40 = vsel %vm6163_vm11, %v11740_v27, 0.0  ;;  %v6956_v32 = vpop.f32.mrf.mxu0 }
 0x641   : > { %v6916_v19 = vadd.f32 %v12858_v18, %v12856_v13  ;;  %v6968_v26 = vadd.f32 %v6967_v12, %v6954_v38  ;;  %v6969_v7 = vpop.f32.mrf.mxu1  ;;  %vm7107_vm12 = vcmask 1043456  }
 0x642   : > { %v5891_v35 = vadd.f32 %v5635_v28, %v5093_v34  ;;  %v5895_v54 = vadd.f32 %v5639_v9, %v5097_v1  ;;  %v6982_v4 = vpop.f32.mrf.mxu2 }
 0x643   : > { %v6929_v5 = vadd.f32 %v12863_v22, %v6916_v19  ;;  %v6981_v0 = vadd.f32 %v6980_v56, %v6968_v26 }
 0x644   : > { %v6685_v16 = vadd.f32 %v6429_v43, %v5891_v35  ;;  %v6689_v36 = vadd.f32 %v6433_v40, %v5895_v54 }
 0x645   : > { %v6994_v55 = vadd.f32 %v6993_v37, %v6981_v0  ;;  %v6942_v13 = vadd.f32 %v12865_v20, %v6929_v5 }
 0x646   : > { %v6864_v27 = vpack.c.bf16 %v6689_v36, %v6685_v16 }
 0x647   : > { %v7105_v18 = vrot.slane %v6994_v55, 4  ;;  %v7045_v14 = vpop.f32.mrf.mxu3 }
 0x648   : > { %7095 = vmatpush.bf16.msrb.mxu3 %v6864_v27  ;;  %v7006_v22 = vpop.f32.mrf.mxu0 }
 0x649   : > { %v7108_v45 = vsel %vm7107_vm12, %v6942_v13, %v7105_v18  ;;  %v7019_v44 = vpop.f32.mrf.mxu1 }
 0x64a   : > { %7112 = vst [vmem:[%s12961_s8] sm:$0xff] %v7108_v45  ;;  %v7020_v10 = vadd.f32 %v7019_v44, %v7006_v22  ;;  %v7032_v52 = vpop.f32.mrf.mxu2 }
 0x64b   : > { %7096 = vmatmul.bf16.vlgmr.msrb.gmra.mxu3 %v9787_v29 }
 0x64c   : > { %v7033_v47 = vadd.f32 %v7032_v52, %v7020_v10 }
 0x64e   : > { %v7046_v8 = vadd.f32 %v7045_v14, %v7033_v47 }
 0x64f   : > { %v7047_v60 = vpop.f32.mrf.mxu3 }
 0x650   : > { %v7008_v30 = vpop.f32.mrf.mxu0 }
 0x651   : > { %v7021_v20 = vpop.f32.mrf.mxu1 }
 0x652   : > { %v7034_v51 = vpop.f32.mrf.mxu2 }
 0x6a5   : > { %v7058_v49 = vpop.f32.mrf.mxu0 }
 0x6ad   : > { %v7060_v2 = vpop.f32.mrf.mxu0 }
 0x6b1   : > { %v7071_v50 = vpop.f32.mrf.mxu1 }
 0x6b2   : > { %v7072_v6 = vadd.f32 %v7071_v50, %v7058_v49 }
 0x6b9   : > { %v7073_v33 = vpop.f32.mrf.mxu1 }
 0x6c3   : > { %v7084_v29 = vpop.f32.mrf.mxu2 }
 0x6c4   : > { %v7085_v25 = vadd.f32 %v7084_v29, %v7072_v6 }
 0x6cb   : > { %v7086_v24 = vpop.f32.mrf.mxu2 }
 0x6ce   : > { %v7097_v59 = vpop.f32.mrf.mxu3 }
 0x6cf   : > { %v7098_v17 = vadd.f32 %v7097_v59, %v7085_v25 }
 0x6d1   : > { %v7106_v15 = vrot.slane %v7098_v17, 4 }
 0x6d3   : > { %v7109_v61 = vsel %vm7107_vm12, %v7046_v8, %v7106_v15 }
 0x6d4   : > { %7113 = vst [vmem:[%s12961_s8 + $0x8] sm:$0xff] %v7109_v61 }
 0x6d5   : > { %7403 = shalt.err (!%p7400_p9)
}
 0x6d6   : > { %7281 = dma.vmem_to_hbm [thread:$0]  (%p7529_p4), %s7131_s13, 256, %s7133_s14, %s7115_s21   ;;  %v7099_v39 = vpop.f32.mrf.mxu3 }
 0x6d7 PF: > { %p7293_p10 = scmp.ge.s32.totalorder %s7458_s20, 2  ;;  %s7144_s6 = sand.u32 1, %s7438_s15  }
 0x6d8   : > { %s7145_s7 = scalar_lea.sflag [#allocation4], %s7144_s6 }
 0x6d9   : > { %p7288_p11 = pnand %p7293_p10, %p7536_p8 }
 0x6db   : > { %p7289_p12 = pneg %p7288_p11 }
 0x6dd   : > { %7433 = dma.done.wait (%p7289_p12), %s7145_s7, 256  }
 0x6de   : > { %7435 = vsyncadd (%p7289_p12), %s7145_s7, 4294967040  ;;  %s18_s20 = sadd.s32 1, %s7458_s20   ;;  %s13013_s15 = smov %s7442_s16 }
 0x6df   : > { %p15_p13 = scmp.ge.s32.totalorder %s18_s20, 4   ;;  %s13014_s16 = smov %s7446_s17 }
 0x6e0   : > { %s13015_s17 = smov %s7542_s28  ;;  %s13016_s18 = smov %s7454_s19 }
 0x6e1   : > { %s13017_s19 = smov %s13019_s23  ;;  %17 = sbr.rel (!%p15_p13) target bundleno = 5 (0x5), region = 83 }
 0x6e6   :  { %7151 = vsyncpa [#allocation3], 1 }
 0x6e7   :  { %7153 = vsyncpa [#allocation3 + $0x1], 1 }
 0x6e8   :  { %7154 = vsyncpa [#allocation4], 1 }
 0x6e9   :  { %7156 = vsyncpa [#allocation4 + $0x1], 1 }

</bundles_post_ra>
